<compile_context>
chip_gen: v7x
topology: tpu7x:2x2x1
jax: 0.10.0
libtpu: 0.0.40
codegen_flags: <defaults>
</compile_context>

<pallas_src>
import jax
import jax.numpy as jnp
from jax.experimental import pallas as pl
from jax.experimental.pallas import tpu as pltpu

# ----------------------------- module config (from the PyTorch module) ------------------------
C_IN, C_OUT = 1, 255
KH, KW = 9, 9
STRIDE = (1, 4)
PADDING = (9, 2)
DILATION = (1, 1)

C_PAD = 256          # lane-dense channel dimension inside the kernel
TM = 608             # row tile (multiple of 8 and 16); grid = 2 tiles -> Mp = 1216
N_TILES = 2


# ----------------------------- Pallas kernel (matmul + bias + gelu-ish + softmax) -------------
def _fused_kernel(a_ref, b_ref, bias_ref, o_ref):
    # a_ref: (TM, K) bf16 im2col patches, b_ref: (K, C_PAD) bf16 weights, bias_ref: (1, C_PAD) f32
    y = jnp.dot(a_ref[...], b_ref[...], preferred_element_type=jnp.float32)
    y = y + bias_ref[...]                      # conv-transpose output tile (TM, C_PAD), f32

    v2 = y * 0.5
    v4 = (y * y * y) * 0.044715
    v6 = (y + v4) * 0.7978845608028654
    v9 = v2 * (jnp.tanh(v6) + 1.0)             # tanh-GELU style gating

    # mask the padded dummy channel (col >= C_OUT) to -inf before the softmax max/sum
    col = jax.lax.broadcasted_iota(jnp.int32, v9.shape, 1)
    v9 = jnp.where(col < C_OUT, v9, -jnp.inf)

    # softmax over the channel axis (= last axis in this layout)
    m = jnp.max(v9, axis=-1, keepdims=True)
    e = jnp.exp(v9 - m)
    s = jnp.sum(e, axis=-1, keepdims=True)
    o_ref[...] = e * pl.reciprocal(s, approx=True)


def _fused_matmul_gelu_softmax(patches, bmat, bias):
    M, K = patches.shape                         # 1188, 81
    C = bmat.shape[1]                            # 255
    Mp = TM * N_TILES                            # 1216

    patches_p = jnp.pad(patches, ((0, Mp - M), (0, 0))).astype(jnp.bfloat16)
    bmat_p = jnp.pad(bmat, ((0, 0), (0, C_PAD - C))).astype(jnp.bfloat16)
    bias_p = jnp.pad(bias, (0, C_PAD - C)).reshape(1, C_PAD).astype(jnp.float32)

    cost = pl.CostEstimate(
        flops=2 * Mp * K * C_PAD,
        transcendentals=2 * Mp * C_PAD,          # tanh + exp per element
        bytes_accessed=Mp * K * 2 + K * C_PAD * 2 + C_PAD * 4 + Mp * C_PAD * 4,
    )

    out = pl.pallas_call(
        _fused_kernel,
        out_shape=jax.ShapeDtypeStruct((Mp, C_PAD), jnp.float32),
        grid_spec=pltpu.PrefetchScalarGridSpec(
            num_scalar_prefetch=0,
            grid=(N_TILES,),
            in_specs=[
                pl.BlockSpec((TM, K), lambda i: (i, 0)),
                pl.BlockSpec((K, C_PAD), lambda i: (0, 0)),
                pl.BlockSpec((1, C_PAD), lambda i: (0, 0)),
            ],
            out_specs=pl.BlockSpec((TM, C_PAD), lambda i: (i, 0)),
        ),
        compiler_params=pltpu.CompilerParams(dimension_semantics=("parallel",)),
        cost_estimate=cost,
    )(patches_p, bmat_p, bias_p)
    return out[:M, :C]


# ----------------------------- glue: conv-transpose -> im2col matmul ---------------------------
def _pad_or_crop(x, axis, amt):
    if amt >= 0:
        cfg = [(0, 0)] * x.ndim
        cfg[axis] = (amt, amt)
        return jnp.pad(x, cfg)
    return jax.lax.slice_in_dim(x, -amt, x.shape[axis] + amt, axis=axis)


def _build_patches(x):
    # x: (N, C_IN, H, W) -> im2col patches for the equivalent stride-1 cross-correlation.
    N, Cin, H, W = x.shape
    sh, sw = STRIDE
    ph, pw = PADDING
    dh, dw = DILATION

    # zero-insert (lhs dilation by stride)
    Hz, Wz = (H - 1) * sh + 1, (W - 1) * sw + 1
    xz = jnp.zeros((N, Cin, Hz, Wz), x.dtype).at[:, :, ::sh, ::sw].set(x)

    # effective padding = dilation*(k-1) - padding   (negative => crop)
    eph = dh * (KH - 1) - ph
    epw = dw * (KW - 1) - pw
    xp = _pad_or_crop(xz, 2, eph)
    xp = _pad_or_crop(xp, 3, epw)

    H_out = xp.shape[2] - dh * (KH - 1)
    W_out = xp.shape[3] - dw * (KW - 1)

    cols = []
    for i in range(KH):
        for j in range(KW):
            cols.append(xp[:, :, i * dh:i * dh + H_out, j * dw:j * dw + W_out])
    p = jnp.stack(cols, axis=2)                      # (N, Cin, KH*KW, H_out, W_out)
    p = jnp.transpose(p, (0, 3, 4, 1, 2))            # (N, H_out, W_out, Cin, KH*KW)
    patches = p.reshape(N * H_out * W_out, Cin * KH * KW)
    return patches, (N, H_out, W_out)


def _weight_matrix(w):
    # w: (C_IN, C_OUT, KH, KW), flip spatially (conv-transpose == conv with flipped kernel)
    wf = w[:, :, ::-1, ::-1]
    return jnp.transpose(wf, (0, 2, 3, 1)).reshape(C_IN * KH * KW, C_OUT)


@jax.jit
def model_forward(x, w, b):
    patches, (N, H_out, W_out) = _build_patches(x)
    bmat = _weight_matrix(w)
    out2d = _fused_matmul_gelu_softmax(patches, bmat, b)
    out = out2d.reshape(N, H_out, W_out, C_OUT)
    # NOTE: final NHWC->NCHW transpose kept so the result matches the PyTorch module exactly;
    # a consumer that accepts NHWC could skip it and save an HBM round trip.
    return jnp.transpose(out, (0, 3, 1, 2))


# ----------------------------- pure-JAX reference (for sanity check) ---------------------------
def _reference(x, w, b):
    wf = w[:, :, ::-1, ::-1]
    rhs = jnp.transpose(wf, (1, 0, 2, 3))            # (C_OUT, C_IN, KH, KW)
    pad_h = DILATION[0] * (KH - 1) - PADDING[0]
    pad_w = DILATION[1] * (KW - 1) - PADDING[1]
    ph_eff, pw_eff = max(pad_h, 0), max(pad_w, 0)
    y = jax.lax.conv_general_dilated(
        x, rhs, window_strides=(1, 1),
        padding=((ph_eff, ph_eff), (pw_eff, pw_eff)),
        lhs_dilation=STRIDE, rhs_dilation=DILATION,
        dimension_numbers=("NCHW", "OIHW", "NCHW"))
    ch, cw = ph_eff - pad_h, pw_eff - pad_w
    y = y[:, :, ch:y.shape[2] - ch if ch else y.shape[2],
             cw:y.shape[3] - cw if cw else y.shape[3]]
    y = y + b[None, :, None, None]
    v9 = (y * 0.5) * (jnp.tanh((y + (y * y * y) * 0.044715) * 0.7978845608028654) + 1.0)
    return jax.nn.softmax(v9, axis=1)


# ----------------------------- main ------------------------------------------------------------
if __name__ == "__main__":
    key = jax.random.PRNGKey(0)
    kx, kw_, kb = jax.random.split(key, 3)

    # input consistent with the module: x1 = torch.randn(3, 1, 22, 8)
    x = jax.random.normal(kx, (3, 1, 22, 8), dtype=jnp.float32)

    # deterministic parameter init (PyTorch-style uniform(-1/sqrt(fan_in), +1/sqrt(fan_in)))
    fan_in = C_IN * KH * KW
    bound = 1.0 / (fan_in ** 0.5)
    w = jax.random.uniform(kw_, (C_IN, C_OUT, KH, KW), jnp.float32, -bound, bound)
    b = jax.random.uniform(kb, (C_OUT,), jnp.float32, -bound, bound)

    out = model_forward(x, w, b)
    out = jax.block_until_ready(out)
    assert out.shape == (3, 255, 12, 33), out.shape

    ref = jax.block_until_ready(_reference(x, w, b))
    err = float(jnp.max(jnp.abs(out - ref)))
    assert err < 2e-3, f"max abs error vs reference too large: {err}"

    print("KERNEL_OK")
</pallas_src>

<mosaic_0001>
module attributes {stable_mosaic.version = 11 : i64} {
  func.func @_fused_kernel(%arg0: i32, %arg1: memref<608x81xbf16, #tpu.memory_space<vmem>>, %arg2: memref<81x256xbf16, #tpu.memory_space<vmem>>, %arg3: memref<1x256xf32, #tpu.memory_space<vmem>>, %arg4: memref<608x256xf32, #tpu.memory_space<vmem>>) attributes {dimension_semantics = [#tpu.dimension_semantics<parallel>], iteration_bounds = array<i64: 2>, scalar_prefetch = 0 : i64, scratch_operands = 0 : i64, tpu.core_type = #tpu.core_type<tc>, window_params = [{transform_indices = @transform_0, window_bounds = array<i64: 608, 81>}, {pipeline_mode = #tpu.pipeline_mode<synchronous>, transform_indices = @transform_1, window_bounds = array<i64: 81, 256>}, {pipeline_mode = #tpu.pipeline_mode<synchronous>, transform_indices = @transform_2, window_bounds = array<i64: 1, 256>}, {transform_indices = @transform_3, window_bounds = array<i64: 608, 256>}]} {
    %c0 = arith.constant 0 : index
    %c0_0 = arith.constant 0 : index
    %0 = vector.load %arg1[%c0, %c0_0] : memref<608x81xbf16, #tpu.memory_space<vmem>>, vector<608x81xbf16>
    %c0_1 = arith.constant 0 : index
    %c0_2 = arith.constant 0 : index
    %1 = vector.load %arg2[%c0_1, %c0_2] : memref<81x256xbf16, #tpu.memory_space<vmem>>, vector<81x256xbf16>
    %cst = arith.constant dense<0.000000e+00> : vector<608x256xf32>
    %2 = tpu.matmul %0, %1, %cst {dimension_numbers = #tpu.dot_dimension_numbers<[1], [0], [0], [1], [0, 0, 1, 1], [], []>} : vector<608x81xbf16>, vector<81x256xbf16>, vector<608x256xf32> -> vector<608x256xf32>
    %c0_3 = arith.constant 0 : index
    %c0_4 = arith.constant 0 : index
    %3 = vector.load %arg3[%c0_3, %c0_4] : memref<1x256xf32, #tpu.memory_space<vmem>>, vector<1x256xf32>
    %4 = vector.broadcast %3 : vector<1x256xf32> to vector<608x256xf32>
    %5 = arith.addf %2, %4 : vector<608x256xf32>
    %cst_5 = arith.constant 5.000000e-01 : f32
    %6 = vector.broadcast %cst_5 : f32 to vector<608x256xf32>
    %7 = arith.mulf %5, %6 : vector<608x256xf32>
    %8 = arith.mulf %5, %5 : vector<608x256xf32>
    %9 = arith.mulf %8, %5 : vector<608x256xf32>
    %cst_6 = arith.constant 4.471500e-02 : f32
    %10 = vector.broadcast %cst_6 : f32 to vector<608x256xf32>
    %11 = arith.mulf %9, %10 : vector<608x256xf32>
    %12 = arith.addf %5, %11 : vector<608x256xf32>
    %cst_7 = arith.constant 0.797884583 : f32
    %13 = vector.broadcast %cst_7 : f32 to vector<608x256xf32>
    %14 = arith.mulf %12, %13 : vector<608x256xf32>
    %15 = math.tanh %14 : vector<608x256xf32>
    %cst_8 = arith.constant 1.000000e+00 : f32
    %16 = vector.broadcast %cst_8 : f32 to vector<608x256xf32>
    %17 = arith.addf %15, %16 : vector<608x256xf32>
    %18 = arith.mulf %7, %17 : vector<608x256xf32>
    %19 = tpu.iota {dimensions = array<i32: 1>} : vector<608x256xi32>
    %c255_i32 = arith.constant 255 : i32
    %20 = vector.broadcast %c255_i32 : i32 to vector<608x256xi32>
    %21 = arith.cmpi slt, %19, %20 : vector<608x256xi32>
    %cst_9 = arith.constant 0xFF800000 : f32
    %22 = vector.broadcast %cst_9 : f32 to vector<608x256xf32>
    %23 = arith.select %21, %18, %22 : vector<608x256xi1>, vector<608x256xf32>
    %cst_10 = arith.constant dense<0xFF800000> : vector<608xf32>
    %24 = vector.multi_reduction <maximumf>, %23, %cst_10 [1] : vector<608x256xf32> to vector<608xf32>
    %25 = vector.shape_cast %24 : vector<608xf32> to vector<608x1xf32>
    %26 = vector.broadcast %25 : vector<608x1xf32> to vector<608x256xf32>
    %27 = arith.subf %23, %26 : vector<608x256xf32>
    %28 = math.exp %27 : vector<608x256xf32>
    %cst_11 = arith.constant dense<0.000000e+00> : vector<608xf32>
    %29 = vector.multi_reduction <add>, %28, %cst_11 [1] : vector<608x256xf32> to vector<608xf32>
    %30 = vector.shape_cast %29 : vector<608xf32> to vector<608x1xf32>
    %31 = tpu.reciprocal %30 {approx = true} : vector<608x1xf32> -> vector<608x1xf32>
    %32 = vector.broadcast %31 : vector<608x1xf32> to vector<608x256xf32>
    %33 = arith.mulf %28, %32 : vector<608x256xf32>
    %c0_12 = arith.constant 0 : index
    %c0_13 = arith.constant 0 : index
    %34 = vector.load %arg4[%c0_12, %c0_13] : memref<608x256xf32, #tpu.memory_space<vmem>>, vector<608x256xf32>
    tpu.vector_store %arg4[%c0_12, %c0_13], %33 {strides = array<i32>} : memref<608x256xf32, #tpu.memory_space<vmem>>, vector<608x256xf32>,
    return
  }
  func.func @transform_0(%arg0: i32) -> (i32, i32) {
    %c0_i32 = arith.constant 0 : i32
    %c0_i32_0 = arith.constant 0 : i32
    return %arg0, %c0_i32 : i32, i32
  }
  func.func @transform_1(%arg0: i32) -> (i32, i32) {
    %c0_i32 = arith.constant 0 : i32
    %c0_i32_0 = arith.constant 0 : i32
    %c0_i32_1 = arith.constant 0 : i32
    return %c0_i32, %c0_i32_0 : i32, i32
  }
  func.func @transform_2(%arg0: i32) -> (i32, i32) {
    %c0_i32 = arith.constant 0 : i32
    %c0_i32_0 = arith.constant 0 : i32
    %c0_i32_1 = arith.constant 0 : i32
    return %c0_i32, %c0_i32_0 : i32, i32
  }
  func.func @transform_3(%arg0: i32) -> (i32, i32) {
    %c0_i32 = arith.constant 0 : i32
    %c0_i32_0 = arith.constant 0 : i32
    return %arg0, %c0_i32 : i32, i32
  }
}

</mosaic_0001>

<bundles_post_ra>
// kernel: model_forward.1
= control target key start
LH: loop header
LB: loop body
LE: loop exit
PB: predicated region body
PF: predicated region fallthrough
CT: control target
= control target key end

     0   :  { %s4897_s12 = smov 0   ;;  %s8929_s0 = inlined_call_operand.vmem [shape: bf16[1216,81], index: 0, kind: input, shape index: {}]   ;;  %s8930_s1 = inlined_call_operand.vmem [shape: bf16[81,256], index: 1, kind: input, shape index: {}]   ;;  %s8931_s2 = inlined_call_operand.vmem [shape: f32[1,256], index: 2, kind: input, shape index: {}]   ;;  %s8932_s3 = inlined_call_operand.vmem [shape: f32[1216,256], index: 3, kind: output, shape index: {}]  }
   0x1 LB: > { %s3933_s13 = sadd.s32 4294967295, %s4874_s12   ;;  %p3937_p0 = scmp.ge.s32.totalorder %s4874_s12, 1  ;;  %s4874_s12 = sphi %s4897_s12, %s13_s12  }
   0x2   : > { %p138_p1 = scmp.lt.s32.totalorder %s4874_s12, 3 }
   0x4   : > { %p139_p2 = pnand %p3937_p0, %p138_p1 }
   0x6   : > { %142 = sbr.rel (%p139_p2) target bundleno = 1010 (0x3f2), region = 32 }
   0xd   : > { %v4053_v0 = vld [vmem:[%s8930_s1 + $0x4] ss:$8 sps:$4 sm:$0xff]   ;;  %v4055_v1 = vld [vmem:[%s8930_s1] ss:$8 sps:$4 sm:$0xff]   ;;  %v4876_v2 = vmov 0   ;;  %s163_s18 = smul.u32 76, %s3933_s13  ;;  %v266_v55 = vlaneseq }
   0xe   : > { %677 = vmatprep.mubr.bf16.mxu0 %v4876_v2  ;;  %867 = vmatprep.mubr.bf16.mxu1 %v4876_v2  ;;  %v4056_v3 = vld [vmem:[%s8930_s1 + $0x14] ss:$8 sps:$4 sm:$0xff]   ;;  %v4058_v4 = vld [vmem:[%s8930_s1 + $0x10] ss:$8 sps:$4 sm:$0xff]   ;;  %v4059_v5 = vld [vmem:[%s8930_s1 + $0x24] ss:$8 sps:$4 sm:$0xff]  }
   0xf   : > { %645 = vmatprep.subr.bf16.mxu0 %v4053_v0  ;;  %4032 = vmatprep.subr.bf16.mxu1 %v4053_v0  ;;  %p164_p3 = scmp.lt.s32.totalorder %s163_s18, 151  ;;  %v4061_v6 = vld [vmem:[%s8930_s1 + $0x20] ss:$8 sps:$4 sm:$0xff]   ;;  %v4062_v7 = vld [vmem:[%s8930_s1 + $0x34] ss:$8 sps:$4 sm:$0xff]   ;;  %vm636_vm0 = vcmask 1040384  }
  0x10   : > { %646 = vmatpush1.bf16.msra.mxu0 %v4055_v1  ;;  %4038 = vmatpush1.bf16.msra.mxu1 %v4055_v1  ;;  %v263_v8 = vld [vmem:[%s8930_s1 + $0x50] sm:$0x11]  ;;  %v4065_v10 = vld [vmem:[%s8930_s1 + $0x44] ss:$8 sps:$4 sm:$0xff]   ;;  %v638_v12 = vsel %vm636_vm0, 65535, %v4876_v2  ;;  %vm521_vm1 = vcmask 662528  }
  0x11   : > { %647 = vmatprep.subr.bf16.mxu0 %v4056_v3  ;;  %4033 = vmatprep.subr.bf16.mxu1 %v4056_v3  ;;  %s10328_s18 = smov (!%p164_p3, %s163_s18), 151  ;;  %v4064_v9 = vld [vmem:[%s8930_s1 + $0x30] ss:$8 sps:$4 sm:$0xff]   ;;  %v3990_v11 = vcombine.high %v263_v8, %v263_v8  ;;  %v4067_v13 = vld [vmem:[%s8930_s1 + $0x40] ss:$8 sps:$4 sm:$0xff]   ;;  %v3989_v14 = vcombine.low %v263_v8, %v263_v8  ;;  %v267_v56 = vshrl.u32 %v266_v55, 7 }
  0x12   : > { %s3938_s27 = sshll.u32 %s10328_s18, 2  ;;  %v264_v58 = vld [vmem:[%s8931_s2] sm:$0x3]  ;;  %s4031_s17 = sshll.u32 %s10328_s18, 4 }
  0x13   : > { %s4934_s5 = scalar_lea.vmem %s8929_s0, %s3938_s27  ;;  %v643_v15 = vand.u32 %v3990_v11, %v638_v12  ;;  %v640_v16 = vand.u32 %v3989_v14, %v638_v12  ;;  %v268_v57 = vsub.s32 0, %v267_v56  ;;  %v272_v59 = vsub.s32 1, %v267_v56  ;;  %s8612_s21 = scalar_lea.vmem %s8932_s3, %s4031_s17 }
  0x14   : > { %648 = vmatpush1.bf16.msra.mxu0 %v4058_v4  ;;  %4039 = vmatpush1.bf16.msra.mxu1 %v4058_v4  ;;  %v4070_v17 = vld [vmem:[%s4934_s5] sm:$0xff]   ;;  %v4071_v18 = vld [vmem:[%s4934_s5 + $0x98] sm:$0xff]   ;;  %v4072_v19 = vld [vmem:[%s4934_s5 + $0x8] sm:$0xff]  }
  0x15   : > { %649 = vmatprep.subr.bf16.mxu0 %v4059_v5  ;;  %4034 = vmatprep.subr.bf16.mxu1 %v4059_v5  ;;  %v4073_v20 = vld [vmem:[%s4934_s5 + $0xa0] sm:$0xff]   ;;  %v4074_v21 = vld [vmem:[%s4934_s5 + $0x10] sm:$0xff]   ;;  %v4075_v22 = vld [vmem:[%s4934_s5 + $0xa8] sm:$0xff]   ;;  %v5064_v60 = vrot.slane %v264_v58, %v268_v57  ;;  %v5066_v61 = vrot.slane %v264_v58, %v272_v59 }
  0x16   : > { %v4076_v23 = vld [vmem:[%s4934_s5 + $0x18] sm:$0xff]   ;;  %v4077_v24 = vld [vmem:[%s4934_s5 + $0xb0] sm:$0xff]   ;;  %v4078_v25 = vld [vmem:[%s4934_s5 + $0x20] sm:$0xff]  }
  0x17   : > { %v4079_v26 = vld [vmem:[%s4934_s5 + $0xb8] sm:$0xff]   ;;  %v4080_v27 = vld [vmem:[%s4934_s5 + $0x28] sm:$0xff]   ;;  %v4081_v28 = vld [vmem:[%s4934_s5 + $0xc0] sm:$0xff]  }
  0x18   : > { %650 = vmatpush1.bf16.msra.mxu0 %v4061_v6  ;;  %4040 = vmatpush1.bf16.msra.mxu1 %v4061_v6  ;;  %v4082_v29 = vld [vmem:[%s4934_s5 + $0x30] sm:$0xff]   ;;  %v4083_v30 = vld [vmem:[%s4934_s5 + $0xc8] sm:$0xff]   ;;  %v4084_v31 = vld [vmem:[%s4934_s5 + $0x38] sm:$0xff]  }
  0x19   : > { %651 = vmatprep.subr.bf16.mxu0 %v4062_v7  ;;  %4035 = vmatprep.subr.bf16.mxu1 %v4062_v7  ;;  %v4085_v32 = vld [vmem:[%s4934_s5 + $0xd0] sm:$0xff]   ;;  %v4086_v33 = vld [vmem:[%s4934_s5 + $0x40] sm:$0xff]   ;;  %v4087_v34 = vld [vmem:[%s4934_s5 + $0xd8] sm:$0xff]  }
  0x1a   : > { %v4088_v35 = vld [vmem:[%s4934_s5 + $0x48] sm:$0xff]   ;;  %v4089_v36 = vld [vmem:[%s4934_s5 + $0xe0] sm:$0xff]   ;;  %v4090_v37 = vld [vmem:[%s4934_s5 + $0x50] sm:$0xff]  }
  0x1b   : > { %v4091_v38 = vld [vmem:[%s4934_s5 + $0xe8] sm:$0xff]   ;;  %v4092_v39 = vld [vmem:[%s4934_s5 + $0x58] sm:$0xff]   ;;  %v4093_v40 = vld [vmem:[%s4934_s5 + $0xf0] sm:$0xff]  }
  0x1c   : > { %652 = vmatpush1.bf16.msra.mxu0 %v4064_v9  ;;  %4041 = vmatpush1.bf16.msra.mxu1 %v4064_v9  ;;  %v4094_v41 = vld [vmem:[%s4934_s5 + $0x60] sm:$0xff]   ;;  %v4095_v42 = vld [vmem:[%s4934_s5 + $0xf8] sm:$0xff]   ;;  %v4096_v43 = vld [vmem:[%s4934_s5 + $0x68] sm:$0xff]  }
  0x1d   : > { %653 = vmatprep.subr.bf16.mxu0 %v4065_v10  ;;  %4036 = vmatprep.subr.bf16.mxu1 %v4065_v10  ;;  %v4097_v44 = vld [vmem:[%s4934_s5 + $0x100] sm:$0xff]   ;;  %v4098_v45 = vld [vmem:[%s4934_s5 + $0x70] sm:$0xff]   ;;  %v4099_v46 = vld [vmem:[%s4934_s5 + $0x108] sm:$0xff]  }
  0x1e   : > { %v4100_v47 = vld [vmem:[%s4934_s5 + $0x78] sm:$0xff]   ;;  %v4101_v48 = vld [vmem:[%s4934_s5 + $0x110] sm:$0xff]   ;;  %v4102_v49 = vld [vmem:[%s4934_s5 + $0x80] sm:$0xff]  }
  0x1f   : > { %v4103_v50 = vld [vmem:[%s4934_s5 + $0x118] sm:$0xff]   ;;  %v4104_v51 = vld [vmem:[%s4934_s5 + $0x88] sm:$0xff]   ;;  %v4105_v52 = vld [vmem:[%s4934_s5 + $0x120] sm:$0xff]  }
  0x20   : > { %654 = vmatpush1.bf16.msra.mxu0 %v4067_v13  ;;  %4042 = vmatpush1.bf16.msra.mxu1 %v4067_v13  ;;  %v4106_v53 = vld [vmem:[%s4934_s5 + $0x90] sm:$0xff]   ;;  %v4107_v54 = vld [vmem:[%s4934_s5 + $0x128] sm:$0xff]  }
  0x21   : > { %655 = vmatprep.subr.bf16.mxu0 %v643_v15  ;;  %4037 = vmatprep.subr.bf16.mxu1 %v643_v15 }
  0x24   : > { %656 = vmatpush1.bf16.msra.mxu0 %v640_v16  ;;  %4043 = vmatpush1.bf16.msra.mxu1 %v640_v16 }
  0x27   : > { %3991 = vmatmul.mubr.msk.bf16.vlgmr.msra.gmra.mrb[0].mxu0 %vm521_vm1, %v4070_v17  ;;  %4010 = vmatmul.mubr.msk.bf16.vlgmr.msra.gmra.mrb[0].mxu1 %vm521_vm1, %v4071_v18  ;;  %v2427_v17 = vand.u32 127, %v266_v55 }
  0x28   : > { %687 = vmatprep.mubr.bf16.mxu0 %v4876_v2  ;;  %877 = vmatprep.mubr.bf16.mxu1 %v4876_v2 }
  0x2f   : > { %3992 = vmatmul.mubr.msk.bf16.gmra.mrb[4].mxu0 %vm521_vm1, %v4072_v19  ;;  %4011 = vmatmul.mubr.msk.bf16.gmra.mrb[4].mxu1 %vm521_vm1, %v4073_v20 }
  0x30   : > { %697 = vmatprep.mubr.bf16.mxu0 %v4876_v2  ;;  %887 = vmatprep.mubr.bf16.mxu1 %v4876_v2 }
  0x37   : > { %3993 = vmatmul.mubr.msk.bf16.gmra.mrb[8].mxu0 %vm521_vm1, %v4074_v21  ;;  %4012 = vmatmul.mubr.msk.bf16.gmra.mrb[8].mxu1 %vm521_vm1, %v4075_v22 }
  0x38   : > { %707 = vmatprep.mubr.bf16.mxu0 %v4876_v2  ;;  %897 = vmatprep.mubr.bf16.mxu1 %v4876_v2 }
  0x3f   : > { %3994 = vmatmul.mubr.msk.bf16.gmra.mrb[12].mxu0 %vm521_vm1, %v4076_v23  ;;  %4013 = vmatmul.mubr.msk.bf16.gmra.mrb[12].mxu1 %vm521_vm1, %v4077_v24 }
  0x40   : > { %717 = vmatprep.mubr.bf16.mxu0 %v4876_v2  ;;  %907 = vmatprep.mubr.bf16.mxu1 %v4876_v2 }
  0x47   : > { %3995 = vmatmul.mubr.msk.bf16.gmra.mrb[16].mxu0 %vm521_vm1, %v4078_v25  ;;  %4014 = vmatmul.mubr.msk.bf16.gmra.mrb[16].mxu1 %vm521_vm1, %v4079_v26 }
  0x48   : > { %727 = vmatprep.mubr.bf16.mxu0 %v4876_v2  ;;  %917 = vmatprep.mubr.bf16.mxu1 %v4876_v2 }
  0x4f   : > { %3996 = vmatmul.mubr.msk.bf16.gmra.mrb[20].mxu0 %vm521_vm1, %v4080_v27  ;;  %4015 = vmatmul.mubr.msk.bf16.gmra.mrb[20].mxu1 %vm521_vm1, %v4081_v28 }
  0x50   : > { %737 = vmatprep.mubr.bf16.mxu0 %v4876_v2  ;;  %927 = vmatprep.mubr.bf16.mxu1 %v4876_v2 }
  0x57   : > { %3997 = vmatmul.mubr.msk.bf16.gmra.mrb[24].mxu0 %vm521_vm1, %v4082_v29  ;;  %4016 = vmatmul.mubr.msk.bf16.gmra.mrb[24].mxu1 %vm521_vm1, %v4083_v30 }
  0x58   : > { %747 = vmatprep.mubr.bf16.mxu0 %v4876_v2  ;;  %937 = vmatprep.mubr.bf16.mxu1 %v4876_v2 }
  0x5f   : > { %3998 = vmatmul.mubr.msk.bf16.gmra.mrb[28].mxu0 %vm521_vm1, %v4084_v31  ;;  %4017 = vmatmul.mubr.msk.bf16.gmra.mrb[28].mxu1 %vm521_vm1, %v4085_v32  ;;  %v5115_v32 = vadd.s32 128, %v2427_v17 }
  0x60   : > { %757 = vmatprep.mubr.bf16.mxu0 %v4876_v2  ;;  %947 = vmatprep.mubr.bf16.mxu1 %v4876_v2 }
  0x61   : > { %vm2430_vm2 = vcmp.lt.s32.totalorder %v5115_v32, 255 }
  0x67   : > { %3999 = vmatmul.mubr.msk.bf16.gmra.mrb[32].mxu0 %vm521_vm1, %v4086_v33  ;;  %4018 = vmatmul.mubr.msk.bf16.gmra.mrb[32].mxu1 %vm521_vm1, %v4087_v34 }
  0x68   : > { %767 = vmatprep.mubr.bf16.mxu0 %v4876_v2  ;;  %957 = vmatprep.mubr.bf16.mxu1 %v4876_v2 }
  0x6f   : > { %4000 = vmatmul.mubr.msk.bf16.gmra.mrb[36].mxu0 %vm521_vm1, %v4088_v35  ;;  %4019 = vmatmul.mubr.msk.bf16.gmra.mrb[36].mxu1 %vm521_vm1, %v4089_v36 }
  0x70   : > { %777 = vmatprep.mubr.bf16.mxu0 %v4876_v2  ;;  %967 = vmatprep.mubr.bf16.mxu1 %v4876_v2 }
  0x77   : > { %4001 = vmatmul.mubr.msk.bf16.gmra.mrb[40].mxu0 %vm521_vm1, %v4090_v37  ;;  %4020 = vmatmul.mubr.msk.bf16.gmra.mrb[40].mxu1 %vm521_vm1, %v4091_v38 }
  0x78   : > { %787 = vmatprep.mubr.bf16.mxu0 %v4876_v2  ;;  %977 = vmatprep.mubr.bf16.mxu1 %v4876_v2 }
  0x7f   : > { %4002 = vmatmul.mubr.msk.bf16.gmra.mrb[44].mxu0 %vm521_vm1, %v4092_v39  ;;  %4021 = vmatmul.mubr.msk.bf16.gmra.mrb[44].mxu1 %vm521_vm1, %v4093_v40 }
  0x80   : > { %797 = vmatprep.mubr.bf16.mxu0 %v4876_v2  ;;  %987 = vmatprep.mubr.bf16.mxu1 %v4876_v2 }
  0x87   : > { %4003 = vmatmul.mubr.msk.bf16.gmra.mrb[48].mxu0 %vm521_vm1, %v4094_v41  ;;  %4022 = vmatmul.mubr.msk.bf16.gmra.mrb[48].mxu1 %vm521_vm1, %v4095_v42 }
  0x88   : > { %807 = vmatprep.mubr.bf16.mxu0 %v4876_v2  ;;  %997 = vmatprep.mubr.bf16.mxu1 %v4876_v2 }
  0x8f   : > { %4004 = vmatmul.mubr.msk.bf16.gmra.mrb[52].mxu0 %vm521_vm1, %v4096_v43  ;;  %4023 = vmatmul.mubr.msk.bf16.gmra.mrb[52].mxu1 %vm521_vm1, %v4097_v44 }
  0x90   : > { %817 = vmatprep.mubr.bf16.mxu0 %v4876_v2  ;;  %1007 = vmatprep.mubr.bf16.mxu1 %v4876_v2 }
  0x97   : > { %4005 = vmatmul.mubr.msk.bf16.gmra.mrb[56].mxu0 %vm521_vm1, %v4098_v45  ;;  %4024 = vmatmul.mubr.msk.bf16.gmra.mrb[56].mxu1 %vm521_vm1, %v4099_v46 }
  0x98   : > { %827 = vmatprep.mubr.bf16.mxu0 %v4876_v2  ;;  %1017 = vmatprep.mubr.bf16.mxu1 %v4876_v2 }
  0x9f   : > { %4006 = vmatmul.mubr.msk.bf16.gmra.mrb[60].mxu0 %vm521_vm1, %v4100_v47  ;;  %4025 = vmatmul.mubr.msk.bf16.gmra.mrb[60].mxu1 %vm521_vm1, %v4101_v48 }
  0xa0   : > { %837 = vmatprep.mubr.bf16.mxu0 %v4876_v2  ;;  %1027 = vmatprep.mubr.bf16.mxu1 %v4876_v2 }
  0xa7   : > { %4007 = vmatmul.mubr.msk.bf16.gmra.mrb[64].mxu0 %vm521_vm1, %v4102_v49  ;;  %4026 = vmatmul.mubr.msk.bf16.gmra.mrb[64].mxu1 %vm521_vm1, %v4103_v50 }
  0xa8   : > { %847 = vmatprep.mubr.bf16.mxu0 %v4876_v2  ;;  %1037 = vmatprep.mubr.bf16.mxu1 %v4876_v2 }
  0xaf   : > { %4008 = vmatmul.mubr.msk.bf16.gmra.mrb[68].mxu0 %vm521_vm1, %v4104_v51  ;;  %4027 = vmatmul.mubr.msk.bf16.gmra.mrb[68].mxu1 %vm521_vm1, %v4105_v52 }
  0xb0   : > { %857 = vmatprep.mubr.bf16.mxu0 %v4876_v2  ;;  %1047 = vmatprep.mubr.bf16.mxu1 %v4876_v2 }
  0xb7   : > { %4009 = vmatmul.mubr.msk.bf16.gmra.mrb[72].mxu0 %vm521_vm1, %v4106_v53  ;;  %4028 = vmatmul.mubr.msk.bf16.gmra.mrb[72].mxu1 %vm521_vm1, %v4107_v54 }
  0xfa   : > { %v679_v62 = vpop.f32.mrb[0].mxu0  ;;  %v869_v63 = vpop.f32.mrb[0].mxu1 }
  0xfb   : > { %v5069_v0 = vadd.f32 %v679_v62, %v5064_v60  ;;  %v5072_v1 = vadd.f32 %v869_v63, %v5064_v60  ;;  %v681_v2 = vpop.f32.mrb[1].mxu0  ;;  %v871_v3 = vpop.f32.mrb[1].mxu1 }
  0xfc   : > { %v5075_v4 = vadd.f32 %v681_v2, %v5066_v61  ;;  %v5078_v5 = vadd.f32 %v871_v3, %v5066_v61  ;;  %v683_v6 = vpop.f32.mrb[2].mxu0  ;;  %v873_v7 = vpop.f32.mrb[2].mxu1 }
  0xfd   : > { %v1210_v8 = vmul.f32 %v5069_v0, %v5069_v0  ;;  %v1286_v9 = vmul.f32 %v5072_v1, %v5072_v1  ;;  %v5085_v10 = vadd.f32 %v683_v6, %v5064_v60  ;;  %v685_v11 = vpop.f32.mrb[3].mxu0  ;;  %v875_v12 = vpop.f32.mrb[3].mxu1  ;;  %v5090_v14 = vadd.f32 %v873_v7, %v5064_v60 }
  0xfe   : > { %v1287_v13 = vmul.f32 %v5078_v5, %v5078_v5  ;;  %v5093_v15 = vadd.f32 %v685_v11, %v5066_v61  ;;  %v5096_v16 = vadd.f32 %v875_v12, %v5066_v61  ;;  %v1211_v20 = vmul.f32 %v5075_v4, %v5075_v4 }
  0xff   : > { %9289 = vst [vmem:[#allocation2_spill] sm:$0xff] %v5085_v10  ;;  %v1362_v18 = vmul.f32 %v1210_v8, %v5069_v0  ;;  %v1438_v19 = vmul.f32 %v1286_v9, %v5072_v1  ;;  %v1212_v23 = vmul.f32 %v5085_v10, %v5085_v10  ;;  %v1288_v24 = vmul.f32 %v5090_v14, %v5090_v14 }
 0x100   : > { %9290 = vst [vmem:[#allocation3_spill] sm:$0xff] %v5093_v15  ;;  %v1213_v21 = vmul.f32 %v5093_v15, %v5093_v15  ;;  %v1439_v22 = vmul.f32 %v1287_v13, %v5078_v5  ;;  %v1289_v25 = vmul.f32 %v5096_v16, %v5096_v16  ;;  %v1363_v35 = vmul.f32 %v1211_v20, %v5075_v4 }
 0x101   : > { %v5117_v33 = vmul.f32 0.044715, %v1362_v18  ;;  %v1590_v34 = vmul.f32 0.044715, %v1438_v19  ;;  %v1364_v39 = vmul.f32 %v1212_v23, %v5085_v10  ;;  %v1440_v44 = vmul.f32 %v1288_v24, %v5090_v14 }
 0x102   : > { %v689_v26 = vpop.f32.mrb[4].mxu0  ;;  %v879_v27 = vpop.f32.mrb[4].mxu1  ;;  %v1365_v28 = vmul.f32 %v1213_v21, %v5093_v15  ;;  %v1591_v38 = vmul.f32 0.044715, %v1439_v22  ;;  %v1441_v45 = vmul.f32 %v1289_v25, %v5096_v16  ;;  %v1515_v52 = vmul.f32 0.044715, %v1363_v35 }
 0x103   : > { %v5113_v29 = vadd.f32 %v689_v26, %v5064_v60  ;;  %v691_v30 = vpop.f32.mrb[5].mxu0  ;;  %v881_v31 = vpop.f32.mrb[5].mxu1  ;;  %v5122_v40 = vadd.f32 %v879_v27, %v5064_v60  ;;  %v5150_v56 = vadd.f32 %v1590_v34, %v5072_v1  ;;  %v1516_v58 = vmul.f32 0.044715, %v1364_v39 }
 0x104   : > { %v693_v36 = vpop.f32.mrb[6].mxu0  ;;  %v883_v37 = vpop.f32.mrb[6].mxu1  ;;  %v5125_v41 = vadd.f32 %v691_v30, %v5066_v61  ;;  %v5132_v47 = vadd.f32 %v881_v31, %v5066_v61  ;;  %v1517_v48 = vmul.f32 0.044715, %v1365_v28  ;;  %v1743_v57 = vadd.f32 %v1591_v38, %v5078_v5 }
 0x105   : > { %9291 = vst [vmem:[#allocation4_spill] sm:$0xff] %v5113_v29  ;;  %9292 = vst [vmem:[#allocation5_spill] sm:$0xff] %v5122_v40  ;;  %v695_v42 = vpop.f32.mrb[7].mxu0  ;;  %v885_v43 = vpop.f32.mrb[7].mxu1  ;;  %v1214_v46 = vmul.f32 %v5113_v29, %v5113_v29  ;;  %v1290_v49 = vmul.f32 %v5122_v40, %v5122_v40  ;;  %v5139_v51 = vadd.f32 %v693_v36, %v5064_v60  ;;  %v1593_v62 = vmul.f32 0.044715, %v1441_v45 }
 0x106   : > { %9293 = vst [vmem:[#allocation6_spill] sm:$0xff] %v5125_v41  ;;  %9294 = vst [vmem:[#allocation7_spill] sm:$0xff] %v5132_v47  ;;  %v1215_v50 = vmul.f32 %v5125_v41, %v5125_v41  ;;  %v1291_v53 = vmul.f32 %v5132_v47, %v5132_v47  ;;  %v5144_v54 = vadd.f32 %v883_v37, %v5064_v60  ;;  %v5160_v8 = vmul.f32 0.044715, %v1440_v44 }
 0x107   : > { %9295 = vst [vmem:[#allocation8_spill] sm:$0xff] %v5139_v51  ;;  %v5147_v55 = vadd.f32 %v695_v42, %v5066_v61  ;;  %v1366_v63 = vmul.f32 %v1214_v46, %v5113_v29  ;;  %v5158_v3 = vadd.f32 %v885_v43, %v5066_v61  ;;  %v1669_v9 = vadd.f32 %v1517_v48, %v5093_v15 }
 0x108   : > { %9296 = vst [vmem:[#allocation9_spill] sm:$0xff] %v5144_v54  ;;  %v1367_v59 = vmul.f32 %v1215_v50, %v5125_v41  ;;  %v1442_v11 = vmul.f32 %v1290_v49, %v5122_v40  ;;  %v1216_v12 = vmul.f32 %v5139_v51, %v5139_v51  ;;  %v1443_v19 = vmul.f32 %v1291_v53, %v5132_v47 }
 0x109   : > { %9297 = vst [vmem:[#allocation10_spill] sm:$0xff] %v5147_v55  ;;  %v1217_v2 = vmul.f32 %v5147_v55, %v5147_v55  ;;  %9298 = vst [vmem:[#allocation11_spill] sm:$0xff] %v5158_v3  ;;  %v1292_v20 = vmul.f32 %v5144_v54, %v5144_v54  ;;  %v1293_v21 = vmul.f32 %v5158_v3, %v5158_v3  ;;  %v5181_v31 = vmul.f32 0.7978846, %v1743_v57 }
 0x10a   : > { %v699_v6 = vpop.f32.mrb[8].mxu0  ;;  %v889_v7 = vpop.f32.mrb[8].mxu1  ;;  %v1519_v18 = vmul.f32 0.044715, %v1367_v59  ;;  %v5172_v24 = vadd.f32 %v1515_v52, %v5075_v4  ;;  %v5175_v25 = vadd.f32 %v1516_v58, %v5085_v10  ;;  %v5184_v34 = vadd.f32 %v1593_v62, %v5096_v16 }
 0x10b   : > { %v701_v13 = vpop.f32.mrb[9].mxu0  ;;  %v891_v17 = vpop.f32.mrb[9].mxu1  ;;  %v1369_v26 = vmul.f32 %v1217_v2, %v5147_v55  ;;  %v5179_v27 = vadd.f32 %v699_v6, %v5064_v60  ;;  %v1518_v35 = vmul.f32 0.044715, %v1366_v63  ;;  %v1445_v36 = vmul.f32 %v1293_v21, %v5158_v3 }
 0x10c   : > { %v703_v22 = vpop.f32.mrb[10].mxu0  ;;  %v893_v23 = vpop.f32.mrb[10].mxu1  ;;  %v1594_v37 = vmul.f32 0.044715, %v1442_v11  ;;  %v1368_v38 = vmul.f32 %v1216_v12, %v5139_v51  ;;  %v5191_v42 = vadd.f32 %v889_v7, %v5064_v60  ;;  %v5193_v43 = vmul.f32 0.7978846, %v1669_v9 }
 0x10d   : > { %9299 = vst [vmem:[#allocation12_spill] sm:$0xff] %v5179_v27  ;;  %v705_v28 = vpop.f32.mrb[11].mxu0  ;;  %v895_v30 = vpop.f32.mrb[11].mxu1  ;;  %v1218_v39 = vmul.f32 %v5179_v27, %v5179_v27  ;;  %v1671_v44 = vadd.f32 %v1519_v18, %v5125_v41  ;;  %v1595_v45 = vmul.f32 0.044715, %v1443_v19  ;;  %v1444_v46 = vmul.f32 %v1292_v20, %v5144_v54 }
 0x10e   : > { %9300 = vst [vmem:[#allocation13_spill] sm:$0xff] %v5191_v42  ;;  %v1521_v48 = vmul.f32 0.044715, %v1369_v26  ;;  %v1294_v49 = vmul.f32 %v5191_v42, %v5191_v42  ;;  %v5200_v50 = vadd.f32 %v701_v13, %v5066_v61  ;;  %v5203_v52 = vadd.f32 %v891_v17, %v5066_v61 }
 0x10f   : > { %v5206_v53 = vadd.f32 %v1518_v35, %v5113_v29  ;;  %v1597_v57 = vmul.f32 0.044715, %v1445_v36  ;;  %v5209_v58 = vadd.f32 %v703_v22, %v5064_v60  ;;  %v5212_v59 = vadd.f32 %v893_v23, %v5064_v60 }
 0x110   : > { %9301 = vst [vmem:[#allocation14_spill] sm:$0xff] %v5200_v50  ;;  %9302 = vst [vmem:[#allocation15_spill] sm:$0xff] %v5203_v52  ;;  %v5215_v2 = vadd.f32 %v1594_v37, %v5122_v40  ;;  %v1520_v6 = vmul.f32 0.044715, %v1368_v38  ;;  %v1370_v7 = vmul.f32 %v1218_v39, %v5179_v27  ;;  %v1446_v9 = vmul.f32 %v1294_v49, %v5191_v42 }
 0x111   : > { %9303 = vst [vmem:[#allocation16_spill] sm:$0xff] %v5209_v58  ;;  %9304 = vst [vmem:[#allocation17_spill] sm:$0xff] %v5212_v59  ;;  %v1747_v13 = vadd.f32 %v1595_v45, %v5132_v47  ;;  %v1219_v17 = vmul.f32 %v5200_v50, %v5200_v50  ;;  %v1295_v18 = vmul.f32 %v5203_v52, %v5203_v52  ;;  %v5227_v22 = vmul.f32 0.7978846, %v1671_v44 }
 0x112   : > { %v709_v62 = vpop.f32.mrb[12].mxu0  ;;  %v899_v63 = vpop.f32.mrb[12].mxu1  ;;  %9305 = vst [vmem:[#allocation18_spill] sm:$0xff] %v5215_v2  ;;  %v5225_v19 = vadd.f32 %v705_v28, %v5066_v61  ;;  %v1596_v23 = vmul.f32 0.044715, %v1444_v46  ;;  %v1673_v26 = vadd.f32 %v1521_v48, %v5147_v55  ;;  %v1220_v35 = vmul.f32 %v5209_v58, %v5209_v58 }
 0x113   : > { %v711_v11 = vpop.f32.mrb[13].mxu0  ;;  %v901_v12 = vpop.f32.mrb[13].mxu1  ;;  %v1749_v38 = vadd.f32 %v1597_v57, %v5158_v3  ;;  %v1296_v39 = vmul.f32 %v5212_v59, %v5212_v59  ;;  %v5238_v45 = vadd.f32 %v895_v30, %v5066_v61  ;;  %v5241_v44 = vadd.f32 %v1520_v6, %v5139_v51 }
 0x114   : > { %9306 = vst [vmem:[#allocation19_spill] sm:$0xff] %v5225_v19  ;;  %v713_v20 = vpop.f32.mrb[14].mxu0  ;;  %v903_v21 = vpop.f32.mrb[14].mxu1  ;;  %v1221_v28 = vmul.f32 %v5225_v19, %v5225_v19  ;;  %v1522_v46 = vmul.f32 0.044715, %v1370_v7  ;;  %v5244_v49 = vadd.f32 %v709_v62, %v5064_v60  ;;  %v1371_v57 = vmul.f32 %v1219_v17, %v5200_v50 }
 0x115   : > { %v715_v36 = vpop.f32.mrb[15].mxu0  ;;  %v905_v37 = vpop.f32.mrb[15].mxu1  ;;  %9307 = vst [vmem:[#allocation20_spill] sm:$0xff] %v5238_v45  ;;  %9308 = vst [vmem:[#allocation21_spill] sm:$0xff] %v5241_v44  ;;  %v1598_v48 = vmul.f32 0.044715, %v1446_v9  ;;  %v1447_v3 = vmul.f32 %v1295_v18, %v5203_v52  ;;  %v1297_v40 = vmul.f32 %v5238_v45, %v5238_v45  ;;  %v5253_v30 = vadd.f32 %v1596_v23, %v5144_v54 }
 0x116   : > { %9309 = vst [vmem:[#allocation22_spill] sm:$0xff] %v5244_v49  ;;  %v5246_v47 = vmul.f32 0.7978846, %v1747_v13  ;;  %v1372_v6 = vmul.f32 %v1220_v35, %v5209_v58  ;;  %v1373_v7 = vmul.f32 %v1221_v28, %v5225_v19  ;;  %v5258_v9 = vadd.f32 %v899_v63, %v5064_v60 }
 0x117   : > { %9311 = vst [vmem:[#allocation24_spill] sm:$0xff] %v5253_v30  ;;  %v5260_v62 = vmul.f32 0.7978846, %v1673_v26  ;;  %v5262_v13 = vmul.f32 0.7978846, %v1749_v38  ;;  %v1448_v17 = vmul.f32 %v1296_v39, %v5212_v59  ;;  %v1222_v18 = vmul.f32 %v5244_v49, %v5244_v49 }
 0x118   : > { %9310 = vst [vmem:[#allocation23_spill] sm:$0xff] %v5246_v47  ;;  %9312 = vst [vmem:[#allocation25_spill] sm:$0xff] %v5258_v9  ;;  %v5268_v23 = vadd.f32 %v1522_v46, %v5179_v27  ;;  %v5271_v35 = vadd.f32 %v1598_v48, %v5191_v42  ;;  %v1449_v63 = vmul.f32 %v1297_v40, %v5238_v45  ;;  %v1523_v39 = vmul.f32 0.044715, %v1371_v57 }
 0x119   : > { %9313 = vst [vmem:[#allocation26_spill] sm:$0xff] %v5260_v62  ;;  %9314 = vst [vmem:[#allocation27_spill] sm:$0xff] %v5262_v13  ;;  %v1298_v26 = vmul.f32 %v5258_v9, %v5258_v9  ;;  %v1599_v54 = vmul.f32 0.044715, %v1447_v3  ;;  %v5281_v13 = vadd.f32 %v711_v11, %v5066_v61  ;;  %v5284_v46 = vadd.f32 %v901_v12, %v5066_v61 }
 0x11a   : > { %v719_v55 = vpop.f32.mrb[16].mxu0  ;;  %v909_v51 = vpop.f32.mrb[16].mxu1  ;;  %9315 = vst [vmem:[#allocation28_spill] sm:$0xff] %v5268_v23  ;;  %9316 = vst [vmem:[#allocation29_spill] sm:$0xff] %v5271_v35  ;;  %v1524_v40 = vmul.f32 0.044715, %v1372_v6  ;;  %v5291_v35 = vadd.f32 %v713_v20, %v5064_v60  ;;  %v5294_v23 = vadd.f32 %v903_v21, %v5064_v60  ;;  %v1374_v12 = vmul.f32 %v1222_v18, %v5244_v49 }
 0x11b   : > { %v5276_v38 = vpop.f32.mrb[17].mxu0  ;;  %v5278_v28 = vpop.f32.mrb[17].mxu1  ;;  %9317 = vst [vmem:[#allocation30_spill] sm:$0xff] %v5281_v13  ;;  %9318 = vst [vmem:[#allocation31_spill] sm:$0xff] %v5284_v46  ;;  %v1525_v42 = vmul.f32 0.044715, %v1373_v7  ;;  %v1223_v30 = vmul.f32 %v5281_v13, %v5281_v13  ;;  %v1299_v6 = vmul.f32 %v5284_v46, %v5284_v46  ;;  %v1450_v20 = vmul.f32 %v1298_v26, %v5258_v9 }
 0x11c   : > { %v5286_v27 = vpop.f32.mrb[18].mxu1  ;;  %v5288_v48 = vpop.f32.mrb[18].mxu0  ;;  %9319 = vst [vmem:[#allocation32_spill] sm:$0xff] %v5291_v35  ;;  %9320 = vst [vmem:[#allocation33_spill] sm:$0xff] %v5294_v23  ;;  %v1600_v11 = vmul.f32 0.044715, %v1448_v17  ;;  %v1224_v21 = vmul.f32 %v5291_v35, %v5291_v35  ;;  %v1300_v47 = vmul.f32 %v5294_v23, %v5294_v23  ;;  %v1675_v2 = vadd.f32 %v1523_v39, %v5200_v50 }
 0x11d   : > { %v5296_v57 = vpop.f32.mrb[19].mxu0  ;;  %v5298_v3 = vpop.f32.mrb[19].mxu1  ;;  %v1601_v7 = vmul.f32 0.044715, %v1449_v63  ;;  %v1751_v17 = vadd.f32 %v1599_v54, %v5203_v52  ;;  %v1375_v18 = vmul.f32 %v1223_v30, %v5281_v13  ;;  %v5314_v62 = vadd.f32 %v715_v36, %v5066_v61 }
 0x11e   : > { %v1677_v44 = vadd.f32 %v1525_v42, %v5225_v19  ;;  %v1451_v63 = vmul.f32 %v1299_v6, %v5284_v46  ;;  %v1376_v26 = vmul.f32 %v1224_v21, %v5291_v35  ;;  %v5320_v15 = vadd.f32 %v905_v37, %v5066_v61 }
 0x11f   : > { %9321 = vst [vmem:[#allocation34_spill] sm:$0xff] %v5314_v62  ;;  %v1526_v10 = vmul.f32 0.044715, %v1374_v12  ;;  %v1527_v41 = vmul.f32 0.044715, %v1375_v18  ;;  %v1452_v39 = vmul.f32 %v1300_v47, %v5294_v23  ;;  %v1225_v54 = vmul.f32 %v5314_v62, %v5314_v62 }
 0x120   : > { %9322 = vst [vmem:[#allocation35_spill] sm:$0xff] %v5320_v15  ;;  %v1753_v42 = vadd.f32 %v1601_v7, %v5238_v45  ;;  %v1602_v52 = vmul.f32 0.044715, %v1450_v20  ;;  %v1301_v6 = vmul.f32 %v5320_v15, %v5320_v15  ;;  %v5333_v37 = vadd.f32 %v719_v55, %v5064_v60 }
 0x121   : > { %v5339_v47 = vmul.f32 0.7978846, %v1675_v2  ;;  %v5341_v18 = vmul.f32 0.7978846, %v1751_v17  ;;  %v1377_v19 = vmul.f32 %v1225_v54, %v5314_v62  ;;  %v5345_v50 = vadd.f32 %v909_v51, %v5064_v60 }
 0x122   : > { %v5325_v30 = vpop.f32.mrb[20].mxu0  ;;  %v5327_v36 = vpop.f32.mrb[20].mxu1  ;;  %9323 = vst [vmem:[#allocation36_spill] sm:$0xff] %v5333_v37  ;;  %v5352_v55 = vadd.f32 %v1524_v40, %v5209_v58  ;;  %v5355_v45 = vadd.f32 %v1600_v11, %v5212_v59  ;;  %v1603_v29 = vmul.f32 0.044715, %v1451_v63  ;;  %v5364_v51 = vadd.f32 %v1526_v10, %v5244_v49 }
 0x123   : > { %v5335_v12 = vpop.f32.mrb[21].mxu0  ;;  %v5337_v21 = vpop.f32.mrb[21].mxu1  ;;  %9324 = vst [vmem:[#allocation37_spill] sm:$0xff] %v5339_v47  ;;  %9325 = vst [vmem:[#allocation38_spill] sm:$0xff] %v5341_v18  ;;  %v1528_v2 = vmul.f32 0.044715, %v1376_v26  ;;  %v1679_v18 = vadd.f32 %v1527_v41, %v5281_v13  ;;  %v5370_v40 = vadd.f32 %v1602_v52, %v5258_v9  ;;  %v1453_v11 = vmul.f32 %v1301_v6, %v5320_v15 }
 0x124   : > { %9326 = vst [vmem:[#allocation39_spill] sm:$0xff] %v5345_v50  ;;  %v5347_v7 = vpop.f32.mrb[22].mxu0  ;;  %v5349_v20 = vpop.f32.mrb[22].mxu1  ;;  %v5361_v54 = vmul.f32 0.7978846, %v1677_v44  ;;  %v1226_v63 = vmul.f32 %v5333_v37, %v5333_v37  ;;  %v1302_v44 = vmul.f32 %v5345_v50, %v5345_v50  ;;  %v1666_v10 = vadd.f32 %v5117_v33, %v5069_v0 }
 0x125   : > { %9327 = vst [vmem:[#allocation40_spill] sm:$0xff] %v5347_v7  ;;  %9328 = vst [vmem:[#allocation41_spill] sm:$0xff] %v5349_v20  ;;  %v5357_v47 = vpop.f32.mrb[23].mxu0  ;;  %v5359_v17 = vpop.f32.mrb[23].mxu1  ;;  %v1604_v20 = vmul.f32 0.044715, %v1452_v39  ;;  %v1755_v39 = vadd.f32 %v1603_v29, %v5284_v46  ;;  %v5386_v52 = vadd.f32 %v5276_v38, %v5066_v61 }
 0x126   : > { %v5367_v7 = vmul.f32 0.7978846, %v1753_v42  ;;  %9329 = vst [vmem:[#allocation42_spill] sm:$0xff] %v5370_v40  ;;  %v1529_v26 = vmul.f32 0.044715, %v1377_v19  ;;  %v5382_v42 = vadd.f32 %v1528_v2, %v5291_v35  ;;  %v5390_v19 = vadd.f32 %v5278_v28, %v5066_v61 }
 0x127   : > { %v1819_v41 = vmul.f32 0.7978846, %v5172_v24  ;;  %9331 = vst [vmem:[#allocation44_spill] sm:$0xff] %v5386_v52  ;;  %v5392_v6 = vmul.f32 0.7978846, %v1679_v18  ;;  %v5395_v9 = vadd.f32 %v1604_v20, %v5294_v23  ;;  %v1378_v46 = vmul.f32 %v1226_v63, %v5333_v37 }
 0x128   : > { %9330 = vst [vmem:[#allocation43_spill] sm:$0xff] %v5382_v42  ;;  %9332 = vst [vmem:[#allocation45_spill] sm:$0xff] %v5390_v19  ;;  %v1818_v33 = vmul.f32 0.7978846, %v1666_v10  ;;  %v1605_v2 = vmul.f32 0.044715, %v1453_v11  ;;  %v1227_v38 = vmul.f32 %v5386_v52, %v5386_v52  ;;  %v1303_v28 = vmul.f32 %v5390_v19, %v5390_v19 }
 0x129   : > { %9333 = vst [vmem:[#allocation46_spill] sm:$0xff] %v5392_v6  ;;  %9334 = vst [vmem:[#allocation47_spill] sm:$0xff] %v5395_v9  ;;  %4108 = vtanh.f32 %v1819_v41  ;;  %v1681_v20 = vadd.f32 %v1529_v26, %v5314_v62  ;;  %v1454_v10 = vmul.f32 %v1302_v44, %v5345_v50  ;;  %v5414_v11 = vadd.f32 %v5286_v27, %v5064_v60 }
 0x12a   : > { %v5397_v24 = vpop.f32.mrb[24].mxu0  ;;  %v5399_v29 = vpop.f32.mrb[24].mxu1  ;;  %4110 = vtanh.f32 %v1818_v33  ;;  %v1379_v23 = vmul.f32 %v1227_v38, %v5386_v52  ;;  %v1455_v9 = vmul.f32 %v1303_v28, %v5390_v19  ;;  %v1744_v35 = vadd.f32 %v5160_v8, %v5090_v14 }
 0x12b   : > { %v5406_v18 = vpop.f32.mrb[25].mxu0  ;;  %v5408_v40 = vpop.f32.mrb[25].mxu1  ;;  %9335 = vst [vmem:[#allocation48_spill] sm:$0xff] %v5414_v11  ;;  %v1897_v26 = vmul.f32 0.7978846, %v5184_v34  ;;  %v1304_v27 = vmul.f32 %v5414_v11, %v5414_v11  ;;  %v5434_v33 = vadd.f32 %v5288_v48, %v5064_v60  ;;  %v5438_v38 = vadd.f32 %v5296_v57, %v5066_v61 }
 0x12c   : > { %v5416_v63 = vpop.f32.mrb[26].mxu0  ;;  %v5418_v41 = vpop.f32.mrb[26].mxu1  ;;  %v5442_v8 = vadd.f32 %v5298_v3, %v5066_v61  ;;  %v1757_v34 = vadd.f32 %v1605_v2, %v5320_v15  ;;  %v1530_v28 = vmul.f32 0.044715, %v1378_v46  ;;  %v1896_v42 = vmul.f32 0.7978846, %v1744_v35 }
 0x12d   : > { %v5425_v62 = vpop.f32.mrb[27].mxu0  ;;  %v5427_v44 = vpop.f32.mrb[27].mxu1  ;;  %9336 = vst [vmem:[#allocation49_spill] sm:$0xff] %v5434_v33  ;;  %9337 = vst [vmem:[#allocation50_spill] sm:$0xff] %v5438_v38  ;;  %4112 = vtanh.f32 %v1897_v26  ;;  %v1606_v13 = vmul.f32 0.044715, %v1454_v10  ;;  %v1229_v48 = vmul.f32 %v5438_v38, %v5438_v38  ;;  %v1456_v35 = vmul.f32 %v1304_v27, %v5414_v11 }
 0x12e   : > { %9338 = vst [vmem:[#allocation51_spill] sm:$0xff] %v5442_v8  ;;  %v1531_v49 = vmul.f32 0.044715, %v1379_v23  ;;  %v1607_v59 = vmul.f32 0.044715, %v1455_v9  ;;  %v1058_v57 = vmul.f32 0.5, %v5069_v0  ;;  %4114 = vtanh.f32 %v1896_v42 }
 0x12f   : > { %v5447_v6 = vmul.f32 0.7978846, %v1755_v39  ;;  %v1305_v3 = vmul.f32 %v5442_v8, %v5442_v8  ;;  %v5452_v58 = vmul.f32 0.7978846, %v1681_v20  ;;  %v1059_v46 = vmul.f32 0.5, %v5075_v4 }
 0x130   : > { %v1228_v9 = vmul.f32 %v5434_v33, %v5434_v33  ;;  %v5462_v39 = vmul.f32 0.7978846, %v1757_v34  ;;  %v5465_v0 = vadd.f32 %v1530_v28, %v5333_v37  ;;  %v1381_v42 = vmul.f32 %v1229_v48, %v5438_v38 }
 0x131   : > { %4116 = vtanh.f32 %v5181_v31  ;;  %v5472_v10 = vadd.f32 %v1606_v13, %v5345_v50  ;;  %v1683_v26 = vadd.f32 %v1531_v49, %v5386_v52  ;;  %v1759_v27 = vadd.f32 %v1607_v59, %v5390_v19 }
 0x132   : > { %v5458_v23 = vpop.f32.mrb[28].mxu0  ;;  %v5460_v2 = vpop.f32.mrb[28].mxu1  ;;  %9339 = vst [vmem:[#allocation52_spill] sm:$0xff] %v5462_v39  ;;  %9340 = vst [vmem:[#allocation53_spill] sm:$0xff] %v5465_v0  ;;  %v1136_v34 = vmul.f32 0.5, %v5090_v14  ;;  %v1137_v28 = vmul.f32 0.5, %v5096_v16  ;;  %v1457_v37 = vmul.f32 %v1305_v3, %v5442_v8  ;;  %v1380_v50 = vmul.f32 %v1228_v9, %v5434_v33 }
 0x133   : > { %v5469_v20 = vpop.f32.mrb[29].mxu0  ;;  %v4109_v4 = vpop.eup %4108  ;;  %9341 = vst [vmem:[#allocation54_spill] sm:$0xff] %v5472_v10  ;;  %v1894_v48 = vmul.f32 0.7978846, %v5150_v56  ;;  %v1608_v13 = vmul.f32 0.044715, %v1456_v35  ;;  %v5490_v14 = vadd.f32 %v5325_v30, %v5064_v60  ;;  %v5505_v30 = vadd.f32 %v5327_v36, %v5064_v60 }
 0x134   : > { %v2123_v15 = vadd.f32 1.0, %v4109_v4  ;;  %v5480_v31 = vpop.f32.mrb[29].mxu1  ;;  %v5482_v0 = vpop.f32.mrb[30].mxu0  ;;  %v5486_v49 = vmul.f32 0.5, %v5072_v1  ;;  %v1533_v4 = vmul.f32 0.044715, %v1381_v42 }
 0x135   : > { %v4111_v39 = vpop.eup %4110  ;;  %v5492_v16 = vpop.f32.mrb[30].mxu1  ;;  %4118 = vtanh.f32 %v1894_v48  ;;  %v5498_v35 = vmul.f32 0.7978846, %v1683_v26  ;;  %v5500_v9 = vmul.f32 0.7978846, %v1759_v27  ;;  %v1135_v1 = vmul.f32 0.5, %v5078_v5 }
 0x136   : > { %v5494_v59 = vpop.f32.mrb[31].mxu0  ;;  %v2122_v56 = vadd.f32 1.0, %v4111_v39  ;;  %v2275_v3 = vmul.f32 %v2123_v15, %v1059_v46  ;;  %v5496_v19 = vpop.f32.mrb[31].mxu1  ;;  %9344 = vst [vmem:[#allocation57_spill] sm:$0xff] %v5505_v30  ;;  %v1609_v46 = vmul.f32 0.044715, %v1457_v37  ;;  %v5515_v42 = vadd.f32 %v1608_v13, %v5414_v11 }
 0x137   : > { %9342 = vst [vmem:[#allocation55_spill] sm:$0xff] %v5498_v35  ;;  %9343 = vst [vmem:[#allocation56_spill] sm:$0xff] %v5500_v9  ;;  %v4113_v10 = vpop.eup %4112  ;;  %v1822_v39 = vmul.f32 0.7978846, %v5206_v53  ;;  %v1230_v5 = vmul.f32 %v5490_v14, %v5490_v14  ;;  %4120 = vtanh.f32 %v5227_v22  ;;  %v1532_v37 = vmul.f32 0.044715, %v1380_v50 }
 0x138   : > { %v5507_v52 = vmul.f32 %v2122_v56, %v1058_v57  ;;  %v5511_v15 = vsel %vm2430_vm2, %v2275_v3, -inf  ;;  %9347 = vst [vmem:[#allocation60_spill] sm:$0xff] %v5515_v42  ;;  %v2201_v26 = vadd.f32 1.0, %v4113_v10  ;;  %v4115_v27 = vpop.eup %4114  ;;  %v1685_v53 = vadd.f32 %v1533_v4, %v5438_v38 }
 0x139   : > { %9346 = vst [vmem:[#allocation59_spill] sm:$0xff] %v5511_v15  ;;  %4122 = vtanh.f32 %v1822_v39  ;;  %v2200_v56 = vadd.f32 1.0, %v4115_v27  ;;  %v1306_v22 = vmul.f32 %v5505_v30, %v5505_v30  ;;  %v1820_v11 = vmul.f32 0.7978846, %v5175_v25 }
 0x13a   : > { %9345 = vst [vmem:[#allocation58_spill] sm:$0xff] %v5507_v52  ;;  %v5520_v36 = vpop.f32.mrb[32].mxu0  ;;  %v5522_v57 = vpop.f32.mrb[32].mxu1  ;;  %v2583_v48 = vmax.f32 %v5507_v52, %v5511_v15  ;;  %v2353_v3 = vmul.f32 %v2201_v26, %v1137_v28  ;;  %v1761_v50 = vadd.f32 %v1609_v46, %v5442_v8  ;;  %4124 = vtanh.f32 %v5193_v43  ;;  %v9357_v15 = vld [vmem:[#allocation40_spill] sm:$0xff] }
 0x13b   : > { %v5527_v13 = vpop.f32.mrb[33].mxu0  ;;  %v5529_v10 = vpop.f32.mrb[33].mxu1  ;;  %v5540_v4 = vadd.f32 %v5335_v12, %v5066_v61  ;;  %v5544_v28 = vadd.f32 %v5337_v21, %v5066_v61  ;;  %v5550_v25 = vmul.f32 %v2200_v56, %v1136_v34  ;;  %v1382_v43 = vmul.f32 %v1230_v5, %v5490_v14  ;;  %v9361_v8 = vld [vmem:[#allocation4_spill] sm:$0xff] }
 0x13c   : > { %9348 = vst [vmem:[#allocation61_spill] sm:$0xff] %v5529_v10  ;;  %v5534_v42 = vpop.f32.mrb[34].mxu0  ;;  %v4117_v9 = vpop.eup %4116  ;;  %2584 = vmax.xlane.f32.xlu0 %v2583_v48  ;;  %v5554_v27 = vsel %vm2430_vm2, %v2353_v3, -inf  ;;  %4126 = vtanh.f32 %v1820_v11  ;;  %v5565_v34 = vadd.f32 %v9357_v15, %v5064_v60  ;;  %v5572_v5 = vadd.f32 %v5357_v47, %v5066_v61  ;;  %v9362_v15 = vld [vmem:[#allocation41_spill] sm:$0xff] }
 0x13d   : > { %9349 = vst [vmem:[#allocation62_spill] sm:$0xff] %v5534_v42  ;;  %9350 = vst [vmem:[#allocation63_spill] sm:$0xff] %v5540_v4  ;;  %v5546_v39 = vpop.f32.mrb[34].mxu1  ;;  %v5548_v26 = vpop.f32.mrb[35].mxu0  ;;  %v2199_v46 = vadd.f32 1.0, %v4117_v9  ;;  %v1231_v12 = vmul.f32 %v5540_v4, %v5540_v4  ;;  %v1307_v21 = vmul.f32 %v5544_v28, %v5544_v28  ;;  %v2700_v56 = vmax.f32 %v5550_v25, %v5554_v27  ;;  %v9375_v42 = vld [vmem:[#allocation2_spill] sm:$0xff] }
 0x13e   : > { %9351 = vst [vmem:[#allocation64_spill] sm:$0xff] %v5544_v28  ;;  %9352 = vst [vmem:[#allocation65_spill] sm:$0xff] %v5546_v39  ;;  %v5557_v48 = vpop.f32.mrb[35].mxu1  ;;  %v1458_v9 = vmul.f32 %v1306_v22, %v5505_v30  ;;  %v5574_v52 = vmul.f32 0.7978846, %v1685_v53  ;;  %v1062_v38 = vmul.f32 0.5, %v9361_v8  ;;  %v5587_v47 = vadd.f32 %v5359_v17, %v5066_v61 }
 0x13f   : > { %9353 = vst [vmem:[#allocation66_spill] sm:$0xff] %v5548_v26  ;;  %9354 = vst [vmem:[#allocation67_spill] sm:$0xff] %v5550_v25  ;;  %v2351_v3 = vmul.f32 %v2199_v46, %v1135_v1  ;;  %v4119_v11 = vpop.eup %4118  ;;  %v5580_v26 = vadd.f32 %v9362_v15, %v5064_v60  ;;  %2701 = vmax.xlane.f32.xlu1 %v2700_v56  ;;  %v9365_v22 = vld [vmem:[#allocation6_spill] sm:$0xff]  ;;  %v1233_v56 = vmul.f32 %v5572_v5, %v5572_v5 }
 0x140   : > { %9355 = vst [vmem:[#allocation68_spill] sm:$0xff] %v5554_v27  ;;  %9356 = vst [vmem:[#allocation69_spill] sm:$0xff] %v5557_v48  ;;  %v1383_v48 = vmul.f32 %v1231_v12, %v5540_v4  ;;  %v5582_v27 = vmul.f32 0.7978846, %v1761_v50  ;;  %v2198_v1 = vadd.f32 1.0, %v4119_v11  ;;  %v1063_v46 = vmul.f32 0.5, %v9365_v22 }
 0x141   : > { %9358 = vst [vmem:[#allocation40_spill] sm:$0xff] %v5565_v34  ;;  %9359 = vst [vmem:[#allocation70_spill] sm:$0xff] %v5572_v5  ;;  %v5595_v8 = vsel %vm2430_vm2, %v2351_v3, -inf  ;;  %v1459_v12 = vmul.f32 %v1307_v21, %v5544_v28  ;;  %v1232_v50 = vmul.f32 %v5565_v34, %v5565_v34  ;;  %v4121_v15 = vpop.eup %4120  ;;  %v5607_v22 = vadd.f32 %v1532_v37, %v5434_v33 }
 0x142   : > { %9360 = vst [vmem:[#allocation71_spill] sm:$0xff] %v5574_v52  ;;  %9363 = vst [vmem:[#allocation4_spill] sm:$0xff] %v5580_v26  ;;  %v5589_v53 = vpop.f32.mrb[36].mxu0  ;;  %v5591_v25 = vpop.f32.mrb[36].mxu1  ;;  %v1534_v3 = vmul.f32 0.044715, %v1382_v43  ;;  %v1385_v33 = vmul.f32 %v1233_v56, %v5572_v5 }
 0x143   : > { %9364 = vst [vmem:[#allocation41_spill] sm:$0xff] %v5582_v27  ;;  %9366 = vst [vmem:[#allocation6_spill] sm:$0xff] %v5587_v47  ;;  %v5602_v11 = vpop.f32.mrb[37].mxu0  ;;  %v5604_v17 = vpop.f32.mrb[37].mxu1  ;;  %v5610_v27 = vmul.f32 %v2198_v1, %v5486_v49  ;;  %v2127_v39 = vadd.f32 1.0, %v4121_v15  ;;  %v1060_v10 = vmul.f32 0.5, %v9375_v42 }
 0x144   : > { %9367 = vst [vmem:[#allocation72_spill] sm:$0xff] %v5589_v53  ;;  %9368 = vst [vmem:[#allocation73_spill] sm:$0xff] %v5591_v25  ;;  %v1610_v25 = vmul.f32 0.044715, %v1458_v9  ;;  %v5612_v21 = vpop.f32.mrb[38].mxu0  ;;  %v5614_v53 = vpop.f32.mrb[38].mxu1 }
 0x145   : > { %9369 = vst [vmem:[#allocation74_spill] sm:$0xff] %v5595_v8  ;;  %9370 = vst [vmem:[#allocation75_spill] sm:$0xff] %v5602_v11  ;;  %v4123_v52 = vpop.eup %4122  ;;  %v1535_v11 = vmul.f32 0.044715, %v1383_v48  ;;  %v5619_v35 = vpop.f32.mrb[39].mxu0  ;;  %v2697_v49 = vmax.f32 %v5610_v27, %v5595_v8  ;;  %v9378_v9 = vld [vmem:[#allocation3_spill] sm:$0xff]  ;;  %v1384_v48 = vmul.f32 %v1232_v50, %v5565_v34 }
 0x146   : > { %9371 = vst [vmem:[#allocation76_spill] sm:$0xff] %v5604_v17  ;;  %9372 = vst [vmem:[#allocation77_spill] sm:$0xff] %v5610_v27  ;;  %v1308_v17 = vmul.f32 %v5580_v26, %v5580_v26  ;;  %v5621_v37 = vpop.f32.mrb[39].mxu1  ;;  %v2126_v43 = vadd.f32 1.0, %v4123_v52  ;;  %v1061_v1 = vmul.f32 0.5, %v9378_v9  ;;  %v4125_v15 = vpop.eup %4124 }
 0x147   : > { %9373 = vst [vmem:[#allocation78_spill] sm:$0xff] %v5612_v21  ;;  %9374 = vst [vmem:[#allocation79_spill] sm:$0xff] %v5614_v53  ;;  %v1309_v53 = vmul.f32 %v5587_v47, %v5587_v47  ;;  %v2279_v21 = vmul.f32 %v2127_v39, %v1063_v46  ;;  %v1611_v42 = vmul.f32 0.044715, %v1459_v12  ;;  %2698 = vmax.xlane.f32.xlu0 %v2697_v49  ;;  %v2125_v9 = vadd.f32 1.0, %v4125_v15  ;;  %v4127_v8 = vpop.eup %4126  ;;  %v9382_v12 = vld [vmem:[#allocation21_spill] sm:$0xff] }
 0x148   : > { %9376 = vst [vmem:[#allocation2_spill] sm:$0xff] %v5619_v35  ;;  %9377 = vst [vmem:[#allocation80_spill] sm:$0xff] %v5621_v37  ;;  %v5631_v35 = vadd.f32 %v1534_v3, %v5490_v14  ;;  %v5634_v37 = vadd.f32 %v1610_v25, %v5505_v30  ;;  %v5636_v52 = vmul.f32 %v2126_v43, %v1062_v38  ;;  %v1824_v50 = vmul.f32 0.7978846, %v9382_v12 }
 0x149   : > { %v5640_v27 = vsel %vm2430_vm2, %v2279_v21, -inf  ;;  %v1687_v39 = vadd.f32 %v1535_v11, %v5540_v4  ;;  %v1460_v46 = vmul.f32 %v1308_v17, %v5580_v26  ;;  %v2124_v3 = vadd.f32 1.0, %v4127_v8 }
 0x14a   : > { %9379 = vst [vmem:[#allocation3_spill] sm:$0xff] %v5634_v37  ;;  %9380 = vst [vmem:[#allocation81_spill] sm:$0xff] %v5636_v52  ;;  %v2589_v56 = vmax.f32 %v5636_v52, %v5640_v27  ;;  %v2277_v25 = vmul.f32 %v2125_v9, %v1061_v1  ;;  %v1461_v38 = vmul.f32 %v1309_v53, %v5587_v47  ;;  %v5648_v49 = vpop.f32.mrb[40].mxu0  ;;  %v5650_v43 = vpop.f32.mrb[40].mxu1  ;;  %v1536_v15 = vmul.f32 0.044715, %v1384_v48 }
 0x14b   : > { %9381 = vst [vmem:[#allocation82_spill] sm:$0xff] %v5640_v27  ;;  %9383 = vst [vmem:[#allocation21_spill] sm:$0xff] %v5648_v49  ;;  %v1763_v21 = vadd.f32 %v1611_v42, %v5544_v28  ;;  %v1537_v30 = vmul.f32 0.044715, %v1385_v33  ;;  %4128 = vtanh.f32 %v1824_v50  ;;  %v5653_v11 = vpop.f32.mrb[41].mxu0  ;;  %v5655_v17 = vpop.f32.mrb[41].mxu1  ;;  %v5657_v12 = vmul.f32 %v2124_v3, %v1060_v10 }
 0x14c   : > { %9384 = vst [vmem:[#allocation83_spill] sm:$0xff] %v5650_v43  ;;  %9385 = vst [vmem:[#allocation84_spill] sm:$0xff] %v5653_v11  ;;  %2590 = vmax.xlane.f32.xlu1 %v2589_v56  ;;  %v5661_v8 = vsel %vm2430_vm2, %v2277_v25, -inf  ;;  %v9389_v53 = vld [vmem:[#allocation26_spill] sm:$0xff]  ;;  %v5665_v27 = vpop.f32.mrb[42].mxu0  ;;  %v5667_v42 = vpop.f32.mrb[42].mxu1  ;;  %v5672_v50 = vadd.f32 %v5397_v24, %v5064_v60  ;;  %v5676_v10 = vadd.f32 %v5399_v29, %v5064_v60 }
 0x14d   : > { %9386 = vst [vmem:[#allocation85_spill] sm:$0xff] %v5655_v17  ;;  %9387 = vst [vmem:[#allocation86_spill] sm:$0xff] %v5657_v12  ;;  %4130 = vtanh.f32 %v9389_v53  ;;  %v9390_v1 = vld [vmem:[#allocation18_spill] sm:$0xff]  ;;  %v1612_v33 = vmul.f32 0.044715, %v1460_v46  ;;  %v9393_v48 = vld [vmem:[#allocation23_spill] sm:$0xff]  ;;  %v2586_v25 = vmax.f32 %v5657_v12, %v5661_v8  ;;  %v1689_v24 = vadd.f32 %v1537_v30, %v5572_v5 }
 0x14e   : > { %9388 = vst [vmem:[#allocation87_spill] sm:$0xff] %v5661_v8  ;;  %v1898_v9 = vmul.f32 0.7978846, %v9390_v1  ;;  %9391 = vst [vmem:[#allocation26_spill] sm:$0xff] %v5665_v27  ;;  %4132 = vtanh.f32 %v9393_v48  ;;  %v5678_v56 = vpop.f32.mrb[43].mxu0  ;;  %v5680_v3 = vpop.f32.mrb[43].mxu1  ;;  %v5705_v30 = vadd.f32 %v5406_v18, %v5066_v61  ;;  %v5723_v18 = vadd.f32 %v5416_v63, %v5064_v60 }
 0x14f   : > { %9392 = vst [vmem:[#allocation18_spill] sm:$0xff] %v5667_v42  ;;  %9394 = vst [vmem:[#allocation23_spill] sm:$0xff] %v5676_v10  ;;  %v1613_v53 = vmul.f32 0.044715, %v1461_v38  ;;  %v9397_v1 = vld [vmem:[#allocation8_spill] sm:$0xff]  ;;  %2587 = vmax.xlane.f32.xlu0 %v2586_v25  ;;  %v9400_v8 = vld [vmem:[#allocation27_spill] sm:$0xff] }
 0x150   : > { %9395 = vst [vmem:[#allocation88_spill] sm:$0xff] %v5678_v56  ;;  %9396 = vst [vmem:[#allocation89_spill] sm:$0xff] %v5680_v3  ;;  %v1064_v46 = vmul.f32 0.5, %v9397_v1  ;;  %4134 = vtanh.f32 %v1898_v9  ;;  %v5685_v48 = vmul.f32 0.7978846, %v1687_v39  ;;  %v9399_v42 = vld [vmem:[#allocation24_spill] sm:$0xff]  ;;  %v1234_v56 = vmul.f32 %v5672_v50, %v5672_v50 }
 0x151   : > { %v5687_v52 = vmul.f32 0.7978846, %v1763_v21  ;;  %v1900_v29 = vmul.f32 0.7978846, %v9399_v42  ;;  %v1310_v3 = vmul.f32 %v5676_v10, %v5676_v10  ;;  %4136 = vtanh.f32 %v9400_v8  ;;  %v9401_v38 = vld [vmem:[#allocation28_spill] sm:$0xff]  ;;  %v9404_v42 = vld [vmem:[#allocation10_spill] sm:$0xff] }
 0x152   : > { %v1826_v1 = vmul.f32 0.7978846, %v9401_v38  ;;  %v5698_v39 = vadd.f32 %v1536_v15, %v5565_v34  ;;  %v5701_v21 = vadd.f32 %v1612_v33, %v5580_v26  ;;  %v1765_v9 = vadd.f32 %v1613_v53, %v5587_v47  ;;  %v5713_v38 = vpop.f32.mrb[44].mxu0  ;;  %v5715_v15 = vpop.f32.mrb[44].mxu1  ;;  %v9410_v26 = vld [vmem:[#allocation37_spill] sm:$0xff]  ;;  %v9417_v27 = vld [vmem:[#allocation11_spill] sm:$0xff] }
 0x153   : > { %9398 = vst [vmem:[#allocation8_spill] sm:$0xff] %v5687_v52  ;;  %4138 = vtanh.f32 %v1900_v29  ;;  %v1065_v25 = vmul.f32 0.5, %v9404_v42  ;;  %v5711_v8 = vadd.f32 %v5408_v40, %v5066_v61  ;;  %9406 = vst [vmem:[#allocation10_spill] sm:$0xff] %v5713_v38  ;;  %v5717_v33 = vmul.f32 0.7978846, %v1689_v24  ;;  %v9409_v29 = vld [vmem:[#allocation5_spill] sm:$0xff] }
 0x154   : > { %9402 = vst [vmem:[#allocation24_spill] sm:$0xff] %v5698_v39  ;;  %9403 = vst [vmem:[#allocation27_spill] sm:$0xff] %v5701_v21  ;;  %4140 = vtanh.f32 %v1826_v1  ;;  %v1138_v12 = vmul.f32 0.5, %v9409_v29  ;;  %v5725_v53 = vpop.f32.mrb[45].mxu0  ;;  %v5727_v1 = vpop.f32.mrb[45].mxu1  ;;  %v9413_v40 = vld [vmem:[#allocation7_spill] sm:$0xff]  ;;  %v1386_v38 = vmul.f32 %v1234_v56, %v5672_v50  ;;  %v1235_v24 = vmul.f32 %v5705_v30, %v5705_v30 }
 0x155   : > { %9405 = vst [vmem:[#allocation28_spill] sm:$0xff] %v5711_v8  ;;  %9407 = vst [vmem:[#allocation90_spill] sm:$0xff] %v5715_v15  ;;  %4142 = vtanh.f32 %v9410_v26  ;;  %v1139_v42 = vmul.f32 0.5, %v9413_v40  ;;  %v1462_v15 = vmul.f32 %v1310_v3, %v5676_v10  ;;  %v5734_v29 = vpop.f32.mrb[46].mxu0  ;;  %v5736_v26 = vpop.f32.mrb[46].mxu1  ;;  %v9416_v63 = vld [vmem:[#allocation9_spill] sm:$0xff]  ;;  %v5746_v56 = vadd.f32 %v5425_v62, %v5066_v61 }
 0x156   : > { %9408 = vst [vmem:[#allocation91_spill] sm:$0xff] %v5717_v33  ;;  %9411 = vst [vmem:[#allocation5_spill] sm:$0xff] %v5725_v53  ;;  %v4129_v47 = vpop.eup %4128  ;;  %v1140_v28 = vmul.f32 0.5, %v9416_v63  ;;  %v1141_v53 = vmul.f32 0.5, %v9417_v27  ;;  %v5748_v3 = vpop.f32.mrb[47].mxu0  ;;  %v1311_v63 = vmul.f32 %v5711_v8, %v5711_v8  ;;  %v5758_v27 = vadd.f32 %v5427_v44, %v5066_v61  ;;  %v9423_v11 = vld [vmem:[#allocation12_spill] sm:$0xff] }
 0x157   : > { %9412 = vst [vmem:[#allocation37_spill] sm:$0xff] %v5727_v1  ;;  %9414 = vst [vmem:[#allocation7_spill] sm:$0xff] %v5734_v29  ;;  %v5742_v1 = vadd.f32 %v5418_v41, %v5064_v60  ;;  %v5750_v40 = vpop.f32.mrb[47].mxu1  ;;  %v4131_v29 = vpop.eup %4130  ;;  %v5752_v17 = vmul.f32 0.7978846, %v1765_v9  ;;  %v1066_v62 = vmul.f32 0.5, %v9423_v11  ;;  %v1387_v43 = vmul.f32 %v1235_v24, %v5705_v30 }
 0x158   : > { %9415 = vst [vmem:[#allocation92_spill] sm:$0xff] %v5736_v26  ;;  %9419 = vst [vmem:[#allocation11_spill] sm:$0xff] %v5748_v3  ;;  %v2128_v26 = vadd.f32 1.0, %v4129_v47  ;;  %v4133_v41 = vpop.eup %4132  ;;  %v2129_v5 = vadd.f32 1.0, %v4131_v29  ;;  %v9424_v21 = vld [vmem:[#allocation14_spill] sm:$0xff]  ;;  %v1237_v29 = vmul.f32 %v5746_v56, %v5746_v56  ;;  %v1463_v33 = vmul.f32 %v1311_v63, %v5711_v8 }
 0x159   : > { %9418 = vst [vmem:[#allocation9_spill] sm:$0xff] %v5742_v1  ;;  %9420 = vst [vmem:[#allocation93_spill] sm:$0xff] %v5750_v40  ;;  %v1067_v52 = vmul.f32 0.5, %v9424_v21  ;;  %v1236_v40 = vmul.f32 %v5723_v18, %v5723_v18  ;;  %v2203_v9 = vadd.f32 1.0, %v4133_v41  ;;  %v1614_v47 = vmul.f32 0.044715, %v1462_v15 }
 0x15a   : > { %9421 = vst [vmem:[#allocation94_spill] sm:$0xff] %v5752_v17  ;;  %9422 = vst [vmem:[#allocation95_spill] sm:$0xff] %v5758_v27  ;;  %v4135_v3 = vpop.eup %4134  ;;  %v1538_v17 = vmul.f32 0.044715, %v1386_v38  ;;  %v2281_v49 = vmul.f32 %v2129_v5, %v1065_v25  ;;  %v1312_v44 = vmul.f32 %v5742_v1, %v5742_v1  ;;  %v5769_v34 = vmul.f32 %v2128_v26, %v1064_v46 }
 0x15b   : > { %v2202_v37 = vadd.f32 1.0, %v4135_v3  ;;  %v4137_v11 = vpop.eup %4136  ;;  %v2355_v21 = vmul.f32 %v2203_v9, %v1139_v42  ;;  %v1313_v38 = vmul.f32 %v5758_v27, %v5758_v27  ;;  %v1388_v3 = vmul.f32 %v1236_v40, %v5723_v18 }
 0x15c   : > { %9425 = vst [vmem:[#allocation12_spill] sm:$0xff] %v5769_v34  ;;  %v5776_v5 = vsel %vm2430_vm2, %v2281_v49, -inf  ;;  %v2205_v24 = vadd.f32 1.0, %v4137_v11  ;;  %v1539_v63 = vmul.f32 0.044715, %v1387_v43  ;;  %v5797_v43 = vadd.f32 %v1614_v47, %v5676_v10 }
 0x15d   : > { %v4139_v15 = vpop.eup %4138  ;;  %9426 = vst [vmem:[#allocation14_spill] sm:$0xff] %v5776_v5  ;;  %v5778_v25 = vmul.f32 %v2202_v37, %v1138_v12  ;;  %v2592_v46 = vmax.f32 %v5769_v34, %v5776_v5  ;;  %v5785_v42 = vsel %vm2430_vm2, %v2355_v21, -inf  ;;  %v1389_v12 = vmul.f32 %v1237_v29, %v5746_v56 }
 0x15e   : > { %v4141_v41 = vpop.eup %4140  ;;  %9428 = vst [vmem:[#allocation97_spill] sm:$0xff] %v5785_v42  ;;  %v2204_v26 = vadd.f32 1.0, %v4139_v15  ;;  %v2357_v39 = vmul.f32 %v2205_v24, %v1141_v53  ;;  %v1615_v4 = vmul.f32 0.044715, %v1463_v33  ;;  %v1465_v5 = vmul.f32 %v1313_v38, %v5758_v27 }
 0x15f   : > { %9427 = vst [vmem:[#allocation96_spill] sm:$0xff] %v5778_v25  ;;  %v4143_v9 = vpop.eup %4142  ;;  %v2703_v49 = vmax.f32 %v5778_v25, %v5785_v42  ;;  %v2130_v37 = vadd.f32 1.0, %v4141_v41  ;;  %2593 = vmax.xlane.f32.xlu1 %v2592_v46  ;;  %v5794_v21 = vadd.f32 %v1538_v17, %v5672_v50  ;;  %v1464_v29 = vmul.f32 %v1312_v44, %v5742_v1  ;;  %v9433_v46 = vld [vmem:[#allocation29_spill] sm:$0xff]  ;;  %v9456_v42 = vld [vmem:[#allocation22_spill] sm:$0xff] }
 0x160   : > { %v5790_v40 = vmul.f32 %v2204_v26, %v1140_v28  ;;  %v2131_v11 = vadd.f32 1.0, %v4143_v9  ;;  %v5801_v53 = vsel %vm2430_vm2, %v2357_v39, -inf  ;;  %v1691_v33 = vadd.f32 %v1539_v63, %v5705_v30 }
 0x161   : > { %2704 = vmax.xlane.f32.xlu0 %v2703_v49  ;;  %9430 = vst [vmem:[#allocation99_spill] sm:$0xff] %v5801_v53  ;;  %v1540_v38 = vmul.f32 0.044715, %v1388_v3  ;;  %v5807_v24 = vmul.f32 %v2130_v37, %v1066_v62  ;;  %v1541_v17 = vmul.f32 0.044715, %v1389_v12  ;;  %4144 = vtanh.f32 %v5361_v54  ;;  %v5840_v49 = vpop.f32.mrb[48].mxu1 }
 0x162   : > { %9429 = vst [vmem:[#allocation98_spill] sm:$0xff] %v5790_v40  ;;  %v2706_v28 = vmax.f32 %v5790_v40, %v5801_v53  ;;  %v2283_v15 = vmul.f32 %v2131_v11, %v1067_v52  ;;  %v1828_v41 = vmul.f32 0.7978846, %v5352_v55  ;;  %v1767_v47 = vadd.f32 %v1615_v4, %v5711_v8  ;;  %9438 = vst [vmem:[#allocation103_spill] sm:$0xff] %v5840_v49  ;;  %v9454_v53 = vld [vmem:[#allocation20_spill] sm:$0xff] }
 0x163   : > { %9431 = vst [vmem:[#allocation100_spill] sm:$0xff] %v5807_v24  ;;  %v1617_v44 = vmul.f32 0.044715, %v1465_v5  ;;  %v1902_v52 = vmul.f32 0.7978846, %v9433_v46  ;;  %v5821_v62 = vadd.f32 %v5458_v23, %v5064_v60  ;;  %v5825_v55 = vadd.f32 %v5460_v2, %v5064_v60  ;;  %v9436_v5 = vld [vmem:[#allocation38_spill] sm:$0xff] }
 0x164   : > { %2707 = vmax.xlane.f32.xlu1 %v2706_v28  ;;  %v5813_v39 = vsel %vm2430_vm2, %v2283_v15, -inf  ;;  %4146 = vtanh.f32 %v1828_v41  ;;  %v5827_v54 = vmul.f32 0.7978846, %v1691_v33  ;;  %v5830_v26 = vadd.f32 %v1540_v38, %v5723_v18  ;;  %v5838_v2 = vpop.f32.mrb[48].mxu0  ;;  %v9439_v33 = vld [vmem:[#allocation16_spill] sm:$0xff]  ;;  %v9440_v41 = vld [vmem:[#allocation19_spill] sm:$0xff] }
 0x165   : > { %9432 = vst [vmem:[#allocation101_spill] sm:$0xff] %v5813_v39  ;;  %v2595_v3 = vmax.f32 %v5807_v24, %v5813_v39  ;;  %9434 = vst [vmem:[#allocation29_spill] sm:$0xff] %v5821_v62  ;;  %v1616_v4 = vmul.f32 0.044715, %v1464_v29  ;;  %4148 = vtanh.f32 %v1902_v52  ;;  %v1238_v63 = vmul.f32 %v5821_v62, %v5821_v62  ;;  %v5870_v46 = vpop.f32.mrb[49].mxu1  ;;  %v9453_v39 = vld [vmem:[#allocation17_spill] sm:$0xff] }
 0x166   : > { %9435 = vst [vmem:[#allocation102_spill] sm:$0xff] %v5825_v55  ;;  %4150 = vtanh.f32 %v9436_v5  ;;  %v1314_v23 = vmul.f32 %v5825_v55, %v5825_v55  ;;  %v1904_v9 = vmul.f32 0.7978846, %v5355_v45  ;;  %9437 = vst [vmem:[#allocation38_spill] sm:$0xff] %v5838_v2  ;;  %v5842_v37 = vmul.f32 0.7978846, %v1767_v47 }
 0x167   : > { %2596 = vmax.xlane.f32.xlu0 %v2595_v3  ;;  %v1693_v12 = vadd.f32 %v1541_v17, %v5746_v56  ;;  %4152 = vtanh.f32 %v5367_v7  ;;  %v1830_v11 = vmul.f32 0.7978846, %v5364_v51  ;;  %v1769_v29 = vadd.f32 %v1617_v44, %v5758_v27  ;;  %v9441_v51 = vld [vmem:[#allocation46_spill] sm:$0xff]  ;;  %v5868_v44 = vpop.f32.mrb[49].mxu0  ;;  %v9445_v3 = vld [vmem:[#allocation13_spill] sm:$0xff]  ;;  %v9446_v5 = vld [vmem:[#allocation15_spill] sm:$0xff] }
 0x168   : > { %v1390_v28 = vmul.f32 %v1238_v63, %v5821_v62  ;;  %4154 = vtanh.f32 %v1904_v9  ;;  %v5851_v45 = vadd.f32 %v5469_v20, %v5066_v61  ;;  %v5854_v15 = vadd.f32 %v1616_v4, %v5742_v1  ;;  %9443 = vst [vmem:[#allocation19_spill] sm:$0xff] %v5868_v44  ;;  %9444 = vst [vmem:[#allocation46_spill] sm:$0xff] %v5870_v46  ;;  %v5878_v9 = vpop.f32.mrb[50].mxu0 }
 0x169   : > { %v1068_v38 = vmul.f32 0.5, %v9439_v33  ;;  %v1069_v17 = vmul.f32 0.5, %v9440_v41  ;;  %4156 = vtanh.f32 %v1830_v11  ;;  %v1466_v7 = vmul.f32 %v1314_v23, %v5825_v55  ;;  %9447 = vst [vmem:[#allocation13_spill] sm:$0xff] %v5878_v9 }
 0x16a   : > { %4158 = vtanh.f32 %v9441_v51  ;;  %v5862_v47 = vadd.f32 %v5480_v31, %v5066_v61  ;;  %v5866_v20 = vadd.f32 %v5482_v0, %v5064_v60  ;;  %v5872_v52 = vmul.f32 0.7978846, %v1693_v12  ;;  %v5880_v31 = vpop.f32.mrb[50].mxu1  ;;  %v5892_v51 = vpop.f32.mrb[51].mxu0 }
 0x16b   : > { %v1142_v4 = vmul.f32 0.5, %v9445_v3  ;;  %v1143_v63 = vmul.f32 0.5, %v9446_v5  ;;  %v1239_v23 = vmul.f32 %v5851_v45, %v5851_v45  ;;  %9448 = vst [vmem:[#allocation15_spill] sm:$0xff] %v5880_v31  ;;  %v4145_v11 = vpop.eup %4144  ;;  %v5882_v0 = vmul.f32 0.7978846, %v1769_v29  ;;  %9451 = vst [vmem:[#allocation106_spill] sm:$0xff] %v5892_v51 }
 0x16c   : > { %9442 = vst [vmem:[#allocation16_spill] sm:$0xff] %v5862_v47  ;;  %v1542_v33 = vmul.f32 0.044715, %v1390_v28  ;;  %v5886_v41 = vadd.f32 %v5492_v16, %v5064_v60  ;;  %v5890_v12 = vadd.f32 %v5494_v59, %v5066_v61  ;;  %v5894_v3 = vpop.f32.mrb[51].mxu1  ;;  %v2133_v5 = vadd.f32 1.0, %v4145_v11 }
 0x16d   : > { %9452 = vst [vmem:[#allocation107_spill] sm:$0xff] %v5894_v3  ;;  %v1144_v24 = vmul.f32 0.5, %v9453_v39  ;;  %v1145_v40 = vmul.f32 0.5, %v9454_v53  ;;  %v5900_v29 = vadd.f32 %v5496_v19, %v5066_v61  ;;  %v1618_v16 = vmul.f32 0.044715, %v1466_v7  ;;  %v9457_v39 = vld [vmem:[#allocation30_spill] sm:$0xff] }
 0x16e   : > { %9449 = vst [vmem:[#allocation104_spill] sm:$0xff] %v5886_v41  ;;  %9450 = vst [vmem:[#allocation105_spill] sm:$0xff] %v5890_v12  ;;  %v4147_v28 = vpop.eup %4146  ;;  %v1070_v25 = vmul.f32 0.5, %v9456_v42  ;;  %v1315_v59 = vmul.f32 %v5862_v47, %v5862_v47  ;;  %v1240_v34 = vmul.f32 %v5866_v20, %v5866_v20  ;;  %v2285_v51 = vmul.f32 %v2133_v5, %v1069_v17 }
 0x16f   : > { %9455 = vst [vmem:[#allocation17_spill] sm:$0xff] %v5900_v29  ;;  %v4149_v3 = vpop.eup %4148  ;;  %v2132_v11 = vadd.f32 1.0, %v4147_v28  ;;  %v1071_v31 = vmul.f32 0.5, %v9457_v39  ;;  %v1391_v53 = vmul.f32 %v1239_v23, %v5851_v45  ;;  %v5910_v46 = vadd.f32 %v1542_v33, %v5821_v62 }
 0x170   : > { %v4151_v9 = vpop.eup %4150  ;;  %v2206_v19 = vadd.f32 1.0, %v4149_v3  ;;  %v1316_v42 = vmul.f32 %v5886_v41, %v5886_v41  ;;  %v1241_v7 = vmul.f32 %v5890_v12, %v5890_v12  ;;  %v5920_v17 = vsel %vm2430_vm2, %v2285_v51, -inf }
 0x171   : > { %v4153_v44 = vpop.eup %4152  ;;  %v5916_v49 = vmul.f32 %v2132_v11, %v1068_v38  ;;  %9459 = vst [vmem:[#allocation22_spill] sm:$0xff] %v5920_v17  ;;  %v2207_v5 = vadd.f32 1.0, %v4151_v9  ;;  %v1317_v23 = vmul.f32 %v5900_v29, %v5900_v29  ;;  %v5925_v33 = vadd.f32 %v1618_v16, %v5825_v55 }
 0x172   : > { %v4155_v3 = vpop.eup %4154  ;;  %v2209_v28 = vadd.f32 1.0, %v4153_v44  ;;  %v1467_v39 = vmul.f32 %v1315_v59, %v5862_v47  ;;  %v1392_v2 = vmul.f32 %v1240_v34, %v5866_v20  ;;  %v1543_v27 = vmul.f32 0.044715, %v1391_v53 }
 0x173   : > { %9458 = vst [vmem:[#allocation20_spill] sm:$0xff] %v5916_v49  ;;  %9460 = vst [vmem:[#allocation30_spill] sm:$0xff] %v5925_v33  ;;  %v4157_v62 = vpop.eup %4156  ;;  %v2598_v38 = vmax.f32 %v5916_v49, %v5920_v17  ;;  %v2359_v11 = vmul.f32 %v2207_v5, %v1143_v63  ;;  %v2208_v51 = vadd.f32 1.0, %v4155_v3  ;;  %v5931_v1 = vmul.f32 %v2206_v19, %v1142_v4  ;;  %v9466_v3 = vld [vmem:[#allocation43_spill] sm:$0xff] }
 0x174   : > { %v4159_v9 = vpop.eup %4158  ;;  %v2361_v8 = vmul.f32 %v2209_v28, %v1145_v40  ;;  %v2134_v10 = vadd.f32 1.0, %v4157_v62  ;;  %v1393_v16 = vmul.f32 %v1241_v7, %v5890_v12  ;;  %v1469_v17 = vmul.f32 %v1317_v23, %v5900_v29 }
 0x175   : > { %9461 = vst [vmem:[#allocation108_spill] sm:$0xff] %v5931_v1  ;;  %2599 = vmax.xlane.f32.xlu1 %v2598_v38  ;;  %v5936_v44 = vsel %vm2430_vm2, %v2359_v11, -inf  ;;  %v5938_v34 = vmul.f32 %v2208_v51, %v1144_v24  ;;  %v2135_v59 = vadd.f32 1.0, %v4159_v9  ;;  %v1619_v40 = vmul.f32 0.044715, %v1467_v39  ;;  %v9468_v39 = vld [vmem:[#allocation32_spill] sm:$0xff] }
 0x176   : > { %9462 = vst [vmem:[#allocation109_spill] sm:$0xff] %v5936_v44  ;;  %v2709_v63 = vmax.f32 %v5931_v1, %v5936_v44  ;;  %v5945_v4 = vsel %vm2430_vm2, %v2361_v8, -inf  ;;  %v1468_v62 = vmul.f32 %v1316_v42, %v5886_v41  ;;  %v1695_v24 = vadd.f32 %v1543_v27, %v5851_v45  ;;  %v9472_v9 = vld [vmem:[#allocation47_spill] sm:$0xff]  ;;  %v9498_v1 = vld [vmem:[#allocation33_spill] sm:$0xff] }
 0x177   : > { %9463 = vst [vmem:[#allocation110_spill] sm:$0xff] %v5938_v34  ;;  %9464 = vst [vmem:[#allocation111_spill] sm:$0xff] %v5945_v4  ;;  %v2712_v53 = vmax.f32 %v5938_v34, %v5945_v4  ;;  %v2287_v19 = vmul.f32 %v2135_v59, %v1071_v31  ;;  %v1544_v7 = vmul.f32 0.044715, %v1392_v2  ;;  %v5951_v5 = vmul.f32 %v2134_v10, %v1070_v25  ;;  %v9469_v31 = vld [vmem:[#allocation42_spill] sm:$0xff]  ;;  %v5982_v59 = vpop.f32.mrb[52].mxu0 }
 0x178   : > { %2710 = vmax.xlane.f32.xlu0 %v2709_v63  ;;  %v1545_v23 = vmul.f32 0.044715, %v1393_v16  ;;  %v1832_v28 = vmul.f32 0.7978846, %v9466_v3  ;;  %4160 = vtanh.f32 %v5452_v58  ;;  %v1621_v42 = vmul.f32 0.044715, %v1469_v17 }
 0x179   : > { %9465 = vst [vmem:[#allocation112_spill] sm:$0xff] %v5951_v5  ;;  %2713 = vmax.xlane.f32.xlu1 %v2712_v53  ;;  %v5957_v8 = vsel %vm2430_vm2, %v2287_v19, -inf  ;;  %v5960_v38 = vmul.f32 0.5, %v9468_v39  ;;  %v1906_v27 = vmul.f32 0.7978846, %v9469_v31  ;;  %v5967_v25 = vadd.f32 %v5520_v36, %v5064_v60  ;;  %9473 = vst [vmem:[#allocation47_spill] sm:$0xff] %v5982_v59 }
 0x17a   : > { %9467 = vst [vmem:[#allocation43_spill] sm:$0xff] %v5957_v8  ;;  %v2601_v10 = vmax.f32 %v5951_v5, %v5957_v8  ;;  %4162 = vtanh.f32 %v1832_v28  ;;  %v5971_v58 = vadd.f32 %v5522_v57, %v5064_v60  ;;  %v5973_v2 = vmul.f32 0.7978846, %v1695_v24  ;;  %v5984_v57 = vpop.f32.mrb[52].mxu1  ;;  %v9479_v39 = vld [vmem:[#allocation34_spill] sm:$0xff]  ;;  %v9492_v8 = vld [vmem:[#allocation65_spill] sm:$0xff] }
 0x17b   : > { %9470 = vst [vmem:[#allocation32_spill] sm:$0xff] %v5967_v25  ;;  %v1771_v17 = vadd.f32 %v1619_v40, %v5862_v47  ;;  %v1620_v11 = vmul.f32 0.044715, %v1468_v62  ;;  %4164 = vtanh.f32 %v1906_v27  ;;  %v1242_v51 = vmul.f32 %v5967_v25, %v5967_v25  ;;  %9474 = vst [vmem:[#allocation113_spill] sm:$0xff] %v5984_v57  ;;  %v9475_v62 = vld [vmem:[#allocation52_spill] sm:$0xff]  ;;  %v9480_v27 = vld [vmem:[#allocation55_spill] sm:$0xff] }
 0x17c   : > { %9471 = vst [vmem:[#allocation42_spill] sm:$0xff] %v5971_v58  ;;  %2602 = vmax.xlane.f32.xlu0 %v2601_v10  ;;  %4166 = vtanh.f32 %v5447_v6  ;;  %v1318_v36 = vmul.f32 %v5971_v58, %v5971_v58  ;;  %v1908_v16 = vmul.f32 0.7978846, %v9472_v9  ;;  %v5987_v63 = vadd.f32 %v1544_v7, %v5866_v20  ;;  %v9476_v6 = vld [vmem:[#allocation53_spill] sm:$0xff]  ;;  %v6016_v9 = vpop.f32.mrb[53].mxu1 }
 0x17d   : > { %v1697_v40 = vadd.f32 %v1545_v23, %v5890_v12  ;;  %4168 = vtanh.f32 %v9475_v62  ;;  %v1834_v53 = vmul.f32 0.7978846, %v9476_v6  ;;  %v1773_v19 = vadd.f32 %v1621_v42, %v5900_v29  ;;  %v9481_v42 = vld [vmem:[#allocation61_spill] sm:$0xff]  ;;  %v9488_v6 = vld [vmem:[#allocation31_spill] sm:$0xff] }
 0x17e   : > { %v1394_v24 = vmul.f32 %v1242_v51, %v5967_v25  ;;  %4170 = vtanh.f32 %v1908_v16  ;;  %v5996_v3 = vadd.f32 %v5527_v13, %v5066_v61  ;;  %v5998_v28 = vmul.f32 0.7978846, %v1771_v17  ;;  %v9483_v51 = vld [vmem:[#allocation62_spill] sm:$0xff]  ;;  %v6014_v17 = vpop.f32.mrb[53].mxu0  ;;  %v9487_v16 = vld [vmem:[#allocation25_spill] sm:$0xff]  ;;  %v10022_v32 = vld [vmem:[#allocation111_spill] sm:$0xff] }
 0x17f   : > { %v6001_v7 = vadd.f32 %v1620_v11, %v5886_v41  ;;  %v1073_v23 = vmul.f32 0.5, %v9479_v39  ;;  %4172 = vtanh.f32 %v1834_v53  ;;  %v1470_v31 = vmul.f32 %v1318_v36, %v5971_v58  ;;  %9485 = vst [vmem:[#allocation61_spill] sm:$0xff] %v6014_v17  ;;  %9486 = vst [vmem:[#allocation62_spill] sm:$0xff] %v6016_v9  ;;  %v6024_v39 = vpop.f32.mrb[54].mxu0  ;;  %v9502_v17 = vld [vmem:[#allocation36_spill] sm:$0xff] }
 0x180   : > { %9477 = vst [vmem:[#allocation52_spill] sm:$0xff] %v5998_v28  ;;  %4174 = vtanh.f32 %v9480_v27  ;;  %v6008_v10 = vadd.f32 %v9481_v42, %v5066_v61  ;;  %v6012_v13 = vadd.f32 %v9483_v51, %v5064_v60  ;;  %v6018_v11 = vmul.f32 0.7978846, %v1697_v40  ;;  %9489 = vst [vmem:[#allocation25_spill] sm:$0xff] %v6024_v39  ;;  %v6026_v27 = vpop.f32.mrb[54].mxu1  ;;  %v9494_v40 = vld [vmem:[#allocation66_spill] sm:$0xff] }
 0x181   : > { %9478 = vst [vmem:[#allocation53_spill] sm:$0xff] %v6001_v7  ;;  %v1146_v62 = vmul.f32 0.5, %v9487_v16  ;;  %v1147_v36 = vmul.f32 0.5, %v9488_v6  ;;  %v1243_v53 = vmul.f32 %v5996_v3, %v5996_v3  ;;  %9490 = vst [vmem:[#allocation31_spill] sm:$0xff] %v6026_v27  ;;  %v6028_v51 = vmul.f32 0.7978846, %v1773_v19 }
 0x182   : > { %9482 = vst [vmem:[#allocation34_spill] sm:$0xff] %v6008_v10  ;;  %9484 = vst [vmem:[#allocation55_spill] sm:$0xff] %v6012_v13  ;;  %v4161_v42 = vpop.eup %4160  ;;  %v1546_v4 = vmul.f32 0.044715, %v1394_v24  ;;  %v6032_v5 = vadd.f32 %v9492_v8, %v5064_v60  ;;  %v6036_v16 = vadd.f32 %v9494_v40, %v5066_v61  ;;  %v6038_v6 = vpop.f32.mrb[55].mxu0  ;;  %v1148_v49 = vmul.f32 0.5, %v9498_v1 }
 0x183   : > { %9491 = vst [vmem:[#allocation114_spill] sm:$0xff] %v6028_v51  ;;  %9496 = vst [vmem:[#allocation115_spill] sm:$0xff] %v6038_v6  ;;  %v6040_v34 = vpop.f32.mrb[55].mxu1  ;;  %v2137_v44 = vadd.f32 1.0, %v4161_v42  ;;  %v9499_v27 = vld [vmem:[#allocation35_spill] sm:$0xff]  ;;  %v9500_v19 = vld [vmem:[#allocation69_spill] sm:$0xff]  ;;  %v1319_v40 = vmul.f32 %v6008_v10, %v6008_v10  ;;  %v1244_v6 = vmul.f32 %v6012_v13, %v6012_v13 }
 0x184   : > { %9493 = vst [vmem:[#allocation65_spill] sm:$0xff] %v6032_v5  ;;  %9495 = vst [vmem:[#allocation66_spill] sm:$0xff] %v6036_v16  ;;  %v1149_v39 = vmul.f32 0.5, %v9499_v27  ;;  %v6046_v24 = vadd.f32 %v9500_v19, %v5066_v61  ;;  %v4163_v9 = vpop.eup %4162  ;;  %v1622_v8 = vmul.f32 0.044715, %v1470_v31  ;;  %v1074_v57 = vmul.f32 0.5, %v9502_v17 }
 0x185   : > { %9497 = vst [vmem:[#allocation116_spill] sm:$0xff] %v6040_v34  ;;  %v4165_v34 = vpop.eup %4164  ;;  %v2136_v42 = vadd.f32 1.0, %v4163_v9  ;;  %v2289_v59 = vmul.f32 %v2137_v44, %v1073_v23  ;;  %v9503_v1 = vld [vmem:[#allocation44_spill] sm:$0xff]  ;;  %v1395_v27 = vmul.f32 %v1243_v53, %v5996_v3  ;;  %v6056_v47 = vadd.f32 %v1546_v4, %v5967_v25 }
 0x186   : > { %9501 = vst [vmem:[#allocation33_spill] sm:$0xff] %v6046_v24  ;;  %v1075_v29 = vmul.f32 0.5, %v9503_v1  ;;  %v4167_v41 = vpop.eup %4166  ;;  %v2210_v19 = vadd.f32 1.0, %v4165_v34  ;;  %v1320_v31 = vmul.f32 %v6032_v5, %v6032_v5  ;;  %v1245_v17 = vmul.f32 %v6036_v16, %v6036_v16 }
 0x187   : > { %9504 = vst [vmem:[#allocation35_spill] sm:$0xff] %v6056_v47  ;;  %v4169_v55 = vpop.eup %4168  ;;  %v6063_v12 = vmul.f32 %v2136_v42, %v5960_v38  ;;  %v6067_v44 = vsel %vm2430_vm2, %v2289_v59, -inf  ;;  %v2211_v23 = vadd.f32 1.0, %v4167_v41  ;;  %v1321_v34 = vmul.f32 %v6046_v24, %v6046_v24 }
 0x188   : > { %9506 = vst [vmem:[#allocation36_spill] sm:$0xff] %v6067_v44  ;;  %v4171_v4 = vpop.eup %4170  ;;  %v6072_v9 = vadd.f32 %v1622_v8, %v5971_v58  ;;  %v2213_v53 = vadd.f32 1.0, %v4169_v55  ;;  %v1471_v1 = vmul.f32 %v1319_v40, %v6008_v10  ;;  %v1396_v25 = vmul.f32 %v1244_v6, %v6012_v13 }
 0x189   : > { %9505 = vst [vmem:[#allocation69_spill] sm:$0xff] %v6063_v12  ;;  %v4173_v47 = vpop.eup %4172  ;;  %v2604_v38 = vmax.f32 %v6063_v12, %v6067_v44  ;;  %v2363_v42 = vmul.f32 %v2211_v23, %v1147_v36  ;;  %v2212_v59 = vadd.f32 1.0, %v4171_v4  ;;  %v1547_v51 = vmul.f32 0.044715, %v1395_v27 }
 0x18a   : > { %9507 = vst [vmem:[#allocation44_spill] sm:$0xff] %v6072_v9  ;;  %v4175_v41 = vpop.eup %4174  ;;  %v6078_v7 = vmul.f32 %v2210_v19, %v1146_v62  ;;  %v2365_v28 = vmul.f32 %v2213_v53, %v1149_v39  ;;  %v2138_v33 = vadd.f32 1.0, %v4173_v47  ;;  %v1397_v8 = vmul.f32 %v1245_v17, %v6036_v16  ;;  %v9513_v53 = vld [vmem:[#allocation71_spill] sm:$0xff] }
 0x18b   : > { %2605 = vmax.xlane.f32.xlu1 %v2604_v38  ;;  %v6083_v55 = vsel %vm2430_vm2, %v2363_v42, -inf  ;;  %v6085_v6 = vmul.f32 %v2212_v59, %v1148_v49  ;;  %v2139_v40 = vadd.f32 1.0, %v4175_v41  ;;  %v1473_v44 = vmul.f32 %v1321_v34, %v6046_v24 }
 0x18c   : > { %9508 = vst [vmem:[#allocation117_spill] sm:$0xff] %v6078_v7  ;;  %9509 = vst [vmem:[#allocation118_spill] sm:$0xff] %v6083_v55  ;;  %v2715_v36 = vmax.f32 %v6078_v7, %v6083_v55  ;;  %v6092_v62 = vsel %vm2430_vm2, %v2365_v28, -inf  ;;  %v1623_v47 = vmul.f32 0.044715, %v1471_v1  ;;  %v1472_v39 = vmul.f32 %v1320_v31, %v6032_v5  ;;  %v9515_v1 = vld [vmem:[#allocation49_spill] sm:$0xff] }
 0x18d   : > { %9510 = vst [vmem:[#allocation119_spill] sm:$0xff] %v6085_v6  ;;  %9511 = vst [vmem:[#allocation120_spill] sm:$0xff] %v6092_v62  ;;  %v2718_v27 = vmax.f32 %v6085_v6, %v6092_v62  ;;  %v2291_v19 = vmul.f32 %v2139_v40, %v1075_v29  ;;  %v1699_v49 = vadd.f32 %v1547_v51, %v5996_v3  ;;  %v1548_v17 = vmul.f32 0.044715, %v1396_v25  ;;  %v9516_v29 = vld [vmem:[#allocation54_spill] sm:$0xff]  ;;  %v9517_v25 = vld [vmem:[#allocation72_spill] sm:$0xff] }
 0x18e   : > { %2716 = vmax.xlane.f32.xlu0 %v2715_v36  ;;  %v6098_v23 = vmul.f32 %v2138_v33, %v1074_v57  ;;  %v1549_v34 = vmul.f32 0.044715, %v1397_v8  ;;  %v1836_v4 = vmul.f32 0.7978846, %v5607_v22  ;;  %4176 = vtanh.f32 %v9513_v53  ;;  %v9519_v57 = vld [vmem:[#allocation73_spill] sm:$0xff]  ;;  %v9521_v8 = vld [vmem:[#allocation56_spill] sm:$0xff] }
 0x18f   : > { %2719 = vmax.xlane.f32.xlu1 %v2718_v27  ;;  %v6104_v28 = vsel %vm2430_vm2, %v2291_v19, -inf  ;;  %v1625_v31 = vmul.f32 0.044715, %v1473_v44  ;;  %v6107_v38 = vmul.f32 0.5, %v9515_v1  ;;  %v1910_v51 = vmul.f32 0.7978846, %v9516_v29 }
 0x190   : > { %9512 = vst [vmem:[#allocation121_spill] sm:$0xff] %v6098_v23  ;;  %9514 = vst [vmem:[#allocation71_spill] sm:$0xff] %v6104_v28  ;;  %v2607_v33 = vmax.f32 %v6098_v23, %v6104_v28  ;;  %4178 = vtanh.f32 %v1836_v4  ;;  %v6114_v22 = vadd.f32 %v9517_v25, %v5064_v60  ;;  %v6118_v42 = vadd.f32 %v9519_v57, %v5064_v60  ;;  %v9522_v27 = vld [vmem:[#allocation60_spill] sm:$0xff]  ;;  %v6129_v4 = vpop.f32.mrb[56].mxu0  ;;  %v6131_v53 = vpop.f32.mrb[56].mxu1  ;;  %v9541_v23 = vld [vmem:[#allocation79_spill] sm:$0xff] }
 0x191   : > { %v6120_v59 = vmul.f32 0.7978846, %v1699_v49  ;;  %v1775_v44 = vadd.f32 %v1623_v47, %v6008_v10  ;;  %v1624_v41 = vmul.f32 0.044715, %v1472_v39  ;;  %4180 = vtanh.f32 %v1910_v51  ;;  %9523 = vst [vmem:[#allocation72_spill] sm:$0xff] %v6129_v4  ;;  %9524 = vst [vmem:[#allocation73_spill] sm:$0xff] %v6131_v53 }
 0x192   : > { %9518 = vst [vmem:[#allocation49_spill] sm:$0xff] %v6114_v22  ;;  %9520 = vst [vmem:[#allocation54_spill] sm:$0xff] %v6118_v42  ;;  %2608 = vmax.xlane.f32.xlu0 %v2607_v33  ;;  %4182 = vtanh.f32 %v9521_v8  ;;  %v1246_v40 = vmul.f32 %v6114_v22, %v6114_v22  ;;  %v1322_v36 = vmul.f32 %v6118_v42, %v6118_v42  ;;  %v1912_v19 = vmul.f32 0.7978846, %v9522_v27  ;;  %v9525_v39 = vld [vmem:[#allocation41_spill] sm:$0xff]  ;;  %v9526_v33 = vld [vmem:[#allocation75_spill] sm:$0xff] }
 0x193   : > { %v6134_v49 = vadd.f32 %v1548_v17, %v6012_v13  ;;  %v1701_v47 = vadd.f32 %v1549_v34, %v6036_v16  ;;  %4184 = vtanh.f32 %v9525_v39  ;;  %v1838_v1 = vmul.f32 0.7978846, %v5631_v35  ;;  %v9529_v8 = vld [vmem:[#allocation50_spill] sm:$0xff]  ;;  %v9530_v35 = vld [vmem:[#allocation76_spill] sm:$0xff]  ;;  %v6163_v39 = vpop.f32.mrb[57].mxu1 }
 0x194   : > { %v1777_v29 = vadd.f32 %v1625_v31, %v6046_v24  ;;  %v1398_v51 = vmul.f32 %v1246_v40, %v6114_v22  ;;  %4186 = vtanh.f32 %v1912_v19  ;;  %v6143_v25 = vadd.f32 %v9526_v33, %v5066_v61  ;;  %v9532_v40 = vld [vmem:[#allocation78_spill] sm:$0xff]  ;;  %9535 = vst [vmem:[#allocation76_spill] sm:$0xff] %v6163_v39  ;;  %v9536_v33 = vld [vmem:[#allocation39_spill] sm:$0xff] }
 0x195   : > { %v6145_v57 = vmul.f32 0.7978846, %v1775_v44  ;;  %v6148_v17 = vadd.f32 %v1624_v41, %v6032_v5  ;;  %v1077_v34 = vmul.f32 0.5, %v9529_v8  ;;  %4188 = vtanh.f32 %v1838_v1  ;;  %v6161_v44 = vpop.f32.mrb[57].mxu0  ;;  %v9537_v8 = vld [vmem:[#allocation45_spill] sm:$0xff] }
 0x196   : > { %v1474_v27 = vmul.f32 %v1322_v36, %v6118_v42  ;;  %4190 = vtanh.f32 %v5685_v48  ;;  %v6155_v31 = vadd.f32 %v9530_v35, %v5066_v61  ;;  %v6159_v19 = vadd.f32 %v9532_v40, %v5064_v60  ;;  %9534 = vst [vmem:[#allocation50_spill] sm:$0xff] %v6161_v44  ;;  %v6171_v62 = vpop.f32.mrb[58].mxu0  ;;  %v6173_v35 = vpop.f32.mrb[58].mxu1 }
 0x197   : > { %9527 = vst [vmem:[#allocation56_spill] sm:$0xff] %v6145_v57  ;;  %9528 = vst [vmem:[#allocation60_spill] sm:$0xff] %v6148_v17  ;;  %v6165_v41 = vmul.f32 0.7978846, %v1701_v47  ;;  %v1150_v1 = vmul.f32 0.5, %v9536_v33  ;;  %v1151_v36 = vmul.f32 0.5, %v9537_v8  ;;  %v1247_v48 = vmul.f32 %v6143_v25, %v6143_v25 }
 0x198   : > { %9531 = vst [vmem:[#allocation41_spill] sm:$0xff] %v6155_v31  ;;  %9533 = vst [vmem:[#allocation75_spill] sm:$0xff] %v6159_v19  ;;  %v4177_v6 = vpop.eup %4176  ;;  %v6175_v40 = vmul.f32 0.7978846, %v1777_v29  ;;  %v1550_v28 = vmul.f32 0.044715, %v1398_v51  ;;  %v6179_v55 = vadd.f32 %v9541_v23, %v5064_v60 }
 0x199   : > { %9538 = vst [vmem:[#allocation78_spill] sm:$0xff] %v6171_v62  ;;  %9539 = vst [vmem:[#allocation39_spill] sm:$0xff] %v6173_v35  ;;  %v9543_v47 = vld [vmem:[#allocation2_spill] sm:$0xff]  ;;  %v6185_v8 = vpop.f32.mrb[59].mxu0  ;;  %v6187_v7 = vpop.f32.mrb[59].mxu1  ;;  %v2141_v12 = vadd.f32 1.0, %v4177_v6 }
 0x19a   : > { %9540 = vst [vmem:[#allocation45_spill] sm:$0xff] %v6175_v40  ;;  %9542 = vst [vmem:[#allocation79_spill] sm:$0xff] %v6179_v55  ;;  %v6183_v33 = vadd.f32 %v9543_v47, %v5066_v61  ;;  %v9547_v62 = vld [vmem:[#allocation48_spill] sm:$0xff]  ;;  %v9548_v35 = vld [vmem:[#allocation51_spill] sm:$0xff]  ;;  %v4179_v53 = vpop.eup %4178  ;;  %v1626_v23 = vmul.f32 0.044715, %v1474_v27  ;;  %v1323_v47 = vmul.f32 %v6155_v31, %v6155_v31  ;;  %v6203_v58 = vadd.f32 %v1550_v28, %v6114_v22 }
 0x19b   : > { %9545 = vst [vmem:[#allocation122_spill] sm:$0xff] %v6185_v8  ;;  %9546 = vst [vmem:[#allocation123_spill] sm:$0xff] %v6187_v7  ;;  %v1152_v39 = vmul.f32 0.5, %v9547_v62  ;;  %v1153_v44 = vmul.f32 0.5, %v9548_v35  ;;  %v9549_v29 = vld [vmem:[#allocation80_spill] sm:$0xff]  ;;  %v1078_v4 = vmul.f32 0.5, %v5490_v14  ;;  %v1248_v8 = vmul.f32 %v6159_v19, %v6159_v19  ;;  %v4181_v7 = vpop.eup %4180 }
 0x19c   : > { %9544 = vst [vmem:[#allocation2_spill] sm:$0xff] %v6183_v33  ;;  %v6193_v51 = vadd.f32 %v9549_v29, %v5066_v61  ;;  %v2140_v6 = vadd.f32 1.0, %v4179_v53  ;;  %v2293_v24 = vmul.f32 %v2141_v12, %v1077_v34  ;;  %v9551_v62 = vld [vmem:[#allocation63_spill] sm:$0xff]  ;;  %v1399_v35 = vmul.f32 %v1247_v48, %v6143_v25  ;;  %v4183_v10 = vpop.eup %4182  ;;  %9552 = vst [vmem:[#allocation51_spill] sm:$0xff] %v6203_v58 }
 0x19d   : > { %v1079_v5 = vmul.f32 0.5, %v9551_v62  ;;  %v2214_v29 = vadd.f32 1.0, %v4181_v7  ;;  %v1324_v14 = vmul.f32 %v6179_v55, %v6179_v55  ;;  %v1249_v27 = vmul.f32 %v6183_v33, %v6183_v33  ;;  %v4185_v16 = vpop.eup %4184 }
 0x19e   : > { %9550 = vst [vmem:[#allocation48_spill] sm:$0xff] %v6193_v51  ;;  %v6210_v40 = vmul.f32 %v2140_v6, %v6107_v38  ;;  %v6214_v12 = vsel %vm2430_vm2, %v2293_v24, -inf  ;;  %v2215_v53 = vadd.f32 1.0, %v4183_v10  ;;  %v1325_v7 = vmul.f32 %v6193_v51, %v6193_v51  ;;  %v4187_v28 = vpop.eup %4186 }
 0x19f   : > { %9554 = vst [vmem:[#allocation63_spill] sm:$0xff] %v6214_v12  ;;  %v6219_v34 = vadd.f32 %v1626_v23, %v6118_v42  ;;  %v2217_v48 = vadd.f32 1.0, %v4185_v16  ;;  %v1475_v62 = vmul.f32 %v1323_v47, %v6155_v31  ;;  %v1400_v22 = vmul.f32 %v1248_v8, %v6159_v19  ;;  %v4189_v58 = vpop.eup %4188 }
 0x1a0   : > { %9553 = vst [vmem:[#allocation80_spill] sm:$0xff] %v6210_v40  ;;  %v2610_v38 = vmax.f32 %v6210_v40, %v6214_v12  ;;  %v2367_v6 = vmul.f32 %v2215_v53, %v1151_v36  ;;  %v2216_v24 = vadd.f32 1.0, %v4187_v28  ;;  %v1551_v17 = vmul.f32 0.044715, %v1399_v35  ;;  %v4191_v10 = vpop.eup %4190  ;;  %v9561_v28 = vld [vmem:[#allocation24_spill] sm:$0xff]  ;;  %v9589_v40 = vld [vmem:[#allocation18_spill] sm:$0xff] }
 0x1a1   : > { %9555 = vst [vmem:[#allocation124_spill] sm:$0xff] %v6219_v34  ;;  %v6225_v57 = vmul.f32 %v2214_v29, %v1150_v1  ;;  %v2369_v9 = vmul.f32 %v2217_v48, %v1153_v44  ;;  %v2142_v13 = vadd.f32 1.0, %v4189_v58  ;;  %v1401_v23 = vmul.f32 %v1249_v27, %v6183_v33 }
 0x1a2   : > { %2611 = vmax.xlane.f32.xlu1 %v2610_v38  ;;  %v6230_v16 = vsel %vm2430_vm2, %v2367_v6, -inf  ;;  %v6232_v8 = vmul.f32 %v2216_v24, %v1152_v39  ;;  %v2143_v47 = vadd.f32 1.0, %v4191_v10  ;;  %v1477_v12 = vmul.f32 %v1325_v7, %v6193_v51  ;;  %v9562_v38 = vld [vmem:[#allocation91_spill] sm:$0xff] }
 0x1a3   : > { %9556 = vst [vmem:[#allocation125_spill] sm:$0xff] %v6225_v57  ;;  %9557 = vst [vmem:[#allocation126_spill] sm:$0xff] %v6230_v16  ;;  %v2721_v36 = vmax.f32 %v6225_v57, %v6230_v16  ;;  %v6239_v1 = vsel %vm2430_vm2, %v2369_v9, -inf  ;;  %v1627_v58 = vmul.f32 0.044715, %v1475_v62  ;;  %v1476_v44 = vmul.f32 %v1324_v14, %v6179_v55  ;;  %v9564_v62 = vld [vmem:[#allocation40_spill] sm:$0xff] }
 0x1a4   : > { %9558 = vst [vmem:[#allocation127_spill] sm:$0xff] %v6232_v8  ;;  %9559 = vst [vmem:[#allocation128_spill] sm:$0xff] %v6239_v1  ;;  %v2724_v35 = vmax.f32 %v6232_v8, %v6239_v1  ;;  %v2295_v29 = vmul.f32 %v2143_v47, %v1079_v5  ;;  %v1703_v39 = vadd.f32 %v1551_v17, %v6143_v25  ;;  %v1552_v27 = vmul.f32 0.044715, %v1400_v22  ;;  %v9565_v5 = vld [vmem:[#allocation3_spill] sm:$0xff]  ;;  %v9566_v22 = vld [vmem:[#allocation21_spill] sm:$0xff] }
 0x1a5   : > { %2722 = vmax.xlane.f32.xlu0 %v2721_v36  ;;  %v6245_v53 = vmul.f32 %v2142_v13, %v1078_v4  ;;  %v1553_v7 = vmul.f32 0.044715, %v1401_v23  ;;  %v1840_v48 = vmul.f32 0.7978846, %v9561_v28  ;;  %4192 = vtanh.f32 %v9562_v38  ;;  %v9568_v24 = vld [vmem:[#allocation83_spill] sm:$0xff]  ;;  %v9570_v36 = vld [vmem:[#allocation8_spill] sm:$0xff] }
 0x1a6   : > { %2725 = vmax.xlane.f32.xlu1 %v2724_v35  ;;  %v6251_v9 = vsel %vm2430_vm2, %v2295_v29, -inf  ;;  %v1629_v14 = vmul.f32 0.044715, %v1477_v12  ;;  %v6254_v6 = vmul.f32 0.5, %v9564_v62  ;;  %v1914_v17 = vmul.f32 0.7978846, %v9565_v5 }
 0x1a7   : > { %9560 = vst [vmem:[#allocation129_spill] sm:$0xff] %v6245_v53  ;;  %9563 = vst [vmem:[#allocation24_spill] sm:$0xff] %v6251_v9  ;;  %v2613_v13 = vmax.f32 %v6245_v53, %v6251_v9  ;;  %4194 = vtanh.f32 %v1840_v48  ;;  %v6261_v4 = vadd.f32 %v9566_v22, %v5064_v60  ;;  %v6265_v10 = vadd.f32 %v9568_v24, %v5064_v60  ;;  %v9571_v28 = vld [vmem:[#allocation27_spill] sm:$0xff]  ;;  %v6276_v38 = vpop.f32.mrb[60].mxu0  ;;  %v6278_v62 = vpop.f32.mrb[60].mxu1  ;;  %v9575_v22 = vld [vmem:[#allocation84_spill] sm:$0xff] }
 0x1a8   : > { %v6267_v23 = vmul.f32 0.7978846, %v1703_v39  ;;  %v1779_v12 = vadd.f32 %v1627_v58, %v6155_v31  ;;  %v1628_v47 = vmul.f32 0.044715, %v1476_v44  ;;  %4196 = vtanh.f32 %v1914_v17  ;;  %9572 = vst [vmem:[#allocation3_spill] sm:$0xff] %v6276_v38  ;;  %9573 = vst [vmem:[#allocation21_spill] sm:$0xff] %v6278_v62 }
 0x1a9   : > { %9567 = vst [vmem:[#allocation91_spill] sm:$0xff] %v6261_v4  ;;  %9569 = vst [vmem:[#allocation40_spill] sm:$0xff] %v6265_v10  ;;  %2614 = vmax.xlane.f32.xlu0 %v2613_v13  ;;  %4198 = vtanh.f32 %v9570_v36  ;;  %v1250_v35 = vmul.f32 %v6261_v4, %v6261_v4  ;;  %v1326_v29 = vmul.f32 %v6265_v10, %v6265_v10  ;;  %v1916_v48 = vmul.f32 0.7978846, %v9571_v28  ;;  %v9574_v44 = vld [vmem:[#allocation94_spill] sm:$0xff]  ;;  %v9585_v1 = vld [vmem:[#allocation64_spill] sm:$0xff] }
 0x1aa   : > { %v6281_v39 = vadd.f32 %v1552_v27, %v6159_v19  ;;  %v1705_v58 = vadd.f32 %v1553_v7, %v6183_v33  ;;  %4200 = vtanh.f32 %v9574_v44  ;;  %v1842_v5 = vmul.f32 0.7978846, %v5794_v21  ;;  %v9578_v28 = vld [vmem:[#allocation70_spill] sm:$0xff]  ;;  %v9579_v21 = vld [vmem:[#allocation85_spill] sm:$0xff] }
 0x1ab   : > { %v1781_v17 = vadd.f32 %v1629_v14, %v6193_v51  ;;  %v1402_v13 = vmul.f32 %v1250_v35, %v6261_v4  ;;  %4202 = vtanh.f32 %v1916_v48  ;;  %v6290_v24 = vadd.f32 %v9575_v22, %v5066_v61  ;;  %v9581_v35 = vld [vmem:[#allocation26_spill] sm:$0xff]  ;;  %v6310_v22 = vpop.f32.mrb[61].mxu1 }
 0x1ac   : > { %v6292_v36 = vmul.f32 0.7978846, %v1779_v12  ;;  %v6295_v27 = vadd.f32 %v1628_v47, %v6179_v55  ;;  %v1081_v7 = vmul.f32 0.5, %v9578_v28  ;;  %4204 = vtanh.f32 %v1842_v5  ;;  %v6308_v12 = vpop.f32.mrb[61].mxu0  ;;  %9583 = vst [vmem:[#allocation84_spill] sm:$0xff] %v6310_v22  ;;  %v9584_v28 = vld [vmem:[#allocation57_spill] sm:$0xff] }
 0x1ad   : > { %v1478_v44 = vmul.f32 %v1326_v29, %v6265_v10  ;;  %4206 = vtanh.f32 %v5827_v54  ;;  %v6302_v14 = vadd.f32 %v9579_v21, %v5066_v61  ;;  %v6306_v48 = vadd.f32 %v9581_v35, %v5064_v60  ;;  %9582 = vst [vmem:[#allocation94_spill] sm:$0xff] %v6308_v12  ;;  %v6318_v9 = vpop.f32.mrb[62].mxu0  ;;  %v6320_v21 = vpop.f32.mrb[62].mxu1 }
 0x1ae   : > { %9576 = vst [vmem:[#allocation83_spill] sm:$0xff] %v6292_v36  ;;  %9577 = vst [vmem:[#allocation8_spill] sm:$0xff] %v6295_v27  ;;  %v6312_v47 = vmul.f32 0.7978846, %v1705_v58  ;;  %v1154_v5 = vmul.f32 0.5, %v9584_v28  ;;  %v1155_v29 = vmul.f32 0.5, %v9585_v1  ;;  %v1251_v54 = vmul.f32 %v6290_v24, %v6290_v24 }
 0x1af   : > { %9580 = vst [vmem:[#allocation27_spill] sm:$0xff] %v6302_v14  ;;  %9586 = vst [vmem:[#allocation70_spill] sm:$0xff] %v6318_v9  ;;  %v4193_v8 = vpop.eup %4192  ;;  %v6322_v35 = vmul.f32 0.7978846, %v1781_v17  ;;  %v1554_v53 = vmul.f32 0.044715, %v1402_v13  ;;  %v6326_v16 = vadd.f32 %v9589_v40, %v5064_v60  ;;  %4208 = vtanh.f32 %v5872_v52 }
 0x1b0   : > { %9587 = vst [vmem:[#allocation85_spill] sm:$0xff] %v6320_v21  ;;  %v9591_v58 = vld [vmem:[#allocation88_spill] sm:$0xff]  ;;  %v6332_v1 = vpop.f32.mrb[63].mxu0  ;;  %v6334_v57 = vpop.f32.mrb[63].mxu1  ;;  %v2145_v22 = vadd.f32 1.0, %v4193_v8  ;;  %v9595_v21 = vld [vmem:[#allocation6_spill] sm:$0xff] }
 0x1b1   : > { %9588 = vst [vmem:[#allocation26_spill] sm:$0xff] %v6322_v35  ;;  %9590 = vst [vmem:[#allocation57_spill] sm:$0xff] %v6326_v16  ;;  %v6330_v28 = vadd.f32 %v9591_v58, %v5066_v61  ;;  %v9594_v9 = vld [vmem:[#allocation4_spill] sm:$0xff]  ;;  %v1157_v62 = vmul.f32 0.5, %v9595_v21  ;;  %v9596_v17 = vld [vmem:[#allocation89_spill] sm:$0xff]  ;;  %v4195_v38 = vpop.eup %4194  ;;  %v1082_v51 = vmul.f32 0.5, %v5672_v50  ;;  %v1327_v58 = vmul.f32 %v6302_v14, %v6302_v14 }
 0x1b2   : > { %9592 = vst [vmem:[#allocation64_spill] sm:$0xff] %v6332_v1  ;;  %9593 = vst [vmem:[#allocation18_spill] sm:$0xff] %v6334_v57  ;;  %v1156_v12 = vmul.f32 0.5, %v9594_v9  ;;  %v6340_v13 = vadd.f32 %v9596_v17, %v5066_v61  ;;  %v1630_v40 = vmul.f32 0.044715, %v1478_v44  ;;  %v1252_v1 = vmul.f32 %v6306_v48, %v6306_v48  ;;  %v4197_v57 = vpop.eup %4196  ;;  %v9609_v52 = vld [vmem:[#allocation90_spill] sm:$0xff] }
 0x1b3   : > { %v2144_v8 = vadd.f32 1.0, %v4195_v38  ;;  %v2297_v55 = vmul.f32 %v2145_v22, %v1081_v7  ;;  %v1083_v9 = vmul.f32 0.5, %v5705_v30  ;;  %v1403_v21 = vmul.f32 %v1251_v54, %v6290_v24  ;;  %v4199_v31 = vpop.eup %4198 }
 0x1b4   : > { %9597 = vst [vmem:[#allocation88_spill] sm:$0xff] %v6340_v13  ;;  %v2218_v17 = vadd.f32 1.0, %v4197_v57  ;;  %v6350_v42 = vadd.f32 %v1554_v53, %v6261_v4  ;;  %v1328_v50 = vmul.f32 %v6326_v16, %v6326_v16  ;;  %v1253_v44 = vmul.f32 %v6330_v28, %v6330_v28  ;;  %v4201_v33 = vpop.eup %4200 }
 0x1b5   : > { %v6357_v35 = vmul.f32 %v2144_v8, %v6254_v6  ;;  %v6361_v30 = vsel %vm2430_vm2, %v2297_v55, -inf  ;;  %v2219_v38 = vadd.f32 1.0, %v4199_v31  ;;  %v1329_v57 = vmul.f32 %v6340_v13, %v6340_v13  ;;  %v4203_v53 = vpop.eup %4202 }
 0x1b6   : > { %9598 = vst [vmem:[#allocation4_spill] sm:$0xff] %v6350_v42  ;;  %9600 = vst [vmem:[#allocation89_spill] sm:$0xff] %v6361_v30  ;;  %v6366_v7 = vadd.f32 %v1630_v40, %v6265_v10  ;;  %v2221_v22 = vadd.f32 1.0, %v4201_v33  ;;  %v1479_v54 = vmul.f32 %v1327_v58, %v6302_v14  ;;  %v1404_v4 = vmul.f32 %v1252_v1, %v6306_v48  ;;  %v4205_v42 = vpop.eup %4204 }
 0x1b7   : > { %9599 = vst [vmem:[#allocation6_spill] sm:$0xff] %v6357_v35  ;;  %v2616_v6 = vmax.f32 %v6357_v35, %v6361_v30  ;;  %v2371_v8 = vmul.f32 %v2219_v38, %v1155_v29  ;;  %v2220_v55 = vadd.f32 1.0, %v4203_v53  ;;  %v1555_v27 = vmul.f32 0.044715, %v1403_v21  ;;  %v4207_v31 = vpop.eup %4206 }
 0x1b8   : > { %v6372_v36 = vmul.f32 %v2218_v17, %v1154_v5  ;;  %v2373_v34 = vmul.f32 %v2221_v22, %v1157_v62  ;;  %v2146_v19 = vadd.f32 1.0, %v4205_v42  ;;  %v1405_v40 = vmul.f32 %v1253_v44, %v6330_v28 }
 0x1b9   : > { %2617 = vmax.xlane.f32.xlu1 %v2616_v6  ;;  %v6377_v33 = vsel %vm2430_vm2, %v2371_v8, -inf  ;;  %v6379_v1 = vmul.f32 %v2220_v55, %v1156_v12  ;;  %v2147_v58 = vadd.f32 1.0, %v4207_v31  ;;  %v1481_v30 = vmul.f32 %v1329_v57, %v6340_v13  ;;  %v6423_v8 = vpop.f32.mrb[64].mxu0  ;;  %v6425_v55 = vpop.f32.mrb[64].mxu1 }
 0x1ba   : > { %9601 = vst [vmem:[#allocation130_spill] sm:$0xff] %v6372_v36  ;;  %9602 = vst [vmem:[#allocation131_spill] sm:$0xff] %v6377_v33  ;;  %v2727_v29 = vmax.f32 %v6372_v36, %v6377_v33  ;;  %v6386_v5 = vsel %vm2430_vm2, %v2373_v34, -inf  ;;  %v1631_v42 = vmul.f32 0.044715, %v1479_v54  ;;  %v1480_v62 = vmul.f32 %v1328_v50, %v6326_v16  ;;  %v9633_v33 = vld [vmem:[#allocation29_spill] sm:$0xff] }
 0x1bb   : > { %9603 = vst [vmem:[#allocation132_spill] sm:$0xff] %v6379_v1  ;;  %9604 = vst [vmem:[#allocation133_spill] sm:$0xff] %v6386_v5  ;;  %v2730_v21 = vmax.f32 %v6379_v1, %v6386_v5  ;;  %v2299_v17 = vmul.f32 %v2147_v58, %v1083_v9  ;;  %v1707_v12 = vadd.f32 %v1555_v27, %v6290_v24  ;;  %v1556_v44 = vmul.f32 0.044715, %v1404_v4  ;;  %v9629_v5 = vld [vmem:[#allocation9_spill] sm:$0xff]  ;;  %v9630_v1 = vld [vmem:[#allocation95_spill] sm:$0xff] }
 0x1bc   : > { %2728 = vmax.xlane.f32.xlu0 %v2727_v29  ;;  %v6392_v38 = vmul.f32 %v2146_v19, %v1082_v51  ;;  %v1557_v57 = vmul.f32 0.044715, %v1405_v40  ;;  %v1844_v53 = vmul.f32 0.7978846, %v5830_v26  ;;  %v1633_v50 = vmul.f32 0.044715, %v1481_v30 }
 0x1bd   : > { %2731 = vmax.xlane.f32.xlu1 %v2730_v21  ;;  %v6398_v34 = vsel %vm2430_vm2, %v2299_v17, -inf  ;;  %v6401_v22 = vmul.f32 0.5, %v5723_v18  ;;  %v1918_v27 = vmul.f32 0.7978846, %v5797_v43  ;;  %v9607_v51 = vld [vmem:[#allocation10_spill] sm:$0xff]  ;;  %v6412_v4 = vadd.f32 %v9609_v52, %v5064_v60  ;;  %9611 = vst [vmem:[#allocation136_spill] sm:$0xff] %v6423_v8 }
 0x1be   : > { %9605 = vst [vmem:[#allocation134_spill] sm:$0xff] %v6392_v38  ;;  %9606 = vst [vmem:[#allocation135_spill] sm:$0xff] %v6398_v34  ;;  %v2619_v19 = vmax.f32 %v6392_v38, %v6398_v34  ;;  %4210 = vtanh.f32 %v1844_v53  ;;  %v6408_v26 = vadd.f32 %v9607_v51, %v5064_v60  ;;  %v6414_v9 = vmul.f32 0.7978846, %v1707_v12  ;;  %v6455_v53 = vpop.f32.mrb[65].mxu0  ;;  %v9620_v51 = vld [vmem:[#allocation28_spill] sm:$0xff] }
 0x1bf   : > { %9610 = vst [vmem:[#allocation90_spill] sm:$0xff] %v6412_v4  ;;  %v1783_v30 = vadd.f32 %v1631_v42, %v6302_v14  ;;  %v1632_v18 = vmul.f32 0.044715, %v1480_v62  ;;  %4212 = vtanh.f32 %v1918_v27  ;;  %v1330_v54 = vmul.f32 %v6412_v4, %v6412_v4  ;;  %9612 = vst [vmem:[#allocation137_spill] sm:$0xff] %v6425_v55 }
 0x1c0   : > { %9608 = vst [vmem:[#allocation10_spill] sm:$0xff] %v6408_v26  ;;  %2620 = vmax.xlane.f32.xlu0 %v2619_v19  ;;  %4214 = vtanh.f32 %v5842_v37  ;;  %v1254_v43 = vmul.f32 %v6408_v26, %v6408_v26  ;;  %v1920_v6 = vmul.f32 0.7978846, %v5854_v15  ;;  %v6428_v31 = vadd.f32 %v1556_v44, %v6306_v48  ;;  %v9613_v15 = vld [vmem:[#allocation5_spill] sm:$0xff]  ;;  %v9616_v44 = vld [vmem:[#allocation7_spill] sm:$0xff] }
 0x1c1   : > { %v1709_v40 = vadd.f32 %v1557_v57, %v6330_v28  ;;  %4216 = vtanh.f32 %v5882_v0  ;;  %v1846_v37 = vmul.f32 0.7978846, %v5910_v46  ;;  %v1785_v58 = vadd.f32 %v1633_v50, %v6340_v13  ;;  %v9614_v46 = vld [vmem:[#allocation37_spill] sm:$0xff]  ;;  %v6457_v50 = vpop.f32.mrb[65].mxu1 }
 0x1c2   : > { %v1406_v29 = vmul.f32 %v1254_v43, %v6408_v26  ;;  %4218 = vtanh.f32 %v1920_v6  ;;  %v6437_v42 = vadd.f32 %v9613_v15, %v5066_v61  ;;  %v6439_v62 = vmul.f32 0.7978846, %v1783_v30  ;;  %9617 = vst [vmem:[#allocation37_spill] sm:$0xff] %v6455_v53  ;;  %9618 = vst [vmem:[#allocation7_spill] sm:$0xff] %v6457_v50  ;;  %v6465_v30 = vpop.f32.mrb[66].mxu0  ;;  %v4209_v43 = vpop.eup %4208 }
 0x1c3   : > { %v6442_v21 = vadd.f32 %v1632_v18, %v6326_v16  ;;  %v1085_v17 = vmul.f32 0.5, %v5746_v56  ;;  %4220 = vtanh.f32 %v1846_v37  ;;  %v1482_v0 = vmul.f32 %v1330_v54, %v6412_v4  ;;  %v9619_v56 = vld [vmem:[#allocation23_spill] sm:$0xff]  ;;  %v6467_v18 = vpop.f32.mrb[66].mxu1  ;;  %v9623_v37 = vld [vmem:[#allocation92_spill] sm:$0xff] }
 0x1c4   : > { %4222 = vtanh.f32 %v5973_v2  ;;  %v6449_v12 = vadd.f32 %v9614_v46, %v5066_v61  ;;  %v6453_v57 = vadd.f32 %v9616_v44, %v5064_v60  ;;  %v6459_v27 = vmul.f32 0.7978846, %v1709_v40  ;;  %9621 = vst [vmem:[#allocation23_spill] sm:$0xff] %v6465_v30  ;;  %9622 = vst [vmem:[#allocation28_spill] sm:$0xff] %v6467_v18  ;;  %v9625_v40 = vld [vmem:[#allocation11_spill] sm:$0xff]  ;;  %v6479_v44 = vpop.f32.mrb[67].mxu0 }
 0x1c5   : > { %v1158_v19 = vmul.f32 0.5, %v9619_v56  ;;  %v1159_v52 = vmul.f32 0.5, %v9620_v51  ;;  %v1255_v2 = vmul.f32 %v6437_v42, %v6437_v42  ;;  %v6469_v54 = vmul.f32 0.7978846, %v1785_v58  ;;  %9627 = vst [vmem:[#allocation138_spill] sm:$0xff] %v6479_v44  ;;  %v6481_v56 = vpop.f32.mrb[67].mxu1 }
 0x1c6   : > { %9615 = vst [vmem:[#allocation5_spill] sm:$0xff] %v6449_v12  ;;  %v1558_v6 = vmul.f32 0.044715, %v1406_v29  ;;  %v6473_v15 = vadd.f32 %v9623_v37, %v5064_v60  ;;  %v6477_v46 = vadd.f32 %v9625_v40, %v5066_v61  ;;  %9628 = vst [vmem:[#allocation139_spill] sm:$0xff] %v6481_v56  ;;  %v2149_v51 = vadd.f32 1.0, %v4209_v43  ;;  %v9631_v58 = vld [vmem:[#allocation93_spill] sm:$0xff] }
 0x1c7   : > { %v1160_v34 = vmul.f32 0.5, %v9629_v5  ;;  %v1161_v38 = vmul.f32 0.5, %v9630_v1  ;;  %v6487_v29 = vadd.f32 %v9631_v58, %v5066_v61  ;;  %v1634_v37 = vmul.f32 0.044715, %v1482_v0 }
 0x1c8   : > { %9624 = vst [vmem:[#allocation92_spill] sm:$0xff] %v6473_v15  ;;  %9626 = vst [vmem:[#allocation11_spill] sm:$0xff] %v6477_v46  ;;  %v4211_v35 = vpop.eup %4210  ;;  %v1086_v36 = vmul.f32 0.5, %v9633_v33  ;;  %v1331_v40 = vmul.f32 %v6449_v12, %v6449_v12  ;;  %v1256_v44 = vmul.f32 %v6453_v57, %v6453_v57  ;;  %v2301_v18 = vmul.f32 %v2149_v51, %v1085_v17 }
 0x1c9   : > { %9632 = vst [vmem:[#allocation9_spill] sm:$0xff] %v6487_v29  ;;  %v4213_v56 = vpop.eup %4212  ;;  %v2148_v43 = vadd.f32 1.0, %v4211_v35  ;;  %v1087_v5 = vmul.f32 0.5, %v5851_v45  ;;  %v1407_v1 = vmul.f32 %v1255_v2, %v6437_v42  ;;  %v6497_v50 = vadd.f32 %v1558_v6, %v6408_v26 }
 0x1ca   : > { %v4215_v30 = vpop.eup %4214  ;;  %v2222_v58 = vadd.f32 1.0, %v4213_v56  ;;  %v1332_v33 = vmul.f32 %v6473_v15, %v6473_v15  ;;  %v1257_v0 = vmul.f32 %v6477_v46, %v6477_v46  ;;  %v6508_v45 = vsel %vm2430_vm2, %v2301_v18, -inf }
 0x1cb   : > { %v4217_v53 = vpop.eup %4216  ;;  %v6504_v55 = vmul.f32 %v2148_v43, %v6401_v22  ;;  %9635 = vst [vmem:[#allocation93_spill] sm:$0xff] %v6508_v45  ;;  %v2223_v35 = vadd.f32 1.0, %v4215_v30  ;;  %v1333_v17 = vmul.f32 %v6487_v29, %v6487_v29  ;;  %v6513_v6 = vadd.f32 %v1634_v37, %v6412_v4 }
 0x1cc   : > { %v4219_v2 = vpop.eup %4218  ;;  %v2225_v56 = vadd.f32 1.0, %v4217_v53  ;;  %v1483_v51 = vmul.f32 %v1331_v40, %v6449_v12  ;;  %v1408_v8 = vmul.f32 %v1256_v44, %v6453_v57  ;;  %v1559_v13 = vmul.f32 0.044715, %v1407_v1 }
 0x1cd   : > { %9634 = vst [vmem:[#allocation95_spill] sm:$0xff] %v6504_v55  ;;  %9636 = vst [vmem:[#allocation29_spill] sm:$0xff] %v6513_v6  ;;  %v4221_v26 = vpop.eup %4220  ;;  %v2622_v22 = vmax.f32 %v6504_v55, %v6508_v45  ;;  %v2375_v43 = vmul.f32 %v2223_v35, %v1159_v52  ;;  %v2224_v18 = vadd.f32 1.0, %v4219_v2  ;;  %v6519_v16 = vmul.f32 %v2222_v58, %v1158_v19 }
 0x1ce   : > { %v4223_v30 = vpop.eup %4222  ;;  %v2377_v14 = vmul.f32 %v2225_v56, %v1161_v38  ;;  %v2150_v10 = vadd.f32 1.0, %v4221_v26  ;;  %v1409_v37 = vmul.f32 %v1257_v0, %v6477_v46  ;;  %v1485_v45 = vmul.f32 %v1333_v17, %v6487_v29 }
 0x1cf   : > { %9637 = vst [vmem:[#allocation140_spill] sm:$0xff] %v6519_v16  ;;  %2623 = vmax.xlane.f32.xlu1 %v2622_v22  ;;  %v6524_v53 = vsel %vm2430_vm2, %v2375_v43, -inf  ;;  %v6526_v44 = vmul.f32 %v2224_v18, %v1160_v34  ;;  %v2151_v40 = vadd.f32 1.0, %v4223_v30  ;;  %v1635_v38 = vmul.f32 0.044715, %v1483_v51  ;;  %v9648_v22 = vld [vmem:[#allocation52_spill] sm:$0xff] }
 0x1d0   : > { %9638 = vst [vmem:[#allocation141_spill] sm:$0xff] %v6524_v53  ;;  %v2733_v52 = vmax.f32 %v6519_v16, %v6524_v53  ;;  %v6533_v19 = vsel %vm2430_vm2, %v2377_v14, -inf  ;;  %v1484_v26 = vmul.f32 %v1332_v33, %v6473_v15  ;;  %v1711_v34 = vadd.f32 %v1559_v13, %v6437_v42  ;;  %v9649_v30 = vld [vmem:[#allocation53_spill] sm:$0xff]  ;;  %v9675_v16 = vld [vmem:[#allocation104_spill] sm:$0xff] }
 0x1d1   : > { %9639 = vst [vmem:[#allocation142_spill] sm:$0xff] %v6526_v44  ;;  %9640 = vst [vmem:[#allocation143_spill] sm:$0xff] %v6533_v19  ;;  %v2736_v1 = vmax.f32 %v6526_v44, %v6533_v19  ;;  %v2303_v58 = vmul.f32 %v2151_v40, %v1087_v5  ;;  %v1560_v0 = vmul.f32 0.044715, %v1408_v8  ;;  %v6539_v35 = vmul.f32 %v2150_v10, %v1086_v36  ;;  %v9643_v5 = vld [vmem:[#allocation30_spill] sm:$0xff]  ;;  %v6570_v40 = vpop.f32.mrb[68].mxu0 }
 0x1d2   : > { %2734 = vmax.xlane.f32.xlu0 %v2733_v52  ;;  %v1561_v17 = vmul.f32 0.044715, %v1409_v37  ;;  %v1848_v2 = vmul.f32 0.7978846, %v5987_v63  ;;  %4224 = vtanh.f32 %v6018_v11  ;;  %v1637_v33 = vmul.f32 0.044715, %v1485_v45 }
 0x1d3   : > { %9641 = vst [vmem:[#allocation144_spill] sm:$0xff] %v6539_v35  ;;  %2737 = vmax.xlane.f32.xlu1 %v2736_v1  ;;  %v6545_v14 = vsel %vm2430_vm2, %v2303_v58, -inf  ;;  %v6548_v56 = vmul.f32 0.5, %v5866_v20  ;;  %v1922_v13 = vmul.f32 0.7978846, %v9643_v5  ;;  %v9644_v36 = vld [vmem:[#allocation38_spill] sm:$0xff]  ;;  %v1787_v45 = vadd.f32 %v1635_v38, %v6449_v12 }
 0x1d4   : > { %9642 = vst [vmem:[#allocation145_spill] sm:$0xff] %v6545_v14  ;;  %v2625_v10 = vmax.f32 %v6539_v35, %v6545_v14  ;;  %4226 = vtanh.f32 %v1848_v2  ;;  %v6555_v63 = vadd.f32 %v9644_v36, %v5064_v60  ;;  %v9646_v11 = vld [vmem:[#allocation103_spill] sm:$0xff]  ;;  %v6561_v51 = vmul.f32 0.7978846, %v1711_v34  ;;  %v6572_v52 = vpop.f32.mrb[68].mxu1 }
 0x1d5   : > { %v6559_v8 = vadd.f32 %v9646_v11, %v5064_v60  ;;  %v1636_v20 = vmul.f32 0.044715, %v1484_v26  ;;  %4228 = vtanh.f32 %v1922_v13  ;;  %v1924_v37 = vmul.f32 0.7978846, %v9649_v30  ;;  %9650 = vst [vmem:[#allocation103_spill] sm:$0xff] %v6570_v40  ;;  %9651 = vst [vmem:[#allocation52_spill] sm:$0xff] %v6572_v52 }
 0x1d6   : > { %9645 = vst [vmem:[#allocation30_spill] sm:$0xff] %v6555_v63  ;;  %2626 = vmax.xlane.f32.xlu0 %v2625_v10  ;;  %4230 = vtanh.f32 %v9648_v22  ;;  %v1258_v43 = vmul.f32 %v6555_v63, %v6555_v63  ;;  %v6575_v1 = vadd.f32 %v1560_v0, %v6453_v57  ;;  %v1713_v38 = vadd.f32 %v1561_v17, %v6477_v46  ;;  %v9652_v26 = vld [vmem:[#allocation114_spill] sm:$0xff]  ;;  %v9653_v58 = vld [vmem:[#allocation35_spill] sm:$0xff]  ;;  %v9657_v11 = vld [vmem:[#allocation105_spill] sm:$0xff] }
 0x1d7   : > { %9647 = vst [vmem:[#allocation38_spill] sm:$0xff] %v6559_v8  ;;  %v1334_v18 = vmul.f32 %v6559_v8, %v6559_v8  ;;  %4232 = vtanh.f32 %v9652_v26  ;;  %v1850_v34 = vmul.f32 0.7978846, %v9653_v58  ;;  %v1789_v2 = vadd.f32 %v1637_v33, %v6487_v29  ;;  %v9654_v13 = vld [vmem:[#allocation19_spill] sm:$0xff]  ;;  %v9658_v33 = vld [vmem:[#allocation46_spill] sm:$0xff]  ;;  %v9660_v30 = vld [vmem:[#allocation13_spill] sm:$0xff] }
 0x1d8   : > { %v1410_v5 = vmul.f32 %v1258_v43, %v6555_v63  ;;  %4234 = vtanh.f32 %v1924_v37  ;;  %v6584_v10 = vadd.f32 %v9654_v13, %v5066_v61  ;;  %v6586_v36 = vmul.f32 0.7978846, %v1787_v45  ;;  %v6602_v45 = vpop.f32.mrb[69].mxu0  ;;  %v6604_v26 = vpop.f32.mrb[69].mxu1  ;;  %v9664_v58 = vld [vmem:[#allocation102_spill] sm:$0xff]  ;;  %v9665_v13 = vld [vmem:[#allocation16_spill] sm:$0xff] }
 0x1d9   : > { %v6589_v0 = vadd.f32 %v1636_v20, %v6473_v15  ;;  %v1089_v17 = vmul.f32 0.5, %v9657_v11  ;;  %4236 = vtanh.f32 %v1850_v34  ;;  %v1486_v22 = vmul.f32 %v1334_v18, %v6559_v8  ;;  %9662 = vst [vmem:[#allocation105_spill] sm:$0xff] %v6602_v45  ;;  %9663 = vst [vmem:[#allocation46_spill] sm:$0xff] %v6604_v26  ;;  %v6612_v11 = vpop.f32.mrb[70].mxu0  ;;  %v9669_v44 = vld [vmem:[#allocation15_spill] sm:$0xff]  ;;  %v9679_v52 = vld [vmem:[#allocation32_spill] sm:$0xff] }
 0x1da   : > { %9655 = vst [vmem:[#allocation53_spill] sm:$0xff] %v6586_v36  ;;  %4238 = vtanh.f32 %v6120_v59  ;;  %v6596_v43 = vadd.f32 %v9658_v33, %v5066_v61  ;;  %v6600_v37 = vadd.f32 %v9660_v30, %v5064_v60  ;;  %v6606_v20 = vmul.f32 0.7978846, %v1713_v38  ;;  %9666 = vst [vmem:[#allocation13_spill] sm:$0xff] %v6612_v11  ;;  %v6614_v33 = vpop.f32.mrb[70].mxu1  ;;  %v9671_v38 = vld [vmem:[#allocation106_spill] sm:$0xff] }
 0x1db   : > { %9656 = vst [vmem:[#allocation114_spill] sm:$0xff] %v6589_v0  ;;  %v1162_v34 = vmul.f32 0.5, %v9664_v58  ;;  %v1163_v18 = vmul.f32 0.5, %v9665_v13  ;;  %v1259_v59 = vmul.f32 %v6584_v10, %v6584_v10  ;;  %9667 = vst [vmem:[#allocation102_spill] sm:$0xff] %v6614_v33  ;;  %v6616_v30 = vmul.f32 0.7978846, %v1789_v2 }
 0x1dc   : > { %9659 = vst [vmem:[#allocation35_spill] sm:$0xff] %v6596_v43  ;;  %9661 = vst [vmem:[#allocation19_spill] sm:$0xff] %v6600_v37  ;;  %v4225_v19 = vpop.eup %4224  ;;  %v1562_v14 = vmul.f32 0.044715, %v1410_v5  ;;  %v6620_v35 = vadd.f32 %v9669_v44, %v5064_v60  ;;  %v6624_v58 = vadd.f32 %v9671_v38, %v5066_v61  ;;  %v6626_v13 = vpop.f32.mrb[71].mxu0  ;;  %v1164_v11 = vmul.f32 0.5, %v9675_v16 }
 0x1dd   : > { %9668 = vst [vmem:[#allocation16_spill] sm:$0xff] %v6616_v30  ;;  %9673 = vst [vmem:[#allocation146_spill] sm:$0xff] %v6626_v13  ;;  %v6628_v55 = vpop.f32.mrb[71].mxu1  ;;  %v2153_v53 = vadd.f32 1.0, %v4225_v19  ;;  %v9676_v33 = vld [vmem:[#allocation17_spill] sm:$0xff]  ;;  %v9677_v2 = vld [vmem:[#allocation107_spill] sm:$0xff]  ;;  %v1335_v38 = vmul.f32 %v6596_v43, %v6596_v43  ;;  %v1260_v13 = vmul.f32 %v6600_v37, %v6600_v37  ;;  %4240 = vtanh.f32 %v6165_v41 }
 0x1de   : > { %9670 = vst [vmem:[#allocation15_spill] sm:$0xff] %v6620_v35  ;;  %9672 = vst [vmem:[#allocation106_spill] sm:$0xff] %v6624_v58  ;;  %v1165_v26 = vmul.f32 0.5, %v9676_v33  ;;  %v6634_v5 = vadd.f32 %v9677_v2, %v5066_v61  ;;  %v4227_v45 = vpop.eup %4226  ;;  %v1638_v44 = vmul.f32 0.044715, %v1486_v22  ;;  %v1090_v40 = vmul.f32 0.5, %v9679_v52 }
 0x1df   : > { %9674 = vst [vmem:[#allocation147_spill] sm:$0xff] %v6628_v55  ;;  %v4229_v55 = vpop.eup %4228  ;;  %v2152_v19 = vadd.f32 1.0, %v4227_v45  ;;  %v2305_v29 = vmul.f32 %v2153_v53, %v1089_v17  ;;  %v1091_v16 = vmul.f32 0.5, %v5996_v3  ;;  %v1411_v33 = vmul.f32 %v1259_v59, %v6584_v10  ;;  %v9694_v41 = vld [vmem:[#allocation113_spill] sm:$0xff] }
 0x1e0   : > { %9678 = vst [vmem:[#allocation104_spill] sm:$0xff] %v6634_v5  ;;  %v4231_v15 = vpop.eup %4230  ;;  %v2226_v2 = vadd.f32 1.0, %v4229_v55  ;;  %v6644_v12 = vadd.f32 %v1562_v14, %v6555_v63  ;;  %v1336_v52 = vmul.f32 %v6620_v35, %v6620_v35  ;;  %v1261_v22 = vmul.f32 %v6624_v58, %v6624_v58 }
 0x1e1   : > { %v4233_v4 = vpop.eup %4232  ;;  %v6651_v46 = vmul.f32 %v2152_v19, %v6548_v56  ;;  %v6655_v3 = vsel %vm2430_vm2, %v2305_v29, -inf  ;;  %v2227_v53 = vadd.f32 1.0, %v4231_v15  ;;  %v1337_v55 = vmul.f32 %v6634_v5, %v6634_v5 }
 0x1e2   : > { %9680 = vst [vmem:[#allocation17_spill] sm:$0xff] %v6644_v12  ;;  %9682 = vst [vmem:[#allocation32_spill] sm:$0xff] %v6655_v3  ;;  %v4235_v14 = vpop.eup %4234  ;;  %v6660_v17 = vadd.f32 %v1638_v44, %v6559_v8  ;;  %v2229_v45 = vadd.f32 1.0, %v4233_v4  ;;  %v1487_v59 = vmul.f32 %v1335_v38, %v6596_v43  ;;  %v1412_v63 = vmul.f32 %v1260_v13, %v6600_v37 }
 0x1e3   : > { %9681 = vst [vmem:[#allocation107_spill] sm:$0xff] %v6651_v46  ;;  %v4237_v12 = vpop.eup %4236  ;;  %v2628_v56 = vmax.f32 %v6651_v46, %v6655_v3  ;;  %v2379_v19 = vmul.f32 %v2227_v53, %v1163_v18  ;;  %v2228_v29 = vadd.f32 1.0, %v4235_v14  ;;  %v1563_v30 = vmul.f32 0.044715, %v1411_v33 }
 0x1e4   : > { %9683 = vst [vmem:[#allocation148_spill] sm:$0xff] %v6660_v17  ;;  %v4239_v15 = vpop.eup %4238  ;;  %v6666_v0 = vmul.f32 %v2226_v2, %v1162_v34  ;;  %v2381_v36 = vmul.f32 %v2229_v45, %v1165_v26  ;;  %v2154_v6 = vadd.f32 1.0, %v4237_v12  ;;  %v1413_v44 = vmul.f32 %v1261_v22, %v6624_v58  ;;  %v9690_v45 = vld [vmem:[#allocation55_spill] sm:$0xff] }
 0x1e5   : > { %2629 = vmax.xlane.f32.xlu1 %v2628_v56  ;;  %v6671_v4 = vsel %vm2430_vm2, %v2379_v19, -inf  ;;  %v6673_v13 = vmul.f32 %v2228_v29, %v1164_v11  ;;  %v2155_v38 = vadd.f32 1.0, %v4239_v15  ;;  %v1489_v3 = vmul.f32 %v1337_v55, %v6634_v5  ;;  %v9696_v29 = vld [vmem:[#allocation56_spill] sm:$0xff] }
 0x1e6   : > { %9684 = vst [vmem:[#allocation149_spill] sm:$0xff] %v6666_v0  ;;  %9685 = vst [vmem:[#allocation150_spill] sm:$0xff] %v6671_v4  ;;  %v2739_v18 = vmax.f32 %v6666_v0, %v6671_v4  ;;  %v6680_v34 = vsel %vm2430_vm2, %v2381_v36, -inf  ;;  %v1639_v12 = vmul.f32 0.044715, %v1487_v59  ;;  %v1488_v26 = vmul.f32 %v1336_v52, %v6620_v35 }
 0x1e7   : > { %9686 = vst [vmem:[#allocation151_spill] sm:$0xff] %v6673_v13  ;;  %9687 = vst [vmem:[#allocation152_spill] sm:$0xff] %v6680_v34  ;;  %v2742_v33 = vmax.f32 %v6673_v13, %v6680_v34  ;;  %v2307_v2 = vmul.f32 %v2155_v38, %v1091_v16  ;;  %v1715_v11 = vadd.f32 %v1563_v30, %v6584_v10  ;;  %v1564_v22 = vmul.f32 0.044715, %v1412_v63  ;;  %v9691_v16 = vld [vmem:[#allocation44_spill] sm:$0xff]  ;;  %v9692_v63 = vld [vmem:[#allocation47_spill] sm:$0xff] }
 0x1e8   : > { %2740 = vmax.xlane.f32.xlu0 %v2739_v18  ;;  %v6686_v53 = vmul.f32 %v2154_v6, %v1090_v40  ;;  %v1565_v55 = vmul.f32 0.044715, %v1413_v44  ;;  %v1852_v14 = vmul.f32 0.7978846, %v6134_v49  ;;  %v1641_v52 = vmul.f32 0.044715, %v1489_v3 }
 0x1e9   : > { %2743 = vmax.xlane.f32.xlu1 %v2742_v33  ;;  %v6692_v36 = vsel %vm2430_vm2, %v2307_v2, -inf  ;;  %v6695_v59 = vmul.f32 0.5, %v9690_v45  ;;  %v1926_v30 = vmul.f32 0.7978846, %v9691_v16  ;;  %v6702_v49 = vadd.f32 %v9692_v63, %v5064_v60  ;;  %v9697_v38 = vld [vmem:[#allocation60_spill] sm:$0xff]  ;;  %v6717_v33 = vpop.f32.mrb[72].mxu0 }
 0x1ea   : > { %9688 = vst [vmem:[#allocation153_spill] sm:$0xff] %v6686_v53  ;;  %9689 = vst [vmem:[#allocation154_spill] sm:$0xff] %v6692_v36  ;;  %v2631_v6 = vmax.f32 %v6686_v53, %v6692_v36  ;;  %4242 = vtanh.f32 %v1852_v14  ;;  %v6706_v40 = vadd.f32 %v9694_v41, %v5064_v60  ;;  %v6708_v56 = vmul.f32 0.7978846, %v1715_v11  ;;  %v6719_v2 = vpop.f32.mrb[72].mxu1  ;;  %v9701_v14 = vld [vmem:[#allocation51_spill] sm:$0xff]  ;;  %v4241_v36 = vpop.eup %4240 }
 0x1eb   : > { %9693 = vst [vmem:[#allocation55_spill] sm:$0xff] %v6702_v49  ;;  %v1791_v3 = vadd.f32 %v1639_v12, %v6596_v43  ;;  %v1640_v19 = vmul.f32 0.044715, %v1488_v26  ;;  %4244 = vtanh.f32 %v1926_v30  ;;  %v1262_v15 = vmul.f32 %v6702_v49, %v6702_v49  ;;  %9698 = vst [vmem:[#allocation47_spill] sm:$0xff] %v6717_v33  ;;  %v9700_v26 = vld [vmem:[#allocation45_spill] sm:$0xff]  ;;  %v9717_v53 = vld [vmem:[#allocation31_spill] sm:$0xff] }
 0x1ec   : > { %9695 = vst [vmem:[#allocation44_spill] sm:$0xff] %v6706_v40  ;;  %2632 = vmax.xlane.f32.xlu0 %v2631_v6  ;;  %4246 = vtanh.f32 %v9696_v29  ;;  %v1338_v44 = vmul.f32 %v6706_v40, %v6706_v40  ;;  %v1928_v18 = vmul.f32 0.7978846, %v9697_v38  ;;  %9699 = vst [vmem:[#allocation113_spill] sm:$0xff] %v6719_v2  ;;  %v6722_v11 = vadd.f32 %v1564_v22, %v6600_v37  ;;  %v9702_v6 = vld [vmem:[#allocation61_spill] sm:$0xff]  ;;  %v9705_v29 = vld [vmem:[#allocation66_spill] sm:$0xff] }
 0x1ed   : > { %v1717_v12 = vadd.f32 %v1565_v55, %v6624_v58  ;;  %4248 = vtanh.f32 %v9700_v26  ;;  %v1854_v45 = vmul.f32 0.7978846, %v9701_v14  ;;  %v1793_v16 = vadd.f32 %v1641_v52, %v6634_v5  ;;  %v9706_v52 = vld [vmem:[#allocation62_spill] sm:$0xff]  ;;  %v6751_v14 = vpop.f32.mrb[73].mxu1  ;;  %v9727_v33 = vld [vmem:[#allocation49_spill] sm:$0xff] }
 0x1ee   : > { %v1414_v30 = vmul.f32 %v1262_v15, %v6702_v49  ;;  %4250 = vtanh.f32 %v1928_v18  ;;  %v6731_v63 = vadd.f32 %v9702_v6, %v5066_v61  ;;  %v6733_v41 = vmul.f32 0.7978846, %v1791_v3  ;;  %v9708_v18 = vld [vmem:[#allocation25_spill] sm:$0xff]  ;;  %v6749_v3 = vpop.f32.mrb[73].mxu0  ;;  %9711 = vst [vmem:[#allocation66_spill] sm:$0xff] %v6751_v14  ;;  %v9712_v6 = vld [vmem:[#allocation42_spill] sm:$0xff] }
 0x1ef   : > { %v6736_v22 = vadd.f32 %v1640_v19, %v6620_v35  ;;  %v1093_v55 = vmul.f32 0.5, %v9705_v29  ;;  %4252 = vtanh.f32 %v1854_v45  ;;  %v1490_v38 = vmul.f32 %v1338_v44, %v6706_v40  ;;  %9710 = vst [vmem:[#allocation61_spill] sm:$0xff] %v6749_v3  ;;  %v9713_v29 = vld [vmem:[#allocation34_spill] sm:$0xff]  ;;  %v6759_v34 = vpop.f32.mrb[74].mxu0  ;;  %v9723_v14 = vld [vmem:[#allocation65_spill] sm:$0xff] }
 0x1f0   : > { %9703 = vst [vmem:[#allocation56_spill] sm:$0xff] %v6733_v41  ;;  %4254 = vtanh.f32 %v6267_v23  ;;  %v6743_v15 = vadd.f32 %v9706_v52, %v5066_v61  ;;  %v6747_v26 = vadd.f32 %v9708_v18, %v5064_v60  ;;  %v6753_v19 = vmul.f32 0.7978846, %v1717_v12  ;;  %9714 = vst [vmem:[#allocation62_spill] sm:$0xff] %v6759_v34  ;;  %v6761_v52 = vpop.f32.mrb[74].mxu1  ;;  %v9719_v12 = vld [vmem:[#allocation115_spill] sm:$0xff] }
 0x1f1   : > { %9704 = vst [vmem:[#allocation60_spill] sm:$0xff] %v6736_v22  ;;  %v1166_v45 = vmul.f32 0.5, %v9712_v6  ;;  %v1167_v44 = vmul.f32 0.5, %v9713_v29  ;;  %v1263_v23 = vmul.f32 %v6731_v63, %v6731_v63  ;;  %9715 = vst [vmem:[#allocation25_spill] sm:$0xff] %v6761_v52  ;;  %v6763_v18 = vmul.f32 0.7978846, %v1793_v16 }
 0x1f2   : > { %9707 = vst [vmem:[#allocation45_spill] sm:$0xff] %v6743_v15  ;;  %9709 = vst [vmem:[#allocation51_spill] sm:$0xff] %v6747_v26  ;;  %v1566_v13 = vmul.f32 0.044715, %v1414_v30  ;;  %v6767_v46 = vadd.f32 %v9717_v53, %v5064_v60  ;;  %v6771_v6 = vadd.f32 %v9719_v12, %v5066_v61  ;;  %v6773_v29 = vpop.f32.mrb[75].mxu0  ;;  %v6775_v4 = vpop.f32.mrb[75].mxu1  ;;  %v1339_v12 = vmul.f32 %v6743_v15, %v6743_v15 }
 0x1f3   : > { %9716 = vst [vmem:[#allocation42_spill] sm:$0xff] %v6763_v18  ;;  %9721 = vst [vmem:[#allocation115_spill] sm:$0xff] %v6773_v29  ;;  %v2157_v0 = vadd.f32 1.0, %v4241_v36  ;;  %v1168_v34 = vmul.f32 0.5, %v9723_v14  ;;  %v9724_v52 = vld [vmem:[#allocation33_spill] sm:$0xff]  ;;  %v9725_v16 = vld [vmem:[#allocation116_spill] sm:$0xff]  ;;  %v1264_v29 = vmul.f32 %v6747_v26, %v6747_v26  ;;  %4256 = vtanh.f32 %v6312_v47 }
 0x1f4   : > { %9718 = vst [vmem:[#allocation34_spill] sm:$0xff] %v6767_v46  ;;  %9720 = vst [vmem:[#allocation31_spill] sm:$0xff] %v6771_v6  ;;  %v1169_v3 = vmul.f32 0.5, %v9724_v52  ;;  %v6781_v30 = vadd.f32 %v9725_v16, %v5066_v61  ;;  %v4243_v2 = vpop.eup %4242  ;;  %v1642_v53 = vmul.f32 0.044715, %v1490_v38  ;;  %v1094_v5 = vmul.f32 0.5, %v9727_v33 }
 0x1f5   : > { %9722 = vst [vmem:[#allocation155_spill] sm:$0xff] %v6775_v4  ;;  %v4245_v4 = vpop.eup %4244  ;;  %v2156_v36 = vadd.f32 1.0, %v4243_v2  ;;  %v2309_v35 = vmul.f32 %v2157_v0, %v1093_v55  ;;  %v1095_v14 = vmul.f32 0.5, %v6143_v25  ;;  %v1415_v52 = vmul.f32 %v1263_v23, %v6731_v63 }
 0x1f6   : > { %9726 = vst [vmem:[#allocation65_spill] sm:$0xff] %v6781_v30  ;;  %v4247_v43 = vpop.eup %4246  ;;  %v2230_v16 = vadd.f32 1.0, %v4245_v4  ;;  %v6791_v8 = vadd.f32 %v1566_v13, %v6702_v49  ;;  %v1340_v33 = vmul.f32 %v6767_v46, %v6767_v46  ;;  %v1265_v38 = vmul.f32 %v6771_v6, %v6771_v6 }
 0x1f7   : > { %v4249_v58 = vpop.eup %4248  ;;  %v6798_v18 = vmul.f32 %v2156_v36, %v6695_v59  ;;  %v6802_v25 = vsel %vm2430_vm2, %v2309_v35, -inf  ;;  %v2231_v0 = vadd.f32 1.0, %v4247_v43  ;;  %v1341_v4 = vmul.f32 %v6781_v30, %v6781_v30 }
 0x1f8   : > { %9728 = vst [vmem:[#allocation33_spill] sm:$0xff] %v6791_v8  ;;  %9730 = vst [vmem:[#allocation49_spill] sm:$0xff] %v6802_v25  ;;  %v4251_v13 = vpop.eup %4250  ;;  %v6807_v2 = vadd.f32 %v1642_v53, %v6706_v40  ;;  %v2233_v55 = vadd.f32 1.0, %v4249_v58  ;;  %v1491_v23 = vmul.f32 %v1339_v12, %v6743_v15  ;;  %v1416_v49 = vmul.f32 %v1264_v29, %v6747_v26 }
 0x1f9   : > { %9729 = vst [vmem:[#allocation116_spill] sm:$0xff] %v6798_v18  ;;  %v4253_v8 = vpop.eup %4252  ;;  %v2634_v59 = vmax.f32 %v6798_v18, %v6802_v25  ;;  %v2383_v36 = vmul.f32 %v2231_v0, %v1167_v44  ;;  %v2232_v35 = vadd.f32 1.0, %v4251_v13  ;;  %v1567_v22 = vmul.f32 0.044715, %v1415_v52 }
 0x1fa   : > { %9731 = vst [vmem:[#allocation156_spill] sm:$0xff] %v6807_v2  ;;  %v4255_v43 = vpop.eup %4254  ;;  %v6813_v41 = vmul.f32 %v2230_v16, %v1166_v45  ;;  %v2385_v17 = vmul.f32 %v2233_v55, %v1169_v3  ;;  %v2158_v37 = vadd.f32 1.0, %v4253_v8  ;;  %v1417_v53 = vmul.f32 %v1265_v38, %v6771_v6  ;;  %v9738_v55 = vld [vmem:[#allocation75_spill] sm:$0xff] }
 0x1fb   : > { %2635 = vmax.xlane.f32.xlu1 %v2634_v59  ;;  %v6818_v58 = vsel %vm2430_vm2, %v2383_v36, -inf  ;;  %v6820_v29 = vmul.f32 %v2232_v35, %v1168_v34  ;;  %v2159_v12 = vadd.f32 1.0, %v4255_v43  ;;  %v1493_v25 = vmul.f32 %v1341_v4, %v6781_v30  ;;  %v9743_v35 = vld [vmem:[#allocation83_spill] sm:$0xff] }
 0x1fc   : > { %9732 = vst [vmem:[#allocation157_spill] sm:$0xff] %v6813_v41  ;;  %9733 = vst [vmem:[#allocation158_spill] sm:$0xff] %v6818_v58  ;;  %v2745_v44 = vmax.f32 %v6813_v41, %v6818_v58  ;;  %v6827_v45 = vsel %vm2430_vm2, %v2385_v17, -inf  ;;  %v1643_v8 = vmul.f32 0.044715, %v1491_v23  ;;  %v1492_v3 = vmul.f32 %v1340_v33, %v6767_v46 }
 0x1fd   : > { %9734 = vst [vmem:[#allocation159_spill] sm:$0xff] %v6820_v29  ;;  %9735 = vst [vmem:[#allocation160_spill] sm:$0xff] %v6827_v45  ;;  %v2748_v52 = vmax.f32 %v6820_v29, %v6827_v45  ;;  %v2311_v16 = vmul.f32 %v2159_v12, %v1095_v14  ;;  %v1719_v34 = vadd.f32 %v1567_v22, %v6731_v63  ;;  %v1568_v38 = vmul.f32 0.044715, %v1416_v49  ;;  %v9739_v14 = vld [vmem:[#allocation124_spill] sm:$0xff] }
 0x1fe   : > { %2746 = vmax.xlane.f32.xlu0 %v2745_v44  ;;  %v6833_v0 = vmul.f32 %v2158_v37, %v1094_v5  ;;  %v1569_v4 = vmul.f32 0.044715, %v1417_v53  ;;  %v1856_v13 = vmul.f32 0.7978846, %v6281_v39  ;;  %v1645_v33 = vmul.f32 0.044715, %v1493_v25 }
 0x1ff   : > { %2749 = vmax.xlane.f32.xlu1 %v2748_v52  ;;  %v6839_v17 = vsel %vm2430_vm2, %v2311_v16, -inf  ;;  %v1096_v23 = vmul.f32 0.5, %v9738_v55  ;;  %v1930_v59 = vmul.f32 0.7978846, %v9739_v14  ;;  %v9740_v37 = vld [vmem:[#allocation72_spill] sm:$0xff]  ;;  %v9742_v39 = vld [vmem:[#allocation73_spill] sm:$0xff]  ;;  %v1795_v25 = vadd.f32 %v1643_v8, %v6743_v15 }
 0x200   : > { %9736 = vst [vmem:[#allocation161_spill] sm:$0xff] %v6833_v0  ;;  %9737 = vst [vmem:[#allocation162_spill] sm:$0xff] %v6839_v17  ;;  %v2637_v49 = vmax.f32 %v6833_v0, %v6839_v17  ;;  %4258 = vtanh.f32 %v1856_v13  ;;  %v6847_v5 = vadd.f32 %v9740_v37, %v5064_v60  ;;  %v6851_v47 = vadd.f32 %v9742_v39, %v5064_v60  ;;  %v9744_v12 = vld [vmem:[#allocation8_spill] sm:$0xff]  ;;  %v9747_v14 = vld [vmem:[#allocation50_spill] sm:$0xff] }
 0x201   : > { %v6853_v22 = vmul.f32 0.7978846, %v1719_v34  ;;  %v1644_v36 = vmul.f32 0.044715, %v1492_v3  ;;  %4260 = vtanh.f32 %v1930_v59  ;;  %v1932_v44 = vmul.f32 0.7978846, %v9744_v12 }
 0x202   : > { %9741 = vst [vmem:[#allocation75_spill] sm:$0xff] %v6847_v5  ;;  %2638 = vmax.xlane.f32.xlu0 %v2637_v49  ;;  %4262 = vtanh.f32 %v9743_v35  ;;  %v1266_v43 = vmul.f32 %v6847_v5, %v6847_v5  ;;  %v1342_v53 = vmul.f32 %v6851_v47, %v6851_v47  ;;  %v6863_v52 = vadd.f32 %v1568_v38, %v6747_v26  ;;  %v9745_v34 = vld [vmem:[#allocation26_spill] sm:$0xff]  ;;  %v9746_v8 = vld [vmem:[#allocation4_spill] sm:$0xff]  ;;  %v9760_v17 = vld [vmem:[#allocation79_spill] sm:$0xff] }
 0x203   : > { %v1721_v16 = vadd.f32 %v1569_v4, %v6771_v6  ;;  %4264 = vtanh.f32 %v9745_v34  ;;  %v1858_v3 = vmul.f32 0.7978846, %v9746_v8  ;;  %v1797_v13 = vadd.f32 %v1645_v33, %v6781_v30  ;;  %v9750_v37 = vld [vmem:[#allocation2_spill] sm:$0xff]  ;;  %v9751_v33 = vld [vmem:[#allocation76_spill] sm:$0xff]  ;;  %v9755_v34 = vld [vmem:[#allocation41_spill] sm:$0xff] }
 0x204   : > { %v1418_v55 = vmul.f32 %v1266_v43, %v6847_v5  ;;  %4266 = vtanh.f32 %v1932_v44  ;;  %v6872_v59 = vadd.f32 %v9747_v14, %v5066_v61  ;;  %v6874_v49 = vmul.f32 0.7978846, %v1795_v25  ;;  %v9753_v43 = vld [vmem:[#allocation78_spill] sm:$0xff]  ;;  %v9761_v29 = vld [vmem:[#allocation48_spill] sm:$0xff]  ;;  %v9762_v0 = vld [vmem:[#allocation123_spill] sm:$0xff] }
 0x205   : > { %v6877_v38 = vadd.f32 %v1644_v36, %v6767_v46  ;;  %v1097_v4 = vmul.f32 0.5, %v9750_v37  ;;  %4268 = vtanh.f32 %v1858_v3  ;;  %v1494_v39 = vmul.f32 %v1342_v53, %v6851_v47  ;;  %v9754_v44 = vld [vmem:[#allocation54_spill] sm:$0xff]  ;;  %v4257_v53 = vpop.eup %4256  ;;  %v9757_v37 = vld [vmem:[#allocation39_spill] sm:$0xff] }
 0x206   : > { %9748 = vst [vmem:[#allocation124_spill] sm:$0xff] %v6874_v49  ;;  %4270 = vtanh.f32 %v6414_v9  ;;  %v6884_v35 = vadd.f32 %v9751_v33, %v5066_v61  ;;  %v6888_v12 = vadd.f32 %v9753_v43, %v5064_v60  ;;  %v6890_v25 = vmul.f32 0.7978846, %v1721_v16  ;;  %v9759_v43 = vld [vmem:[#allocation122_spill] sm:$0xff] }
 0x207   : > { %9749 = vst [vmem:[#allocation72_spill] sm:$0xff] %v6877_v38  ;;  %v1170_v36 = vmul.f32 0.5, %v9754_v44  ;;  %v1171_v8 = vmul.f32 0.5, %v9755_v34  ;;  %v1267_v3 = vmul.f32 %v6872_v59, %v6872_v59  ;;  %v6896_v14 = vmul.f32 0.7978846, %v1797_v13 }
 0x208   : > { %9752 = vst [vmem:[#allocation73_spill] sm:$0xff] %v6884_v35  ;;  %v1570_v9 = vmul.f32 0.044715, %v1418_v55  ;;  %v6900_v33 = vadd.f32 %v9757_v37, %v5064_v60  ;;  %v6904_v45 = vadd.f32 %v9759_v43, %v5066_v61  ;;  %v2161_v16 = vadd.f32 1.0, %v4257_v53  ;;  %v9764_v55 = vld [vmem:[#allocation91_spill] sm:$0xff] }
 0x209   : > { %9756 = vst [vmem:[#allocation83_spill] sm:$0xff] %v6896_v14  ;;  %v1172_v44 = vmul.f32 0.5, %v9760_v17  ;;  %v1173_v34 = vmul.f32 0.5, %v9761_v29  ;;  %v6910_v18 = vadd.f32 %v9762_v0, %v5066_v61  ;;  %v1646_v58 = vmul.f32 0.044715, %v1494_v39 }
 0x20a   : > { %9758 = vst [vmem:[#allocation8_spill] sm:$0xff] %v6900_v33  ;;  %v4259_v13 = vpop.eup %4258  ;;  %v1098_v41 = vmul.f32 0.5, %v9764_v55  ;;  %v1343_v37 = vmul.f32 %v6884_v35, %v6884_v35  ;;  %v1268_v43 = vmul.f32 %v6888_v12, %v6888_v12  ;;  %v2313_v46 = vmul.f32 %v2161_v16, %v1097_v4 }
 0x20b   : > { %9763 = vst [vmem:[#allocation26_spill] sm:$0xff] %v6910_v18  ;;  %v4261_v30 = vpop.eup %4260  ;;  %v2160_v53 = vadd.f32 1.0, %v4259_v13  ;;  %v1099_v17 = vmul.f32 0.5, %v6290_v24  ;;  %v1419_v29 = vmul.f32 %v1267_v3, %v6872_v59  ;;  %v6920_v40 = vadd.f32 %v1570_v9, %v6847_v5 }
 0x20c   : > { %v4263_v15 = vpop.eup %4262  ;;  %v2234_v0 = vadd.f32 1.0, %v4261_v30  ;;  %v1344_v39 = vmul.f32 %v6900_v33, %v6900_v33  ;;  %v1269_v55 = vmul.f32 %v6904_v45, %v6904_v45  ;;  %v6930_v4 = vsel %vm2430_vm2, %v2313_v46, -inf }
 0x20d   : > { %9765 = vst [vmem:[#allocation4_spill] sm:$0xff] %v6920_v40  ;;  %v4265_v6 = vpop.eup %4264  ;;  %v6926_v14 = vmul.f32 %v2160_v53, %v1096_v23  ;;  %9767 = vst [vmem:[#allocation2_spill] sm:$0xff] %v6930_v4  ;;  %v2235_v24 = vadd.f32 1.0, %v4263_v15  ;;  %v1345_v30 = vmul.f32 %v6910_v18, %v6910_v18  ;;  %v6935_v9 = vadd.f32 %v1646_v58, %v6851_v47 }
 0x20e   : > { %v4267_v3 = vpop.eup %4266  ;;  %v2237_v16 = vadd.f32 1.0, %v4265_v6  ;;  %v1495_v13 = vmul.f32 %v1343_v37, %v6884_v35  ;;  %v1420_v5 = vmul.f32 %v1268_v43, %v6888_v12  ;;  %v1571_v38 = vmul.f32 0.044715, %v1419_v29 }
 0x20f   : > { %9766 = vst [vmem:[#allocation50_spill] sm:$0xff] %v6926_v14  ;;  %v4269_v40 = vpop.eup %4268  ;;  %v2640_v23 = vmax.f32 %v6926_v14, %v6930_v4  ;;  %v2387_v53 = vmul.f32 %v2235_v24, %v1171_v8  ;;  %v2236_v46 = vadd.f32 1.0, %v4267_v3  ;;  %v6941_v49 = vmul.f32 %v2234_v0, %v1170_v36 }
 0x210   : > { %v4271_v15 = vpop.eup %4270  ;;  %v2389_v2 = vmul.f32 %v2237_v16, %v1173_v34  ;;  %v2162_v26 = vadd.f32 1.0, %v4269_v40  ;;  %v1421_v58 = vmul.f32 %v1269_v55, %v6904_v45  ;;  %v1497_v4 = vmul.f32 %v1345_v30, %v6910_v18 }
 0x211   : > { %9768 = vst [vmem:[#allocation76_spill] sm:$0xff] %v6941_v49  ;;  %2641 = vmax.xlane.f32.xlu1 %v2640_v23  ;;  %v6946_v6 = vsel %vm2430_vm2, %v2387_v53, -inf  ;;  %v6948_v37 = vmul.f32 %v2236_v46, %v1172_v44  ;;  %v2163_v43 = vadd.f32 1.0, %v4271_v15  ;;  %v1647_v40 = vmul.f32 0.044715, %v1495_v13 }
 0x212   : > { %9769 = vst [vmem:[#allocation78_spill] sm:$0xff] %v6946_v6  ;;  %v2751_v8 = vmax.f32 %v6941_v49, %v6946_v6  ;;  %v6955_v36 = vsel %vm2430_vm2, %v2389_v2, -inf  ;;  %v1496_v34 = vmul.f32 %v1344_v39, %v6900_v33  ;;  %v1723_v44 = vadd.f32 %v1571_v38, %v6872_v59 }
 0x213   : > { %9770 = vst [vmem:[#allocation54_spill] sm:$0xff] %v6948_v37  ;;  %9771 = vst [vmem:[#allocation41_spill] sm:$0xff] %v6955_v36  ;;  %v2754_v29 = vmax.f32 %v6948_v37, %v6955_v36  ;;  %v2315_v0 = vmul.f32 %v2163_v43, %v1099_v17  ;;  %v1572_v55 = vmul.f32 0.044715, %v1420_v5  ;;  %v6961_v24 = vmul.f32 %v2162_v26, %v1098_v41  ;;  %v9774_v41 = vld [vmem:[#allocation3_spill] sm:$0xff]  ;;  %v9778_v43 = vld [vmem:[#allocation94_spill] sm:$0xff] }
 0x214   : > { %2752 = vmax.xlane.f32.xlu0 %v2751_v8  ;;  %v1573_v30 = vmul.f32 0.044715, %v1421_v58  ;;  %v1860_v3 = vmul.f32 0.7978846, %v6428_v31  ;;  %4272 = vtanh.f32 %v6459_v27  ;;  %v1649_v39 = vmul.f32 0.044715, %v1497_v4 }
 0x215   : > { %9772 = vst [vmem:[#allocation39_spill] sm:$0xff] %v6961_v24  ;;  %2755 = vmax.xlane.f32.xlu1 %v2754_v29  ;;  %v6967_v2 = vsel %vm2430_vm2, %v2315_v0, -inf  ;;  %v1100_v16 = vmul.f32 0.5, %v6306_v48  ;;  %v1934_v17 = vmul.f32 0.7978846, %v6366_v7  ;;  %v6975_v26 = vadd.f32 %v9774_v41, %v5064_v60  ;;  %v9776_v31 = vld [vmem:[#allocation21_spill] sm:$0xff] }
 0x216   : > { %9773 = vst [vmem:[#allocation122_spill] sm:$0xff] %v6967_v2  ;;  %v2643_v5 = vmax.f32 %v6961_v24, %v6967_v2  ;;  %4274 = vtanh.f32 %v1860_v3  ;;  %v6979_v27 = vadd.f32 %v9776_v31, %v5064_v60  ;;  %v6981_v38 = vmul.f32 0.7978846, %v1723_v44  ;;  %v9781_v0 = vld [vmem:[#allocation70_spill] sm:$0xff]  ;;  %v9785_v31 = vld [vmem:[#allocation85_spill] sm:$0xff] }
 0x217   : > { %9775 = vst [vmem:[#allocation79_spill] sm:$0xff] %v6975_v26  ;;  %v1799_v4 = vadd.f32 %v1647_v40, %v6884_v35  ;;  %v1648_v13 = vmul.f32 0.044715, %v1496_v34  ;;  %4276 = vtanh.f32 %v1934_v17  ;;  %v1270_v48 = vmul.f32 %v6975_v26, %v6975_v26 }
 0x218   : > { %9777 = vst [vmem:[#allocation48_spill] sm:$0xff] %v6979_v27  ;;  %2644 = vmax.xlane.f32.xlu0 %v2643_v5  ;;  %4278 = vtanh.f32 %v6439_v62  ;;  %v1346_v7 = vmul.f32 %v6979_v27, %v6979_v27  ;;  %v1936_v23 = vmul.f32 0.7978846, %v6442_v21  ;;  %v6991_v53 = vadd.f32 %v1572_v55, %v6888_v12 }
 0x219   : > { %v1725_v46 = vadd.f32 %v1573_v30, %v6904_v45  ;;  %4280 = vtanh.f32 %v6469_v54  ;;  %v1862_v15 = vmul.f32 0.7978846, %v6497_v50  ;;  %v1801_v58 = vadd.f32 %v1649_v39, %v6910_v18  ;;  %v9779_v50 = vld [vmem:[#allocation84_spill] sm:$0xff]  ;;  %v9783_v39 = vld [vmem:[#allocation27_spill] sm:$0xff] }
 0x21a   : > { %v1422_v62 = vmul.f32 %v1270_v48, %v6975_v26  ;;  %4282 = vtanh.f32 %v1936_v23  ;;  %v7000_v8 = vadd.f32 %v9778_v43, %v5066_v61  ;;  %v7002_v40 = vmul.f32 0.7978846, %v1799_v4  ;;  %v9782_v30 = vld [vmem:[#allocation40_spill] sm:$0xff]  ;;  %v9788_v23 = vld [vmem:[#allocation57_spill] sm:$0xff] }
 0x21b   : > { %v7005_v21 = vadd.f32 %v1648_v13, %v6900_v33  ;;  %v1101_v34 = vmul.f32 0.5, %v6330_v28  ;;  %4284 = vtanh.f32 %v1862_v15  ;;  %v1498_v54 = vmul.f32 %v1346_v7, %v6979_v27  ;;  %v9787_v13 = vld [vmem:[#allocation64_spill] sm:$0xff] }
 0x21c   : > { %4286 = vtanh.f32 %v6561_v51  ;;  %v7012_v29 = vadd.f32 %v9779_v50, %v5066_v61  ;;  %v7016_v44 = vadd.f32 %v9781_v0, %v5064_v60  ;;  %v7018_v55 = vmul.f32 0.7978846, %v1725_v46  ;;  %v9789_v15 = vld [vmem:[#allocation88_spill] sm:$0xff]  ;;  %v9790_v50 = vld [vmem:[#allocation18_spill] sm:$0xff] }
 0x21d   : > { %v1174_v3 = vmul.f32 0.5, %v9782_v30  ;;  %v1175_v17 = vmul.f32 0.5, %v9783_v39  ;;  %v1271_v28 = vmul.f32 %v7000_v8, %v7000_v8  ;;  %v7024_v41 = vmul.f32 0.7978846, %v1801_v58 }
 0x21e   : > { %9780 = vst [vmem:[#allocation123_spill] sm:$0xff] %v7012_v29  ;;  %v4273_v5 = vpop.eup %4272  ;;  %v1574_v51 = vmul.f32 0.044715, %v1422_v62  ;;  %v7028_v4 = vadd.f32 %v9785_v31, %v5064_v60  ;;  %v7032_v48 = vadd.f32 %v9787_v13, %v5066_v61  ;;  %v1176_v46 = vmul.f32 0.5, %v9788_v23  ;;  %v9792_v62 = vld [vmem:[#allocation10_spill] sm:$0xff] }
 0x21f   : > { %9784 = vst [vmem:[#allocation91_spill] sm:$0xff] %v7024_v41  ;;  %v2165_v7 = vadd.f32 1.0, %v4273_v5  ;;  %v1177_v43 = vmul.f32 0.5, %v9789_v15  ;;  %v7038_v0 = vadd.f32 %v9790_v50, %v5066_v61  ;;  %v1650_v30 = vmul.f32 0.044715, %v1498_v54 }
 0x220   : > { %9786 = vst [vmem:[#allocation3_spill] sm:$0xff] %v7028_v4  ;;  %v4275_v58 = vpop.eup %4274  ;;  %v1102_v39 = vmul.f32 0.5, %v9792_v62  ;;  %v1347_v31 = vmul.f32 %v7012_v29, %v7012_v29  ;;  %v1272_v13 = vmul.f32 %v7016_v44, %v7016_v44  ;;  %v1103_v23 = vmul.f32 0.5, %v6437_v42 }
 0x221   : > { %9791 = vst [vmem:[#allocation21_spill] sm:$0xff] %v7038_v0  ;;  %v4277_v36 = vpop.eup %4276  ;;  %v2164_v5 = vadd.f32 1.0, %v4275_v58  ;;  %v2317_v2 = vmul.f32 %v2165_v7, %v1101_v34  ;;  %v1423_v15 = vmul.f32 %v1271_v28, %v7000_v8  ;;  %v7048_v24 = vadd.f32 %v1574_v51, %v6975_v26 }
 0x222   : > { %v4279_v37 = vpop.eup %4278  ;;  %v2238_v50 = vadd.f32 1.0, %v4277_v36  ;;  %v1348_v54 = vmul.f32 %v7028_v4, %v7028_v4  ;;  %v1273_v62 = vmul.f32 %v7032_v48, %v7032_v48  ;;  %v1349_v36 = vmul.f32 %v7038_v0, %v7038_v0 }
 0x223   : > { %v4281_v14 = vpop.eup %4280  ;;  %v7054_v6 = vmul.f32 %v2164_v5, %v1100_v16  ;;  %v7058_v34 = vsel %vm2430_vm2, %v2317_v2, -inf  ;;  %v2239_v42 = vadd.f32 1.0, %v4279_v37  ;;  %v7063_v51 = vadd.f32 %v1650_v30, %v6979_v27 }
 0x224   : > { %9794 = vst [vmem:[#allocation84_spill] sm:$0xff] %v7058_v34  ;;  %v4283_v28 = vpop.eup %4282  ;;  %v2241_v7 = vadd.f32 1.0, %v4281_v14  ;;  %v1499_v58 = vmul.f32 %v1347_v31, %v7012_v29  ;;  %v1424_v49 = vmul.f32 %v1272_v13, %v7016_v44  ;;  %v1575_v41 = vmul.f32 0.044715, %v1423_v15 }
 0x225   : > { %9793 = vst [vmem:[#allocation94_spill] sm:$0xff] %v7054_v6  ;;  %v4285_v26 = vpop.eup %4284  ;;  %v2646_v16 = vmax.f32 %v7054_v6, %v7058_v34  ;;  %v2391_v5 = vmul.f32 %v2239_v42, %v1175_v17  ;;  %v2240_v2 = vadd.f32 1.0, %v4283_v28  ;;  %v7069_v18 = vmul.f32 %v2238_v50, %v1174_v3 }
 0x226   : > { %v4287_v37 = vpop.eup %4286  ;;  %v2393_v33 = vmul.f32 %v2241_v7, %v1177_v43  ;;  %v2166_v35 = vadd.f32 1.0, %v4285_v26  ;;  %v1425_v30 = vmul.f32 %v1273_v62, %v7032_v48  ;;  %v1501_v34 = vmul.f32 %v1349_v36, %v7038_v0 }
 0x227   : > { %9795 = vst [vmem:[#allocation70_spill] sm:$0xff] %v7069_v18  ;;  %2647 = vmax.xlane.f32.xlu1 %v2646_v16  ;;  %v7074_v14 = vsel %vm2430_vm2, %v2391_v5, -inf  ;;  %v7076_v31 = vmul.f32 %v2240_v2, %v1176_v46  ;;  %v2167_v13 = vadd.f32 1.0, %v4287_v37  ;;  %v1651_v26 = vmul.f32 0.044715, %v1499_v58  ;;  %v9808_v37 = vld [vmem:[#allocation114_spill] sm:$0xff] }
 0x228   : > { %9796 = vst [vmem:[#allocation40_spill] sm:$0xff] %v7074_v14  ;;  %v2757_v17 = vmax.f32 %v7069_v18, %v7074_v14  ;;  %v7083_v3 = vsel %vm2430_vm2, %v2393_v33, -inf  ;;  %v1500_v43 = vmul.f32 %v1348_v54, %v7028_v4  ;;  %v1727_v46 = vadd.f32 %v1575_v41, %v7000_v8 }
 0x229   : > { %9797 = vst [vmem:[#allocation27_spill] sm:$0xff] %v7076_v31  ;;  %9798 = vst [vmem:[#allocation85_spill] sm:$0xff] %v7083_v3  ;;  %v2760_v15 = vmax.f32 %v7076_v31, %v7083_v3  ;;  %v2319_v50 = vmul.f32 %v2167_v13, %v1103_v23  ;;  %v1576_v62 = vmul.f32 0.044715, %v1424_v49  ;;  %v7089_v42 = vmul.f32 %v2166_v35, %v1102_v39  ;;  %v9801_v23 = vld [vmem:[#allocation29_spill] sm:$0xff]  ;;  %v9802_v35 = vld [vmem:[#allocation136_spill] sm:$0xff] }
 0x22a   : > { %2758 = vmax.xlane.f32.xlu0 %v2757_v17  ;;  %v1577_v36 = vmul.f32 0.044715, %v1425_v30  ;;  %v1864_v28 = vmul.f32 0.7978846, %v6575_v1  ;;  %4288 = vtanh.f32 %v6606_v20  ;;  %v1653_v54 = vmul.f32 0.044715, %v1501_v34 }
 0x22b   : > { %9799 = vst [vmem:[#allocation64_spill] sm:$0xff] %v7089_v42  ;;  %2761 = vmax.xlane.f32.xlu1 %v2760_v15  ;;  %v7095_v33 = vsel %vm2430_vm2, %v2319_v50, -inf  ;;  %v1104_v7 = vmul.f32 0.5, %v6453_v57  ;;  %v1938_v58 = vmul.f32 0.7978846, %v9801_v23  ;;  %v7103_v41 = vadd.f32 %v9802_v35, %v5064_v60  ;;  %v9804_v1 = vld [vmem:[#allocation137_spill] sm:$0xff] }
 0x22c   : > { %9800 = vst [vmem:[#allocation57_spill] sm:$0xff] %v7095_v33  ;;  %v2649_v49 = vmax.f32 %v7089_v42, %v7095_v33  ;;  %4290 = vtanh.f32 %v1864_v28  ;;  %v7107_v20 = vadd.f32 %v9804_v1, %v5064_v60  ;;  %v7109_v39 = vmul.f32 0.7978846, %v1727_v46  ;;  %v9807_v57 = vld [vmem:[#allocation53_spill] sm:$0xff]  ;;  %v9809_v15 = vld [vmem:[#allocation16_spill] sm:$0xff]  ;;  %v9827_v31 = vld [vmem:[#allocation139_spill] sm:$0xff] }
 0x22d   : > { %9803 = vst [vmem:[#allocation88_spill] sm:$0xff] %v7103_v41  ;;  %v1803_v34 = vadd.f32 %v1651_v26, %v7012_v29  ;;  %v1652_v16 = vmul.f32 0.044715, %v1500_v43  ;;  %4292 = vtanh.f32 %v1938_v58  ;;  %v1274_v5 = vmul.f32 %v7103_v41, %v7103_v41  ;;  %v9810_v26 = vld [vmem:[#allocation17_spill] sm:$0xff]  ;;  %v9825_v3 = vld [vmem:[#allocation92_spill] sm:$0xff] }
 0x22e   : > { %9805 = vst [vmem:[#allocation18_spill] sm:$0xff] %v7107_v20  ;;  %9806 = vst [vmem:[#allocation10_spill] sm:$0xff] %v7109_v39  ;;  %2650 = vmax.xlane.f32.xlu0 %v2649_v49  ;;  %4294 = vtanh.f32 %v9807_v57  ;;  %v1350_v2 = vmul.f32 %v7107_v20, %v7107_v20  ;;  %v1940_v30 = vmul.f32 0.7978846, %v9808_v37  ;;  %v7119_v13 = vadd.f32 %v1576_v62, %v7016_v44  ;;  %v9811_v28 = vld [vmem:[#allocation37_spill] sm:$0xff]  ;;  %v9814_v49 = vld [vmem:[#allocation11_spill] sm:$0xff] }
 0x22f   : > { %v1729_v17 = vadd.f32 %v1577_v36, %v7032_v48  ;;  %4296 = vtanh.f32 %v9809_v15  ;;  %v1866_v43 = vmul.f32 0.7978846, %v9810_v26  ;;  %v1805_v50 = vadd.f32 %v1653_v54, %v7038_v0  ;;  %v9815_v54 = vld [vmem:[#allocation7_spill] sm:$0xff]  ;;  %v9819_v37 = vld [vmem:[#allocation90_spill] sm:$0xff]  ;;  %v9826_v33 = vld [vmem:[#allocation9_spill] sm:$0xff] }
 0x230   : > { %v1426_v46 = vmul.f32 %v1274_v5, %v7103_v41  ;;  %4298 = vtanh.f32 %v1940_v30  ;;  %v7128_v23 = vadd.f32 %v9811_v28, %v5066_v61  ;;  %v7130_v58 = vmul.f32 0.7978846, %v1803_v34  ;;  %v9817_v57 = vld [vmem:[#allocation23_spill] sm:$0xff]  ;;  %v9820_v30 = vld [vmem:[#allocation5_spill] sm:$0xff]  ;;  %v9822_v28 = vld [vmem:[#allocation28_spill] sm:$0xff] }
 0x231   : > { %v7133_v62 = vadd.f32 %v1652_v16, %v7028_v4  ;;  %v1105_v36 = vmul.f32 0.5, %v9814_v49  ;;  %4300 = vtanh.f32 %v1866_v43  ;;  %v1502_v35 = vmul.f32 %v1350_v2, %v7107_v20 }
 0x232   : > { %9812 = vst [vmem:[#allocation29_spill] sm:$0xff] %v7130_v58  ;;  %4302 = vtanh.f32 %v6708_v56  ;;  %v7140_v1 = vadd.f32 %v9815_v54, %v5066_v61  ;;  %v7144_v5 = vadd.f32 %v9817_v57, %v5064_v60  ;;  %v7146_v34 = vmul.f32 0.7978846, %v1729_v17  ;;  %v9824_v54 = vld [vmem:[#allocation138_spill] sm:$0xff] }
 0x233   : > { %9813 = vst [vmem:[#allocation136_spill] sm:$0xff] %v7133_v62  ;;  %v1178_v16 = vmul.f32 0.5, %v9819_v37  ;;  %v1179_v15 = vmul.f32 0.5, %v9820_v30  ;;  %v1275_v26 = vmul.f32 %v7128_v23, %v7128_v23  ;;  %v7152_v43 = vmul.f32 0.7978846, %v1805_v50 }
 0x234   : > { %9816 = vst [vmem:[#allocation137_spill] sm:$0xff] %v7140_v1  ;;  %9818 = vst [vmem:[#allocation53_spill] sm:$0xff] %v7146_v34  ;;  %v4289_v2 = vpop.eup %4288  ;;  %v1578_v56 = vmul.f32 0.044715, %v1426_v46  ;;  %v7156_v49 = vadd.f32 %v9822_v28, %v5064_v60  ;;  %v7160_v57 = vadd.f32 %v9824_v54, %v5066_v61  ;;  %v1180_v37 = vmul.f32 0.5, %v9825_v3  ;;  %v9829_v46 = vld [vmem:[#allocation30_spill] sm:$0xff] }
 0x235   : > { %9821 = vst [vmem:[#allocation114_spill] sm:$0xff] %v7152_v43  ;;  %v2169_v17 = vadd.f32 1.0, %v4289_v2  ;;  %v1181_v30 = vmul.f32 0.5, %v9826_v33  ;;  %v7166_v42 = vadd.f32 %v9827_v31, %v5066_v61  ;;  %v1654_v6 = vmul.f32 0.044715, %v1502_v35 }
 0x236   : > { %9823 = vst [vmem:[#allocation16_spill] sm:$0xff] %v7156_v49  ;;  %v4291_v50 = vpop.eup %4290  ;;  %v1106_v14 = vmul.f32 0.5, %v9829_v46  ;;  %v1351_v28 = vmul.f32 %v7140_v1, %v7140_v1  ;;  %v1276_v54 = vmul.f32 %v7144_v5, %v7144_v5  ;;  %v1107_v3 = vmul.f32 0.5, %v6584_v10 }
 0x237   : > { %9828 = vst [vmem:[#allocation17_spill] sm:$0xff] %v7166_v42  ;;  %v4293_v18 = vpop.eup %4292  ;;  %v2168_v2 = vadd.f32 1.0, %v4291_v50  ;;  %v2321_v43 = vmul.f32 %v2169_v17, %v1105_v36  ;;  %v1427_v33 = vmul.f32 %v1275_v26, %v7128_v23  ;;  %v7176_v34 = vadd.f32 %v1578_v56, %v7103_v41 }
 0x238   : > { %v4295_v58 = vpop.eup %4294  ;;  %v2242_v31 = vadd.f32 1.0, %v4293_v18  ;;  %v1352_v35 = vmul.f32 %v7156_v49, %v7156_v49  ;;  %v1277_v46 = vmul.f32 %v7160_v57, %v7160_v57  ;;  %v1353_v18 = vmul.f32 %v7166_v42, %v7166_v42 }
 0x239   : > { %9830 = vst [vmem:[#allocation37_spill] sm:$0xff] %v7176_v34  ;;  %v4297_v62 = vpop.eup %4296  ;;  %v7182_v0 = vmul.f32 %v2168_v2, %v1104_v7  ;;  %v7186_v36 = vsel %vm2430_vm2, %v2321_v43, -inf  ;;  %v2243_v10 = vadd.f32 1.0, %v4295_v58  ;;  %v7191_v56 = vadd.f32 %v1654_v6, %v7107_v20 }
 0x23a   : > { %9832 = vst [vmem:[#allocation7_spill] sm:$0xff] %v7186_v36  ;;  %v4299_v26 = vpop.eup %4298  ;;  %v2245_v17 = vadd.f32 1.0, %v4297_v62  ;;  %v1503_v50 = vmul.f32 %v1351_v28, %v7140_v1  ;;  %v1428_v34 = vmul.f32 %v1276_v54, %v7144_v5  ;;  %v1579_v4 = vmul.f32 0.044715, %v1427_v33 }
 0x23b   : > { %9831 = vst [vmem:[#allocation11_spill] sm:$0xff] %v7182_v0  ;;  %9833 = vst [vmem:[#allocation23_spill] sm:$0xff] %v7191_v56  ;;  %v4301_v41 = vpop.eup %4300  ;;  %v2652_v7 = vmax.f32 %v7182_v0, %v7186_v36  ;;  %v2395_v2 = vmul.f32 %v2243_v10, %v1179_v15  ;;  %v2244_v43 = vadd.f32 1.0, %v4299_v26  ;;  %v7197_v29 = vmul.f32 %v2242_v31, %v1178_v16 }
 0x23c   : > { %v4303_v58 = vpop.eup %4302  ;;  %v2397_v27 = vmul.f32 %v2245_v17, %v1181_v30  ;;  %v2170_v39 = vadd.f32 1.0, %v4301_v41  ;;  %v1429_v6 = vmul.f32 %v1277_v46, %v7160_v57  ;;  %v1505_v36 = vmul.f32 %v1353_v18, %v7166_v42  ;;  %v9840_v17 = vld [vmem:[#allocation19_spill] sm:$0xff] }
 0x23d   : > { %9834 = vst [vmem:[#allocation90_spill] sm:$0xff] %v7197_v29  ;;  %2653 = vmax.xlane.f32.xlu1 %v2652_v7  ;;  %v7202_v62 = vsel %vm2430_vm2, %v2395_v2, -inf  ;;  %v7204_v28 = vmul.f32 %v2244_v43, %v1180_v37  ;;  %v2171_v54 = vadd.f32 1.0, %v4303_v58  ;;  %v1655_v41 = vmul.f32 0.044715, %v1503_v50  ;;  %v9847_v43 = vld [vmem:[#allocation56_spill] sm:$0xff] }
 0x23e   : > { %9835 = vst [vmem:[#allocation5_spill] sm:$0xff] %v7202_v62  ;;  %v2763_v15 = vmax.f32 %v7197_v29, %v7202_v62  ;;  %v7211_v16 = vsel %vm2430_vm2, %v2397_v27, -inf  ;;  %v1504_v30 = vmul.f32 %v1352_v35, %v7156_v49  ;;  %v1731_v37 = vadd.f32 %v1579_v4, %v7128_v23 }
 0x23f   : > { %9836 = vst [vmem:[#allocation28_spill] sm:$0xff] %v7204_v28  ;;  %9837 = vst [vmem:[#allocation138_spill] sm:$0xff] %v7211_v16  ;;  %v2766_v33 = vmax.f32 %v7204_v28, %v7211_v16  ;;  %v2323_v31 = vmul.f32 %v2171_v54, %v1107_v3  ;;  %v1580_v46 = vmul.f32 0.044715, %v1428_v34  ;;  %v7217_v10 = vmul.f32 %v2170_v39, %v1106_v14  ;;  %v9841_v3 = vld [vmem:[#allocation148_spill] sm:$0xff]  ;;  %v9842_v14 = vld [vmem:[#allocation103_spill] sm:$0xff] }
 0x240   : > { %2764 = vmax.xlane.f32.xlu0 %v2763_v15  ;;  %v1581_v18 = vmul.f32 0.044715, %v1429_v6  ;;  %v1868_v26 = vmul.f32 0.7978846, %v6722_v11  ;;  %4304 = vtanh.f32 %v6753_v19  ;;  %v1657_v35 = vmul.f32 0.044715, %v1505_v36 }
 0x241   : > { %9838 = vst [vmem:[#allocation92_spill] sm:$0xff] %v7217_v10  ;;  %2767 = vmax.xlane.f32.xlu1 %v2766_v33  ;;  %v7223_v27 = vsel %vm2430_vm2, %v2323_v31, -inf  ;;  %v1108_v50 = vmul.f32 0.5, %v9840_v17  ;;  %v1942_v7 = vmul.f32 0.7978846, %v9841_v3  ;;  %v7231_v39 = vadd.f32 %v9842_v14, %v5064_v60  ;;  %v9844_v11 = vld [vmem:[#allocation52_spill] sm:$0xff] }
 0x242   : > { %9839 = vst [vmem:[#allocation9_spill] sm:$0xff] %v7223_v27  ;;  %v2655_v4 = vmax.f32 %v7217_v10, %v7223_v27  ;;  %4306 = vtanh.f32 %v1868_v26  ;;  %v7235_v19 = vadd.f32 %v9844_v11, %v5064_v60  ;;  %v7237_v34 = vmul.f32 0.7978846, %v1731_v37  ;;  %v9848_v54 = vld [vmem:[#allocation60_spill] sm:$0xff]  ;;  %v9849_v37 = vld [vmem:[#allocation42_spill] sm:$0xff]  ;;  %v9851_v3 = vld [vmem:[#allocation105_spill] sm:$0xff] }
 0x243   : > { %9843 = vst [vmem:[#allocation139_spill] sm:$0xff] %v7231_v39  ;;  %v1807_v36 = vadd.f32 %v1655_v41, %v7140_v1  ;;  %v1656_v2 = vmul.f32 0.044715, %v1504_v30  ;;  %4308 = vtanh.f32 %v1942_v7  ;;  %v1278_v58 = vmul.f32 %v7231_v39, %v7231_v39  ;;  %v9850_v41 = vld [vmem:[#allocation33_spill] sm:$0xff]  ;;  %v9854_v14 = vld [vmem:[#allocation106_spill] sm:$0xff]  ;;  %v9866_v27 = vld [vmem:[#allocation15_spill] sm:$0xff] }
 0x244   : > { %9845 = vst [vmem:[#allocation30_spill] sm:$0xff] %v7235_v19  ;;  %9846 = vst [vmem:[#allocation19_spill] sm:$0xff] %v7237_v34  ;;  %2656 = vmax.xlane.f32.xlu0 %v2655_v4  ;;  %4310 = vtanh.f32 %v9847_v43  ;;  %v1354_v6 = vmul.f32 %v7235_v19, %v7235_v19  ;;  %v1944_v15 = vmul.f32 0.7978846, %v9848_v54  ;;  %v7247_v33 = vadd.f32 %v1580_v46, %v7144_v5  ;;  %v9867_v28 = vld [vmem:[#allocation104_spill] sm:$0xff]  ;;  %v9868_v10 = vld [vmem:[#allocation147_spill] sm:$0xff] }
 0x245   : > { %v1733_v31 = vadd.f32 %v1581_v18, %v7160_v57  ;;  %4312 = vtanh.f32 %v9849_v37  ;;  %v1870_v30 = vmul.f32 0.7978846, %v9850_v41  ;;  %v1809_v26 = vadd.f32 %v1657_v35, %v7166_v42  ;;  %v9855_v35 = vld [vmem:[#allocation46_spill] sm:$0xff]  ;;  %v9860_v37 = vld [vmem:[#allocation35_spill] sm:$0xff] }
 0x246   : > { %v1430_v17 = vmul.f32 %v1278_v58, %v7231_v39  ;;  %4314 = vtanh.f32 %v1944_v15  ;;  %v7256_v7 = vadd.f32 %v9851_v3, %v5066_v61  ;;  %v7258_v4 = vmul.f32 0.7978846, %v1807_v36  ;;  %v9857_v58 = vld [vmem:[#allocation13_spill] sm:$0xff]  ;;  %v9859_v15 = vld [vmem:[#allocation38_spill] sm:$0xff] }
 0x247   : > { %v7261_v46 = vadd.f32 %v1656_v2, %v7156_v49  ;;  %v1109_v18 = vmul.f32 0.5, %v9854_v14  ;;  %4316 = vtanh.f32 %v1870_v30  ;;  %v1506_v11 = vmul.f32 %v1354_v6, %v7235_v19  ;;  %v9862_v14 = vld [vmem:[#allocation102_spill] sm:$0xff] }
 0x248   : > { %9852 = vst [vmem:[#allocation148_spill] sm:$0xff] %v7258_v4  ;;  %4318 = vtanh.f32 %v6853_v22  ;;  %v7268_v43 = vadd.f32 %v9855_v35, %v5066_v61  ;;  %v7272_v54 = vadd.f32 %v9857_v58, %v5064_v60  ;;  %v7274_v36 = vmul.f32 0.7978846, %v1733_v31  ;;  %v9864_v58 = vld [vmem:[#allocation146_spill] sm:$0xff] }
 0x249   : > { %9853 = vst [vmem:[#allocation103_spill] sm:$0xff] %v7261_v46  ;;  %v1182_v2 = vmul.f32 0.5, %v9859_v15  ;;  %v1183_v41 = vmul.f32 0.5, %v9860_v37  ;;  %v1279_v30 = vmul.f32 %v7256_v7, %v7256_v7  ;;  %v7280_v3 = vmul.f32 0.7978846, %v1809_v26 }
 0x24a   : > { %9856 = vst [vmem:[#allocation52_spill] sm:$0xff] %v7268_v43  ;;  %9858 = vst [vmem:[#allocation56_spill] sm:$0xff] %v7274_v36  ;;  %v4305_v6 = vpop.eup %4304  ;;  %v1582_v22 = vmul.f32 0.044715, %v1430_v17  ;;  %v7284_v35 = vadd.f32 %v9862_v14, %v5064_v60  ;;  %v7288_v16 = vadd.f32 %v9864_v58, %v5066_v61  ;;  %v1184_v15 = vmul.f32 0.5, %v9866_v27  ;;  %v9870_v17 = vld [vmem:[#allocation55_spill] sm:$0xff] }
 0x24b   : > { %9861 = vst [vmem:[#allocation60_spill] sm:$0xff] %v7280_v3  ;;  %v2173_v31 = vadd.f32 1.0, %v4305_v6  ;;  %v1185_v37 = vmul.f32 0.5, %v9867_v28  ;;  %v7294_v0 = vadd.f32 %v9868_v10, %v5066_v61  ;;  %v1658_v62 = vmul.f32 0.044715, %v1506_v11 }
 0x24c   : > { %9863 = vst [vmem:[#allocation42_spill] sm:$0xff] %v7284_v35  ;;  %9865 = vst [vmem:[#allocation33_spill] sm:$0xff] %v7288_v16  ;;  %v4307_v26 = vpop.eup %4306  ;;  %v1110_v29 = vmul.f32 0.5, %v9870_v17  ;;  %v1355_v14 = vmul.f32 %v7268_v43, %v7268_v43  ;;  %v1280_v58 = vmul.f32 %v7272_v54, %v7272_v54  ;;  %v1111_v27 = vmul.f32 0.5, %v6731_v63 }
 0x24d   : > { %9869 = vst [vmem:[#allocation105_spill] sm:$0xff] %v7294_v0  ;;  %v4309_v3 = vpop.eup %4308  ;;  %v2172_v6 = vadd.f32 1.0, %v4307_v26  ;;  %v2325_v4 = vmul.f32 %v2173_v31, %v1109_v18  ;;  %v1431_v28 = vmul.f32 %v1279_v30, %v7256_v7  ;;  %v7304_v34 = vadd.f32 %v1582_v22, %v7231_v39 }
 0x24e   : > { %v4311_v36 = vpop.eup %4310  ;;  %v2246_v10 = vadd.f32 1.0, %v4309_v3  ;;  %v1356_v11 = vmul.f32 %v7284_v35, %v7284_v35  ;;  %v1281_v17 = vmul.f32 %v7288_v16, %v7288_v16  ;;  %v1357_v30 = vmul.f32 %v7294_v0, %v7294_v0 }
 0x24f   : > { %9871 = vst [vmem:[#allocation106_spill] sm:$0xff] %v7304_v34  ;;  %v4313_v46 = vpop.eup %4312  ;;  %v7310_v42 = vmul.f32 %v2172_v6, %v1108_v50  ;;  %v7314_v18 = vsel %vm2430_vm2, %v2325_v4, -inf  ;;  %v2247_v63 = vadd.f32 1.0, %v4311_v36  ;;  %v7319_v22 = vadd.f32 %v1658_v62, %v7235_v19 }
 0x250   : > { %9873 = vst [vmem:[#allocation13_spill] sm:$0xff] %v7314_v18  ;;  %v4315_v3 = vpop.eup %4314  ;;  %v2249_v31 = vadd.f32 1.0, %v4313_v46  ;;  %v1507_v26 = vmul.f32 %v1355_v14, %v7268_v43  ;;  %v1432_v34 = vmul.f32 %v1280_v58, %v7272_v54  ;;  %v1583_v49 = vmul.f32 0.044715, %v1431_v28 }
 0x251   : > { %9872 = vst [vmem:[#allocation46_spill] sm:$0xff] %v7310_v42  ;;  %v4317_v39 = vpop.eup %4316  ;;  %v2658_v50 = vmax.f32 %v7310_v42, %v7314_v18  ;;  %v2399_v6 = vmul.f32 %v2247_v63, %v1183_v41  ;;  %v2248_v4 = vadd.f32 1.0, %v4315_v3  ;;  %v7325_v56 = vmul.f32 %v2246_v10, %v1182_v2 }
 0x252   : > { %v4319_v36 = vpop.eup %4318  ;;  %v2401_v1 = vmul.f32 %v2249_v31, %v1185_v37  ;;  %v2174_v20 = vadd.f32 1.0, %v4317_v39  ;;  %v1433_v62 = vmul.f32 %v1281_v17, %v7288_v16  ;;  %v1509_v18 = vmul.f32 %v1357_v30, %v7294_v0  ;;  %v9880_v31 = vld [vmem:[#allocation51_spill] sm:$0xff] }
 0x253   : > { %9874 = vst [vmem:[#allocation38_spill] sm:$0xff] %v7325_v56  ;;  %2659 = vmax.xlane.f32.xlu1 %v2658_v50  ;;  %v7330_v46 = vsel %vm2430_vm2, %v2399_v6, -inf  ;;  %v7332_v14 = vmul.f32 %v2248_v4, %v1184_v15  ;;  %v2175_v58 = vadd.f32 1.0, %v4319_v36  ;;  %v1659_v39 = vmul.f32 0.044715, %v1507_v26  ;;  %v9886_v4 = vld [vmem:[#allocation124_spill] sm:$0xff] }
 0x254   : > { %9875 = vst [vmem:[#allocation35_spill] sm:$0xff] %v7330_v46  ;;  %v2769_v41 = vmax.f32 %v7325_v56, %v7330_v46  ;;  %v7339_v2 = vsel %vm2430_vm2, %v2401_v1, -inf  ;;  %v1508_v37 = vmul.f32 %v1356_v11, %v7284_v35  ;;  %v1735_v15 = vadd.f32 %v1583_v49, %v7256_v7 }
 0x255   : > { %9876 = vst [vmem:[#allocation102_spill] sm:$0xff] %v7332_v14  ;;  %9877 = vst [vmem:[#allocation146_spill] sm:$0xff] %v7339_v2  ;;  %v2772_v28 = vmax.f32 %v7332_v14, %v7339_v2  ;;  %v2327_v10 = vmul.f32 %v2175_v58, %v1111_v27  ;;  %v1584_v17 = vmul.f32 0.044715, %v1432_v34  ;;  %v7345_v63 = vmul.f32 %v2174_v20, %v1110_v29  ;;  %v9881_v27 = vld [vmem:[#allocation156_spill] sm:$0xff]  ;;  %v9882_v29 = vld [vmem:[#allocation47_spill] sm:$0xff] }
 0x256   : > { %2770 = vmax.xlane.f32.xlu0 %v2769_v41  ;;  %v1585_v30 = vmul.f32 0.044715, %v1433_v62  ;;  %v1872_v3 = vmul.f32 0.7978846, %v6863_v52  ;;  %4320 = vtanh.f32 %v6890_v25  ;;  %v1661_v11 = vmul.f32 0.044715, %v1509_v18 }
 0x257   : > { %9878 = vst [vmem:[#allocation15_spill] sm:$0xff] %v7345_v63  ;;  %2773 = vmax.xlane.f32.xlu1 %v2772_v28  ;;  %v7351_v1 = vsel %vm2430_vm2, %v2327_v10, -inf  ;;  %v1112_v26 = vmul.f32 0.5, %v9880_v31  ;;  %v1946_v50 = vmul.f32 0.7978846, %v9881_v27  ;;  %v7359_v20 = vadd.f32 %v9882_v29, %v5064_v60  ;;  %v9884_v52 = vld [vmem:[#allocation113_spill] sm:$0xff] }
 0x258   : > { %9879 = vst [vmem:[#allocation104_spill] sm:$0xff] %v7351_v1  ;;  %v2661_v49 = vmax.f32 %v7345_v63, %v7351_v1  ;;  %4322 = vtanh.f32 %v1872_v3  ;;  %v7363_v25 = vadd.f32 %v9884_v52, %v5064_v60  ;;  %v7365_v34 = vmul.f32 0.7978846, %v1735_v15  ;;  %v9887_v58 = vld [vmem:[#allocation72_spill] sm:$0xff]  ;;  %v9888_v15 = vld [vmem:[#allocation83_spill] sm:$0xff]  ;;  %v9890_v27 = vld [vmem:[#allocation61_spill] sm:$0xff]  ;;  %v7418_v1 = vpop.xlane.xlu0 %2584 }
 0x259   : > { %9883 = vst [vmem:[#allocation147_spill] sm:$0xff] %v7359_v20  ;;  %v1811_v18 = vadd.f32 %v1659_v39, %v7268_v43  ;;  %v1660_v6 = vmul.f32 0.044715, %v1508_v37  ;;  %4324 = vtanh.f32 %v1946_v50  ;;  %v1282_v36 = vmul.f32 %v7359_v20, %v7359_v20  ;;  %v9889_v39 = vld [vmem:[#allocation4_spill] sm:$0xff]  ;;  %v9892_v29 = vld [vmem:[#allocation31_spill] sm:$0xff]  ;;  %v9902_v14 = vld [vmem:[#allocation34_spill] sm:$0xff]  ;;  %v7452_v43 = vpop.xlane.xlu1 %2701 }
 0x25a   : > { %9885 = vst [vmem:[#allocation55_spill] sm:$0xff] %v7363_v25  ;;  %2662 = vmax.xlane.f32.xlu0 %v2661_v49  ;;  %4326 = vtanh.f32 %v9886_v4  ;;  %v1358_v62 = vmul.f32 %v7363_v25, %v7363_v25  ;;  %v1948_v41 = vmul.f32 0.7978846, %v9887_v58  ;;  %v7375_v28 = vadd.f32 %v1584_v17, %v7272_v54  ;;  %v9893_v4 = vld [vmem:[#allocation62_spill] sm:$0xff]  ;;  %9910 = vst [vmem:[#allocation61_spill] sm:$0xff] %v7452_v43 }
 0x25b   : > { %v1737_v10 = vadd.f32 %v1585_v30, %v7288_v16  ;;  %4328 = vtanh.f32 %v9888_v15  ;;  %v1874_v37 = vmul.f32 0.7978846, %v9889_v39  ;;  %v1813_v3 = vadd.f32 %v1661_v11, %v7294_v0  ;;  %v9905_v0 = vld [vmem:[#allocation155_spill] sm:$0xff] }
 0x25c   : > { %v1434_v31 = vmul.f32 %v1282_v36, %v7359_v20  ;;  %4330 = vtanh.f32 %v1948_v41  ;;  %v7384_v50 = vadd.f32 %v9890_v27, %v5066_v61  ;;  %v7386_v49 = vmul.f32 0.7978846, %v1811_v18  ;;  %v9895_v18 = vld [vmem:[#allocation44_spill] sm:$0xff] }
 0x25d   : > { %v7389_v17 = vadd.f32 %v1660_v6, %v7284_v35  ;;  %v1510_v30 = vmul.f32 %v1358_v62, %v7363_v25  ;;  %4332 = vtanh.f32 %v1874_v37  ;;  %v1113_v52 = vmul.f32 0.5, %v9892_v29  ;;  %v9896_v6 = vld [vmem:[#allocation45_spill] sm:$0xff]  ;;  %v9897_v62 = vld [vmem:[#allocation115_spill] sm:$0xff]  ;;  %v9900_v29 = vld [vmem:[#allocation66_spill] sm:$0xff] }
 0x25e   : > { %4334 = vtanh.f32 %v6981_v38  ;;  %v1283_v11 = vmul.f32 %v7384_v50, %v7384_v50  ;;  %v7398_v36 = vadd.f32 %v9893_v4, %v5064_v60  ;;  %v7400_v58 = vmul.f32 0.7978846, %v1737_v10  ;;  %v9901_v4 = vld [vmem:[#allocation25_spill] sm:$0xff] }
 0x25f   : > { %9891 = vst [vmem:[#allocation51_spill] sm:$0xff] %v7389_v17  ;;  %v1186_v41 = vmul.f32 0.5, %v9895_v18  ;;  %v1187_v15 = vmul.f32 0.5, %v9896_v6  ;;  %v7406_v39 = vadd.f32 %v9897_v62, %v5066_v61  ;;  %v7408_v27 = vmul.f32 0.7978846, %v1813_v3  ;;  %v9903_v62 = vld [vmem:[#allocation65_spill] sm:$0xff] }
 0x260   : > { %9894 = vst [vmem:[#allocation156_spill] sm:$0xff] %v7398_v36  ;;  %v4321_v37 = vpop.eup %4320  ;;  %v1586_v38 = vmul.f32 0.044715, %v1434_v31  ;;  %v7412_v2 = vadd.f32 %v9900_v29, %v5066_v61  ;;  %v7416_v10 = vadd.f32 %v9901_v4, %v5064_v60  ;;  %v1662_v6 = vmul.f32 0.044715, %v1510_v30  ;;  %v9904_v3 = vld [vmem:[#allocation75_spill] sm:$0xff] }
 0x261   : > { %9898 = vst [vmem:[#allocation47_spill] sm:$0xff] %v7406_v39  ;;  %9899 = vst [vmem:[#allocation113_spill] sm:$0xff] %v7408_v27  ;;  %v2177_v18 = vadd.f32 1.0, %v4321_v37  ;;  %v1188_v63 = vmul.f32 0.5, %v9902_v14  ;;  %v1189_v42 = vmul.f32 0.5, %v9903_v62  ;;  %v1114_v56 = vmul.f32 0.5, %v9904_v3 }
 0x262   : > { %v4323_v46 = vpop.eup %4322  ;;  %v1435_v31 = vmul.f32 %v1283_v11, %v7384_v50  ;;  %v1284_v29 = vmul.f32 %v7398_v36, %v7398_v36  ;;  %v7428_v60 = vadd.f32 %v9905_v0, %v5066_v61  ;;  %v1115_v30 = vmul.f32 0.5, %v6872_v59 }
 0x263   : > { %v4325_v4 = vpop.eup %4324  ;;  %v2176_v35 = vadd.f32 1.0, %v4323_v46  ;;  %v2329_v37 = vmul.f32 %v2177_v18, %v1113_v52  ;;  %v1285_v14 = vmul.f32 %v7406_v39, %v7406_v39  ;;  %v7434_v3 = vadd.f32 %v1586_v38, %v7359_v20 }
 0x264   : > { %v4327_v62 = vpop.eup %4326  ;;  %v2250_v27 = vadd.f32 1.0, %v4325_v4  ;;  %v1359_v11 = vmul.f32 %v7412_v2, %v7412_v2  ;;  %v1360_v61 = vmul.f32 %v7416_v10, %v7416_v10  ;;  %v7447_v52 = vadd.f32 %v1662_v6, %v7363_v25 }
 0x265   : > { %9906 = vst [vmem:[#allocation124_spill] sm:$0xff] %v7434_v3  ;;  %v4329_v0 = vpop.eup %4328  ;;  %v7440_v17 = vmul.f32 %v2176_v35, %v1112_v26  ;;  %v7444_v59 = vsel %vm2430_vm2, %v2329_v37, -inf  ;;  %v2251_v46 = vadd.f32 1.0, %v4327_v62  ;;  %v1587_v4 = vmul.f32 0.044715, %v1435_v31  ;;  %v7454_v35 = vpop.xlane.xlu0 %2698 }
 0x266   : > { %9908 = vst [vmem:[#allocation83_spill] sm:$0xff] %v7444_v59  ;;  %9909 = vst [vmem:[#allocation4_spill] sm:$0xff] %v7447_v52  ;;  %v4331_v18 = vpop.eup %4330  ;;  %v2253_v38 = vadd.f32 1.0, %v4329_v0  ;;  %v1436_v20 = vmul.f32 %v1284_v29, %v7398_v36  ;;  %v1361_v3 = vmul.f32 %v7428_v60, %v7428_v60  ;;  %v1437_v6 = vmul.f32 %v1285_v14, %v7406_v39 }
 0x267   : > { %9907 = vst [vmem:[#allocation72_spill] sm:$0xff] %v7440_v17  ;;  %9911 = vst [vmem:[#allocation31_spill] sm:$0xff] %v7454_v35  ;;  %v4333_v26 = vpop.eup %4332  ;;  %v2664_v37 = vmax.f32 %v7440_v17, %v7444_v59  ;;  %v2403_v62 = vmul.f32 %v2251_v46, %v1187_v15  ;;  %v2252_v19 = vadd.f32 1.0, %v4331_v18  ;;  %v7459_v0 = vmul.f32 %v2250_v27, %v1186_v41 }
 0x268   : > { %v4335_v25 = vpop.eup %4334  ;;  %v2405_v31 = vmul.f32 %v2253_v38, %v1189_v42  ;;  %v2178_v29 = vadd.f32 1.0, %v4333_v26  ;;  %v1511_v52 = vmul.f32 %v1359_v11, %v7412_v2  ;;  %v1512_v15 = vmul.f32 %v1360_v61, %v7416_v10  ;;  %v7476_v11 = vpop.xlane.xlu1 %2590 }
 0x269   : > { %9912 = vst [vmem:[#allocation62_spill] sm:$0xff] %v7459_v0  ;;  %2665 = vmax.xlane.f32.xlu1 %v2664_v37  ;;  %v7464_v43 = vsel %vm2430_vm2, %v2403_v62, -inf  ;;  %v7466_v35 = vmul.f32 %v2252_v19, %v1188_v63  ;;  %v2179_v16 = vadd.f32 1.0, %v4335_v25  ;;  %v1739_v42 = vadd.f32 %v1587_v4, %v7384_v50  ;;  %v7487_v4 = vpop.xlane.xlu0 %2587 }
 0x26a   : > { %9913 = vst [vmem:[#allocation44_spill] sm:$0xff] %v7464_v43  ;;  %v2775_v14 = vmax.f32 %v7459_v0, %v7464_v43  ;;  %v7473_v41 = vsel %vm2430_vm2, %v2405_v31, -inf  ;;  %v1588_v27 = vmul.f32 0.044715, %v1436_v20  ;;  %v1589_v63 = vmul.f32 0.044715, %v1437_v6 }
 0x26b   : > { %9914 = vst [vmem:[#allocation45_spill] sm:$0xff] %v7466_v35  ;;  %9915 = vst [vmem:[#allocation115_spill] sm:$0xff] %v7473_v41  ;;  %v2778_v46 = vmax.f32 %v7466_v35, %v7473_v41  ;;  %v2331_v19 = vmul.f32 %v2179_v16, %v1115_v30  ;;  %v1513_v25 = vmul.f32 %v1361_v3, %v7428_v60  ;;  %v7483_v18 = vmul.f32 0.044715, %v1511_v52  ;;  %v9919_v31 = vld [vmem:[#allocation73_spill] sm:$0xff] }
 0x26c   : > { %2776 = vmax.xlane.f32.xlu0 %v2775_v14  ;;  %v7481_v61 = vmul.f32 %v2178_v29, %v1114_v56  ;;  %v1876_v38 = vmul.f32 0.7978846, %v6991_v53  ;;  %4336 = vtanh.f32 %v7018_v55  ;;  %v7493_v16 = vmul.f32 0.044715, %v1512_v15  ;;  %v7518_v6 = vpop.xlane.xlu1 %2593  ;;  %v9920_v15 = vld [vmem:[#allocation8_spill] sm:$0xff] }
 0x26d   : > { %2779 = vmax.xlane.f32.xlu1 %v2778_v46  ;;  %v7491_v20 = vsel %vm2430_vm2, %v2331_v19, -inf  ;;  %v7496_v30 = vmul.f32 0.5, %v6888_v12  ;;  %v1950_v56 = vmul.f32 0.7978846, %v6935_v9  ;;  %v7501_v53 = vmul.f32 0.7978846, %v1739_v42 }
 0x26e   : > { %9916 = vst [vmem:[#allocation66_spill] sm:$0xff] %v7481_v61  ;;  %9917 = vst [vmem:[#allocation25_spill] sm:$0xff] %v7491_v20  ;;  %v2667_v3 = vmax.f32 %v7481_v61, %v7491_v20  ;;  %v7504_v55 = vadd.f32 %v1588_v27, %v7398_v36  ;;  %4338 = vtanh.f32 %v1876_v38  ;;  %v7507_v52 = vadd.f32 %v1589_v63, %v7406_v39  ;;  %v9921_v42 = vld [vmem:[#allocation26_spill] sm:$0xff]  ;;  %v9926_v38 = vld [vmem:[#allocation48_spill] sm:$0xff] }
 0x26f   : > { %v7509_v26 = vmul.f32 0.044715, %v1513_v25  ;;  %4340 = vtanh.f32 %v1950_v56  ;;  %v1952_v12 = vmul.f32 0.7978846, %v7005_v21  ;;  %v1117_v9 = vmul.f32 0.5, %v6904_v45  ;;  %9918 = vst [vmem:[#allocation34_spill] sm:$0xff] %v7518_v6 }
 0x270   : > { %2668 = vmax.xlane.f32.xlu0 %v2667_v3  ;;  %v7514_v37 = vmul.f32 0.5, %v6851_v47  ;;  %4342 = vtanh.f32 %v7002_v40  ;;  %v1878_v62 = vmul.f32 0.7978846, %v7048_v24  ;;  %v1191_v29 = vmul.f32 0.5, %v9919_v31  ;;  %v9922_v45 = vld [vmem:[#allocation91_spill] sm:$0xff]  ;;  %v7535_v40 = vpop.xlane.xlu0 %2704  ;;  %v9925_v25 = vld [vmem:[#allocation10_spill] sm:$0xff] }
 0x271   : > { %v7522_v14 = vmul.f32 0.5, %v9920_v15  ;;  %4344 = vtanh.f32 %v1952_v12  ;;  %v1880_v21 = vmul.f32 0.7978846, %v7119_v13  ;;  %v7526_v27 = vmul.f32 0.5, %v9921_v42  ;;  %v9923_v47 = vld [vmem:[#allocation79_spill] sm:$0xff]  ;;  %9924 = vst [vmem:[#allocation65_spill] sm:$0xff] %v7535_v40 }
 0x272   : > { %4346 = vtanh.f32 %v9922_v45  ;;  %v7530_v46 = vmul.f32 0.5, %v9923_v47  ;;  %v7533_v24 = vmul.f32 0.5, %v7000_v8  ;;  %v7538_v19 = vmul.f32 0.5, %v7016_v44  ;;  %v9927_v3 = vld [vmem:[#allocation123_spill] sm:$0xff]  ;;  %v9930_v15 = vld [vmem:[#allocation136_spill] sm:$0xff]  ;;  %v9932_v47 = vld [vmem:[#allocation53_spill] sm:$0xff] }
 0x273   : > { %4348 = vtanh.f32 %v1878_v62  ;;  %v7541_v63 = vmul.f32 0.5, %v7032_v48  ;;  %v1954_v13 = vmul.f32 0.7978846, %v7063_v51  ;;  %v7546_v56 = vmul.f32 0.5, %v9926_v38  ;;  %v9928_v8 = vld [vmem:[#allocation3_spill] sm:$0xff]  ;;  %v9929_v62 = vld [vmem:[#allocation21_spill] sm:$0xff] }
 0x274   : > { %4350 = vtanh.f32 %v9925_v25  ;;  %v7549_v12 = vmul.f32 0.5, %v9927_v3  ;;  %v7552_v31 = vmul.f32 0.5, %v9928_v8  ;;  %v7555_v44 = vmul.f32 0.5, %v9929_v62  ;;  %v9931_v42 = vld [vmem:[#allocation88_spill] sm:$0xff]  ;;  %v9933_v38 = vld [vmem:[#allocation37_spill] sm:$0xff]  ;;  %v7583_v59 = vpop.xlane.xlu0 %2596 }
 0x275   : > { %4352 = vtanh.f32 %v1880_v21  ;;  %v1956_v48 = vmul.f32 0.7978846, %v9930_v15  ;;  %v7559_v45 = vmul.f32 0.5, %v9931_v42  ;;  %v7563_v25 = vmul.f32 0.5, %v7128_v23  ;;  %v7569_v21 = vpop.xlane.xlu1 %2707  ;;  %v9935_v20 = vld [vmem:[#allocation29_spill] sm:$0xff]  ;;  %9939 = vst [vmem:[#allocation155_spill] sm:$0xff] %v7583_v59 }
 0x276   : > { %v4337_v51 = vpop.eup %4336  ;;  %4354 = vtanh.f32 %v9932_v47  ;;  %v1882_v3 = vmul.f32 0.7978846, %v9933_v38  ;;  %v7567_v8 = vmul.f32 0.5, %v7144_v5  ;;  %9934 = vst [vmem:[#allocation75_spill] sm:$0xff] %v7569_v21  ;;  %v7572_v15 = vmul.f32 0.5, %v7160_v57  ;;  %v9936_v47 = vld [vmem:[#allocation18_spill] sm:$0xff] }
 0x277   : > { %v2181_v62 = vadd.f32 1.0, %v4337_v51  ;;  %4356 = vtanh.f32 %v1954_v13  ;;  %v1884_v42 = vmul.f32 0.7978846, %v7247_v33  ;;  %v7577_v23 = vmul.f32 0.5, %v9936_v47  ;;  %v9937_v61 = vld [vmem:[#allocation137_spill] sm:$0xff]  ;;  %v9938_v5 = vld [vmem:[#allocation23_spill] sm:$0xff] }
 0x278   : > { %v4339_v41 = vpop.eup %4338  ;;  %4358 = vtanh.f32 %v9935_v20  ;;  %v7580_v38 = vmul.f32 0.5, %v9937_v61  ;;  %v1958_v35 = vmul.f32 0.7978846, %v9938_v5  ;;  %v9940_v57 = vld [vmem:[#allocation16_spill] sm:$0xff]  ;;  %v9941_v20 = vld [vmem:[#allocation114_spill] sm:$0xff]  ;;  %v9942_v47 = vld [vmem:[#allocation17_spill] sm:$0xff]  ;;  %v7614_v36 = vpop.xlane.xlu0 %2710 }
 0x279   : > { %v4341_v51 = vpop.eup %4340  ;;  %v2180_v13 = vadd.f32 1.0, %v4339_v41  ;;  %v2333_v17 = vmul.f32 %v2181_v62, %v1117_v9  ;;  %4360 = vtanh.f32 %v1956_v48  ;;  %v7586_v43 = vmul.f32 0.5, %v9940_v57  ;;  %v9943_v61 = vld [vmem:[#allocation103_spill] sm:$0xff] }
 0x27a   : > { %v4343_v33 = vpop.eup %4342  ;;  %v2254_v0 = vadd.f32 1.0, %v4341_v51  ;;  %4362 = vtanh.f32 %v9941_v20  ;;  %v7590_v21 = vmul.f32 0.5, %v9942_v47  ;;  %v1960_v40 = vmul.f32 0.7978846, %v9943_v61  ;;  %v9944_v51 = vld [vmem:[#allocation19_spill] sm:$0xff]  ;;  %v9946_v47 = vld [vmem:[#allocation106_spill] sm:$0xff]  ;;  %v7605_v61 = vpop.xlane.xlu1 %2599 }
 0x27b   : > { %v4345_v6 = vpop.eup %4344  ;;  %v7594_v5 = vmul.f32 %v2180_v13, %v7496_v30  ;;  %v7598_v41 = vsel %vm2430_vm2, %v2333_v17, -inf  ;;  %v2255_v9 = vadd.f32 1.0, %v4343_v33  ;;  %4364 = vtanh.f32 %v1882_v3  ;;  %v9945_v57 = vld [vmem:[#allocation139_spill] sm:$0xff]  ;;  %9947 = vst [vmem:[#allocation73_spill] sm:$0xff] %v7605_v61 }
 0x27c   : > { %v4347_v48 = vpop.eup %4346  ;;  %v2256_v62 = vadd.f32 1.0, %v4345_v6  ;;  %4366 = vtanh.f32 %v9944_v51  ;;  %v7602_v20 = vmul.f32 0.5, %v9945_v57  ;;  %v1886_v59 = vmul.f32 0.7978846, %v9946_v47  ;;  %v9948_v51 = vld [vmem:[#allocation56_spill] sm:$0xff] }
 0x27d   : > { %v4349_v39 = vpop.eup %4348  ;;  %v2670_v30 = vmax.f32 %v7594_v5, %v7598_v41  ;;  %v2407_v13 = vmul.f32 %v2255_v9, %v1191_v29  ;;  %v2257_v17 = vadd.f32 1.0, %v4347_v48  ;;  %4368 = vtanh.f32 %v1884_v42 }
 0x27e   : > { %v4351_v33 = vpop.eup %4350  ;;  %v7610_v3 = vmul.f32 %v2254_v0, %v7514_v37  ;;  %v2182_v6 = vadd.f32 1.0, %v4349_v39  ;;  %4370 = vtanh.f32 %v9948_v51  ;;  %v1888_v57 = vmul.f32 0.7978846, %v7375_v28  ;;  %v9949_v37 = vld [vmem:[#allocation148_spill] sm:$0xff]  ;;  %v7638_v51 = vpop.xlane.xlu1 %2713 }
 0x27f   : > { %v4353_v47 = vpop.eup %4352  ;;  %2671 = vmax.xlane.f32.xlu1 %v2670_v30  ;;  %v7618_v61 = vsel %vm2430_vm2, %v2407_v13, -inf  ;;  %v2409_v29 = vmul.f32 %v2257_v17, %v7526_v27  ;;  %v2183_v42 = vadd.f32 1.0, %v4351_v33  ;;  %4372 = vtanh.f32 %v1958_v35  ;;  %v9950_v33 = vld [vmem:[#allocation60_spill] sm:$0xff] }
 0x280   : > { %v4355_v9 = vpop.eup %4354  ;;  %v2781_v39 = vmax.f32 %v7610_v3, %v7618_v61  ;;  %v7624_v0 = vmul.f32 %v2256_v62, %v7522_v14  ;;  %v2184_v28 = vadd.f32 1.0, %v4353_v47  ;;  %4374 = vtanh.f32 %v9949_v37 }
 0x281   : > { %v4357_v48 = vpop.eup %4356  ;;  %v7629_v30 = vsel %vm2430_vm2, %v2409_v29, -inf  ;;  %v2335_v13 = vmul.f32 %v2183_v42, %v7533_v24  ;;  %v2185_v27 = vadd.f32 1.0, %v4355_v9  ;;  %4376 = vtanh.f32 %v1960_v40 }
 0x282   : > { %v4359_v35 = vpop.eup %4358  ;;  %2782 = vmax.xlane.f32.xlu0 %v2781_v39  ;;  %v2784_v17 = vmax.f32 %v7624_v0, %v7629_v30  ;;  %v7635_v14 = vmul.f32 %v2182_v6, %v7530_v46  ;;  %v2258_v62 = vadd.f32 1.0, %v4357_v48  ;;  %4378 = vtanh.f32 %v9950_v33  ;;  %v7651_v39 = vpop.xlane.xlu0 %2602 }
 0x283   : > { %v4361_v47 = vpop.eup %4360  ;;  %v7642_v29 = vsel %vm2430_vm2, %v2335_v13, -inf  ;;  %v2337_v24 = vmul.f32 %v2185_v27, %v7541_v63  ;;  %v2259_v40 = vadd.f32 1.0, %v4359_v35  ;;  %4380 = vtanh.f32 %v1886_v59 }
 0x284   : > { %v4363_v42 = vpop.eup %4362  ;;  %2785 = vmax.xlane.f32.xlu1 %v2784_v17  ;;  %v2673_v46 = vmax.f32 %v7635_v14, %v7642_v29  ;;  %v7648_v6 = vmul.f32 %v2184_v28, %v7538_v19  ;;  %v2260_v9 = vadd.f32 1.0, %v4361_v47  ;;  %4382 = vtanh.f32 %v7365_v34 }
 0x285   : > { %v4365_v37 = vpop.eup %4364  ;;  %v7655_v48 = vsel %vm2430_vm2, %v2337_v24, -inf  ;;  %v2411_v59 = vmul.f32 %v2259_v40, %v7549_v12  ;;  %v2261_v63 = vadd.f32 1.0, %v4363_v42  ;;  %4384 = vtanh.f32 %v1888_v57 }
 0x286   : > { %v4367_v13 = vpop.eup %4366  ;;  %2674 = vmax.xlane.f32.xlu0 %v2673_v46  ;;  %v2676_v19 = vmax.f32 %v7648_v6, %v7655_v48  ;;  %v7661_v28 = vmul.f32 %v2258_v62, %v7546_v56  ;;  %v2186_v34 = vadd.f32 1.0, %v4365_v37  ;;  %4386 = vtanh.f32 %v7400_v58  ;;  %v7676_v58 = vpop.xlane.xlu1 %2605 }
 0x287   : > { %v4369_v27 = vpop.eup %4368  ;;  %v7666_v35 = vsel %vm2430_vm2, %v2411_v59, -inf  ;;  %v2413_v12 = vmul.f32 %v2261_v63, %v7555_v44  ;;  %v2187_v17 = vadd.f32 1.0, %v4367_v13  ;;  %v1962_v57 = vmul.f32 0.7978846, %v7319_v22  ;;  %v7690_v59 = vpop.xlane.xlu0 %2716 }
 0x288   : > { %v4371_v33 = vpop.eup %4370  ;;  %2677 = vmax.xlane.f32.xlu1 %v2676_v19  ;;  %v2787_v47 = vmax.f32 %v7661_v28, %v7666_v35  ;;  %v7673_v56 = vmul.f32 %v2260_v9, %v7552_v31  ;;  %v2188_v62 = vadd.f32 1.0, %v4369_v27  ;;  %4388 = vtanh.f32 %v7386_v49  ;;  %v9953_v9 = vld [vmem:[#allocation58_spill] sm:$0xff]  ;;  %v9954_v27 = vld [vmem:[#allocation59_spill] sm:$0xff] }
 0x289   : > { %v4373_v24 = vpop.eup %4372  ;;  %v7680_v44 = vsel %vm2430_vm2, %v2413_v12, -inf  ;;  %v2339_v22 = vmul.f32 %v2187_v17, %v7563_v25  ;;  %v2189_v40 = vadd.f32 1.0, %v4371_v33  ;;  %4390 = vtanh.f32 %v1962_v57 }
 0x28a   : > { %9951 = vst [vmem:[#allocation8_spill] sm:$0xff] %v7673_v56  ;;  %9952 = vst [vmem:[#allocation26_spill] sm:$0xff] %v7680_v44  ;;  %v4375_v42 = vpop.eup %4374  ;;  %2788 = vmax.xlane.f32.xlu0 %v2787_v47  ;;  %v2790_v31 = vmax.f32 %v7673_v56, %v7680_v44  ;;  %v7686_v46 = vmul.f32 %v2186_v34, %v7559_v45  ;;  %v2262_v49 = vadd.f32 1.0, %v4373_v24  ;;  %v1127_v33 = vmul.f32 0.5, %v7256_v7  ;;  %v9991_v44 = vld [vmem:[#allocation14_spill] sm:$0xff] }
 0x28b   : > { %v2811_v37 = vsub.f32 %v9953_v9, %v7418_v1  ;;  %v4377_v63 = vpop.eup %4376  ;;  %v7694_v25 = vsel %vm2430_vm2, %v2339_v22, -inf  ;;  %v2341_v13 = vmul.f32 %v2189_v40, %v7572_v15  ;;  %v2263_v19 = vadd.f32 1.0, %v4375_v42 }
 0x28c   : > { %v2812_v12 = vsub.f32 %v9954_v27, %v7418_v1  ;;  %v4379_v17 = vpop.eup %4378  ;;  %2791 = vmax.xlane.f32.xlu1 %v2790_v31  ;;  %v2679_v45 = vmax.f32 %v7686_v46, %v7694_v25  ;;  %v7702_v34 = vmul.f32 %v2188_v62, %v7567_v8  ;;  %v2264_v57 = vadd.f32 1.0, %v4377_v63  ;;  %v7716_v31 = vpop.xlane.xlu1 %2719 }
 0x28d   : > { %v4381_v47 = vpop.eup %4380  ;;  %v7707_v24 = vsel %vm2430_vm2, %v2341_v13, -inf  ;;  %v2415_v15 = vmul.f32 %v2263_v19, %v7580_v38  ;;  %v2265_v22 = vadd.f32 1.0, %v4379_v17  ;;  %v1128_v1 = vmul.f32 0.5, %v7272_v54 }
 0x28e   : > { %9955 = vst [vmem:[#allocation91_spill] sm:$0xff] %v7702_v34  ;;  %9956 = vst [vmem:[#allocation79_spill] sm:$0xff] %v7707_v24  ;;  %v4383_v40 = vpop.eup %4382  ;;  %2680 = vmax.xlane.f32.xlu0 %v2679_v45  ;;  %v2682_v42 = vmax.f32 %v7702_v34, %v7707_v24  ;;  %v7714_v8 = vmul.f32 %v2262_v49, %v7577_v23  ;;  %v2190_v62 = vadd.f32 1.0, %v4381_v47  ;;  %v2963_v7 = vmul.f32 1.442695, %v2811_v37  ;;  %v9960_v49 = vld [vmem:[#allocation33_spill] sm:$0xff]  ;;  %v7729_v45 = vpop.xlane.xlu0 %2608 }
 0x28f   : > { %v4385_v9 = vpop.eup %4384  ;;  %v7720_v63 = vsel %vm2430_vm2, %v2415_v15, -inf  ;;  %v2417_v38 = vmul.f32 %v2265_v22, %v7590_v21  ;;  %v2191_v54 = vadd.f32 1.0, %v4383_v40  ;;  %v2965_v13 = vmul.f32 1.442695, %v2812_v12  ;;  %v9962_v12 = vld [vmem:[#allocation30_spill] sm:$0xff] }
 0x290   : > { %9957 = vst [vmem:[#allocation10_spill] sm:$0xff] %v7714_v8  ;;  %9958 = vst [vmem:[#allocation48_spill] sm:$0xff] %v7720_v63  ;;  %v4387_v19 = vpop.eup %4386  ;;  %2683 = vmax.xlane.f32.xlu1 %v2682_v42  ;;  %v2793_v27 = vmax.f32 %v7714_v8, %v7720_v63  ;;  %v7726_v23 = vmul.f32 %v2264_v57, %v7586_v43  ;;  %v1129_v37 = vmul.f32 0.5, %v9960_v49  ;;  %v2192_v17 = vadd.f32 1.0, %v4385_v9  ;;  %v9964_v57 = vld [vmem:[#allocation52_spill] sm:$0xff] }
 0x291   : > { %v7733_v47 = vsel %vm2430_vm2, %v2417_v38, -inf  ;;  %v2343_v21 = vmul.f32 %v2191_v54, %v1127_v33  ;;  %v2193_v15 = vadd.f32 1.0, %v4387_v19  ;;  %v1202_v22 = vmul.f32 0.5, %v9962_v12  ;;  %v9990_v8 = vld [vmem:[#allocation12_spill] sm:$0xff] }
 0x292   : > { %9959 = vst [vmem:[#allocation123_spill] sm:$0xff] %v7726_v23  ;;  %9961 = vst [vmem:[#allocation3_spill] sm:$0xff] %v7733_v47  ;;  %v4389_v40 = vpop.eup %4388  ;;  %2794 = vmax.xlane.f32.xlu0 %v2793_v27  ;;  %v2796_v42 = vmax.f32 %v7726_v23, %v7733_v47  ;;  %v7739_v43 = vmul.f32 %v2190_v62, %v7602_v20  ;;  %v1203_v9 = vmul.f32 0.5, %v9964_v57  ;;  %4392 = vpow2.f32 %v2963_v7  ;;  %v9967_v20 = vld [vmem:[#allocation61_spill] sm:$0xff]  ;;  %v9968_v62 = vld [vmem:[#allocation67_spill] sm:$0xff]  ;;  %v7752_v57 = vpop.xlane.xlu1 %2611 }
 0x293   : > { %v4391_v49 = vpop.eup %4390  ;;  %v7744_v38 = vsel %vm2430_vm2, %v2343_v21, -inf  ;;  %v2345_v33 = vmul.f32 %v2193_v15, %v1129_v37  ;;  %v2267_v54 = vadd.f32 1.0, %v4389_v40  ;;  %4394 = vpow2.f32 %v2965_v13  ;;  %v9970_v37 = vld [vmem:[#allocation68_spill] sm:$0xff]  ;;  %v9971_v15 = vld [vmem:[#allocation51_spill] sm:$0xff] }
 0x294   : > { %9963 = vst [vmem:[#allocation21_spill] sm:$0xff] %v7739_v43  ;;  %9965 = vst [vmem:[#allocation136_spill] sm:$0xff] %v7744_v38  ;;  %2797 = vmax.xlane.f32.xlu1 %v2796_v42  ;;  %v2685_v19 = vmax.f32 %v7739_v43, %v7744_v38  ;;  %v7748_v27 = vmul.f32 %v2192_v17, %v1128_v1  ;;  %v2266_v12 = vadd.f32 1.0, %v4391_v49  ;;  %v1964_v40 = vmul.f32 0.7978846, %v9971_v15  ;;  %v9973_v49 = vld [vmem:[#allocation113_spill] sm:$0xff] }
 0x295   : > { %v2889_v47 = vsub.f32 %v9968_v62, %v9967_v20  ;;  %v7756_v7 = vsel %vm2430_vm2, %v2345_v33, -inf  ;;  %v2419_v21 = vmul.f32 %v2267_v54, %v1203_v9  ;;  %v2890_v13 = vsub.f32 %v9970_v37, %v9967_v20  ;;  %v7767_v62 = vpop.xlane.xlu0 %2722  ;;  %v9975_v54 = vld [vmem:[#allocation124_spill] sm:$0xff]  ;;  %v9977_v37 = vld [vmem:[#allocation77_spill] sm:$0xff]  ;;  %v9988_v43 = vld [vmem:[#allocation47_spill] sm:$0xff] }
 0x296   : > { %9966 = vst [vmem:[#allocation88_spill] sm:$0xff] %v7748_v27  ;;  %9969 = vst [vmem:[#allocation53_spill] sm:$0xff] %v7756_v7  ;;  %v1893_v42 = vmul.f32 0.7978846, %v7507_v52  ;;  %2686 = vmax.xlane.f32.xlu0 %v2685_v19  ;;  %v2688_v1 = vmax.f32 %v7748_v27, %v7756_v7  ;;  %v7764_v17 = vmul.f32 %v2266_v12, %v1202_v22  ;;  %4396 = vtanh.f32 %v9973_v49  ;;  %v9985_v27 = vld [vmem:[#allocation105_spill] sm:$0xff] }
 0x297   : > { %v1815_v9 = vadd.f32 %v7483_v18, %v7412_v2  ;;  %v7773_v33 = vsel %vm2430_vm2, %v2419_v21, -inf  ;;  %4398 = vtanh.f32 %v1964_v40  ;;  %v1890_v52 = vmul.f32 0.7978846, %v9975_v54  ;;  %v9976_v18 = vld [vmem:[#allocation31_spill] sm:$0xff]  ;;  %v9978_v40 = vld [vmem:[#allocation74_spill] sm:$0xff]  ;;  %v9979_v54 = vld [vmem:[#allocation4_spill] sm:$0xff] }
 0x298   : > { %9972 = vst [vmem:[#allocation37_spill] sm:$0xff] %v7764_v17  ;;  %9974 = vst [vmem:[#allocation29_spill] sm:$0xff] %v7773_v33  ;;  %v1817_v19 = vadd.f32 %v7509_v26, %v7428_v60  ;;  %2689 = vmax.xlane.f32.xlu1 %v2688_v1  ;;  %v2799_v22 = vmax.f32 %v7764_v17, %v7773_v33  ;;  %v3119_v12 = vmul.f32 1.442695, %v2889_v47  ;;  %4400 = vtanh.f32 %v7501_v53  ;;  %v7786_v26 = vpop.xlane.xlu1 %2725  ;;  %v9986_v17 = vld [vmem:[#allocation147_spill] sm:$0xff] }
 0x299   : > { %v3121_v20 = vmul.f32 1.442695, %v2890_v13  ;;  %4402 = vtanh.f32 %v1890_v52  ;;  %v2887_v15 = vsub.f32 %v9977_v37, %v9976_v18  ;;  %v1892_v21 = vmul.f32 0.7978846, %v7504_v55  ;;  %v9980_v52 = vld [vmem:[#allocation42_spill] sm:$0xff] }
 0x29a   : > { %2800 = vmax.xlane.f32.xlu0 %v2799_v22  ;;  %v2888_v49 = vsub.f32 %v9978_v40, %v9976_v18  ;;  %4404 = vtanh.f32 %v1893_v42  ;;  %v1967_v1 = vmul.f32 0.7978846, %v1815_v9  ;;  %v1966_v47 = vmul.f32 0.7978846, %v9979_v54  ;;  %v7794_v22 = vpop.xlane.xlu0 %2614  ;;  %v9981_v9 = vld [vmem:[#allocation81_spill] sm:$0xff] }
 0x29b   : > { %4406 = vtanh.f32 %v1892_v21  ;;  %v1816_v53 = vadd.f32 %v7493_v16, %v7416_v10  ;;  %v1969_v13 = vmul.f32 0.7978846, %v1817_v19  ;;  %v1204_v55 = vmul.f32 0.5, %v9980_v52  ;;  %v9982_v21 = vld [vmem:[#allocation82_spill] sm:$0xff] }
 0x29c   : > { %v7789_v7 = vpop.eup %4392  ;;  %4408 = vpow2.f32 %v3119_v12  ;;  %v3115_v42 = vmul.f32 1.442695, %v2887_v15  ;;  %v2815_v18 = vsub.f32 %v9981_v9, %v7476_v11  ;;  %v2816_v40 = vsub.f32 %v9982_v21, %v7476_v11  ;;  %v9983_v16 = vld [vmem:[#allocation86_spill] sm:$0xff]  ;;  %v9984_v12 = vld [vmem:[#allocation87_spill] sm:$0xff]  ;;  %v9987_v9 = vld [vmem:[#allocation156_spill] sm:$0xff]  ;;  %v7814_v21 = vpop.xlane.xlu1 %2617 }
 0x29d   : > { %v7796_v37 = vpop.eup %4394  ;;  %4410 = vpow2.f32 %v3121_v20  ;;  %v3117_v54 = vmul.f32 1.442695, %v2888_v49  ;;  %v2813_v19 = vsub.f32 %v9983_v16, %v7487_v4  ;;  %v2814_v52 = vsub.f32 %v9984_v12, %v7487_v4 }
 0x29e   : > { %4412 = vtanh.f32 %v1966_v47  ;;  %v1205_v33 = vmul.f32 0.5, %v9985_v27  ;;  %v1130_v23 = vmul.f32 0.5, %v9986_v17  ;;  %v1131_v20 = vmul.f32 0.5, %v7384_v50  ;;  %v7816_v34 = vpop.xlane.xlu0 %2728 }
 0x29f   : > { %4414 = vtanh.f32 %v1967_v1  ;;  %v1132_v38 = vmul.f32 0.5, %v9987_v9  ;;  %v1133_v11 = vmul.f32 0.5, %v9988_v43  ;;  %v7812_v49 = vmul.f32 0.5, %v7412_v2  ;;  %v9989_v2 = vld [vmem:[#allocation34_spill] sm:$0xff] }
 0x2a0   : > { %v4397_v15 = vpop.eup %4396  ;;  %v1968_v47 = vmul.f32 0.7978846, %v1816_v53  ;;  %4416 = vpow2.f32 %v3115_v42  ;;  %v2971_v27 = vmul.f32 1.442695, %v2815_v18  ;;  %v2973_v12 = vmul.f32 1.442695, %v2816_v40 }
 0x2a1   : > { %v4399_v16 = vpop.eup %4398  ;;  %v2269_v4 = vadd.f32 1.0, %v4397_v15  ;;  %4418 = vpow2.f32 %v3117_v54  ;;  %v2967_v50 = vmul.f32 1.442695, %v2813_v19  ;;  %v2969_v1 = vmul.f32 1.442695, %v2814_v52  ;;  %v9992_v40 = vld [vmem:[#allocation65_spill] sm:$0xff] }
 0x2a2   : > { %v4401_v17 = vpop.eup %4400  ;;  %v2268_v24 = vadd.f32 1.0, %v4399_v16  ;;  %v2817_v53 = vsub.f32 %v9990_v8, %v9989_v2  ;;  %v2818_v56 = vsub.f32 %v9991_v44, %v9989_v2  ;;  %4420 = vtanh.f32 %v1968_v47  ;;  %v9993_v54 = vld [vmem:[#allocation96_spill] sm:$0xff]  ;;  %v7836_v47 = vpop.xlane.xlu1 %2731  ;;  %v10000_v2 = vld [vmem:[#allocation98_spill] sm:$0xff] }
 0x2a3   : > { %v4403_v9 = vpop.eup %4402  ;;  %v2421_v43 = vmul.f32 %v2269_v4, %v1205_v33  ;;  %v2195_v63 = vadd.f32 1.0, %v4401_v17  ;;  %v2891_v19 = vsub.f32 %v9993_v54, %v9992_v40  ;;  %4422 = vtanh.f32 %v1969_v13  ;;  %v9998_v13 = vld [vmem:[#allocation97_spill] sm:$0xff] }
 0x2a4   : > { %v4405_v15 = vpop.eup %4404  ;;  %v7822_v42 = vmul.f32 %v2268_v24, %v1204_v55  ;;  %v2194_v18 = vadd.f32 1.0, %v4403_v9  ;;  %4424 = vpow2.f32 %v2971_v27 }
 0x2a5   : > { %v4407_v52 = vpop.eup %4406  ;;  %v7828_v16 = vsel %vm2430_vm2, %v2421_v43, -inf  ;;  %v2347_v33 = vmul.f32 %v2195_v63, %v1131_v20  ;;  %v2197_v4 = vadd.f32 1.0, %v4405_v15  ;;  %v2892_v20 = vsub.f32 %v9998_v13, %v9992_v40  ;;  %v9999_v43 = vld [vmem:[#allocation75_spill] sm:$0xff] }
 0x2a6   : > { %9994 = vst [vmem:[#allocation18_spill] sm:$0xff] %v7828_v16  ;;  %v7830_v8 = vpop.eup %4408  ;;  %v2802_v44 = vmax.f32 %v7822_v42, %v7828_v16  ;;  %v7834_v24 = vmul.f32 %v2194_v18, %v1130_v23  ;;  %v2196_v55 = vadd.f32 1.0, %v4407_v52  ;;  %v2893_v15 = vsub.f32 %v10000_v2, %v9999_v43  ;;  %v7852_v16 = vpop.xlane.xlu0 %2620 }
 0x2a7   : > { %v7838_v17 = vpop.eup %4410  ;;  %v7842_v9 = vsel %vm2430_vm2, %v2347_v33, -inf  ;;  %v2349_v63 = vmul.f32 %v2197_v4, %v1133_v11  ;;  %v2975_v18 = vmul.f32 1.442695, %v2817_v53  ;;  %v2977_v52 = vmul.f32 1.442695, %v2818_v56 }
 0x2a8   : > { %9995 = vst [vmem:[#allocation137_spill] sm:$0xff] %v7834_v24  ;;  %9996 = vst [vmem:[#allocation23_spill] sm:$0xff] %v7838_v17  ;;  %v4413_v54 = vpop.eup %4412  ;;  %2803 = vmax.xlane.f32.xlu1 %v2802_v44  ;;  %v2691_v23 = vmax.f32 %v7834_v24, %v7842_v9  ;;  %v7850_v27 = vmul.f32 %v2196_v55, %v1132_v38  ;;  %4426 = vpow2.f32 %v2967_v50  ;;  %v3123_v4 = vmul.f32 1.442695, %v2891_v19  ;;  %v10003_v38 = vld [vmem:[#allocation99_spill] sm:$0xff] }
 0x2a9   : > { %9997 = vst [vmem:[#allocation16_spill] sm:$0xff] %v7842_v9  ;;  %v4415_v33 = vpop.eup %4414  ;;  %v7856_v11 = vsel %vm2430_vm2, %v2349_v63, -inf  ;;  %v2270_v40 = vadd.f32 1.0, %v4413_v54  ;;  %4428 = vpow2.f32 %v2969_v1  ;;  %v2894_v53 = vsub.f32 %v10003_v38, %v9999_v43  ;;  %v10004_v55 = vld [vmem:[#allocation55_spill] sm:$0xff]  ;;  %v10006_v63 = vld [vmem:[#allocation100_spill] sm:$0xff]  ;;  %v10008_v1 = vld [vmem:[#allocation101_spill] sm:$0xff] }
 0x2aa   : > { %10001 = vst [vmem:[#allocation114_spill] sm:$0xff] %v7850_v27  ;;  %10002 = vst [vmem:[#allocation17_spill] sm:$0xff] %v7856_v11  ;;  %2692 = vmax.xlane.f32.xlu0 %v2691_v23  ;;  %v2694_v44 = vmax.f32 %v7850_v27, %v7856_v11  ;;  %v2271_v13 = vadd.f32 1.0, %v4415_v33  ;;  %v7862_v56 = vpop.eup %4416  ;;  %v1206_v2 = vmul.f32 0.5, %v10004_v55  ;;  %4430 = vpow2.f32 %v2973_v12  ;;  %v10005_v9 = vld [vmem:[#allocation155_spill] sm:$0xff]  ;;  %v7872_v33 = vpop.xlane.xlu1 %2623 }
 0x2ab   : > { %v2819_v24 = vsub.f32 %v10006_v63, %v10005_v9  ;;  %v7867_v54 = vpop.eup %4418  ;;  %4432 = vpow2.f32 %v2975_v18  ;;  %v3125_v19 = vmul.f32 1.442695, %v2892_v20  ;;  %v2820_v23 = vsub.f32 %v10008_v1, %v10005_v9  ;;  %v10011_v18 = vld [vmem:[#allocation73_spill] sm:$0xff]  ;;  %v10012_v20 = vld [vmem:[#allocation20_spill] sm:$0xff] }
 0x2ac   : > { %10007 = vst [vmem:[#allocation103_spill] sm:$0xff] %v7867_v54  ;;  %2695 = vmax.xlane.f32.xlu1 %v2694_v44  ;;  %v2423_v50 = vmul.f32 %v2271_v13, %v7812_v49  ;;  %v7874_v43 = vmul.f32 %v2270_v40, %v1206_v2  ;;  %v1209_v38 = vmul.f32 0.5, %v7428_v60  ;;  %4434 = vpow2.f32 %v2977_v52  ;;  %v4421_v55 = vpop.eup %4420  ;;  %v7883_v13 = vpop.xlane.xlu0 %2734 }
 0x2ad   : > { %v3127_v12 = vmul.f32 1.442695, %v2893_v15  ;;  %4436 = vpow2.f32 %v3123_v4  ;;  %v3129_v49 = vmul.f32 1.442695, %v2894_v53  ;;  %v2821_v44 = vsub.f32 %v10012_v20, %v10011_v18  ;;  %v4423_v9 = vpop.eup %4422  ;;  %v10013_v15 = vld [vmem:[#allocation108_spill] sm:$0xff]  ;;  %v10015_v53 = vld [vmem:[#allocation109_spill] sm:$0xff] }
 0x2ae   : > { %10009 = vst [vmem:[#allocation19_spill] sm:$0xff] %v7874_v43  ;;  %v7879_v63 = vsel %vm2430_vm2, %v2423_v50, -inf  ;;  %v2272_v2 = vadd.f32 1.0, %v4421_v55  ;;  %v2979_v60 = vmul.f32 1.442695, %v2819_v24  ;;  %v2895_v52 = vsub.f32 %v10013_v15, %v7614_v36  ;;  %v7889_v1 = vpop.eup %4424  ;;  %v10016_v24 = vld [vmem:[#allocation22_spill] sm:$0xff] }
 0x2af   : > { %10010 = vst [vmem:[#allocation139_spill] sm:$0xff] %v7879_v63  ;;  %v2805_v40 = vmax.f32 %v7874_v43, %v7879_v63  ;;  %10014 = vst [vmem:[#allocation106_spill] sm:$0xff] %v7889_v1  ;;  %v2273_v50 = vadd.f32 1.0, %v4423_v9  ;;  %4438 = vpow2.f32 %v3125_v19  ;;  %v2981_v4 = vmul.f32 1.442695, %v2820_v23  ;;  %v10017_v9 = vld [vmem:[#allocation110_spill] sm:$0xff]  ;;  %v7900_v23 = vpop.xlane.xlu1 %2737 }
 0x2b0   : > { %v2896_v11 = vsub.f32 %v10015_v53, %v7614_v36  ;;  %v1208_v20 = vmul.f32 0.5, %v7416_v10  ;;  %4440 = vpow2.f32 %v3127_v12  ;;  %v3267_v63 = vadd.f32 %v7796_v37, %v7789_v7  ;;  %v10018_v12 = vld [vmem:[#allocation112_spill] sm:$0xff] }
 0x2b1   : > { %2806 = vmax.xlane.f32.xlu0 %v2805_v40  ;;  %v2822_v55 = vsub.f32 %v10016_v24, %v10011_v18  ;;  %v2425_v43 = vmul.f32 %v2273_v50, %v1209_v38  ;;  %4442 = vpow2.f32 %v3129_v49  ;;  %v2983_v15 = vmul.f32 1.442695, %v2821_v44  ;;  %v10020_v18 = vld [vmem:[#allocation43_spill] sm:$0xff]  ;;  %v7916_v50 = vpop.xlane.xlu0 %2626 }
 0x2b2   : > { %v2897_v19 = vsub.f32 %v10017_v9, %v7638_v51  ;;  %v7902_v27 = vpop.eup %4426  ;;  %v7904_v36 = vmul.f32 %v2272_v2, %v1208_v20  ;;  %4444 = vpow2.f32 %v2979_v60  ;;  %v3131_v10 = vmul.f32 1.442695, %v2895_v52 }
 0x2b3   : > { %v2823_v40 = vsub.f32 %v10018_v12, %v7651_v39  ;;  %v7908_v53 = vpop.eup %4428  ;;  %v7912_v38 = vsel %vm2430_vm2, %v2425_v43, -inf  ;;  %4446 = vpow2.f32 %v2981_v4  ;;  %v3133_v49 = vmul.f32 1.442695, %v2896_v11 }
 0x2b4   : > { %10019 = vst [vmem:[#allocation56_spill] sm:$0xff] %v7908_v53  ;;  %v2824_v44 = vsub.f32 %v10020_v18, %v7651_v39  ;;  %v7918_v2 = vpop.eup %4430  ;;  %v2808_v60 = vmax.f32 %v7904_v36, %v7912_v38  ;;  %v2985_v52 = vmul.f32 1.442695, %v2822_v55  ;;  %v3381_v20 = vadd.f32 %v7867_v54, %v7862_v56  ;;  %v10024_v39 = vld [vmem:[#allocation69_spill] sm:$0xff] }
 0x2b5   : > { %10021 = vst [vmem:[#allocation148_spill] sm:$0xff] %v7918_v2  ;;  %3268 = vadd.xlane.f32.xlu0 %v3267_v63  ;;  %v2898_v43 = vsub.f32 %v10022_v32, %v7638_v51  ;;  %v7926_v4 = vpop.eup %4432  ;;  %4448 = vpow2.f32 %v2983_v15  ;;  %v3135_v11 = vmul.f32 1.442695, %v2897_v19  ;;  %v2825_v24 = vsub.f32 %v10024_v39, %v7676_v58  ;;  %v10026_v55 = vld [vmem:[#allocation117_spill] sm:$0xff]  ;;  %v10028_v15 = vld [vmem:[#allocation118_spill] sm:$0xff]  ;;  %v7940_v32 = vpop.xlane.xlu1 %2629  ;;  %v10030_v39 = vld [vmem:[#allocation36_spill] sm:$0xff] }
 0x2b6   : > { %10023 = vst [vmem:[#allocation60_spill] sm:$0xff] %v7926_v4  ;;  %v7930_v9 = vpop.eup %4434  ;;  %2809 = vmax.xlane.f32.xlu1 %v2808_v60  ;;  %4450 = vpow2.f32 %v3131_v10  ;;  %v2987_v12 = vmul.f32 1.442695, %v2823_v40  ;;  %v3270_v63 = vadd.f32 %v7908_v53, %v7902_v27  ;;  %v2899_v18 = vsub.f32 %v10026_v55, %v7690_v59 }
 0x2b7   : > { %10025 = vst [vmem:[#allocation58_spill] sm:$0xff] %v7930_v9  ;;  %v7936_v54 = vpop.eup %4436  ;;  %4452 = vpow2.f32 %v3133_v49  ;;  %v2989_v51 = vmul.f32 1.442695, %v2824_v44  ;;  %v2900_v19 = vsub.f32 %v10028_v15, %v7690_v59  ;;  %v3137_v60 = vmul.f32 1.442695, %v2898_v43  ;;  %v7948_v49 = vpop.xlane.xlu0 %2740 }
 0x2b8   : > { %10027 = vst [vmem:[#allocation59_spill] sm:$0xff] %v7936_v54  ;;  %4454 = vpow2.f32 %v2985_v52  ;;  %v3273_v10 = vadd.f32 %v7918_v2, %v7889_v1  ;;  %v2826_v55 = vsub.f32 %v10030_v39, %v7676_v58  ;;  %v2991_v53 = vmul.f32 1.442695, %v2825_v24  ;;  %v10031_v52 = vld [vmem:[#allocation121_spill] sm:$0xff] }
 0x2b9   : > { %3382 = vadd.xlane.f32.xlu0 %v3381_v20  ;;  %v7944_v40 = vpop.eup %4438  ;;  %4456 = vpow2.f32 %v3135_v11  ;;  %v3139_v59 = vmul.f32 1.442695, %v2899_v18  ;;  %v2827_v20 = vsub.f32 %v10031_v52, %v7729_v45  ;;  %v3141_v15 = vmul.f32 1.442695, %v2900_v19  ;;  %v10033_v11 = vld [vmem:[#allocation71_spill] sm:$0xff]  ;;  %v10037_v19 = vld [vmem:[#allocation120_spill] sm:$0xff]  ;;  %v7970_v39 = vpop.xlane.xlu1 %2743 }
 0x2ba   : > { %10029 = vst [vmem:[#allocation33_spill] sm:$0xff] %v7944_v40  ;;  %v7950_v44 = vpop.eup %4440  ;;  %4458 = vpow2.f32 %v2987_v12  ;;  %3271 = vadd.xlane.f32.xlu1 %v3270_v63  ;;  %v2828_v2 = vsub.f32 %v10033_v11, %v7729_v45  ;;  %v3384_v58 = vadd.f32 %v7838_v17, %v7830_v8  ;;  %v3387_v24 = vadd.f32 %v7944_v40, %v7936_v54  ;;  %v10035_v12 = vld [vmem:[#allocation119_spill] sm:$0xff] }
 0x2bb   : > { %v7954_v43 = vpop.eup %4442  ;;  %4460 = vpow2.f32 %v2989_v51  ;;  %v2901_v63 = vsub.f32 %v10035_v12, %v7716_v31  ;;  %v2993_v51 = vmul.f32 1.442695, %v2826_v55  ;;  %v2902_v45 = vsub.f32 %v10037_v19, %v7716_v31  ;;  %v10039_v12 = vld [vmem:[#allocation126_spill] sm:$0xff] }
 0x2bc   : > { %10032 = vst [vmem:[#allocation30_spill] sm:$0xff] %v7954_v43  ;;  %v7958_v1 = vpop.eup %4444  ;;  %4462 = vpow2.f32 %v3137_v60  ;;  %v2995_v60 = vmul.f32 1.442695, %v2827_v20  ;;  %v2997_v40 = vmul.f32 1.442695, %v2828_v2  ;;  %v2904_v54 = vsub.f32 %v10039_v12, %v7767_v62 }
 0x2bd   : > { %10034 = vst [vmem:[#allocation52_spill] sm:$0xff] %v7958_v1  ;;  %3274 = vadd.xlane.f32.xlu0 %v3273_v10  ;;  %v7966_v18 = vpop.eup %4446  ;;  %4464 = vpow2.f32 %v2991_v53  ;;  %v10038_v10 = vld [vmem:[#allocation125_spill] sm:$0xff]  ;;  %v7978_v53 = vpop.xlane.xlu0 %2632  ;;  %v3143_v31 = vmul.f32 1.442695, %v2901_v63  ;;  %v3145_v2 = vmul.f32 1.442695, %v2902_v45 }
 0x2be   : > { %10036 = vst [vmem:[#allocation61_spill] sm:$0xff] %v7966_v18  ;;  %4466 = vpow2.f32 %v3139_v59  ;;  %3385 = vadd.xlane.f32.xlu1 %v3384_v58  ;;  %v2903_v52 = vsub.f32 %v10038_v10, %v7767_v62  ;;  %v3276_v59 = vadd.f32 %v7930_v9, %v7926_v4  ;;  %v3279_v20 = vadd.f32 %v7966_v18, %v7958_v1  ;;  %v10041_v58 = vld [vmem:[#allocation80_spill] sm:$0xff]  ;;  %v10043_v62 = vld [vmem:[#allocation63_spill] sm:$0xff]  ;;  %v10045_v63 = vld [vmem:[#allocation129_spill] sm:$0xff]  ;;  %v8002_v17 = vpop.xlane.xlu1 %2635 }
 0x2bf   : > { %v7974_v11 = vpop.eup %4448  ;;  %4468 = vpow2.f32 %v3141_v15  ;;  %v2829_v19 = vsub.f32 %v10041_v58, %v7752_v57  ;;  %v2830_v10 = vsub.f32 %v10043_v62, %v7752_v57  ;;  %v2831_v9 = vsub.f32 %v10045_v63, %v7794_v22  ;;  %v10046_v58 = vld [vmem:[#allocation127_spill] sm:$0xff]  ;;  %v10050_v62 = vld [vmem:[#allocation128_spill] sm:$0xff] }
 0x2c0   : > { %v7980_v55 = vpop.eup %4450  ;;  %4470 = vpow2.f32 %v2993_v51  ;;  %v3149_v18 = vmul.f32 1.442695, %v2904_v54  ;;  %v2905_v1 = vsub.f32 %v10046_v58, %v7786_v26  ;;  %v10047_v51 = vld [vmem:[#allocation24_spill] sm:$0xff] }
 0x2c1   : > { %10040 = vst [vmem:[#allocation67_spill] sm:$0xff] %v7980_v55  ;;  %3388 = vadd.xlane.f32.xlu0 %v3387_v24  ;;  %v7988_v15 = vpop.eup %4452  ;;  %4472 = vpow2.f32 %v2995_v60  ;;  %v3147_v24 = vmul.f32 1.442695, %v2903_v52  ;;  %v2832_v45 = vsub.f32 %v10047_v51, %v7794_v22  ;;  %v2999_v60 = vmul.f32 1.442695, %v2829_v19  ;;  %v8014_v63 = vpop.xlane.xlu0 %2746 }
 0x2c2   : > { %10042 = vst [vmem:[#allocation68_spill] sm:$0xff] %v7988_v15  ;;  %v7992_v12 = vpop.eup %4454  ;;  %3277 = vadd.xlane.f32.xlu1 %v3276_v59  ;;  %4474 = vpow2.f32 %v2997_v40  ;;  %v3390_v52 = vadd.f32 %v7954_v43, %v7950_v44  ;;  %v3393_v40 = vadd.f32 %v7988_v15, %v7980_v55  ;;  %v3001_v59 = vmul.f32 1.442695, %v2830_v10 }
 0x2c3   : > { %10044 = vst [vmem:[#allocation51_spill] sm:$0xff] %v7992_v12  ;;  %v7996_v4 = vpop.eup %4456  ;;  %4476 = vpow2.f32 %v3143_v31  ;;  %v2906_v22 = vsub.f32 %v10050_v62, %v7786_v26  ;;  %v3003_v31 = vmul.f32 1.442695, %v2831_v9  ;;  %v3151_v15 = vmul.f32 1.442695, %v2905_v1 }
 0x2c4   : > { %v8004_v57 = vpop.eup %4458  ;;  %4478 = vpow2.f32 %v3145_v2  ;;  %v3005_v55 = vmul.f32 1.442695, %v2832_v45  ;;  %v10053_v2 = vld [vmem:[#allocation131_spill] sm:$0xff]  ;;  %v3282_v26 = vadd.f32 %v7992_v12, %v7974_v11  ;;  %v8036_v45 = vpop.xlane.xlu1 %2749 }
 0x2c5   : > { %10048 = vst [vmem:[#allocation113_spill] sm:$0xff] %v8004_v57  ;;  %3280 = vadd.xlane.f32.xlu0 %v3279_v20  ;;  %v8010_v54 = vpop.eup %4460  ;;  %4480 = vpow2.f32 %v3147_v24  ;;  %v10052_v20 = vld [vmem:[#allocation130_spill] sm:$0xff]  ;;  %v2908_v10 = vsub.f32 %v10053_v2, %v7816_v34  ;;  %v3153_v1 = vmul.f32 1.442695, %v2906_v22  ;;  %v8046_v12 = vpop.xlane.xlu0 %2638 }
 0x2c6   : > { %10049 = vst [vmem:[#allocation124_spill] sm:$0xff] %v8010_v54  ;;  %v8016_v58 = vpop.eup %4462  ;;  %3391 = vadd.xlane.f32.xlu1 %v3390_v52  ;;  %v2907_v19 = vsub.f32 %v10052_v20, %v7816_v34  ;;  %4482 = vpow2.f32 %v3149_v18  ;;  %v3285_v9 = vadd.f32 %v8010_v54, %v8004_v57  ;;  %v10055_v24 = vld [vmem:[#allocation6_spill] sm:$0xff]  ;;  %v10057_v18 = vld [vmem:[#allocation89_spill] sm:$0xff] }
 0x2c7   : > { %10051 = vst [vmem:[#allocation31_spill] sm:$0xff] %v8016_v58  ;;  %v8020_v51 = vpop.eup %4464  ;;  %4484 = vpow2.f32 %v2999_v60  ;;  %v2833_v52 = vsub.f32 %v10055_v24, %v7814_v21  ;;  %v2834_v34 = vsub.f32 %v10057_v18, %v7814_v21  ;;  %v3157_v54 = vmul.f32 1.442695, %v2908_v10  ;;  %v10060_v24 = vld [vmem:[#allocation132_spill] sm:$0xff]  ;;  %v10064_v18 = vld [vmem:[#allocation133_spill] sm:$0xff] }
 0x2c8   : > { %v8024_v43 = vpop.eup %4466  ;;  %4486 = vpow2.f32 %v3001_v59  ;;  %v3155_v60 = vmul.f32 1.442695, %v2907_v19  ;;  %v2909_v57 = vsub.f32 %v10060_v24, %v7836_v47  ;;  %v10061_v59 = vld [vmem:[#allocation135_spill] sm:$0xff]  ;;  %v3396_v19 = vadd.f32 %v8016_v58, %v7996_v4 }
 0x2c9   : > { %10054 = vst [vmem:[#allocation77_spill] sm:$0xff] %v8024_v43  ;;  %3394 = vadd.xlane.f32.xlu0 %v3393_v40  ;;  %v8032_v62 = vpop.eup %4468  ;;  %4488 = vpow2.f32 %v3003_v31  ;;  %v10058_v40 = vld [vmem:[#allocation134_spill] sm:$0xff]  ;;  %v2836_v22 = vsub.f32 %v10061_v59, %v7852_v16  ;;  %v3007_v31 = vmul.f32 1.442695, %v2833_v52 }
 0x2ca   : > { %10056 = vst [vmem:[#allocation74_spill] sm:$0xff] %v8032_v62  ;;  %3283 = vadd.xlane.f32.xlu1 %v3282_v26  ;;  %v2835_v20 = vsub.f32 %v10058_v40, %v7852_v16  ;;  %v8040_v2 = vpop.eup %4470  ;;  %4490 = vpow2.f32 %v3005_v55  ;;  %v3399_v55 = vadd.f32 %v8032_v62, %v8024_v43  ;;  %v3009_v26 = vmul.f32 1.442695, %v2834_v34  ;;  %v10067_v43 = vld [vmem:[#allocation141_spill] sm:$0xff]  ;;  %v8066_v34 = vpop.xlane.xlu1 %2641 }
 0x2cb   : > { %10059 = vst [vmem:[#allocation4_spill] sm:$0xff] %v8040_v2  ;;  %v8048_v21 = vpop.eup %4472  ;;  %4492 = vpow2.f32 %v3151_v15  ;;  %v2910_v16 = vsub.f32 %v10064_v18, %v7836_v47  ;;  %v3159_v59 = vmul.f32 1.442695, %v2909_v57  ;;  %v3013_v62 = vmul.f32 1.442695, %v2836_v22  ;;  %v10073_v18 = vld [vmem:[#allocation144_spill] sm:$0xff] }
 0x2cc   : > { %10062 = vst [vmem:[#allocation42_spill] sm:$0xff] %v8048_v21  ;;  %v8054_v10 = vpop.eup %4474  ;;  %4494 = vpow2.f32 %v3153_v1  ;;  %v3011_v15 = vmul.f32 1.442695, %v2835_v20  ;;  %v2912_v1 = vsub.f32 %v10067_v43, %v7883_v13  ;;  %v3288_v47 = vadd.f32 %v8040_v2, %v8020_v51  ;;  %v10069_v20 = vld [vmem:[#allocation95_spill] sm:$0xff] }
 0x2cd   : > { %3286 = vadd.xlane.f32.xlu0 %v3285_v9  ;;  %10063 = vst [vmem:[#allocation81_spill] sm:$0xff] %v8054_v10  ;;  %v8058_v40 = vpop.eup %4476  ;;  %4496 = vpow2.f32 %v3155_v60  ;;  %v10065_v9 = vld [vmem:[#allocation140_spill] sm:$0xff]  ;;  %v3291_v60 = vadd.f32 %v8054_v10, %v8048_v21  ;;  %v3161_v22 = vmul.f32 1.442695, %v2910_v16  ;;  %v10076_v21 = vld [vmem:[#allocation145_spill] sm:$0xff] }
 0x2ce   : > { %3397 = vadd.xlane.f32.xlu1 %v3396_v19  ;;  %v2911_v52 = vsub.f32 %v10065_v9, %v7883_v13  ;;  %v8062_v24 = vpop.eup %4478  ;;  %4498 = vpow2.f32 %v3157_v54  ;;  %v2837_v54 = vsub.f32 %v10069_v20, %v7872_v33  ;;  %v10071_v13 = vld [vmem:[#allocation93_spill] sm:$0xff]  ;;  %v8080_v19 = vpop.xlane.xlu0 %2752  ;;  %v2839_v9 = vsub.f32 %v10073_v18, %v7916_v50 }
 0x2cf   : > { %10066 = vst [vmem:[#allocation82_spill] sm:$0xff] %v8062_v24  ;;  %v8068_v58 = vpop.eup %4480  ;;  %4500 = vpow2.f32 %v3007_v31  ;;  %v2838_v43 = vsub.f32 %v10071_v13, %v7872_v33  ;;  %v3165_v20 = vmul.f32 1.442695, %v2912_v1  ;;  %v2840_v33 = vsub.f32 %v10076_v21, %v7916_v50  ;;  %v10079_v1 = vld [vmem:[#allocation143_spill] sm:$0xff]  ;;  %v8102_v2 = vpop.xlane.xlu1 %2755 }
 0x2d0   : > { %10068 = vst [vmem:[#allocation86_spill] sm:$0xff] %v8068_v58  ;;  %v8076_v57 = vpop.eup %4482  ;;  %4502 = vpow2.f32 %v3009_v26  ;;  %v10075_v26 = vld [vmem:[#allocation142_spill] sm:$0xff]  ;;  %v3019_v21 = vmul.f32 1.442695, %v2839_v9 }
 0x2d1   : > { %3400 = vadd.xlane.f32.xlu0 %v3399_v55  ;;  %10070 = vst [vmem:[#allocation87_spill] sm:$0xff] %v8076_v57  ;;  %v8082_v31 = vpop.eup %4484  ;;  %4504 = vpow2.f32 %v3011_v15  ;;  %v3163_v55 = vmul.f32 1.442695, %v2911_v52  ;;  %v2913_v16 = vsub.f32 %v10075_v26, %v7900_v23  ;;  %v3015_v15 = vmul.f32 1.442695, %v2837_v54 }
 0x2d2   : > { %10072 = vst [vmem:[#allocation105_spill] sm:$0xff] %v8082_v31  ;;  %3289 = vadd.xlane.f32.xlu1 %v3288_v47  ;;  %v8086_v10 = vpop.eup %4486  ;;  %4506 = vpow2.f32 %v3013_v62  ;;  %v3402_v52 = vadd.f32 %v8062_v24, %v8058_v40  ;;  %v3405_v47 = vadd.f32 %v8076_v57, %v8068_v58  ;;  %v3017_v62 = vmul.f32 1.442695, %v2838_v43  ;;  %v8112_v24 = vpop.xlane.xlu0 %2644 }
 0x2d3   : > { %10074 = vst [vmem:[#allocation147_spill] sm:$0xff] %v8086_v10  ;;  %v8092_v13 = vpop.eup %4488  ;;  %4508 = vpow2.f32 %v3159_v59  ;;  %v2914_v26 = vsub.f32 %v10079_v1, %v7900_v23  ;;  %v10080_v59 = vld [vmem:[#allocation149_spill] sm:$0xff]  ;;  %v3167_v57 = vmul.f32 1.442695, %v2913_v16  ;;  %v3021_v58 = vmul.f32 1.442695, %v2840_v33 }
 0x2d4   : > { %10077 = vst [vmem:[#allocation156_spill] sm:$0xff] %v8092_v13  ;;  %v8098_v18 = vpop.eup %4490  ;;  %4510 = vpow2.f32 %v3161_v22  ;;  %v10082_v22 = vld [vmem:[#allocation150_spill] sm:$0xff] }
 0x2d5   : > { %3292 = vadd.xlane.f32.xlu0 %v3291_v60  ;;  %10078 = vst [vmem:[#allocation47_spill] sm:$0xff] %v8098_v18  ;;  %v8104_v50 = vpop.eup %4492  ;;  %4512 = vpow2.f32 %v3163_v55  ;;  %v2915_v60 = vsub.f32 %v10080_v59, %v7948_v49  ;;  %v2916_v43 = vsub.f32 %v10082_v22, %v7948_v49  ;;  %v3294_v55 = vadd.f32 %v8086_v10, %v8082_v31  ;;  %v10086_v49 = vld [vmem:[#allocation32_spill] sm:$0xff]  ;;  %v8136_v31 = vpop.xlane.xlu1 %2647 }
 0x2d6   : > { %3403 = vadd.xlane.f32.xlu1 %v3402_v52  ;;  %v8108_v54 = vpop.eup %4494  ;;  %4514 = vpow2.f32 %v3165_v20  ;;  %v3297_v9 = vadd.f32 %v8098_v18, %v8092_v13  ;;  %v10084_v52 = vld [vmem:[#allocation107_spill] sm:$0xff]  ;;  %v3169_v33 = vmul.f32 1.442695, %v2914_v26  ;;  %v2842_v1 = vsub.f32 %v10086_v49, %v7940_v32  ;;  %v10093_v49 = vld [vmem:[#allocation152_spill] sm:$0xff] }
 0x2d7   : > { %10081 = vst [vmem:[#allocation34_spill] sm:$0xff] %v8108_v54  ;;  %v8114_v23 = vpop.eup %4496  ;;  %4516 = vpow2.f32 %v3015_v15  ;;  %v2841_v20 = vsub.f32 %v10084_v52, %v7940_v32  ;;  %v3171_v15 = vmul.f32 1.442695, %v2915_v60  ;;  %v3173_v18 = vmul.f32 1.442695, %v2916_v43  ;;  %v10089_v52 = vld [vmem:[#allocation151_spill] sm:$0xff] }
 0x2d8   : > { %10083 = vst [vmem:[#allocation12_spill] sm:$0xff] %v8114_v23  ;;  %v8122_v16 = vpop.eup %4498  ;;  %4518 = vpow2.f32 %v3017_v62  ;;  %v2917_v13 = vsub.f32 %v10089_v52, %v7970_v39  ;;  %v10090_v62 = vld [vmem:[#allocation154_spill] sm:$0xff]  ;;  %v3408_v60 = vadd.f32 %v8108_v54, %v8104_v50 }
 0x2d9   : > { %3406 = vadd.xlane.f32.xlu0 %v3405_v47  ;;  %10085 = vst [vmem:[#allocation14_spill] sm:$0xff] %v8122_v16  ;;  %v8126_v59 = vpop.eup %4500  ;;  %4520 = vpow2.f32 %v3019_v21  ;;  %v10087_v47 = vld [vmem:[#allocation153_spill] sm:$0xff]  ;;  %v2844_v26 = vsub.f32 %v10090_v62, %v7978_v53  ;;  %v3023_v21 = vmul.f32 1.442695, %v2841_v20 }
 0x2da   : > { %3295 = vadd.xlane.f32.xlu1 %v3294_v55  ;;  %v2843_v22 = vsub.f32 %v10087_v47, %v7978_v53  ;;  %v8130_v10 = vpop.eup %4502  ;;  %4522 = vpow2.f32 %v3021_v58  ;;  %v3411_v58 = vadd.f32 %v8122_v16, %v8114_v23  ;;  %v3025_v55 = vmul.f32 1.442695, %v2842_v1  ;;  %v8148_v47 = vpop.xlane.xlu0 %2758 }
 0x2db   : > { %10088 = vst [vmem:[#allocation65_spill] sm:$0xff] %v8130_v10  ;;  %v8138_v32 = vpop.eup %4504  ;;  %4524 = vpow2.f32 %v3167_v57  ;;  %v2918_v53 = vsub.f32 %v10093_v49, %v7970_v39  ;;  %v3175_v16 = vmul.f32 1.442695, %v2917_v13  ;;  %v3029_v23 = vmul.f32 1.442695, %v2844_v26  ;;  %v8170_v26 = vpop.xlane.xlu1 %2761 }
 0x2dc   : > { %10091 = vst [vmem:[#allocation96_spill] sm:$0xff] %v8138_v32  ;;  %v8144_v43 = vpop.eup %4506  ;;  %4526 = vpow2.f32 %v3169_v33  ;;  %v3027_v57 = vmul.f32 1.442695, %v2843_v22  ;;  %v10097_v33 = vld [vmem:[#allocation158_spill] sm:$0xff]  ;;  %v3300_v39 = vadd.f32 %v8130_v10, %v8126_v59  ;;  %v10099_v22 = vld [vmem:[#allocation116_spill] sm:$0xff] }
 0x2dd   : > { %3298 = vadd.xlane.f32.xlu0 %v3297_v9  ;;  %10092 = vst [vmem:[#allocation97_spill] sm:$0xff] %v8144_v43  ;;  %v8150_v52 = vpop.eup %4508  ;;  %4528 = vpow2.f32 %v3171_v15  ;;  %v10095_v9 = vld [vmem:[#allocation157_spill] sm:$0xff]  ;;  %v2920_v1 = vsub.f32 %v10097_v33, %v8014_v63  ;;  %v3303_v15 = vadd.f32 %v8144_v43, %v8138_v32  ;;  %v3177_v13 = vmul.f32 1.442695, %v2918_v53  ;;  %v10105_v32 = vld [vmem:[#allocation162_spill] sm:$0xff] }
 0x2de   : > { %10094 = vst [vmem:[#allocation75_spill] sm:$0xff] %v8150_v52  ;;  %3409 = vadd.xlane.f32.xlu1 %v3408_v60  ;;  %v2919_v20 = vsub.f32 %v10095_v9, %v8014_v63  ;;  %v8154_v62 = vpop.eup %4510  ;;  %4530 = vpow2.f32 %v3173_v18  ;;  %v2845_v60 = vsub.f32 %v10099_v22, %v8002_v17  ;;  %v10101_v18 = vld [vmem:[#allocation49_spill] sm:$0xff] }
 0x2df   : > { %10096 = vst [vmem:[#allocation98_spill] sm:$0xff] %v8154_v62  ;;  %v8158_v54 = vpop.eup %4512  ;;  %4532 = vpow2.f32 %v3023_v21  ;;  %v2846_v63 = vsub.f32 %v10101_v18, %v8002_v17  ;;  %v10102_v9 = vld [vmem:[#allocation161_spill] sm:$0xff]  ;;  %v3181_v22 = vmul.f32 1.442695, %v2920_v1  ;;  %v2848_v17 = vsub.f32 %v10105_v32, %v8046_v12  ;;  %v8182_v18 = vpop.xlane.xlu0 %2650 }
 0x2e0   : > { %10098 = vst [vmem:[#allocation99_spill] sm:$0xff] %v8158_v54  ;;  %v8166_v49 = vpop.eup %4514  ;;  %4534 = vpow2.f32 %v3025_v55  ;;  %v2847_v33 = vsub.f32 %v10102_v9, %v8046_v12  ;;  %v10104_v55 = vld [vmem:[#allocation159_spill] sm:$0xff]  ;;  %v10108_v9 = vld [vmem:[#allocation160_spill] sm:$0xff] }
 0x2e1   : > { %3412 = vadd.xlane.f32.xlu0 %v3411_v58  ;;  %10100 = vst [vmem:[#allocation55_spill] sm:$0xff] %v8166_v49  ;;  %v8172_v21 = vpop.eup %4516  ;;  %4536 = vpow2.f32 %v3027_v57  ;;  %v3179_v58 = vmul.f32 1.442695, %v2919_v20  ;;  %v2921_v53 = vsub.f32 %v10104_v55, %v8036_v45  ;;  %v3031_v57 = vmul.f32 1.442695, %v2845_v60 }
 0x2e2   : > { %3301 = vadd.xlane.f32.xlu1 %v3300_v39  ;;  %v8176_v43 = vpop.eup %4518  ;;  %4538 = vpow2.f32 %v3029_v23  ;;  %v3414_v20 = vadd.f32 %v8154_v62, %v8150_v52  ;;  %v3417_v23 = vadd.f32 %v8166_v49, %v8158_v54  ;;  %v3033_v39 = vmul.f32 1.442695, %v2846_v63  ;;  %v10111_v54 = vld [vmem:[#allocation78_spill] sm:$0xff]  ;;  %v8202_v63 = vpop.xlane.xlu1 %2653 }
 0x2e3   : > { %10103 = vst [vmem:[#allocation155_spill] sm:$0xff] %v8176_v43  ;;  %v8184_v10 = vpop.eup %4520  ;;  %4540 = vpow2.f32 %v3175_v16  ;;  %v2922_v12 = vsub.f32 %v10108_v9, %v8036_v45  ;;  %v3035_v16 = vmul.f32 1.442695, %v2847_v33  ;;  %v3183_v62 = vmul.f32 1.442695, %v2921_v53  ;;  %v10113_v33 = vld [vmem:[#allocation50_spill] sm:$0xff] }
 0x2e4   : > { %10106 = vst [vmem:[#allocation100_spill] sm:$0xff] %v8184_v10  ;;  %v8190_v1 = vpop.eup %4522  ;;  %4542 = vpow2.f32 %v3177_v13  ;;  %v3037_v49 = vmul.f32 1.442695, %v2848_v17  ;;  %v2924_v13 = vsub.f32 %v10111_v54, %v8080_v19  ;;  %v3306_v45 = vadd.f32 %v8176_v43, %v8172_v21  ;;  %v10117_v9 = vld [vmem:[#allocation39_spill] sm:$0xff] }
 0x2e5   : > { %3304 = vadd.xlane.f32.xlu0 %v3303_v15  ;;  %10107 = vst [vmem:[#allocation101_spill] sm:$0xff] %v8190_v1  ;;  %v8194_v32 = vpop.eup %4524  ;;  %4544 = vpow2.f32 %v3179_v58  ;;  %v10109_v15 = vld [vmem:[#allocation76_spill] sm:$0xff]  ;;  %v3309_v58 = vadd.f32 %v8190_v1, %v8184_v10  ;;  %v3185_v17 = vmul.f32 1.442695, %v2922_v12  ;;  %v10120_v10 = vld [vmem:[#allocation122_spill] sm:$0xff] }
 0x2e6   : > { %3415 = vadd.xlane.f32.xlu1 %v3414_v20  ;;  %v2923_v60 = vsub.f32 %v10109_v15, %v8080_v19  ;;  %v8198_v55 = vpop.eup %4526  ;;  %4546 = vpow2.f32 %v3181_v22  ;;  %v2849_v22 = vsub.f32 %v10113_v33, %v8066_v34  ;;  %v10115_v19 = vld [vmem:[#allocation2_spill] sm:$0xff]  ;;  %v8216_v20 = vpop.xlane.xlu0 %2764  ;;  %v2851_v15 = vsub.f32 %v10117_v9, %v8112_v24 }
 0x2e7   : > { %10110 = vst [vmem:[#allocation73_spill] sm:$0xff] %v8198_v55  ;;  %v8204_v52 = vpop.eup %4528  ;;  %4548 = vpow2.f32 %v3031_v57  ;;  %v2850_v54 = vsub.f32 %v10115_v19, %v8066_v34  ;;  %v3189_v33 = vmul.f32 1.442695, %v2924_v13  ;;  %v2852_v34 = vsub.f32 %v10120_v10, %v8112_v24  ;;  %v10123_v13 = vld [vmem:[#allocation41_spill] sm:$0xff]  ;;  %v8238_v43 = vpop.xlane.xlu1 %2767 }
 0x2e8   : > { %10112 = vst [vmem:[#allocation20_spill] sm:$0xff] %v8204_v52  ;;  %v8212_v53 = vpop.eup %4530  ;;  %4550 = vpow2.f32 %v3033_v39  ;;  %v10119_v39 = vld [vmem:[#allocation54_spill] sm:$0xff]  ;;  %v3043_v24 = vmul.f32 1.442695, %v2851_v15 }
 0x2e9   : > { %3418 = vadd.xlane.f32.xlu0 %v3417_v23  ;;  %10114 = vst [vmem:[#allocation108_spill] sm:$0xff] %v8212_v53  ;;  %v8218_v57 = vpop.eup %4532  ;;  %4552 = vpow2.f32 %v3035_v16  ;;  %v3187_v23 = vmul.f32 1.442695, %v2923_v60  ;;  %v2925_v12 = vsub.f32 %v10119_v39, %v8102_v2  ;;  %v3039_v16 = vmul.f32 1.442695, %v2849_v22 }
 0x2ea   : > { %10116 = vst [vmem:[#allocation109_spill] sm:$0xff] %v8218_v57  ;;  %3307 = vadd.xlane.f32.xlu1 %v3306_v45  ;;  %v8222_v1 = vpop.eup %4534  ;;  %4554 = vpow2.f32 %v3037_v49  ;;  %v3420_v60 = vadd.f32 %v8198_v55, %v8194_v32  ;;  %v3423_v45 = vadd.f32 %v8212_v53, %v8204_v52  ;;  %v3041_v49 = vmul.f32 1.442695, %v2850_v54  ;;  %v8248_v55 = vpop.xlane.xlu0 %2656 }
 0x2eb   : > { %10118 = vst [vmem:[#allocation22_spill] sm:$0xff] %v8222_v1  ;;  %v8228_v19 = vpop.eup %4536  ;;  %4556 = vpow2.f32 %v3183_v62  ;;  %v2926_v39 = vsub.f32 %v10123_v13, %v8102_v2  ;;  %v10124_v62 = vld [vmem:[#allocation70_spill] sm:$0xff]  ;;  %v3191_v53 = vmul.f32 1.442695, %v2925_v12  ;;  %v3045_v52 = vmul.f32 1.442695, %v2852_v34 }
 0x2ec   : > { %10121 = vst [vmem:[#allocation110_spill] sm:$0xff] %v8228_v19  ;;  %v8234_v9 = vpop.eup %4538  ;;  %4558 = vpow2.f32 %v3185_v17  ;;  %v10126_v17 = vld [vmem:[#allocation40_spill] sm:$0xff] }
 0x2ed   : > { %3310 = vadd.xlane.f32.xlu0 %v3309_v58  ;;  %10122 = vst [vmem:[#allocation112_spill] sm:$0xff] %v8234_v9  ;;  %v8240_v10 = vpop.eup %4540  ;;  %4560 = vpow2.f32 %v3187_v23  ;;  %v2927_v58 = vsub.f32 %v10124_v62, %v8148_v47  ;;  %v2928_v54 = vsub.f32 %v10126_v17, %v8148_v47  ;;  %v3312_v23 = vadd.f32 %v8222_v1, %v8218_v57  ;;  %v10130_v47 = vld [vmem:[#allocation84_spill] sm:$0xff]  ;;  %v8272_v57 = vpop.xlane.xlu1 %2659 }
 0x2ee   : > { %3421 = vadd.xlane.f32.xlu1 %v3420_v60  ;;  %v8244_v22 = vpop.eup %4542  ;;  %4562 = vpow2.f32 %v3189_v33  ;;  %v3315_v15 = vadd.f32 %v8234_v9, %v8228_v19  ;;  %v10128_v60 = vld [vmem:[#allocation94_spill] sm:$0xff]  ;;  %v3193_v34 = vmul.f32 1.442695, %v2926_v39  ;;  %v2854_v13 = vsub.f32 %v10130_v47, %v8136_v31  ;;  %v10137_v47 = vld [vmem:[#allocation85_spill] sm:$0xff] }
 0x2ef   : > { %10125 = vst [vmem:[#allocation43_spill] sm:$0xff] %v8244_v22  ;;  %v8250_v2 = vpop.eup %4544  ;;  %4564 = vpow2.f32 %v3039_v16  ;;  %v2853_v33 = vsub.f32 %v10128_v60, %v8136_v31  ;;  %v3195_v16 = vmul.f32 1.442695, %v2927_v58  ;;  %v3197_v9 = vmul.f32 1.442695, %v2928_v54  ;;  %v10133_v60 = vld [vmem:[#allocation27_spill] sm:$0xff] }
 0x2f0   : > { %10127 = vst [vmem:[#allocation111_spill] sm:$0xff] %v8250_v2  ;;  %v8258_v12 = vpop.eup %4546  ;;  %4566 = vpow2.f32 %v3041_v49  ;;  %v2929_v19 = vsub.f32 %v10133_v60, %v8170_v26  ;;  %v10134_v49 = vld [vmem:[#allocation57_spill] sm:$0xff]  ;;  %v3426_v58 = vadd.f32 %v8244_v22, %v8240_v10 }
 0x2f1   : > { %3424 = vadd.xlane.f32.xlu0 %v3423_v45  ;;  %10129 = vst [vmem:[#allocation69_spill] sm:$0xff] %v8258_v12  ;;  %v8262_v62 = vpop.eup %4548  ;;  %4568 = vpow2.f32 %v3043_v24  ;;  %v10131_v45 = vld [vmem:[#allocation64_spill] sm:$0xff]  ;;  %v2856_v39 = vsub.f32 %v10134_v49, %v8182_v18  ;;  %v3047_v24 = vmul.f32 1.442695, %v2853_v33 }
 0x2f2   : > { %3313 = vadd.xlane.f32.xlu1 %v3312_v23  ;;  %v2855_v17 = vsub.f32 %v10131_v45, %v8182_v18  ;;  %v8266_v1 = vpop.eup %4550  ;;  %4570 = vpow2.f32 %v3045_v52  ;;  %v3429_v52 = vadd.f32 %v8258_v12, %v8250_v2  ;;  %v3049_v23 = vmul.f32 1.442695, %v2854_v13  ;;  %v8284_v45 = vpop.xlane.xlu0 %2770 }
 0x2f3   : > { %10132 = vst [vmem:[#allocation117_spill] sm:$0xff] %v8266_v1  ;;  %v8274_v31 = vpop.eup %4552  ;;  %4572 = vpow2.f32 %v3191_v53  ;;  %v2930_v18 = vsub.f32 %v10137_v47, %v8170_v26  ;;  %v3199_v12 = vmul.f32 1.442695, %v2929_v19  ;;  %v3053_v2 = vmul.f32 1.442695, %v2856_v39  ;;  %v8306_v39 = vpop.xlane.xlu1 %2773 }
 0x2f4   : > { %10135 = vst [vmem:[#allocation118_spill] sm:$0xff] %v8274_v31  ;;  %v8280_v54 = vpop.eup %4554  ;;  %4574 = vpow2.f32 %v3193_v34  ;;  %v3051_v53 = vmul.f32 1.442695, %v2855_v17  ;;  %v10141_v34 = vld [vmem:[#allocation5_spill] sm:$0xff]  ;;  %v3318_v26 = vadd.f32 %v8266_v1, %v8262_v62  ;;  %v10143_v17 = vld [vmem:[#allocation11_spill] sm:$0xff] }
 0x2f5   : > { %3316 = vadd.xlane.f32.xlu0 %v3315_v15  ;;  %10136 = vst [vmem:[#allocation36_spill] sm:$0xff] %v8280_v54  ;;  %v8286_v60 = vpop.eup %4556  ;;  %4576 = vpow2.f32 %v3195_v16  ;;  %v10139_v15 = vld [vmem:[#allocation90_spill] sm:$0xff]  ;;  %v2932_v13 = vsub.f32 %v10141_v34, %v8216_v20  ;;  %v3321_v16 = vadd.f32 %v8280_v54, %v8274_v31  ;;  %v3201_v19 = vmul.f32 1.442695, %v2930_v18  ;;  %v10150_v31 = vld [vmem:[#allocation9_spill] sm:$0xff] }
 0x2f6   : > { %10138 = vst [vmem:[#allocation121_spill] sm:$0xff] %v8286_v60  ;;  %3427 = vadd.xlane.f32.xlu1 %v3426_v58  ;;  %v2931_v33 = vsub.f32 %v10139_v15, %v8216_v20  ;;  %v8290_v49 = vpop.eup %4558  ;;  %4578 = vpow2.f32 %v3197_v9  ;;  %v2857_v58 = vsub.f32 %v10143_v17, %v8202_v63  ;;  %v10145_v9 = vld [vmem:[#allocation7_spill] sm:$0xff]  ;;  %v10147_v15 = vld [vmem:[#allocation92_spill] sm:$0xff] }
 0x2f7   : > { %10140 = vst [vmem:[#allocation71_spill] sm:$0xff] %v8290_v49  ;;  %v8294_v22 = vpop.eup %4560  ;;  %4580 = vpow2.f32 %v3047_v24  ;;  %v2858_v20 = vsub.f32 %v10145_v9, %v8202_v63  ;;  %v2859_v34 = vsub.f32 %v10147_v15, %v8248_v55  ;;  %v3205_v17 = vmul.f32 1.442695, %v2932_v13  ;;  %v2663_v9 = vpop.xlane.xlu0 %2662  ;;  %v10153_v15 = vld [vmem:[#allocation138_spill] sm:$0xff] }
 0x2f8   : > { %10142 = vst [vmem:[#allocation119_spill] sm:$0xff] %v8294_v22  ;;  %v8302_v47 = vpop.eup %4562  ;;  %4582 = vpow2.f32 %v3049_v23  ;;  %v10149_v23 = vld [vmem:[#allocation28_spill] sm:$0xff]  ;;  %v2860_v63 = vsub.f32 %v10150_v31, %v8248_v55  ;;  %v10154_v31 = vld [vmem:[#allocation38_spill] sm:$0xff] }
 0x2f9   : > { %3430 = vadd.xlane.f32.xlu0 %v3429_v52  ;;  %10144 = vst [vmem:[#allocation120_spill] sm:$0xff] %v8302_v47  ;;  %v8308_v24 = vpop.eup %4564  ;;  %4584 = vpow2.f32 %v3051_v53  ;;  %v3203_v52 = vmul.f32 1.442695, %v2931_v33  ;;  %v2933_v18 = vsub.f32 %v10149_v23, %v8238_v43  ;;  %v3055_v53 = vmul.f32 1.442695, %v2857_v58 }
 0x2fa   : > { %10146 = vst [vmem:[#allocation125_spill] sm:$0xff] %v8308_v24  ;;  %3319 = vadd.xlane.f32.xlu1 %v3318_v26  ;;  %v8312_v54 = vpop.eup %4566  ;;  %4586 = vpow2.f32 %v3053_v2  ;;  %v3432_v33 = vadd.f32 %v8290_v49, %v8286_v60  ;;  %v3435_v26 = vadd.f32 %v8302_v47, %v8294_v22  ;;  %v3057_v13 = vmul.f32 1.442695, %v2858_v20  ;;  %v10156_v22 = vld [vmem:[#allocation35_spill] sm:$0xff]  ;;  %v8336_v20 = vpop.xlane.xlu1 %2665 }
 0x2fb   : > { %10148 = vst [vmem:[#allocation126_spill] sm:$0xff] %v8312_v54  ;;  %v8318_v1 = vpop.eup %4568  ;;  %4588 = vpow2.f32 %v3199_v12  ;;  %v2934_v23 = vsub.f32 %v10153_v15, %v8238_v43  ;;  %v3059_v12 = vmul.f32 1.442695, %v2859_v34  ;;  %v3207_v49 = vmul.f32 1.442695, %v2933_v18  ;;  %v10158_v34 = vld [vmem:[#allocation46_spill] sm:$0xff] }
 0x2fc   : > { %10151 = vst [vmem:[#allocation80_spill] sm:$0xff] %v8318_v1  ;;  %v8324_v2 = vpop.eup %4570  ;;  %4590 = vpow2.f32 %v3201_v19  ;;  %v3061_v47 = vmul.f32 1.442695, %v2860_v63  ;;  %v2936_v19 = vsub.f32 %v10156_v22, %v8284_v45  ;;  %v3324_v43 = vadd.f32 %v8312_v54, %v8308_v24  ;;  %v10160_v22 = vld [vmem:[#allocation13_spill] sm:$0xff] }
 0x2fd   : > { %3322 = vadd.xlane.f32.xlu0 %v3321_v16  ;;  %10152 = vst [vmem:[#allocation63_spill] sm:$0xff] %v8324_v2  ;;  %v8328_v55 = vpop.eup %4572  ;;  %4592 = vpow2.f32 %v3203_v52  ;;  %v2935_v16 = vsub.f32 %v10154_v31, %v8284_v45  ;;  %v3327_v52 = vadd.f32 %v8324_v2, %v8318_v1  ;;  %v3209_v63 = vmul.f32 1.442695, %v2934_v23 }
 0x2fe   : > { %3433 = vadd.xlane.f32.xlu1 %v3432_v33  ;;  %v8332_v58 = vpop.eup %4574  ;;  %4594 = vpow2.f32 %v3205_v17  ;;  %v2861_v17 = vsub.f32 %v10158_v34, %v8272_v57  ;;  %v2862_v45 = vsub.f32 %v10160_v22, %v8272_v57  ;;  %v2777_v33 = vpop.xlane.xlu0 %2776  ;;  %v3213_v2 = vmul.f32 1.442695, %v2936_v19  ;;  %v10164_v34 = vld [vmem:[#allocation102_spill] sm:$0xff] }
 0x2ff   : > { %10155 = vst [vmem:[#allocation129_spill] sm:$0xff] %v8332_v58  ;;  %v8338_v60 = vpop.eup %4576  ;;  %4596 = vpow2.f32 %v3055_v53  ;;  %v3211_v53 = vmul.f32 1.442695, %v2935_v16  ;;  %v2937_v1 = vsub.f32 %v10164_v34, %v8306_v39  ;;  %v10168_v19 = vld [vmem:[#allocation146_spill] sm:$0xff] }
 0x300   : > { %10157 = vst [vmem:[#allocation127_spill] sm:$0xff] %v8338_v60  ;;  %v8346_v18 = vpop.eup %4578  ;;  %4598 = vpow2.f32 %v3057_v13  ;;  %v10165_v13 = vld [vmem:[#allocation104_spill] sm:$0xff]  ;;  %v3063_v57 = vmul.f32 1.442695, %v2861_v17  ;;  %v2938_v22 = vsub.f32 %v10168_v19, %v8306_v39 }
 0x301   : > { %3436 = vadd.xlane.f32.xlu0 %v3435_v26  ;;  %10159 = vst [vmem:[#allocation24_spill] sm:$0xff] %v8346_v18  ;;  %v8350_v15 = vpop.eup %4580  ;;  %4600 = vpow2.f32 %v3059_v12  ;;  %v10162_v26 = vld [vmem:[#allocation15_spill] sm:$0xff]  ;;  %v2864_v23 = vsub.f32 %v10165_v13, %v2663_v9  ;;  %v3438_v12 = vadd.f32 %v8332_v58, %v8328_v55  ;;  %v3441_v16 = vadd.f32 %v8346_v18, %v8338_v60  ;;  %v10170_v60 = vld [vmem:[#allocation44_spill] sm:$0xff] }
 0x302   : > { %10161 = vst [vmem:[#allocation128_spill] sm:$0xff] %v8350_v15  ;;  %3325 = vadd.xlane.f32.xlu1 %v3324_v43  ;;  %v2863_v31 = vsub.f32 %v10162_v26, %v2663_v9  ;;  %v8353_v54 = vpop.eup %4582  ;;  %4602 = vpow2.f32 %v3061_v47  ;;  %v3065_v47 = vmul.f32 1.442695, %v2862_v45  ;;  %v8368_v26 = vpop.xlane.xlu1 %2779  ;;  %v3215_v13 = vmul.f32 1.442695, %v2937_v1 }
 0x303   : > { %10163 = vst [vmem:[#allocation130_spill] sm:$0xff] %v8353_v54  ;;  %v8358_v24 = vpop.eup %4584  ;;  %4604 = vpow2.f32 %v3207_v49  ;;  %v3069_v18 = vmul.f32 1.442695, %v2864_v23  ;;  %v2669_v45 = vpop.xlane.xlu0 %2668  ;;  %v3330_v39 = vadd.f32 %v8353_v54, %v8350_v15  ;;  %v3217_v1 = vmul.f32 1.442695, %v2938_v22  ;;  %v10176_v54 = vld [vmem:[#allocation25_spill] sm:$0xff] }
 0x304   : > { %10166 = vst [vmem:[#allocation131_spill] sm:$0xff] %v8358_v24  ;;  %v8364_v43 = vpop.eup %4586  ;;  %4606 = vpow2.f32 %v3209_v63  ;;  %v3067_v49 = vmul.f32 1.442695, %v2863_v31  ;;  %v2940_v63 = vsub.f32 %v10170_v60, %v2777_v33  ;;  %v10171_v31 = vld [vmem:[#allocation72_spill] sm:$0xff]  ;;  %v10173_v60 = vld [vmem:[#allocation83_spill] sm:$0xff] }
 0x305   : > { %3328 = vadd.xlane.f32.xlu0 %v3327_v52  ;;  %10167 = vst [vmem:[#allocation6_spill] sm:$0xff] %v8364_v43  ;;  %v8370_v9 = vpop.eup %4588  ;;  %4608 = vpow2.f32 %v3211_v53  ;;  %v10169_v52 = vld [vmem:[#allocation62_spill] sm:$0xff]  ;;  %v3333_v53 = vadd.f32 %v8364_v43, %v8358_v24 }
 0x306   : > { %3439 = vadd.xlane.f32.xlu1 %v3438_v12  ;;  %v2939_v17 = vsub.f32 %v10169_v52, %v2777_v33  ;;  %v8373_v34 = vpop.eup %4590  ;;  %4610 = vpow2.f32 %v3213_v2  ;;  %v2865_v12 = vsub.f32 %v10171_v31, %v8336_v20  ;;  %v2866_v2 = vsub.f32 %v10173_v60, %v8336_v20  ;;  %v10175_v52 = vld [vmem:[#allocation66_spill] sm:$0xff] }
 0x307   : > { %v8376_v58 = vpop.eup %4592  ;;  %4612 = vpow2.f32 %v3063_v57  ;;  %v10174_v57 = vld [vmem:[#allocation45_spill] sm:$0xff]  ;;  %v2867_v43 = vsub.f32 %v10175_v52, %v2669_v45  ;;  %v3221_v31 = vmul.f32 1.442695, %v2940_v63 }
 0x308   : > { %v8384_v19 = vpop.eup %4594  ;;  %4614 = vpow2.f32 %v3065_v47  ;;  %v3219_v23 = vmul.f32 1.442695, %v2939_v17  ;;  %v2868_v47 = vsub.f32 %v10176_v54, %v2669_v45  ;;  %v3071_v20 = vmul.f32 1.442695, %v2865_v12 }
 0x309   : > { %3442 = vadd.xlane.f32.xlu0 %v3441_v16  ;;  %10172 = vst [vmem:[#allocation89_spill] sm:$0xff] %v8384_v19  ;;  %v8388_v33 = vpop.eup %4596  ;;  %4616 = vpow2.f32 %v3067_v49  ;;  %v2941_v16 = vsub.f32 %v10174_v57, %v8368_v26  ;;  %v3444_v49 = vadd.f32 %v8373_v34, %v8370_v9  ;;  %v3447_v17 = vadd.f32 %v8384_v19, %v8376_v58 }
 0x30a   : > { %3331 = vadd.xlane.f32.xlu1 %v3330_v39  ;;  %v8393_v24 = vpop.eup %4598  ;;  %4618 = vpow2.f32 %v3069_v18  ;;  %v3073_v60 = vmul.f32 1.442695, %v2866_v2  ;;  %v10177_v18 = vld [vmem:[#allocation115_spill] sm:$0xff]  ;;  %v3075_v45 = vmul.f32 1.442695, %v2867_v43 }
 0x30b   : > { %v8396_v15 = vpop.eup %4600  ;;  %4620 = vpow2.f32 %v3215_v13  ;;  %v2942_v63 = vsub.f32 %v10177_v18, %v8368_v26  ;;  %v3223_v13 = vmul.f32 1.442695, %v2941_v16  ;;  %v3077_v57 = vmul.f32 1.442695, %v2868_v47 }
 0x30c   : > { %v2672_v22 = vpop.xlane.xlu1 %2671  ;;  %v8402_v39 = vpop.eup %4602  ;;  %4622 = vpow2.f32 %v3217_v1  ;;  %v3336_v26 = vadd.f32 %v8393_v24, %v8388_v33 }
 0x30d   : > { %3334 = vadd.xlane.f32.xlu0 %v3333_v53  ;;  %v8406_v54 = vpop.eup %4604  ;;  %4624 = vpow2.f32 %v3219_v23  ;;  %v3339_v2 = vadd.f32 %v8402_v39, %v8396_v15  ;;  %v2869_v43 = vsub.f32 %v7594_v5, %v2672_v22 }
 0x30e   : > { %3445 = vadd.xlane.f32.xlu1 %v3444_v49  ;;  %v8408_v12 = vpop.eup %4606  ;;  %4626 = vpow2.f32 %v3221_v31  ;;  %v3225_v31 = vmul.f32 1.442695, %v2942_v63 }
 0x30f   : > { %v2783_v53 = vpop.xlane.xlu0 %2782  ;;  %v8412_v1 = vpop.eup %4608  ;;  %4628 = vpow2.f32 %v3071_v20  ;;  %v3450_v20 = vadd.f32 %v8408_v12, %v8406_v54 }
 0x310   : > { %v2943_v52 = vsub.f32 %v7610_v3, %v2783_v53  ;;  %v2944_v19 = vsub.f32 %v7618_v61, %v2783_v53  ;;  %v8419_v16 = vpop.eup %4610  ;;  %4630 = vpow2.f32 %v3073_v60  ;;  %v2870_v3 = vsub.f32 %v7598_v41, %v2672_v22 }
 0x311   : > { %3448 = vadd.xlane.f32.xlu0 %v3447_v17  ;;  %v2786_v23 = vpop.xlane.xlu1 %2785  ;;  %v8422_v61 = vpop.eup %4612  ;;  %4632 = vpow2.f32 %v3075_v45  ;;  %v3079_v41 = vmul.f32 1.442695, %v2869_v43  ;;  %v3453_v22 = vadd.f32 %v8419_v16, %v8412_v1 }
 0x312   : > { %3337 = vadd.xlane.f32.xlu1 %v3336_v26  ;;  %v3227_v47 = vmul.f32 1.442695, %v2943_v52  ;;  %v8426_v17 = vpop.eup %4614  ;;  %4634 = vpow2.f32 %v3077_v57  ;;  %v3229_v5 = vmul.f32 1.442695, %v2944_v19  ;;  %v2945_v45 = vsub.f32 %v7624_v0, %v2786_v23 }
 0x313   : > { %v2675_v49 = vpop.xlane.xlu0 %2674  ;;  %v8430_v63 = vpop.eup %4616  ;;  %4636 = vpow2.f32 %v3223_v13  ;;  %v3081_v57 = vmul.f32 1.442695, %v2870_v3  ;;  %v2946_v19 = vsub.f32 %v7629_v30, %v2786_v23  ;;  %v3342_v13 = vadd.f32 %v8426_v17, %v8422_v61 }
 0x314   : > { %v2871_v18 = vsub.f32 %v7635_v14, %v2675_v49  ;;  %v2872_v60 = vsub.f32 %v7642_v29, %v2675_v49  ;;  %v8435_v52 = vpop.eup %4618  ;;  %4638 = vpow2.f32 %v3225_v31  ;;  %v3231_v30 = vmul.f32 1.442695, %v2945_v45 }
 0x315   : > { %3340 = vadd.xlane.f32.xlu0 %v3339_v2  ;;  %v2678_v53 = vpop.xlane.xlu1 %2677  ;;  %v8438_v14 = vpop.eup %4620  ;;  %4640 = vpow2.f32 %v3227_v47  ;;  %v3345_v23 = vadd.f32 %v8435_v52, %v8430_v63 }
 0x316   : > { %10178 = vst [vmem:[#allocation134_spill] sm:$0xff] %v8438_v14  ;;  %3451 = vadd.xlane.f32.xlu1 %v3450_v20  ;;  %v3083_v29 = vmul.f32 1.442695, %v2871_v18  ;;  %v8442_v2 = vpop.eup %4622  ;;  %4642 = vpow2.f32 %v3229_v5  ;;  %v3085_v0 = vmul.f32 1.442695, %v2872_v60  ;;  %v2873_v47 = vsub.f32 %v7648_v6, %v2678_v53 }
 0x317   : > { %v2789_v26 = vpop.xlane.xlu0 %2788  ;;  %10179 = vst [vmem:[#allocation132_spill] sm:$0xff] %v8442_v2  ;;  %v8446_v3 = vpop.eup %4624  ;;  %4644 = vpow2.f32 %v3079_v41  ;;  %v3233_v5 = vmul.f32 1.442695, %v2946_v19  ;;  %v2874_v18 = vsub.f32 %v7655_v48, %v2678_v53  ;;  %v3456_v60 = vadd.f32 %v8442_v2, %v8438_v14 }
 0x318   : > { %v2947_v43 = vsub.f32 %v7661_v28, %v2789_v26  ;;  %v2948_v31 = vsub.f32 %v7666_v35, %v2789_v26  ;;  %10180 = vst [vmem:[#allocation135_spill] sm:$0xff] %v8446_v3  ;;  %v8451_v49 = vpop.eup %4626  ;;  %4646 = vpow2.f32 %v3081_v57  ;;  %v3087_v48 = vmul.f32 1.442695, %v2873_v47 }
 0x319   : > { %3454 = vadd.xlane.f32.xlu0 %v3453_v22  ;;  %v2792_v20 = vpop.xlane.xlu1 %2791  ;;  %10181 = vst [vmem:[#allocation133_spill] sm:$0xff] %v8451_v49  ;;  %v8454_v28 = vpop.eup %4628  ;;  %4648 = vpow2.f32 %v3083_v29  ;;  %v3459_v53 = vadd.f32 %v8451_v49, %v8446_v3  ;;  %v10185_v29 = vld [vmem:[#allocation8_spill] sm:$0xff] }
 0x31a   : > { %10182 = vst [vmem:[#allocation140_spill] sm:$0xff] %v8454_v28  ;;  %3343 = vadd.xlane.f32.xlu1 %v3342_v13  ;;  %v3235_v35 = vmul.f32 1.442695, %v2947_v43  ;;  %v8458_v22 = vpop.eup %4630  ;;  %4650 = vpow2.f32 %v3085_v0  ;;  %v3237_v6 = vmul.f32 1.442695, %v2948_v31  ;;  %v2949_v13 = vsub.f32 %v10185_v29, %v2792_v20  ;;  %v10187_v31 = vld [vmem:[#allocation26_spill] sm:$0xff] }
 0x31b   : > { %v2681_v41 = vpop.xlane.xlu0 %2680  ;;  %10183 = vst [vmem:[#allocation141_spill] sm:$0xff] %v8458_v22  ;;  %v8462_v19 = vpop.eup %4632  ;;  %4652 = vpow2.f32 %v3231_v30  ;;  %v3089_v0 = vmul.f32 1.442695, %v2874_v18  ;;  %v2950_v2 = vsub.f32 %v10187_v31, %v2792_v20  ;;  %v3348_v30 = vadd.f32 %v8458_v22, %v8454_v28  ;;  %v10190_v29 = vld [vmem:[#allocation10_spill] sm:$0xff]  ;;  %v10191_v3 = vld [vmem:[#allocation48_spill] sm:$0xff] }
 0x31c   : > { %v2875_v45 = vsub.f32 %v7686_v46, %v2681_v41  ;;  %v2876_v57 = vsub.f32 %v7694_v25, %v2681_v41  ;;  %10184 = vst [vmem:[#allocation95_spill] sm:$0xff] %v8462_v19  ;;  %v8467_v43 = vpop.eup %4634  ;;  %4654 = vpow2.f32 %v3233_v5  ;;  %v3239_v20 = vmul.f32 1.442695, %v2949_v13 }
 0x31d   : > { %3346 = vadd.xlane.f32.xlu0 %v3345_v23  ;;  %v2684_v26 = vpop.xlane.xlu1 %2683  ;;  %10186 = vst [vmem:[#allocation93_spill] sm:$0xff] %v8467_v43  ;;  %v8470_v46 = vpop.eup %4636  ;;  %4656 = vpow2.f32 %v3235_v35  ;;  %v3351_v35 = vadd.f32 %v8467_v43, %v8462_v19  ;;  %v3241_v22 = vmul.f32 1.442695, %v2950_v2 }
 0x31e   : > { %10188 = vst [vmem:[#allocation144_spill] sm:$0xff] %v8470_v46  ;;  %3457 = vadd.xlane.f32.xlu1 %v3456_v60  ;;  %v3091_v25 = vmul.f32 1.442695, %v2875_v45  ;;  %v8474_v47 = vpop.eup %4638  ;;  %4658 = vpow2.f32 %v3237_v6  ;;  %v3093_v41 = vmul.f32 1.442695, %v2876_v57  ;;  %v10193_v60 = vld [vmem:[#allocation91_spill] sm:$0xff] }
 0x31f   : > { %v2795_v23 = vpop.xlane.xlu0 %2794  ;;  %10189 = vst [vmem:[#allocation142_spill] sm:$0xff] %v8474_v47  ;;  %v8478_v18 = vpop.eup %4640  ;;  %4660 = vpow2.f32 %v3087_v48  ;;  %v2877_v45 = vsub.f32 %v10193_v60, %v2684_v26  ;;  %v10195_v6 = vld [vmem:[#allocation79_spill] sm:$0xff]  ;;  %v3462_v48 = vadd.f32 %v8474_v47, %v8470_v46  ;;  %v10196_v60 = vld [vmem:[#allocation21_spill] sm:$0xff] }
 0x320   : > { %v2951_v49 = vsub.f32 %v10190_v29, %v2795_v23  ;;  %v2952_v5 = vsub.f32 %v10191_v3, %v2795_v23  ;;  %10192 = vst [vmem:[#allocation145_spill] sm:$0xff] %v8478_v18  ;;  %v8483_v31 = vpop.eup %4642  ;;  %4662 = vpow2.f32 %v3089_v0  ;;  %v2878_v57 = vsub.f32 %v10195_v6, %v2684_v26  ;;  %v10197_v0 = vld [vmem:[#allocation136_spill] sm:$0xff] }
 0x321   : > { %3460 = vadd.xlane.f32.xlu0 %v3459_v53  ;;  %10194 = vst [vmem:[#allocation143_spill] sm:$0xff] %v8483_v31  ;;  %v2798_v28 = vpop.xlane.xlu1 %2797  ;;  %v8486_v29 = vpop.eup %4644  ;;  %4664 = vpow2.f32 %v3091_v25  ;;  %v3095_v26 = vmul.f32 1.442695, %v2877_v45  ;;  %v10198_v25 = vld [vmem:[#allocation123_spill] sm:$0xff] }
 0x322   : > { %3349 = vadd.xlane.f32.xlu1 %v3348_v30  ;;  %v3243_v3 = vmul.f32 1.442695, %v2951_v49  ;;  %v8490_v13 = vpop.eup %4646  ;;  %4666 = vpow2.f32 %v3093_v41  ;;  %v3245_v23 = vmul.f32 1.442695, %v2952_v5  ;;  %v3465_v49 = vadd.f32 %v8483_v31, %v8478_v18  ;;  %v10199_v41 = vld [vmem:[#allocation3_spill] sm:$0xff] }
 0x323   : > { %v2687_v53 = vpop.xlane.xlu0 %2686  ;;  %v8494_v19 = vpop.eup %4648  ;;  %4668 = vpow2.f32 %v3239_v20  ;;  %v2953_v30 = vsub.f32 %v10198_v25, %v2798_v28  ;;  %v3097_v47 = vmul.f32 1.442695, %v2878_v57  ;;  %v2954_v5 = vsub.f32 %v10199_v41, %v2798_v28  ;;  %v10201_v25 = vld [vmem:[#allocation29_spill] sm:$0xff] }
 0x324   : > { %v2879_v43 = vsub.f32 %v10196_v60, %v2687_v53  ;;  %v2880_v2 = vsub.f32 %v10197_v0, %v2687_v53  ;;  %v8499_v6 = vpop.eup %4650  ;;  %4670 = vpow2.f32 %v3241_v22  ;;  %v10200_v0 = vld [vmem:[#allocation37_spill] sm:$0xff]  ;;  %v3354_v22 = vadd.f32 %v8490_v13, %v8486_v29 }
 0x325   : > { %3352 = vadd.xlane.f32.xlu0 %v3351_v35  ;;  %v8502_v46 = vpop.eup %4652  ;;  %4672 = vpow2.f32 %v3243_v3  ;;  %v2690_v45 = vpop.xlane.xlu1 %2689  ;;  %v3247_v28 = vmul.f32 1.442695, %v2953_v30  ;;  %v3249_v3 = vmul.f32 1.442695, %v2954_v5 }
 0x326   : > { %3463 = vadd.xlane.f32.xlu1 %v3462_v48  ;;  %v3099_v53 = vmul.f32 1.442695, %v2879_v43  ;;  %v8504_v20 = vpop.eup %4654  ;;  %4674 = vpow2.f32 %v3245_v23  ;;  %v3101_v35 = vmul.f32 1.442695, %v2880_v2  ;;  %v3357_v43 = vadd.f32 %v8499_v6, %v8494_v19  ;;  %v10204_v23 = vld [vmem:[#allocation88_spill] sm:$0xff] }
 0x327   : > { %v2801_v60 = vpop.xlane.xlu0 %2800  ;;  %v8508_v14 = vpop.eup %4656  ;;  %4676 = vpow2.f32 %v3095_v26  ;;  %v2881_v2 = vsub.f32 %v10204_v23, %v2690_v45 }
 0x328   : > { %v2955_v31 = vsub.f32 %v10200_v0, %v2801_v60  ;;  %v2956_v18 = vsub.f32 %v10201_v25, %v2801_v60  ;;  %v8514_v57 = vpop.eup %4658  ;;  %4678 = vpow2.f32 %v3097_v47  ;;  %v3468_v47 = vadd.f32 %v8504_v20, %v8502_v46 }
 0x329   : > { %3466 = vadd.xlane.f32.xlu0 %v3465_v49  ;;  %10202 = vst [vmem:[#allocation149_spill] sm:$0xff] %v8514_v57  ;;  %v8516_v48 = vpop.eup %4660  ;;  %4680 = vpow2.f32 %v3099_v53  ;;  %v10206_v49 = vld [vmem:[#allocation53_spill] sm:$0xff]  ;;  %v3471_v5 = vadd.f32 %v8514_v57, %v8508_v14  ;;  %v3103_v25 = vmul.f32 1.442695, %v2881_v2 }
 0x32a   : > { %10203 = vst [vmem:[#allocation150_spill] sm:$0xff] %v8516_v48  ;;  %3355 = vadd.xlane.f32.xlu1 %v3354_v22  ;;  %v3251_v41 = vmul.f32 1.442695, %v2955_v31  ;;  %v8519_v26 = vpop.eup %4662  ;;  %4682 = vpow2.f32 %v3101_v35  ;;  %v2882_v30 = vsub.f32 %v10206_v49, %v2690_v45  ;;  %v3253_v60 = vmul.f32 1.442695, %v2956_v18 }
 0x32b   : > { %10205 = vst [vmem:[#allocation107_spill] sm:$0xff] %v8519_v26  ;;  %v8522_v0 = vpop.eup %4664  ;;  %4684 = vpow2.f32 %v3247_v28  ;;  %v3360_v28 = vadd.f32 %v8519_v26, %v8516_v48  ;;  %v10216_v26 = vld [vmem:[#allocation137_spill] sm:$0xff] }
 0x32c   : > { %10207 = vst [vmem:[#allocation32_spill] sm:$0xff] %v8522_v0  ;;  %v8528_v53 = vpop.eup %4666  ;;  %4686 = vpow2.f32 %v3249_v3  ;;  %v3105_v18 = vmul.f32 1.442695, %v2882_v30 }
 0x32d   : > { %3358 = vadd.xlane.f32.xlu0 %v3357_v43  ;;  %10208 = vst [vmem:[#allocation153_spill] sm:$0xff] %v8528_v53  ;;  %v8530_v31 = vpop.eup %4668  ;;  %4688 = vpow2.f32 %v3251_v41  ;;  %v3363_v22 = vadd.f32 %v8528_v53, %v8522_v0 }
 0x32e   : > { %10209 = vst [vmem:[#allocation151_spill] sm:$0xff] %v8530_v31  ;;  %3469 = vadd.xlane.f32.xlu1 %v3468_v47  ;;  %v8532_v35 = vpop.eup %4670  ;;  %4690 = vpow2.f32 %v3253_v60 }
 0x32f   : > { %10210 = vst [vmem:[#allocation154_spill] sm:$0xff] %v8532_v35  ;;  %v8534_v45 = vpop.eup %4672  ;;  %4692 = vpow2.f32 %v3103_v25  ;;  %v3474_v49 = vadd.f32 %v8532_v35, %v8530_v31  ;;  %v10217_v35 = vld [vmem:[#allocation16_spill] sm:$0xff] }
 0x330   : > { %10211 = vst [vmem:[#allocation152_spill] sm:$0xff] %v8534_v45  ;;  %v8540_v43 = vpop.eup %4674  ;;  %4694 = vpow2.f32 %v3105_v18 }
 0x331   : > { %3472 = vadd.xlane.f32.xlu0 %v3471_v5  ;;  %10212 = vst [vmem:[#allocation157_spill] sm:$0xff] %v8540_v43  ;;  %v8542_v3 = vpop.eup %4676  ;;  %v3477_v30 = vadd.f32 %v8540_v43, %v8534_v45  ;;  %v10215_v5 = vld [vmem:[#allocation18_spill] sm:$0xff] }
 0x332   : > { %3361 = vadd.xlane.f32.xlu1 %v3360_v28  ;;  %v8544_v23 = vpop.eup %4678 }
 0x333   : > { %10213 = vst [vmem:[#allocation158_spill] sm:$0xff] %v8544_v23  ;;  %v8546_v2 = vpop.eup %4680 }
 0x334   : > { %v8552_v60 = vpop.eup %4682 }
 0x335   : > { %v2804_v41 = vpop.xlane.xlu1 %2803  ;;  %3364 = vadd.xlane.f32.xlu0 %v3363_v22  ;;  %10214 = vst [vmem:[#allocation116_spill] sm:$0xff] %v8552_v60  ;;  %v8556_v28 = vpop.eup %4684 }
 0x336   : > { %v2957_v47 = vsub.f32 %v7822_v42, %v2804_v41  ;;  %v2958_v25 = vsub.f32 %v10215_v5, %v2804_v41  ;;  %3475 = vadd.xlane.f32.xlu1 %v3474_v49  ;;  %v8558_v18 = vpop.eup %4686  ;;  %v3366_v42 = vadd.f32 %v8544_v23, %v8542_v3  ;;  %v3369_v41 = vadd.f32 %v8552_v60, %v8546_v2 }
 0x337   : > { %v2693_v53 = vpop.xlane.xlu0 %2692  ;;  %v8562_v57 = vpop.eup %4688  ;;  %v3480_v60 = vadd.f32 %v8558_v18, %v8556_v28 }
 0x338   : > { %v3255_v0 = vmul.f32 1.442695, %v2957_v47  ;;  %v3257_v22 = vmul.f32 1.442695, %v2958_v25  ;;  %v2883_v48 = vsub.f32 %v10216_v26, %v2693_v53  ;;  %v2884_v31 = vsub.f32 %v10217_v35, %v2693_v53  ;;  %v8568_v5 = vpop.eup %4690  ;;  %v10218_v25 = vld [vmem:[#allocation114_spill] sm:$0xff]  ;;  %v10219_v26 = vld [vmem:[#allocation17_spill] sm:$0xff] }
 0x339   : > { %v2696_v43 = vpop.xlane.xlu1 %2695  ;;  %3478 = vadd.xlane.f32.xlu0 %v3477_v30  ;;  %v8572_v30 = vpop.eup %4692 }
 0x33a   : > { %4696 = vpow2.f32 %v3255_v0  ;;  %v3107_v49 = vmul.f32 1.442695, %v2883_v48  ;;  %v3109_v47 = vmul.f32 1.442695, %v2884_v31  ;;  %v2885_v45 = vsub.f32 %v10218_v25, %v2696_v43  ;;  %3367 = vadd.xlane.f32.xlu1 %v3366_v42  ;;  %v8578_v0 = vpop.eup %4694  ;;  %v10221_v42 = vld [vmem:[#allocation139_spill] sm:$0xff] }
 0x33b   : > { %4698 = vpow2.f32 %v3257_v22  ;;  %v2886_v53 = vsub.f32 %v10219_v26, %v2696_v43  ;;  %v3483_v48 = vadd.f32 %v8568_v5, %v8562_v57  ;;  %v10220_v43 = vld [vmem:[#allocation19_spill] sm:$0xff] }
 0x33c   : > { %4700 = vpow2.f32 %v3107_v49  ;;  %v3111_v35 = vmul.f32 1.442695, %v2885_v45 }
 0x33d   : > { %4702 = vpow2.f32 %v3109_v47  ;;  %v3113_v23 = vmul.f32 1.442695, %v2886_v53  ;;  %3370 = vadd.xlane.f32.xlu0 %v3369_v41  ;;  %v3372_v41 = vadd.f32 %v8578_v0, %v8572_v30 }
 0x33e   : > { %4704 = vpow2.f32 %v3111_v35  ;;  %v2807_v31 = vpop.xlane.xlu0 %2806  ;;  %3481 = vadd.xlane.f32.xlu1 %v3480_v60 }
 0x33f   : > { %4706 = vpow2.f32 %v3113_v23  ;;  %v2959_v22 = vsub.f32 %v10220_v43, %v2807_v31  ;;  %v2960_v45 = vsub.f32 %v10221_v42, %v2807_v31 }
 0x341   : > { %v3259_v49 = vmul.f32 1.442695, %v2959_v22  ;;  %v3261_v47 = vmul.f32 1.442695, %v2960_v45  ;;  %3484 = vadd.xlane.f32.xlu0 %v3483_v48 }
 0x342   : > { %v3269_v25 = vpop.xlane.xlu0 %3268  ;;  %3373 = vadd.xlane.f32.xlu1 %v3372_v41 }
 0x343   : > { %4708 = vpow2.f32 %v3259_v49  ;;  %v2810_v53 = vpop.xlane.xlu1 %2809 }
 0x344   : > { %v8584_v26 = vpop.eup %4696  ;;  %4710 = vpow2.f32 %v3261_v47  ;;  %v2961_v23 = vsub.f32 %v7904_v36, %v2810_v53  ;;  %v2962_v31 = vsub.f32 %v7912_v38, %v2810_v53 }
 0x345   : > { %v8586_v35 = vpop.eup %4698  ;;  %4712 = vrcp.f32 %v3269_v25 }
 0x346   : > { %v8590_v60 = vpop.eup %4700  ;;  %v3383_v48 = vpop.xlane.xlu0 %3382  ;;  %v3486_v43 = vadd.f32 %v8586_v35, %v8584_v26  ;;  %v3263_v42 = vmul.f32 1.442695, %v2961_v23  ;;  %v3265_v45 = vmul.f32 1.442695, %v2962_v31 }
 0x347   : > { %v8594_v22 = vpop.eup %4702  ;;  %4714 = vrcp.f32 %v3383_v48  ;;  %v3272_v38 = vpop.xlane.xlu1 %3271 }
 0x348   : > { %10222 = vst [vmem:[#allocation49_spill] sm:$0xff] %v8594_v22  ;;  %v8596_v49 = vpop.eup %4704  ;;  %v3375_v36 = vadd.f32 %v8594_v22, %v8590_v60  ;;  %3487 = vadd.xlane.f32.xlu1 %v3486_v43  ;;  %4716 = vpow2.f32 %v3263_v42 }
 0x349   : > { %10223 = vst [vmem:[#allocation161_spill] sm:$0xff] %v8596_v49  ;;  %v8600_v47 = vpop.eup %4706  ;;  %4718 = vpow2.f32 %v3265_v45 }
 0x34a   : > { %10224 = vst [vmem:[#allocation159_spill] sm:$0xff] %v8600_v47  ;;  %3376 = vadd.xlane.f32.xlu0 %v3375_v36  ;;  %v3275_v41 = vpop.xlane.xlu0 %3274  ;;  %v3378_v25 = vadd.f32 %v8600_v47, %v8596_v49  ;;  %4720 = vrcp.f32 %v3272_v38 }
 0x34b   : > { %4722 = vrcp.f32 %v3275_v41  ;;  %v3386_v53 = vpop.xlane.xlu1 %3385 }
 0x34c   : > { %3379 = vadd.xlane.f32.xlu1 %v3378_v25  ;;  %4724 = vrcp.f32 %v3386_v53  ;;  %v10225_v53 = vld [vmem:[#allocation103_spill] sm:$0xff] }
 0x34d   : > { %v8605_v23 = vpop.eup %4708 }
 0x34e   : > { %v8607_v31 = vpop.eup %4710  ;;  %v3389_v48 = vpop.xlane.xlu0 %3388 }
 0x34f   : > { %v4713_v43 = vpop.eup %4712  ;;  %v3489_v42 = vadd.f32 %v8607_v31, %v8605_v23  ;;  %4726 = vrcp.f32 %v3389_v48  ;;  %v3278_v38 = vpop.xlane.xlu1 %3277 }
 0x350   : > { %v3571_v45 = vmul.f32 %v4713_v43, %v7789_v7  ;;  %v3572_v36 = vmul.f32 %v4713_v43, %v7796_v37  ;;  %4728 = vrcp.f32 %v3278_v38 }
 0x351   : > { %v4715_v41 = vpop.eup %4714  ;;  %3490 = vadd.xlane.f32.xlu0 %v3489_v42 }
 0x352   : > { %3723 = vst [vmem:[%s8612_s21] sm:$0xff] %v3571_v45  ;;  %3724 = vst [vmem:[%s8612_s21 + $0x8] sm:$0xff] %v3572_v36  ;;  %v3647_v25 = vmul.f32 %v4715_v41, %v7862_v56  ;;  %v3648_v47 = vmul.f32 %v4715_v41, %v10225_v53  ;;  %v3281_v49 = vpop.xlane.xlu0 %3280  ;;  %v8622_v22 = vpop.eup %4716  ;;  %v10228_v45 = vld [vmem:[#allocation56_spill] sm:$0xff]  ;;  %v10229_v41 = vld [vmem:[#allocation106_spill] sm:$0xff] }
 0x353   : > { %10226 = vst [vmem:[#allocation162_spill] sm:$0xff] %v8622_v22  ;;  %4730 = vrcp.f32 %v3281_v49  ;;  %v8624_v48 = vpop.eup %4718  ;;  %v3392_v7 = vpop.xlane.xlu1 %3391 }
 0x354   : > { %10227 = vst [vmem:[#allocation160_spill] sm:$0xff] %v8624_v48  ;;  %3799 = vst [vmem:[%s8612_s21 + $0x260] sm:$0xff] %v3647_v25  ;;  %v4721_v37 = vpop.eup %4720  ;;  %v3492_v43 = vadd.f32 %v8624_v48, %v8622_v22  ;;  %4732 = vrcp.f32 %v3392_v7  ;;  %v10231_v48 = vld [vmem:[#allocation23_spill] sm:$0xff] }
 0x355   : > { %3800 = vst [vmem:[%s8612_s21 + $0x268] sm:$0xff] %v3648_v47  ;;  %v4723_v56 = vpop.eup %4722  ;;  %v3573_v42 = vmul.f32 %v4721_v37, %v7902_v27  ;;  %v3574_v36 = vmul.f32 %v4721_v37, %v10228_v45  ;;  %v10230_v47 = vld [vmem:[#allocation148_spill] sm:$0xff]  ;;  %v10233_v45 = vld [vmem:[#allocation33_spill] sm:$0xff] }
 0x356   : > { %v3395_v49 = vpop.xlane.xlu0 %3394  ;;  %v4725_v38 = vpop.eup %4724  ;;  %v3575_v25 = vmul.f32 %v4723_v56, %v10229_v41  ;;  %v3576_v53 = vmul.f32 %v4723_v56, %v10230_v47  ;;  %3493 = vadd.xlane.f32.xlu1 %v3492_v43  ;;  %v10232_v56 = vld [vmem:[#allocation59_spill] sm:$0xff]  ;;  %v10236_v47 = vld [vmem:[#allocation52_spill] sm:$0xff] }
 0x357   : > { %4734 = vrcp.f32 %v3395_v49  ;;  %3725 = vst [vmem:[%s8612_s21 + $0x10] sm:$0xff] %v3573_v42  ;;  %3726 = vst [vmem:[%s8612_s21 + $0x18] sm:$0xff] %v3574_v36  ;;  %v3649_v7 = vmul.f32 %v4725_v38, %v7830_v8  ;;  %v3650_v27 = vmul.f32 %v4725_v38, %v10231_v48  ;;  %v3284_v22 = vpop.xlane.xlu1 %3283  ;;  %v10234_v8 = vld [vmem:[#allocation60_spill] sm:$0xff]  ;;  %v10235_v38 = vld [vmem:[#allocation58_spill] sm:$0xff] }
 0x358   : > { %3727 = vst [vmem:[%s8612_s21 + $0x20] sm:$0xff] %v3575_v25  ;;  %3728 = vst [vmem:[%s8612_s21 + $0x28] sm:$0xff] %v3576_v53  ;;  %4736 = vrcp.f32 %v3284_v22 }
 0x359   : > { %v4727_v37 = vpop.eup %4726  ;;  %3801 = vst [vmem:[%s8612_s21 + $0x270] sm:$0xff] %v3649_v7  ;;  %3802 = vst [vmem:[%s8612_s21 + $0x278] sm:$0xff] %v3650_v27  ;;  %v10237_v7 = vld [vmem:[#allocation61_spill] sm:$0xff] }
 0x35a   : > { %v3651_v43 = vmul.f32 %v4727_v37, %v10232_v56  ;;  %v3652_v42 = vmul.f32 %v4727_v37, %v10233_v45  ;;  %v3287_v49 = vpop.xlane.xlu0 %3286  ;;  %v4729_v36 = vpop.eup %4728  ;;  %v10238_v45 = vld [vmem:[#allocation30_spill] sm:$0xff] }
 0x35b   : > { %4738 = vrcp.f32 %v3287_v49  ;;  %v3577_v48 = vmul.f32 %v4729_v36, %v10234_v8  ;;  %v3578_v41 = vmul.f32 %v4729_v36, %v10235_v38  ;;  %v3398_v25 = vpop.xlane.xlu1 %3397  ;;  %v10239_v8 = vld [vmem:[#allocation67_spill] sm:$0xff]  ;;  %v10240_v38 = vld [vmem:[#allocation68_spill] sm:$0xff] }
 0x35c   : > { %3803 = vst [vmem:[%s8612_s21 + $0x280] sm:$0xff] %v3651_v43  ;;  %3804 = vst [vmem:[%s8612_s21 + $0x288] sm:$0xff] %v3652_v42  ;;  %4740 = vrcp.f32 %v3398_v25 }
 0x35d   : > { %v4731_v22 = vpop.eup %4730  ;;  %3729 = vst [vmem:[%s8612_s21 + $0x30] sm:$0xff] %v3577_v48  ;;  %3730 = vst [vmem:[%s8612_s21 + $0x38] sm:$0xff] %v3578_v41 }
 0x35e   : > { %v3579_v53 = vmul.f32 %v4731_v22, %v10236_v47  ;;  %v3580_v27 = vmul.f32 %v4731_v22, %v10237_v7  ;;  %v3401_v37 = vpop.xlane.xlu0 %3400  ;;  %v4733_v56 = vpop.eup %4732  ;;  %v10241_v47 = vld [vmem:[#allocation51_spill] sm:$0xff] }
 0x35f   : > { %4742 = vrcp.f32 %v3401_v37  ;;  %v3653_v43 = vmul.f32 %v4733_v56, %v7950_v44  ;;  %v3654_v42 = vmul.f32 %v4733_v56, %v10238_v45  ;;  %v3290_v49 = vpop.xlane.xlu1 %3289  ;;  %v10242_v37 = vld [vmem:[#allocation113_spill] sm:$0xff] }
 0x360   : > { %3731 = vst [vmem:[%s8612_s21 + $0x40] sm:$0xff] %v3579_v53  ;;  %3732 = vst [vmem:[%s8612_s21 + $0x48] sm:$0xff] %v3580_v27  ;;  %4744 = vrcp.f32 %v3290_v49 }
 0x361   : > { %v4735_v36 = vpop.eup %4734  ;;  %3805 = vst [vmem:[%s8612_s21 + $0x290] sm:$0xff] %v3653_v43  ;;  %3806 = vst [vmem:[%s8612_s21 + $0x298] sm:$0xff] %v3654_v42  ;;  %v10243_v43 = vld [vmem:[#allocation124_spill] sm:$0xff] }
 0x362   : > { %v3655_v48 = vmul.f32 %v4735_v36, %v10239_v8  ;;  %v3656_v41 = vmul.f32 %v4735_v36, %v10240_v38  ;;  %v3293_v25 = vpop.xlane.xlu0 %3292  ;;  %v4737_v22 = vpop.eup %4736  ;;  %v10244_v36 = vld [vmem:[#allocation31_spill] sm:$0xff] }
 0x363   : > { %4746 = vrcp.f32 %v3293_v25  ;;  %v3581_v44 = vmul.f32 %v4737_v22, %v7974_v11  ;;  %v3582_v53 = vmul.f32 %v4737_v22, %v10241_v47  ;;  %v3404_v7 = vpop.xlane.xlu1 %3403  ;;  %v10246_v22 = vld [vmem:[#allocation74_spill] sm:$0xff] }
 0x364   : > { %3807 = vst [vmem:[%s8612_s21 + $0x2a0] sm:$0xff] %v3655_v48  ;;  %3808 = vst [vmem:[%s8612_s21 + $0x2a8] sm:$0xff] %v3656_v41  ;;  %4748 = vrcp.f32 %v3404_v7  ;;  %v10245_v41 = vld [vmem:[#allocation77_spill] sm:$0xff]  ;;  %v10247_v7 = vld [vmem:[#allocation4_spill] sm:$0xff] }
 0x365   : > { %v4739_v27 = vpop.eup %4738  ;;  %3733 = vst [vmem:[%s8612_s21 + $0x50] sm:$0xff] %v3581_v44  ;;  %3734 = vst [vmem:[%s8612_s21 + $0x58] sm:$0xff] %v3582_v53 }
 0x366   : > { %v3583_v56 = vmul.f32 %v4739_v27, %v10242_v37  ;;  %v3584_v45 = vmul.f32 %v4739_v27, %v10243_v43  ;;  %v3407_v42 = vpop.xlane.xlu0 %3406  ;;  %v4741_v49 = vpop.eup %4740  ;;  %v10248_v43 = vld [vmem:[#allocation42_spill] sm:$0xff] }
 0x367   : > { %4750 = vrcp.f32 %v3407_v42  ;;  %v3657_v11 = vmul.f32 %v4741_v49, %v7996_v4  ;;  %v3658_v8 = vmul.f32 %v4741_v49, %v10244_v36  ;;  %v3296_v48 = vpop.xlane.xlu1 %3295  ;;  %v10249_v42 = vld [vmem:[#allocation81_spill] sm:$0xff] }
 0x368   : > { %3735 = vst [vmem:[%s8612_s21 + $0x60] sm:$0xff] %v3583_v56  ;;  %3736 = vst [vmem:[%s8612_s21 + $0x68] sm:$0xff] %v3584_v45  ;;  %4752 = vrcp.f32 %v3296_v48 }
 0x369   : > { %v4743_v38 = vpop.eup %4742  ;;  %3809 = vst [vmem:[%s8612_s21 + $0x2b0] sm:$0xff] %v3657_v11  ;;  %3810 = vst [vmem:[%s8612_s21 + $0x2b8] sm:$0xff] %v3658_v8  ;;  %v10250_v8 = vld [vmem:[#allocation82_spill] sm:$0xff] }
 0x36a   : > { %v3659_v25 = vmul.f32 %v4743_v38, %v10245_v41  ;;  %v3660_v44 = vmul.f32 %v4743_v38, %v10246_v22  ;;  %v3299_v47 = vpop.xlane.xlu0 %3298  ;;  %v4745_v53 = vpop.eup %4744 }
 0x36b   : > { %4754 = vrcp.f32 %v3299_v47  ;;  %v3585_v4 = vmul.f32 %v4745_v53, %v8020_v51  ;;  %v3586_v27 = vmul.f32 %v4745_v53, %v10247_v7  ;;  %v3410_v37 = vpop.xlane.xlu1 %3409 }
 0x36c   : > { %3811 = vst [vmem:[%s8612_s21 + $0x2c0] sm:$0xff] %v3659_v25  ;;  %3812 = vst [vmem:[%s8612_s21 + $0x2c8] sm:$0xff] %v3660_v44  ;;  %4756 = vrcp.f32 %v3410_v37  ;;  %v10251_v25 = vld [vmem:[#allocation86_spill] sm:$0xff]  ;;  %v10252_v44 = vld [vmem:[#allocation87_spill] sm:$0xff] }
 0x36d   : > { %v4747_v56 = vpop.eup %4746  ;;  %3737 = vst [vmem:[%s8612_s21 + $0x70] sm:$0xff] %v3585_v4  ;;  %3738 = vst [vmem:[%s8612_s21 + $0x78] sm:$0xff] %v3586_v27  ;;  %v10254_v27 = vld [vmem:[#allocation147_spill] sm:$0xff] }
 0x36e   : > { %v3587_v45 = vmul.f32 %v4747_v56, %v10248_v43  ;;  %v3588_v49 = vmul.f32 %v4747_v56, %v10249_v42  ;;  %v3413_v11 = vpop.xlane.xlu0 %3412  ;;  %v4749_v36 = vpop.eup %4748 }
 0x36f   : > { %4758 = vrcp.f32 %v3413_v11  ;;  %v3661_v51 = vmul.f32 %v4749_v36, %v8058_v40  ;;  %v3662_v48 = vmul.f32 %v4749_v36, %v10250_v8  ;;  %v3302_v38 = vpop.xlane.xlu1 %3301  ;;  %v10253_v40 = vld [vmem:[#allocation105_spill] sm:$0xff] }
 0x370   : > { %3739 = vst [vmem:[%s8612_s21 + $0x80] sm:$0xff] %v3587_v45  ;;  %3740 = vst [vmem:[%s8612_s21 + $0x88] sm:$0xff] %v3588_v49  ;;  %4760 = vrcp.f32 %v3302_v38  ;;  %v10255_v45 = vld [vmem:[#allocation156_spill] sm:$0xff]  ;;  %v10256_v49 = vld [vmem:[#allocation47_spill] sm:$0xff] }
 0x371   : > { %v4751_v41 = vpop.eup %4750  ;;  %3813 = vst [vmem:[%s8612_s21 + $0x2d0] sm:$0xff] %v3661_v51  ;;  %3814 = vst [vmem:[%s8612_s21 + $0x2d8] sm:$0xff] %v3662_v48  ;;  %v10257_v48 = vld [vmem:[#allocation34_spill] sm:$0xff] }
 0x372   : > { %v3663_v22 = vmul.f32 %v4751_v41, %v10251_v25  ;;  %v3664_v47 = vmul.f32 %v4751_v41, %v10252_v44  ;;  %v3305_v53 = vpop.xlane.xlu0 %3304  ;;  %v4753_v4 = vpop.eup %4752 }
 0x373   : > { %4762 = vrcp.f32 %v3305_v53  ;;  %v3589_v7 = vmul.f32 %v4753_v4, %v10253_v40  ;;  %v3590_v37 = vmul.f32 %v4753_v4, %v10254_v27  ;;  %v3416_v56 = vpop.xlane.xlu1 %3415 }
 0x374   : > { %3815 = vst [vmem:[%s8612_s21 + $0x2e0] sm:$0xff] %v3663_v22  ;;  %3816 = vst [vmem:[%s8612_s21 + $0x2e8] sm:$0xff] %v3664_v47  ;;  %4764 = vrcp.f32 %v3416_v56  ;;  %v10258_v22 = vld [vmem:[#allocation12_spill] sm:$0xff]  ;;  %v10259_v47 = vld [vmem:[#allocation14_spill] sm:$0xff] }
 0x375   : > { %v4755_v43 = vpop.eup %4754  ;;  %3741 = vst [vmem:[%s8612_s21 + $0x90] sm:$0xff] %v3589_v7  ;;  %3742 = vst [vmem:[%s8612_s21 + $0x98] sm:$0xff] %v3590_v37  ;;  %v10260_v7 = vld [vmem:[#allocation65_spill] sm:$0xff] }
 0x376   : > { %v3591_v42 = vmul.f32 %v4755_v43, %v10255_v45  ;;  %v3592_v11 = vmul.f32 %v4755_v43, %v10256_v49  ;;  %v3419_v36 = vpop.xlane.xlu0 %3418  ;;  %v4757_v51 = vpop.eup %4756  ;;  %v10261_v43 = vld [vmem:[#allocation96_spill] sm:$0xff] }
 0x377   : > { %4766 = vrcp.f32 %v3419_v36  ;;  %v3665_v8 = vmul.f32 %v4757_v51, %v8104_v50  ;;  %v3666_v38 = vmul.f32 %v4757_v51, %v10257_v48  ;;  %v3308_v41 = vpop.xlane.xlu1 %3307 }
 0x378   : > { %3743 = vst [vmem:[%s8612_s21 + $0xa0] sm:$0xff] %v3591_v42  ;;  %3744 = vst [vmem:[%s8612_s21 + $0xa8] sm:$0xff] %v3592_v11  ;;  %4768 = vrcp.f32 %v3308_v41  ;;  %v10262_v42 = vld [vmem:[#allocation97_spill] sm:$0xff] }
 0x379   : > { %v4759_v25 = vpop.eup %4758  ;;  %3817 = vst [vmem:[%s8612_s21 + $0x2f0] sm:$0xff] %v3665_v8  ;;  %3818 = vst [vmem:[%s8612_s21 + $0x2f8] sm:$0xff] %v3666_v38  ;;  %v10264_v8 = vld [vmem:[#allocation98_spill] sm:$0xff] }
 0x37a   : > { %v3667_v44 = vmul.f32 %v4759_v25, %v10258_v22  ;;  %v3668_v53 = vmul.f32 %v4759_v25, %v10259_v47  ;;  %v3311_v4 = vpop.xlane.xlu0 %3310  ;;  %v4761_v40 = vpop.eup %4760  ;;  %v10265_v25 = vld [vmem:[#allocation99_spill] sm:$0xff] }
 0x37b   : > { %4770 = vrcp.f32 %v3311_v4  ;;  %v3593_v50 = vmul.f32 %v4761_v40, %v8126_v59  ;;  %v3594_v27 = vmul.f32 %v4761_v40, %v10260_v7  ;;  %v3422_v37 = vpop.xlane.xlu1 %3421  ;;  %v10263_v59 = vld [vmem:[#allocation75_spill] sm:$0xff] }
 0x37c   : > { %3819 = vst [vmem:[%s8612_s21 + $0x300] sm:$0xff] %v3667_v44  ;;  %3820 = vst [vmem:[%s8612_s21 + $0x308] sm:$0xff] %v3668_v53  ;;  %4772 = vrcp.f32 %v3422_v37  ;;  %v10266_v44 = vld [vmem:[#allocation55_spill] sm:$0xff] }
 0x37d   : > { %v4763_v56 = vpop.eup %4762  ;;  %3745 = vst [vmem:[%s8612_s21 + $0xb0] sm:$0xff] %v3593_v50  ;;  %3746 = vst [vmem:[%s8612_s21 + $0xb8] sm:$0xff] %v3594_v27  ;;  %v10267_v50 = vld [vmem:[#allocation155_spill] sm:$0xff] }
 0x37e   : > { %v3595_v45 = vmul.f32 %v4763_v56, %v10261_v43  ;;  %v3596_v49 = vmul.f32 %v4763_v56, %v10262_v42  ;;  %v3425_v11 = vpop.xlane.xlu0 %3424  ;;  %v4765_v36 = vpop.eup %4764  ;;  %v10268_v56 = vld [vmem:[#allocation100_spill] sm:$0xff] }
 0x37f   : > { %4774 = vrcp.f32 %v3425_v11  ;;  %v3669_v51 = vmul.f32 %v4765_v36, %v10263_v59  ;;  %v3670_v48 = vmul.f32 %v4765_v36, %v10264_v8  ;;  %v3314_v38 = vpop.xlane.xlu1 %3313  ;;  %v10270_v36 = vld [vmem:[#allocation73_spill] sm:$0xff] }
 0x380   : > { %3747 = vst [vmem:[%s8612_s21 + $0xc0] sm:$0xff] %v3595_v45  ;;  %3748 = vst [vmem:[%s8612_s21 + $0xc8] sm:$0xff] %v3596_v49  ;;  %4776 = vrcp.f32 %v3314_v38  ;;  %v10269_v45 = vld [vmem:[#allocation101_spill] sm:$0xff] }
 0x381   : > { %v4767_v41 = vpop.eup %4766  ;;  %3821 = vst [vmem:[%s8612_s21 + $0x310] sm:$0xff] %v3669_v51  ;;  %3822 = vst [vmem:[%s8612_s21 + $0x318] sm:$0xff] %v3670_v48  ;;  %v10271_v48 = vld [vmem:[#allocation20_spill] sm:$0xff] }
 0x382   : > { %v3671_v22 = vmul.f32 %v4767_v41, %v10265_v25  ;;  %v3672_v47 = vmul.f32 %v4767_v41, %v10266_v44  ;;  %v3317_v53 = vpop.xlane.xlu0 %3316  ;;  %v4769_v4 = vpop.eup %4768  ;;  %v10272_v41 = vld [vmem:[#allocation108_spill] sm:$0xff] }
 0x383   : > { %4778 = vrcp.f32 %v3317_v53  ;;  %v3597_v40 = vmul.f32 %v4769_v4, %v8172_v21  ;;  %v3598_v7 = vmul.f32 %v4769_v4, %v10267_v50  ;;  %v3428_v27 = vpop.xlane.xlu1 %3427  ;;  %v10274_v53 = vld [vmem:[#allocation22_spill] sm:$0xff] }
 0x384   : > { %3823 = vst [vmem:[%s8612_s21 + $0x320] sm:$0xff] %v3671_v22  ;;  %3824 = vst [vmem:[%s8612_s21 + $0x328] sm:$0xff] %v3672_v47  ;;  %4780 = vrcp.f32 %v3428_v27 }
 0x385   : > { %v4771_v37 = vpop.eup %4770  ;;  %3749 = vst [vmem:[%s8612_s21 + $0xd0] sm:$0xff] %v3597_v40  ;;  %3750 = vst [vmem:[%s8612_s21 + $0xd8] sm:$0xff] %v3598_v7  ;;  %v10275_v7 = vld [vmem:[#allocation110_spill] sm:$0xff] }
 0x386   : > { %v3599_v43 = vmul.f32 %v4771_v37, %v10268_v56  ;;  %v3600_v42 = vmul.f32 %v4771_v37, %v10269_v45  ;;  %v3431_v49 = vpop.xlane.xlu0 %3430  ;;  %v4773_v11 = vpop.eup %4772  ;;  %v10276_v37 = vld [vmem:[#allocation112_spill] sm:$0xff] }
 0x387   : > { %4782 = vrcp.f32 %v3431_v49  ;;  %v3673_v21 = vmul.f32 %v4773_v11, %v8194_v32  ;;  %v3674_v59 = vmul.f32 %v4773_v11, %v10270_v36  ;;  %v3320_v51 = vpop.xlane.xlu1 %3319  ;;  %v10273_v32 = vld [vmem:[#allocation109_spill] sm:$0xff]  ;;  %v10277_v49 = vld [vmem:[#allocation43_spill] sm:$0xff] }
 0x388   : > { %3751 = vst [vmem:[%s8612_s21 + $0xe0] sm:$0xff] %v3599_v43  ;;  %3752 = vst [vmem:[%s8612_s21 + $0xe8] sm:$0xff] %v3600_v42  ;;  %4784 = vrcp.f32 %v3320_v51 }
 0x389   : > { %v4775_v8 = vpop.eup %4774  ;;  %3825 = vst [vmem:[%s8612_s21 + $0x330] sm:$0xff] %v3673_v21  ;;  %3826 = vst [vmem:[%s8612_s21 + $0x338] sm:$0xff] %v3674_v59  ;;  %v10278_v59 = vld [vmem:[#allocation111_spill] sm:$0xff] }
 0x38a   : > { %v3675_v38 = vmul.f32 %v4775_v8, %v10271_v48  ;;  %v3676_v25 = vmul.f32 %v4775_v8, %v10272_v41  ;;  %v3323_v22 = vpop.xlane.xlu0 %3322  ;;  %v4777_v44 = vpop.eup %4776  ;;  %v10279_v8 = vld [vmem:[#allocation69_spill] sm:$0xff] }
 0x38b   : > { %4786 = vrcp.f32 %v3323_v22  ;;  %v3601_v47 = vmul.f32 %v4777_v44, %v10273_v32  ;;  %v3602_v4 = vmul.f32 %v4777_v44, %v10274_v53  ;;  %v3434_v40 = vpop.xlane.xlu1 %3433 }
 0x38c   : > { %3827 = vst [vmem:[%s8612_s21 + $0x340] sm:$0xff] %v3675_v38  ;;  %3828 = vst [vmem:[%s8612_s21 + $0x348] sm:$0xff] %v3676_v25  ;;  %4788 = vrcp.f32 %v3434_v40  ;;  %v10280_v25 = vld [vmem:[#allocation117_spill] sm:$0xff] }
 0x38d   : > { %v4779_v50 = vpop.eup %4778  ;;  %3753 = vst [vmem:[%s8612_s21 + $0xf0] sm:$0xff] %v3601_v47  ;;  %3754 = vst [vmem:[%s8612_s21 + $0xf8] sm:$0xff] %v3602_v4  ;;  %v10281_v47 = vld [vmem:[#allocation118_spill] sm:$0xff]  ;;  %v10282_v4 = vld [vmem:[#allocation36_spill] sm:$0xff] }
 0x38e   : > { %v3603_v27 = vmul.f32 %v4779_v50, %v10275_v7  ;;  %v3604_v56 = vmul.f32 %v4779_v50, %v10276_v37  ;;  %v3437_v43 = vpop.xlane.xlu0 %3436  ;;  %v4781_v45 = vpop.eup %4780  ;;  %v10284_v37 = vld [vmem:[#allocation71_spill] sm:$0xff] }
 0x38f   : > { %4790 = vrcp.f32 %v3437_v43  ;;  %v3677_v42 = vmul.f32 %v4781_v45, %v8240_v10  ;;  %v3678_v11 = vmul.f32 %v4781_v45, %v10277_v49  ;;  %v3326_v21 = vpop.xlane.xlu1 %3325 }
 0x390   : > { %3755 = vst [vmem:[%s8612_s21 + $0x100] sm:$0xff] %v3603_v27  ;;  %3756 = vst [vmem:[%s8612_s21 + $0x108] sm:$0xff] %v3604_v56  ;;  %4792 = vrcp.f32 %v3326_v21 }
 0x391   : > { %v4783_v36 = vpop.eup %4782  ;;  %3829 = vst [vmem:[%s8612_s21 + $0x350] sm:$0xff] %v3677_v42  ;;  %3830 = vst [vmem:[%s8612_s21 + $0x358] sm:$0xff] %v3678_v11  ;;  %v10285_v42 = vld [vmem:[#allocation119_spill] sm:$0xff]  ;;  %v10286_v11 = vld [vmem:[#allocation120_spill] sm:$0xff] }
 0x392   : > { %v3679_v51 = vmul.f32 %v4783_v36, %v10278_v59  ;;  %v3680_v48 = vmul.f32 %v4783_v36, %v10279_v8  ;;  %v3329_v38 = vpop.xlane.xlu0 %3328  ;;  %v4785_v41 = vpop.eup %4784 }
 0x393   : > { %4794 = vrcp.f32 %v3329_v38  ;;  %v3605_v10 = vmul.f32 %v4785_v41, %v8262_v62  ;;  %v3606_v22 = vmul.f32 %v4785_v41, %v10280_v25  ;;  %v3440_v44 = vpop.xlane.xlu1 %3439  ;;  %v10283_v62 = vld [vmem:[#allocation121_spill] sm:$0xff]  ;;  %v10289_v25 = vld [vmem:[#allocation80_spill] sm:$0xff] }
 0x394   : > { %3831 = vst [vmem:[%s8612_s21 + $0x360] sm:$0xff] %v3679_v51  ;;  %3832 = vst [vmem:[%s8612_s21 + $0x368] sm:$0xff] %v3680_v48  ;;  %4796 = vrcp.f32 %v3440_v44  ;;  %v10287_v51 = vld [vmem:[#allocation125_spill] sm:$0xff]  ;;  %v10288_v48 = vld [vmem:[#allocation126_spill] sm:$0xff] }
 0x395   : > { %v4787_v32 = vpop.eup %4786  ;;  %3757 = vst [vmem:[%s8612_s21 + $0x110] sm:$0xff] %v3605_v10  ;;  %3758 = vst [vmem:[%s8612_s21 + $0x118] sm:$0xff] %v3606_v22  ;;  %v10290_v44 = vld [vmem:[#allocation63_spill] sm:$0xff] }
 0x396   : > { %v3607_v53 = vmul.f32 %v4787_v32, %v10281_v47  ;;  %v3608_v40 = vmul.f32 %v4787_v32, %v10282_v4  ;;  %v3443_v50 = vpop.xlane.xlu0 %3442  ;;  %v4789_v7 = vpop.eup %4788 }
 0x397   : > { %4798 = vrcp.f32 %v3443_v50  ;;  %v3681_v27 = vmul.f32 %v4789_v7, %v10283_v62  ;;  %v3682_v56 = vmul.f32 %v4789_v7, %v10284_v37  ;;  %v3332_v43 = vpop.xlane.xlu1 %3331 }
 0x398   : > { %3759 = vst [vmem:[%s8612_s21 + $0x120] sm:$0xff] %v3607_v53  ;;  %3760 = vst [vmem:[%s8612_s21 + $0x128] sm:$0xff] %v3608_v40  ;;  %4800 = vrcp.f32 %v3332_v43  ;;  %v10291_v40 = vld [vmem:[#allocation129_spill] sm:$0xff] }
 0x399   : > { %v4791_v45 = vpop.eup %4790  ;;  %3833 = vst [vmem:[%s8612_s21 + $0x370] sm:$0xff] %v3681_v27  ;;  %3834 = vst [vmem:[%s8612_s21 + $0x378] sm:$0xff] %v3682_v56  ;;  %v10292_v27 = vld [vmem:[#allocation127_spill] sm:$0xff]  ;;  %v10293_v56 = vld [vmem:[#allocation24_spill] sm:$0xff] }
 0x39a   : > { %v3683_v49 = vmul.f32 %v4791_v45, %v10285_v42  ;;  %v3684_v21 = vmul.f32 %v4791_v45, %v10286_v11  ;;  %v3335_v36 = vpop.xlane.xlu0 %3334  ;;  %v4793_v59 = vpop.eup %4792  ;;  %v10295_v11 = vld [vmem:[#allocation130_spill] sm:$0xff] }
 0x39b   : > { %4802 = vrcp.f32 %v3335_v36  ;;  %v3609_v8 = vmul.f32 %v4793_v59, %v10287_v51  ;;  %v3610_v38 = vmul.f32 %v4793_v59, %v10288_v48  ;;  %v3446_v41 = vpop.xlane.xlu1 %3445  ;;  %v10296_v51 = vld [vmem:[#allocation131_spill] sm:$0xff]  ;;  %v10297_v48 = vld [vmem:[#allocation6_spill] sm:$0xff] }
 0x39c   : > { %3835 = vst [vmem:[%s8612_s21 + $0x380] sm:$0xff] %v3683_v49  ;;  %3836 = vst [vmem:[%s8612_s21 + $0x388] sm:$0xff] %v3684_v21  ;;  %4804 = vrcp.f32 %v3446_v41 }
 0x39d   : > { %v4795_v10 = vpop.eup %4794  ;;  %3761 = vst [vmem:[%s8612_s21 + $0x130] sm:$0xff] %v3609_v8  ;;  %3762 = vst [vmem:[%s8612_s21 + $0x138] sm:$0xff] %v3610_v38 }
 0x39e   : > { %v3611_v22 = vmul.f32 %v4795_v10, %v10289_v25  ;;  %v3612_v32 = vmul.f32 %v4795_v10, %v10290_v44  ;;  %v3449_v47 = vpop.xlane.xlu0 %3448  ;;  %v4797_v53 = vpop.eup %4796 }
 0x39f   : > { %4806 = vrcp.f32 %v3449_v47  ;;  %v3685_v4 = vmul.f32 %v4797_v53, %v8328_v55  ;;  %v3686_v50 = vmul.f32 %v4797_v53, %v10291_v40  ;;  %v3338_v7 = vpop.xlane.xlu1 %3337  ;;  %v10294_v55 = vld [vmem:[#allocation128_spill] sm:$0xff]  ;;  %v10298_v53 = vld [vmem:[#allocation89_spill] sm:$0xff] }
 0x3a0   : > { %3763 = vst [vmem:[%s8612_s21 + $0x140] sm:$0xff] %v3611_v22  ;;  %3764 = vst [vmem:[%s8612_s21 + $0x148] sm:$0xff] %v3612_v32  ;;  %4808 = vrcp.f32 %v3338_v7 }
 0x3a1   : > { %v4799_v62 = vpop.eup %4798  ;;  %3837 = vst [vmem:[%s8612_s21 + $0x390] sm:$0xff] %v3685_v4  ;;  %3838 = vst [vmem:[%s8612_s21 + $0x398] sm:$0xff] %v3686_v50 }
 0x3a2   : > { %v3687_v37 = vmul.f32 %v4799_v62, %v10292_v27  ;;  %v3688_v43 = vmul.f32 %v4799_v62, %v10293_v56  ;;  %v3341_v45 = vpop.xlane.xlu0 %3340  ;;  %v4801_v42 = vpop.eup %4800 }
 0x3a3   : > { %4810 = vrcp.f32 %v3341_v45  ;;  %v3613_v49 = vmul.f32 %v4801_v42, %v10294_v55  ;;  %v3614_v21 = vmul.f32 %v4801_v42, %v10295_v11  ;;  %v3452_v36 = vpop.xlane.xlu1 %3451 }
 0x3a4   : > { %3839 = vst [vmem:[%s8612_s21 + $0x3a0] sm:$0xff] %v3687_v37  ;;  %3840 = vst [vmem:[%s8612_s21 + $0x3a8] sm:$0xff] %v3688_v43  ;;  %4812 = vrcp.f32 %v3452_v36 }
 0x3a5   : > { %v4803_v59 = vpop.eup %4802  ;;  %3765 = vst [vmem:[%s8612_s21 + $0x150] sm:$0xff] %v3613_v49  ;;  %3766 = vst [vmem:[%s8612_s21 + $0x158] sm:$0xff] %v3614_v21 }
 0x3a6   : > { %v3615_v8 = vmul.f32 %v4803_v59, %v10296_v51  ;;  %v3616_v38 = vmul.f32 %v4803_v59, %v10297_v48  ;;  %v3455_v41 = vpop.xlane.xlu0 %3454  ;;  %v4805_v10 = vpop.eup %4804  ;;  %v10300_v59 = vld [vmem:[#allocation132_spill] sm:$0xff] }
 0x3a7   : > { %4814 = vrcp.f32 %v3455_v41  ;;  %v3689_v25 = vmul.f32 %v4805_v10, %v8370_v9  ;;  %v3690_v22 = vmul.f32 %v4805_v10, %v8373_v34  ;;  %v3344_v44 = vpop.xlane.xlu1 %3343 }
 0x3a8   : > { %3767 = vst [vmem:[%s8612_s21 + $0x160] sm:$0xff] %v3615_v8  ;;  %3768 = vst [vmem:[%s8612_s21 + $0x168] sm:$0xff] %v3616_v38  ;;  %4816 = vrcp.f32 %v3344_v44  ;;  %v10302_v38 = vld [vmem:[#allocation133_spill] sm:$0xff] }
 0x3a9   : > { %v4807_v32 = vpop.eup %4806  ;;  %3841 = vst [vmem:[%s8612_s21 + $0x3b0] sm:$0xff] %v3689_v25  ;;  %3842 = vst [vmem:[%s8612_s21 + $0x3b8] sm:$0xff] %v3690_v22  ;;  %v10303_v22 = vld [vmem:[#allocation140_spill] sm:$0xff] }
 0x3aa   : > { %v3691_v47 = vmul.f32 %v4807_v32, %v8376_v58  ;;  %v3692_v4 = vmul.f32 %v4807_v32, %v10298_v53  ;;  %v3347_v40 = vpop.xlane.xlu0 %3346  ;;  %v4809_v50 = vpop.eup %4808  ;;  %v10304_v32 = vld [vmem:[#allocation141_spill] sm:$0xff] }
 0x3ab   : > { %4818 = vrcp.f32 %v3347_v40  ;;  %v3617_v9 = vmul.f32 %v4809_v50, %v8388_v33  ;;  %v3618_v34 = vmul.f32 %v4809_v50, %v8393_v24  ;;  %v3458_v7 = vpop.xlane.xlu1 %3457  ;;  %v10305_v40 = vld [vmem:[#allocation95_spill] sm:$0xff] }
 0x3ac   : > { %3843 = vst [vmem:[%s8612_s21 + $0x3c0] sm:$0xff] %v3691_v47  ;;  %3844 = vst [vmem:[%s8612_s21 + $0x3c8] sm:$0xff] %v3692_v4  ;;  %4820 = vrcp.f32 %v3458_v7 }
 0x3ad   : > { %v4811_v62 = vpop.eup %4810  ;;  %3769 = vst [vmem:[%s8612_s21 + $0x170] sm:$0xff] %v3617_v9  ;;  %3770 = vst [vmem:[%s8612_s21 + $0x178] sm:$0xff] %v3618_v34  ;;  %v10306_v9 = vld [vmem:[#allocation93_spill] sm:$0xff] }
 0x3ae   : > { %v3619_v58 = vmul.f32 %v4811_v62, %v8396_v15  ;;  %v3620_v27 = vmul.f32 %v4811_v62, %v8402_v39  ;;  %v3461_v37 = vpop.xlane.xlu0 %3460  ;;  %v4813_v56 = vpop.eup %4812 }
 0x3af   : > { %4822 = vrcp.f32 %v3461_v37  ;;  %v3693_v24 = vmul.f32 %v4813_v56, %v8406_v54  ;;  %v3694_v33 = vmul.f32 %v4813_v56, %v8408_v12  ;;  %v3350_v43 = vpop.xlane.xlu1 %3349  ;;  %v10308_v37 = vld [vmem:[#allocation142_spill] sm:$0xff] }
 0x3b0   : > { %3771 = vst [vmem:[%s8612_s21 + $0x180] sm:$0xff] %v3619_v58  ;;  %3772 = vst [vmem:[%s8612_s21 + $0x188] sm:$0xff] %v3620_v27  ;;  %4824 = vrcp.f32 %v3350_v43  ;;  %v10307_v58 = vld [vmem:[#allocation144_spill] sm:$0xff]  ;;  %v10309_v43 = vld [vmem:[#allocation145_spill] sm:$0xff] }
 0x3b1   : > { %v4815_v45 = vpop.eup %4814  ;;  %3845 = vst [vmem:[%s8612_s21 + $0x3d0] sm:$0xff] %v3693_v24  ;;  %3846 = vst [vmem:[%s8612_s21 + $0x3d8] sm:$0xff] %v3694_v33 }
 0x3b2   : > { %v3695_v15 = vmul.f32 %v4815_v45, %v8412_v1  ;;  %v3696_v39 = vmul.f32 %v4815_v45, %v8419_v16  ;;  %v3353_v42 = vpop.xlane.xlu0 %3352  ;;  %v4817_v55 = vpop.eup %4816 }
 0x3b3   : > { %4826 = vrcp.f32 %v3353_v42  ;;  %v3621_v54 = vmul.f32 %v4817_v55, %v8422_v61  ;;  %v3622_v12 = vmul.f32 %v4817_v55, %v8426_v17  ;;  %v3464_v49 = vpop.xlane.xlu1 %3463  ;;  %v10299_v61 = vld [vmem:[#allocation134_spill] sm:$0xff] }
 0x3b4   : > { %3847 = vst [vmem:[%s8612_s21 + $0x3e0] sm:$0xff] %v3695_v15  ;;  %3848 = vst [vmem:[%s8612_s21 + $0x3e8] sm:$0xff] %v3696_v39  ;;  %4828 = vrcp.f32 %v3464_v49  ;;  %v10310_v15 = vld [vmem:[#allocation143_spill] sm:$0xff] }
 0x3b5   : > { %v4819_v11 = vpop.eup %4818  ;;  %3773 = vst [vmem:[%s8612_s21 + $0x190] sm:$0xff] %v3621_v54  ;;  %3774 = vst [vmem:[%s8612_s21 + $0x198] sm:$0xff] %v3622_v12 }
 0x3b6   : > { %v3623_v1 = vmul.f32 %v4819_v11, %v8430_v63  ;;  %v3624_v16 = vmul.f32 %v4819_v11, %v8435_v52  ;;  %v3467_v21 = vpop.xlane.xlu0 %3466  ;;  %v4821_v36 = vpop.eup %4820  ;;  %v10301_v63 = vld [vmem:[#allocation135_spill] sm:$0xff] }
 0x3b7   : > { %4830 = vrcp.f32 %v3467_v21  ;;  %v3697_v17 = vmul.f32 %v4821_v36, %v10299_v61  ;;  %v3698_v51 = vmul.f32 %v4821_v36, %v10300_v59  ;;  %v3356_v8 = vpop.xlane.xlu1 %3355 }
 0x3b8   : > { %3775 = vst [vmem:[%s8612_s21 + $0x1a0] sm:$0xff] %v3623_v1  ;;  %3776 = vst [vmem:[%s8612_s21 + $0x1a8] sm:$0xff] %v3624_v16  ;;  %4832 = vrcp.f32 %v3356_v8 }
 0x3b9   : > { %v4823_v48 = vpop.eup %4822  ;;  %3849 = vst [vmem:[%s8612_s21 + $0x3f0] sm:$0xff] %v3697_v17  ;;  %3850 = vst [vmem:[%s8612_s21 + $0x3f8] sm:$0xff] %v3698_v51 }
 0x3ba   : > { %v3699_v52 = vmul.f32 %v4823_v48, %v10301_v63  ;;  %v3700_v41 = vmul.f32 %v4823_v48, %v10302_v38  ;;  %v3359_v10 = vpop.xlane.xlu0 %3358  ;;  %v4825_v25 = vpop.eup %4824  ;;  %v10313_v48 = vld [vmem:[#allocation107_spill] sm:$0xff] }
 0x3bb   : > { %4834 = vrcp.f32 %v3359_v10  ;;  %v3625_v44 = vmul.f32 %v4825_v25, %v10303_v22  ;;  %v3626_v47 = vmul.f32 %v4825_v25, %v10304_v32  ;;  %v3470_v53 = vpop.xlane.xlu1 %3469  ;;  %v10315_v10 = vld [vmem:[#allocation153_spill] sm:$0xff]  ;;  %v10316_v32 = vld [vmem:[#allocation151_spill] sm:$0xff] }
 0x3bc   : > { %3851 = vst [vmem:[%s8612_s21 + $0x400] sm:$0xff] %v3699_v52  ;;  %3852 = vst [vmem:[%s8612_s21 + $0x408] sm:$0xff] %v3700_v41  ;;  %4836 = vrcp.f32 %v3470_v53  ;;  %v10317_v53 = vld [vmem:[#allocation154_spill] sm:$0xff] }
 0x3bd   : > { %v4827_v4 = vpop.eup %4826  ;;  %3777 = vst [vmem:[%s8612_s21 + $0x1b0] sm:$0xff] %v3625_v44  ;;  %3778 = vst [vmem:[%s8612_s21 + $0x1b8] sm:$0xff] %v3626_v47 }
 0x3be   : > { %v3627_v50 = vmul.f32 %v4827_v4, %v10305_v40  ;;  %v3628_v34 = vmul.f32 %v4827_v4, %v10306_v9  ;;  %v3473_v7 = vpop.xlane.xlu0 %3472  ;;  %v4829_v62 = vpop.eup %4828  ;;  %v10318_v9 = vld [vmem:[#allocation152_spill] sm:$0xff] }
 0x3bf   : > { %4838 = vrcp.f32 %v3473_v7  ;;  %v3701_v27 = vmul.f32 %v4829_v62, %v10307_v58  ;;  %v3702_v56 = vmul.f32 %v4829_v62, %v10308_v37  ;;  %v3362_v24 = vpop.xlane.xlu1 %3361  ;;  %v10319_v7 = vld [vmem:[#allocation157_spill] sm:$0xff]  ;;  %v10320_v37 = vld [vmem:[#allocation158_spill] sm:$0xff] }
 0x3c0   : > { %3779 = vst [vmem:[%s8612_s21 + $0x1c0] sm:$0xff] %v3627_v50  ;;  %3780 = vst [vmem:[%s8612_s21 + $0x1c8] sm:$0xff] %v3628_v34  ;;  %4840 = vrcp.f32 %v3362_v24 }
 0x3c1   : > { %v4831_v33 = vpop.eup %4830  ;;  %3853 = vst [vmem:[%s8612_s21 + $0x410] sm:$0xff] %v3701_v27  ;;  %3854 = vst [vmem:[%s8612_s21 + $0x418] sm:$0xff] %v3702_v56 }
 0x3c2   : > { %v3703_v45 = vmul.f32 %v4831_v33, %v10309_v43  ;;  %v3704_v39 = vmul.f32 %v4831_v33, %v10310_v15  ;;  %v3365_v42 = vpop.xlane.xlu0 %3364  ;;  %v4833_v55 = vpop.eup %4832 }
 0x3c3   : > { %4842 = vrcp.f32 %v3365_v42  ;;  %v3629_v54 = vmul.f32 %v4833_v55, %v8486_v29  ;;  %v3630_v12 = vmul.f32 %v4833_v55, %v8490_v13  ;;  %v3476_v49 = vpop.xlane.xlu1 %3475 }
 0x3c4   : > { %3855 = vst [vmem:[%s8612_s21 + $0x420] sm:$0xff] %v3703_v45  ;;  %3856 = vst [vmem:[%s8612_s21 + $0x428] sm:$0xff] %v3704_v39  ;;  %4844 = vrcp.f32 %v3476_v49  ;;  %v10321_v45 = vld [vmem:[#allocation116_spill] sm:$0xff] }
 0x3c5   : > { %v4835_v11 = vpop.eup %4834  ;;  %3781 = vst [vmem:[%s8612_s21 + $0x1d0] sm:$0xff] %v3629_v54  ;;  %3782 = vst [vmem:[%s8612_s21 + $0x1d8] sm:$0xff] %v3630_v12 }
 0x3c6   : > { %v3631_v1 = vmul.f32 %v4835_v11, %v8494_v19  ;;  %v3632_v16 = vmul.f32 %v4835_v11, %v8499_v6  ;;  %v3479_v21 = vpop.xlane.xlu0 %3478  ;;  %v4837_v36 = vpop.eup %4836  ;;  %v10311_v6 = vld [vmem:[#allocation149_spill] sm:$0xff] }
 0x3c7   : > { %4846 = vrcp.f32 %v3479_v21  ;;  %v3705_v29 = vmul.f32 %v4837_v36, %v8502_v46  ;;  %v3706_v13 = vmul.f32 %v4837_v36, %v8504_v20  ;;  %v3368_v61 = vpop.xlane.xlu1 %3367  ;;  %v10312_v46 = vld [vmem:[#allocation150_spill] sm:$0xff] }
 0x3c8   : > { %3783 = vst [vmem:[%s8612_s21 + $0x1e0] sm:$0xff] %v3631_v1  ;;  %3784 = vst [vmem:[%s8612_s21 + $0x1e8] sm:$0xff] %v3632_v16  ;;  %4848 = vrcp.f32 %v3368_v61  ;;  %v10323_v61 = vld [vmem:[#allocation161_spill] sm:$0xff] }
 0x3c9   : > { %v4839_v17 = vpop.eup %4838  ;;  %3857 = vst [vmem:[%s8612_s21 + $0x430] sm:$0xff] %v3705_v29  ;;  %3858 = vst [vmem:[%s8612_s21 + $0x438] sm:$0xff] %v3706_v13  ;;  %v10322_v29 = vld [vmem:[#allocation49_spill] sm:$0xff] }
 0x3ca   : > { %v3707_v19 = vmul.f32 %v4839_v17, %v8508_v14  ;;  %v3708_v59 = vmul.f32 %v4839_v17, %v10311_v6  ;;  %v3371_v51 = vpop.xlane.xlu0 %3370  ;;  %v4841_v8 = vpop.eup %4840  ;;  %v10314_v14 = vld [vmem:[#allocation32_spill] sm:$0xff] }
 0x3cb   : > { %4850 = vrcp.f32 %v3371_v51  ;;  %v3633_v20 = vmul.f32 %v4841_v8, %v10312_v46  ;;  %v3634_v63 = vmul.f32 %v4841_v8, %v10313_v48  ;;  %v3482_v52 = vpop.xlane.xlu1 %3481  ;;  %v10325_v51 = vld [vmem:[#allocation162_spill] sm:$0xff]  ;;  %v10326_v46 = vld [vmem:[#allocation160_spill] sm:$0xff] }
 0x3cc   : > { %3859 = vst [vmem:[%s8612_s21 + $0x440] sm:$0xff] %v3707_v19  ;;  %3860 = vst [vmem:[%s8612_s21 + $0x448] sm:$0xff] %v3708_v59  ;;  %4852 = vrcp.f32 %v3482_v52 }
 0x3cd   : > { %v4843_v38 = vpop.eup %4842  ;;  %3785 = vst [vmem:[%s8612_s21 + $0x1f0] sm:$0xff] %v3633_v20  ;;  %3786 = vst [vmem:[%s8612_s21 + $0x1f8] sm:$0xff] %v3634_v63 }
 0x3ce   : > { %v3635_v41 = vmul.f32 %v4843_v38, %v10314_v14  ;;  %v3636_v25 = vmul.f32 %v4843_v38, %v10315_v10  ;;  %v3485_v22 = vpop.xlane.xlu0 %3484  ;;  %v4845_v44 = vpop.eup %4844 }
 0x3cf   : > { %4854 = vrcp.f32 %v3485_v22  ;;  %v3709_v47 = vmul.f32 %v4845_v44, %v10316_v32  ;;  %v3710_v4 = vmul.f32 %v4845_v44, %v10317_v53  ;;  %v3374_v40 = vpop.xlane.xlu1 %3373 }
 0x3d0   : > { %3787 = vst [vmem:[%s8612_s21 + $0x200] sm:$0xff] %v3635_v41  ;;  %3788 = vst [vmem:[%s8612_s21 + $0x208] sm:$0xff] %v3636_v25  ;;  %4856 = vrcp.f32 %v3374_v40 }
 0x3d1   : > { %v4847_v50 = vpop.eup %4846  ;;  %3861 = vst [vmem:[%s8612_s21 + $0x450] sm:$0xff] %v3709_v47  ;;  %3862 = vst [vmem:[%s8612_s21 + $0x458] sm:$0xff] %v3710_v4 }
 0x3d2   : > { %v3711_v34 = vmul.f32 %v4847_v50, %v10318_v9  ;;  %v3712_v62 = vmul.f32 %v4847_v50, %v10319_v7  ;;  %v4849_v58 = vpop.eup %4848 }
 0x3d3   : > { %v3637_v27 = vmul.f32 %v4849_v58, %v8542_v3  ;;  %v3638_v56 = vmul.f32 %v4849_v58, %v10320_v37 }
 0x3d4   : > { %3863 = vst [vmem:[%s8612_s21 + $0x460] sm:$0xff] %v3711_v34  ;;  %3864 = vst [vmem:[%s8612_s21 + $0x468] sm:$0xff] %v3712_v62 }
 0x3d5   : > { %v4851_v24 = vpop.eup %4850  ;;  %v3488_v33 = vpop.xlane.xlu1 %3487  ;;  %3789 = vst [vmem:[%s8612_s21 + $0x210] sm:$0xff] %v3637_v27  ;;  %3790 = vst [vmem:[%s8612_s21 + $0x218] sm:$0xff] %v3638_v56 }
 0x3d6   : > { %v3639_v43 = vmul.f32 %v4851_v24, %v8546_v2  ;;  %v3640_v15 = vmul.f32 %v4851_v24, %v10321_v45  ;;  %4858 = vrcp.f32 %v3488_v33  ;;  %v4853_v39 = vpop.eup %4852 }
 0x3d7   : > { %v3377_v42 = vpop.xlane.xlu0 %3376  ;;  %v3713_v3 = vmul.f32 %v4853_v39, %v8556_v28  ;;  %v3714_v55 = vmul.f32 %v4853_v39, %v8558_v18 }
 0x3d8   : > { %3791 = vst [vmem:[%s8612_s21 + $0x220] sm:$0xff] %v3639_v43  ;;  %3792 = vst [vmem:[%s8612_s21 + $0x228] sm:$0xff] %v3640_v15  ;;  %4860 = vrcp.f32 %v3377_v42 }
 0x3d9   : > { %v4855_v54 = vpop.eup %4854  ;;  %v3380_v12 = vpop.xlane.xlu1 %3379  ;;  %3865 = vst [vmem:[%s8612_s21 + $0x470] sm:$0xff] %v3713_v3  ;;  %3866 = vst [vmem:[%s8612_s21 + $0x478] sm:$0xff] %v3714_v55 }
 0x3da   : > { %v3715_v2 = vmul.f32 %v4855_v54, %v8562_v57  ;;  %v3716_v49 = vmul.f32 %v4855_v54, %v8568_v5  ;;  %4862 = vrcp.f32 %v3380_v12  ;;  %v4857_v11 = vpop.eup %4856 }
 0x3db   : > { %v3641_v28 = vmul.f32 %v4857_v11, %v8572_v30  ;;  %v3642_v18 = vmul.f32 %v4857_v11, %v8578_v0 }
 0x3dc   : > { %3867 = vst [vmem:[%s8612_s21 + $0x480] sm:$0xff] %v3715_v2  ;;  %3868 = vst [vmem:[%s8612_s21 + $0x488] sm:$0xff] %v3716_v49 }
 0x3dd   : > { %3793 = vst [vmem:[%s8612_s21 + $0x230] sm:$0xff] %v3641_v28  ;;  %3794 = vst [vmem:[%s8612_s21 + $0x238] sm:$0xff] %v3642_v18 }
 0x3de   : > { %v3491_v1 = vpop.xlane.xlu0 %3490 }
 0x3df   : > { %4864 = vrcp.f32 %v3491_v1 }
 0x3e0   : > { %v4859_v57 = vpop.eup %4858 }
 0x3e1   : > { %v3717_v5 = vmul.f32 %v4859_v57, %v8584_v26  ;;  %v3718_v16 = vmul.f32 %v4859_v57, %v8586_v35  ;;  %v10324_v26 = vld [vmem:[#allocation159_spill] sm:$0xff] }
 0x3e2   : > { %v4861_v21 = vpop.eup %4860 }
 0x3e3   : > { %v3643_v36 = vmul.f32 %v4861_v21, %v8590_v60  ;;  %v3644_v30 = vmul.f32 %v4861_v21, %v10322_v29  ;;  %3869 = vst [vmem:[%s8612_s21 + $0x490] sm:$0xff] %v3717_v5  ;;  %3870 = vst [vmem:[%s8612_s21 + $0x498] sm:$0xff] %v3718_v16  ;;  %v3494_v13 = vpop.xlane.xlu1 %3493 }
 0x3e4   : > { %v4863_v0 = vpop.eup %4862  ;;  %4866 = vrcp.f32 %v3494_v13 }
 0x3e5   : > { %3795 = vst [vmem:[%s8612_s21 + $0x240] sm:$0xff] %v3643_v36  ;;  %3796 = vst [vmem:[%s8612_s21 + $0x248] sm:$0xff] %v3644_v30  ;;  %v3645_v17 = vmul.f32 %v4863_v0, %v10323_v61  ;;  %v3646_v19 = vmul.f32 %v4863_v0, %v10324_v26 }
 0x3e7   : > { %3797 = vst [vmem:[%s8612_s21 + $0x250] sm:$0xff] %v3645_v17  ;;  %3798 = vst [vmem:[%s8612_s21 + $0x258] sm:$0xff] %v3646_v19 }
 0x3e9   : > { %v4865_v35 = vpop.eup %4864 }
 0x3ea   : > { %v3719_v60 = vmul.f32 %v4865_v35, %v8605_v23  ;;  %v3720_v6 = vmul.f32 %v4865_v35, %v8607_v31 }
 0x3ec   : > { %3871 = vst [vmem:[%s8612_s21 + $0x4a0] sm:$0xff] %v3719_v60  ;;  %3872 = vst [vmem:[%s8612_s21 + $0x4a8] sm:$0xff] %v3720_v6 }
 0x3ee   : > { %v4867_v59 = vpop.eup %4866 }
 0x3ef   : > { %v3721_v8 = vmul.f32 %v4867_v59, %v10325_v51  ;;  %v3722_v20 = vmul.f32 %v4867_v59, %v10326_v46 }
 0x3f1   : > { %3873 = vst [vmem:[%s8612_s21 + $0x4b0] sm:$0xff] %v3721_v8  ;;  %3874 = vst [vmem:[%s8612_s21 + $0x4b8] sm:$0xff] %v3722_v20 }
 0x3f2 PF: > { %s13_s12 = sadd.s32 1, %s4874_s12  }
 0x3f3   : > { %p10_p4 = scmp.ge.s32.totalorder %s13_s12, 4  }
 0x3f5   :  { %12 = sbr.rel (!%p10_p4) target bundleno = 1 (0x1), region = 62 }

</bundles_post_ra>
